<compile_context>
chip_gen: v6e
topology: v6e:2x2x1
jax: 0.10.0
libtpu: 0.0.40
codegen_flags: <defaults>
</compile_context>

<pallas_src>
import functools
import math

import numpy as np
import jax
import jax.numpy as jnp
from jax.experimental import pallas as pl
from jax.experimental.pallas import tpu as pltpu

NA = 3                      # anchors per yolo layer
NC = 2                      # classes
NO = NC + 5                 # outputs per anchor
ANCHORS_NP = np.array([[10.0, 13.0], [16.0, 30.0], [33.0, 23.0]], dtype=np.float32)

H = W = 16                  # input spatial size
C_IN = 3
C0 = 16                     # conv0 output channels
C2 = 32                     # pointwise output channels
C4 = NA * NO                # detection-head channels (21)
H1 = W1 = H // 2            # after first maxpool  (8)
H2 = W2 = H1 // 2           # after second maxpool (4)


# ----------------------------- fused Pallas kernel -----------------------------

def _darknet_fused_kernel(x_ref, w0_ref, b0_ref, wdw_ref, bdw_ref,
                          wpw_ref, bpw_ref, w4_ref, b4_ref, dec_ref,
                          io_ref, p_ref,
                          xpad_ref, c0h_ref, p1pad_ref, c2h_ref,
                          *, stride):
    f32 = jnp.float32
    bblk = x_ref.shape[0]           # images in this grid step
    m0 = bblk * H * W               # conv0 matmul rows
    m1 = bblk * H1 * W1             # rows after pool1
    m2 = bblk * H2 * W2             # rows after pool2

    # ---- preprocess (x / 255) + zero pad for the 3x3 conv -------------------
    xpad_ref[...] = jnp.zeros(xpad_ref.shape, f32)
    xpad_ref[:, 1:1 + H, 1:1 + W, :] = x_ref[...] * (1.0 / 255.0)

    # ---- layer 0: conv 3x3  3->16 (BN folded) as 9 accumulated MXU dots -----
    w0 = w0_ref[...]                                        # (27, 16)
    acc0 = jnp.zeros((m0, C0), f32)
    for kh in range(3):
        for kw in range(3):
            tap = xpad_ref[:, kh:kh + H, kw:kw + W, :].reshape(m0, C_IN)
            t = kh * 3 + kw
            acc0 = acc0 + jnp.dot(tap, w0[t * C_IN:(t + 1) * C_IN, :],
                                  preferred_element_type=f32)
    c0 = jnp.clip(acc0 + b0_ref[...], 0.0, 6.0)             # (m0, 16), relu6

    # ---- layer 1: 2x2 stride-2 maxpool (vectorized) --------------------------
    # H-halves: aligned reshape + one maximum; W-halves: strided sublane reads.
    c0_5 = c0.reshape(bblk, H1, 2, W, C0)
    c0h_ref[...] = jnp.maximum(c0_5[:, :, 0, :, :],
                               c0_5[:, :, 1, :, :]).reshape(bblk * H1 * W, C0)
    p1 = jnp.maximum(c0h_ref[pl.ds(0, m1, stride=2), :],
                     c0h_ref[pl.ds(1, m1, stride=2), :])    # (m1, 16)

    # ---- layer 2a: depthwise 3x3 (VPU, one hoisted weight broadcast per tap) -
    p1pad_ref[...] = jnp.zeros(p1pad_ref.shape, f32)
    p1pad_ref[:, 1:1 + H1, 1:1 + W1, :] = p1.reshape(bblk, H1, W1, C0)
    accd = jnp.zeros((bblk, H1, W1, C0), f32)
    for kh in range(3):
        for kw in range(3):
            w_t = wdw_ref[kh * 3 + kw]                      # (16,)
            accd = accd + p1pad_ref[:, kh:kh + H1, kw:kw + W1, :] * w_t
    dws = jnp.clip(accd.reshape(m1, C0) + bdw_ref[...], 0.0, 6.0)

    # ---- layer 2b: pointwise 1x1  16->32 on the MXU --------------------------
    c2 = jnp.clip(jnp.dot(dws, wpw_ref[...], preferred_element_type=f32)
                  + bpw_ref[...], 0.0, 6.0)                 # (m1, 32)

    # ---- layer 3: 2x2 stride-2 maxpool (vectorized) ---------------------------
    c2_5 = c2.reshape(bblk, H2, 2, W1, C2)
    c2h_ref[...] = jnp.maximum(c2_5[:, :, 0, :, :],
                               c2_5[:, :, 1, :, :]).reshape(bblk * H2 * W1, C2)
    p2 = jnp.maximum(c2h_ref[pl.ds(0, m2, stride=2), :],
                     c2h_ref[pl.ds(1, m2, stride=2), :])    # (m2, 32)

    # ---- layer 4: 1x1 conv 32 -> na*(nc+5) on the MXU, bias, no activation ----
    out4 = jnp.dot(p2, w4_ref[...], preferred_element_type=f32) + b4_ref[...]

    # ---- layer 5: YOLO decode on the full block (dense single stores) --------
    # rows are (b, y, x); dec rows: 0 sel_xy, 1 sel_wh, 2 mask_x, 3 mask_y, 4 anchors
    dec = dec_ref[...]                                      # (5, 21)
    row = jax.lax.broadcasted_iota(jnp.int32, (m2, 1), 0)
    gx = (row & (W2 - 1)).astype(f32)                       # x = row % 4
    gy = ((row >> 2) & (H2 - 1)).astype(f32)                # y = (row // 4) % 4
    grid_add = gx * dec[2:3, :] + gy * dec[3:4, :]          # (m2, 21)
    sig = jax.nn.sigmoid(out4)
    ex = jnp.exp(out4)
    io = jnp.where(dec[0:1, :] > 0.5, (sig + grid_add) * stride,
                   jnp.where(dec[1:2, :] > 0.5, ex * dec[4:5, :], sig))
    io_ref[...] = io                                        # single dense store
    p_ref[...] = out4                                       # raw predictions


# ----------------------------- host-side helpers -----------------------------

def _fold_bn(w, scale):
    # w: torch layout (Cout, Cin, kh, kw); scale: (1, Cout) per-channel BN scale
    return w * scale.reshape(-1, 1, 1, 1)


def _prepare_kernel_params(params):
    kp = {}
    w0 = _fold_bn(params['w0'], params['s0'])
    kp['w0'] = jnp.transpose(w0, (2, 3, 1, 0)).reshape(9 * C_IN, C0)   # rows (kh,kw,ci)
    kp['b0'] = params['b0'].reshape(1, C0)
    wdw = params['w2_dw'] * params['s2_dw'].reshape(-1, 1, 1, 1)
    kp['wdw'] = jnp.transpose(wdw[:, 0, :, :], (1, 2, 0)).reshape(9, C0)  # rows (kh,kw)
    kp['bdw'] = params['b2_dw'].reshape(1, C0)
    wpw = _fold_bn(params['w2_pw'], params['s2_pw'])
    kp['wpw'] = jnp.transpose(wpw[:, :, 0, 0], (1, 0))                  # (ci, co)
    kp['bpw'] = params['b2_pw'].reshape(1, C2)
    w4 = _fold_bn(params['w4'], params['s4'])
    kp['w4'] = jnp.transpose(w4[:, :, 0, 0], (1, 0))                    # (ci, co)
    kp['b4'] = params['b4'].reshape(1, C4)
    return kp


def _decode_consts():
    dec = np.zeros((5, C4), np.float32)
    for c in range(C4):
        a, o = divmod(c, NO)
        dec[0, c] = 1.0 if o < 2 else 0.0                  # xy columns
        dec[1, c] = 1.0 if 2 <= o < 4 else 0.0             # wh columns
        dec[2, c] = 1.0 if o == 0 else 0.0                 # add grid-x here
        dec[3, c] = 1.0 if o == 1 else 0.0                 # add grid-y here
        if o == 2:
            dec[4, c] = ANCHORS_NP[a, 0]                   # anchor_vec * stride
        elif o == 3:
            dec[4, c] = ANCHORS_NP[a, 1]
        else:
            dec[4, c] = 1.0
    return dec


def _const_spec(shape):
    n = len(shape)
    return pl.BlockSpec(shape, lambda i, n=n: (0,) * n)


@functools.partial(jax.jit, static_argnames=('block_b',))
def darknet_forward(x_nchw, params, block_b=None):
    img_size = x_nchw.shape[-2:]
    B = x_nchw.shape[0]
    if block_b is None:
        block_b = B            # one fat step (best for v5e/v6e); B//2 on v7x
    assert B % block_b == 0
    nb = B // block_b

    x = jnp.transpose(x_nchw, (0, 2, 3, 1)).astype(jnp.float32)    # NHWC
    kp = _prepare_kernel_params(params)
    dec = jnp.asarray(_decode_consts())

    ny, nx = H2, W2
    stride = float(max(img_size)) / float(max(nx, ny))
    m_blk = block_b * ny * nx

    in_specs = [
        pl.BlockSpec((block_b, H, W, C_IN), lambda i: (i, 0, 0, 0)),
        _const_spec((9 * C_IN, C0)), _const_spec((1, C0)),
        _const_spec((9, C0)), _const_spec((1, C0)),
        _const_spec((C0, C2)), _const_spec((1, C2)),
        _const_spec((C2, C4)), _const_spec((1, C4)),
        _const_spec((5, C4)),
    ]
    out_specs = (
        pl.BlockSpec((m_blk, C4), lambda i: (i, 0)),
        pl.BlockSpec((m_blk, C4), lambda i: (i, 0)),
    )
    out_shape = (
        jax.ShapeDtypeStruct((B * ny * nx, C4), jnp.float32),   # decoded io
        jax.ShapeDtypeStruct((B * ny * nx, C4), jnp.float32),   # raw p
    )
    scratch_shapes = [
        pltpu.VMEM((block_b, H + 2, W + 2, C_IN), jnp.float32),   # padded /255 input
        pltpu.VMEM((block_b * H1 * W, C0), jnp.float32),          # H-pooled conv0
        pltpu.VMEM((block_b, H1 + 2, W1 + 2, C0), jnp.float32),   # padded pool1
        pltpu.VMEM((block_b * H2 * W1, C2), jnp.float32),         # H-pooled pointwise
    ]

    io_k, p_k = pl.pallas_call(
        functools.partial(_darknet_fused_kernel, stride=stride),
        grid=(nb,),
        in_specs=in_specs,
        out_specs=out_specs,
        out_shape=out_shape,
        scratch_shapes=scratch_shapes,
        compiler_params=pltpu.CompilerParams(
            dimension_semantics=("parallel",)),
    )(x, kp['w0'], kp['b0'], kp['wdw'], kp['bdw'],
      kp['wpw'], kp['bpw'], kp['w4'], kp['b4'], dec)

    # Host-side layout plumbing: kernel rows are (b, y, x), cols are (a, o).
    p5 = p_k.reshape(B, ny, nx, NA, NO).transpose(0, 3, 1, 2, 4)
    io5 = io_k.reshape(B, ny, nx, NA, NO).transpose(0, 3, 1, 2, 4)
    io = io5.reshape(B, NA * ny * nx, NO)     # == torch.cat(io, 1) for one yolo layer
    return io, [p5]


# ----------------------------- parameters -----------------------------

def _make_bn(key, c):
    k1, k2, k3, k4 = jax.random.split(key, 4)
    gamma = 1.0 + 0.1 * jax.random.normal(k1, (c,), jnp.float32)
    beta = 0.1 * jax.random.normal(k2, (c,), jnp.float32)
    mean = 0.1 * jax.random.normal(k3, (c,), jnp.float32)
    var = 1.0 + 0.1 * jax.random.uniform(k4, (c,), jnp.float32)
    eps = 1e-5
    scale = gamma / jnp.sqrt(var + eps)
    bias = beta - mean * scale
    return scale.reshape(1, c), bias.reshape(1, c)


def init_params(key):
    ks = jax.random.split(key, 16)
    p = {}
    p['w0'] = 0.2 * jax.random.normal(ks[0], (16, 3, 3, 3), jnp.float32)
    p['s0'], p['b0'] = _make_bn(ks[1], 16)
    p['w2_dw'] = 0.2 * jax.random.normal(ks[2], (16, 1, 3, 3), jnp.float32)
    p['s2_dw'], p['b2_dw'] = _make_bn(ks[3], 16)
    p['w2_pw'] = 0.2 * jax.random.normal(ks[4], (32, 16, 1, 1), jnp.float32)
    p['s2_pw'], p['b2_pw'] = _make_bn(ks[5], 32)
    p['w4'] = 0.1 * jax.random.normal(ks[6], (NA * NO, 32, 1, 1), jnp.float32)
    b4 = 0.1 * jax.random.normal(ks[7], (NA * NO,), jnp.float32)
    # smart bias initialization (create_modules yolo branch)
    bo = -4.5
    bc = math.log(1.0 / (NC - 0.99))
    b = b4.reshape(NA, NO)
    b = b.at[:, 4].add(bo - jnp.mean(b[:, 4]))
    b = b.at[:, 5:].add(bc - jnp.mean(b[:, 5:]))
    p['b4'] = b.reshape(1, NA * NO)
    p['s4'] = jnp.ones((1, NA * NO), jnp.float32)
    return p


# ----------------------------- pure-JAX reference -----------------------------

def _ref_forward(x_nchw, params):
    hp = jax.lax.Precision.HIGHEST
    x = x_nchw.astype(jnp.float32) / 255.0

    def conv(x, w, s, b, pad, groups=1, clip=None):
        y = jax.lax.conv_general_dilated(
            x, w, (1, 1), [(pad, pad), (pad, pad)],
            dimension_numbers=('NCHW', 'OIHW', 'NCHW'),
            feature_group_count=groups, precision=hp)
        y = y * s.reshape(1, -1, 1, 1) + b.reshape(1, -1, 1, 1)
        if clip is not None:
            y = jnp.clip(y, 0.0, clip)
        return y

    def pool(x):
        Bb, Cc, Hh, Ww = x.shape
        return x.reshape(Bb, Cc, Hh // 2, 2, Ww // 2, 2).max(axis=(3, 5))

    x = conv(x, params['w0'], params['s0'], params['b0'], 1, 1, 6.0)
    x = pool(x)
    x = conv(x, params['w2_dw'], params['s2_dw'], params['b2_dw'], 1, 16, 6.0)
    x = conv(x, params['w2_pw'], params['s2_pw'], params['b2_pw'], 0, 1, 6.0)
    x = pool(x)
    x = conv(x, params['w4'], params['s4'], params['b4'], 0, 1, None)
    Bb, _, ny, nx = x.shape
    p = jnp.transpose(x.reshape(Bb, NA, NO, ny, nx), (0, 1, 3, 4, 2))
    stride = float(max(x_nchw.shape[-2:])) / float(max(nx, ny))
    yv, xv = jnp.meshgrid(jnp.arange(ny, dtype=jnp.float32),
                          jnp.arange(nx, dtype=jnp.float32), indexing='ij')
    grid_xy = jnp.stack([xv, yv], -1).reshape(1, 1, ny, nx, 2)
    anchor_wh = (jnp.asarray(ANCHORS_NP) / stride).reshape(1, NA, 1, 1, 2)
    xy = (jax.nn.sigmoid(p[..., :2]) + grid_xy) * stride
    wh = jnp.exp(p[..., 2:4]) * anchor_wh * stride
    rest = jax.nn.sigmoid(p[..., 4:])
    io = jnp.concatenate([xy, wh, rest], -1).reshape(Bb, -1, NO)
    return io, [p]


# ----------------------------- main -----------------------------

if __name__ == "__main__":
    key = jax.random.PRNGKey(0)
    kx, kparam = jax.random.split(key)
    x = jax.random.uniform(kx, (2, 3, 16, 16), jnp.float32, 0.0, 255.0)
    params = init_params(kparam)

    io, (p,) = darknet_forward(x, params)
    io = jax.block_until_ready(io)
    p = jax.block_until_ready(p)

    io_ref, (p_ref,) = _ref_forward(x, params)
    assert io.shape == (2, NA * H2 * W2, NO) and p.shape == (2, NA, H2, W2, NO)
    assert jnp.allclose(io, io_ref, rtol=1e-3, atol=1e-3), \
        float(jnp.max(jnp.abs(io - io_ref)))
    assert jnp.allclose(p, p_ref, rtol=1e-3, atol=1e-3), \
        float(jnp.max(jnp.abs(p - p_ref)))
    print("KERNEL_OK")
</pallas_src>

<mosaic_0001>
module attributes {stable_mosaic.version = 11 : i64} {
  func.func @_darknet_fused_kernel(%arg0: i32, %arg1: memref<2x16x16x3xf32, #tpu.memory_space<vmem>>, %arg2: memref<27x16xf32, #tpu.memory_space<vmem>>, %arg3: memref<1x16xf32, #tpu.memory_space<vmem>>, %arg4: memref<9x16xf32, #tpu.memory_space<vmem>>, %arg5: memref<1x16xf32, #tpu.memory_space<vmem>>, %arg6: memref<16x32xf32, #tpu.memory_space<vmem>>, %arg7: memref<1x32xf32, #tpu.memory_space<vmem>>, %arg8: memref<32x21xf32, #tpu.memory_space<vmem>>, %arg9: memref<1x21xf32, #tpu.memory_space<vmem>>, %arg10: memref<5x21xf32, #tpu.memory_space<vmem>>, %arg11: memref<32x21xf32, #tpu.memory_space<vmem>>, %arg12: memref<32x21xf32, #tpu.memory_space<vmem>>, %arg13: memref<2x18x18x3xf32, #tpu.memory_space<vmem>>, %arg14: memref<256x16xf32, #tpu.memory_space<vmem>>, %arg15: memref<2x10x10x16xf32, #tpu.memory_space<vmem>>, %arg16: memref<64x32xf32, #tpu.memory_space<vmem>>) attributes {dimension_semantics = [#tpu.dimension_semantics<parallel>], iteration_bounds = array<i64: 1>, scalar_prefetch = 0 : i64, scratch_operands = 4 : i64, tpu.core_type = #tpu.core_type<tc>, window_params = [{transform_indices = @transform_0, window_bounds = array<i64: 2, 16, 16, 3>}, {pipeline_mode = #tpu.pipeline_mode<synchronous>, transform_indices = @transform_1, window_bounds = array<i64: 27, 16>}, {pipeline_mode = #tpu.pipeline_mode<synchronous>, transform_indices = @transform_2, window_bounds = array<i64: 1, 16>}, {pipeline_mode = #tpu.pipeline_mode<synchronous>, transform_indices = @transform_3, window_bounds = array<i64: 9, 16>}, {pipeline_mode = #tpu.pipeline_mode<synchronous>, transform_indices = @transform_4, window_bounds = array<i64: 1, 16>}, {pipeline_mode = #tpu.pipeline_mode<synchronous>, transform_indices = @transform_5, window_bounds = array<i64: 16, 32>}, {pipeline_mode = #tpu.pipeline_mode<synchronous>, transform_indices = @transform_6, window_bounds = array<i64: 1, 32>}, {pipeline_mode = #tpu.pipeline_mode<synchronous>, transform_indices = @transform_7, window_bounds = array<i64: 32, 21>}, {pipeline_mode = #tpu.pipeline_mode<synchronous>, transform_indices = @transform_8, window_bounds = array<i64: 1, 21>}, {pipeline_mode = #tpu.pipeline_mode<synchronous>, transform_indices = @transform_9, window_bounds = array<i64: 5, 21>}, {transform_indices = @transform_10, window_bounds = array<i64: 32, 21>}, {transform_indices = @transform_11, window_bounds = array<i64: 32, 21>}]} {
    %cst = arith.constant 0.000000e+00 : f32
    %0 = vector.broadcast %cst : f32 to vector<2x18x18x3xf32>
    %c0 = arith.constant 0 : index
    %c0_0 = arith.constant 0 : index
    %c0_1 = arith.constant 0 : index
    %c0_2 = arith.constant 0 : index
    %1 = vector.load %arg13[%c0, %c0_0, %c0_1, %c0_2] : memref<2x18x18x3xf32, #tpu.memory_space<vmem>>, vector<2x18x18x3xf32>
    tpu.vector_store %arg13[%c0, %c0_0, %c0_1, %c0_2], %0 {strides = array<i32>} : memref<2x18x18x3xf32, #tpu.memory_space<vmem>>, vector<2x18x18x3xf32>,
    %c0_3 = arith.constant 0 : index
    %c0_4 = arith.constant 0 : index
    %c0_5 = arith.constant 0 : index
    %c0_6 = arith.constant 0 : index
    %2 = vector.load %arg1[%c0_3, %c0_4, %c0_5, %c0_6] : memref<2x16x16x3xf32, #tpu.memory_space<vmem>>, vector<2x16x16x3xf32>
    %cst_7 = arith.constant 0.00392156886 : f32
    %3 = vector.broadcast %cst_7 : f32 to vector<2x16x16x3xf32>
    %4 = arith.mulf %2, %3 : vector<2x16x16x3xf32>
    %c0_8 = arith.constant 0 : index
    %c1 = arith.constant 1 : index
    %c1_9 = arith.constant 1 : index
    %c0_10 = arith.constant 0 : index
    %5 = vector.load %arg13[%c0_8, %c1, %c1_9, %c0_10] : memref<2x18x18x3xf32, #tpu.memory_space<vmem>>, vector<2x16x16x3xf32>
    tpu.vector_store %arg13[%c0_8, %c1, %c1_9, %c0_10], %4 {strides = array<i32>} : memref<2x18x18x3xf32, #tpu.memory_space<vmem>>, vector<2x16x16x3xf32>,
    %c0_11 = arith.constant 0 : index
    %c0_12 = arith.constant 0 : index
    %6 = vector.load %arg2[%c0_11, %c0_12] : memref<27x16xf32, #tpu.memory_space<vmem>>, vector<27x16xf32>
    %cst_13 = arith.constant 0.000000e+00 : f32
    %7 = vector.broadcast %cst_13 : f32 to vector<512x16xf32>
    %c0_14 = arith.constant 0 : index
    %c0_15 = arith.constant 0 : index
    %c0_16 = arith.constant 0 : index
    %c0_17 = arith.constant 0 : index
    %8 = vector.load %arg13[%c0_14, %c0_15, %c0_16, %c0_17] : memref<2x18x18x3xf32, #tpu.memory_space<vmem>>, vector<2x16x16x3xf32>
    %9 = vector.shape_cast %8 : vector<2x16x16x3xf32> to vector<512x3xf32>
    %10 = vector.extract_strided_slice %6 {offsets = [0, 0], sizes = [3, 16], strides = [1, 1]} : vector<27x16xf32> to vector<3x16xf32>
    %cst_18 = arith.constant dense<0.000000e+00> : vector<512x16xf32>
    %11 = tpu.matmul %9, %10, %cst_18 {dimension_numbers = #tpu.dot_dimension_numbers<[1], [0], [0], [1], [0, 0, 1, 1], [], []>} : vector<512x3xf32>, vector<3x16xf32>, vector<512x16xf32> -> vector<512x16xf32>
    %12 = arith.addf %7, %11 : vector<512x16xf32>
    %c0_19 = arith.constant 0 : index
    %c0_20 = arith.constant 0 : index
    %c1_21 = arith.constant 1 : index
    %c0_22 = arith.constant 0 : index
    %13 = vector.load %arg13[%c0_19, %c0_20, %c1_21, %c0_22] : memref<2x18x18x3xf32, #tpu.memory_space<vmem>>, vector<2x16x16x3xf32>
    %14 = vector.shape_cast %13 : vector<2x16x16x3xf32> to vector<512x3xf32>
    %15 = vector.extract_strided_slice %6 {offsets = [3, 0], sizes = [3, 16], strides = [1, 1]} : vector<27x16xf32> to vector<3x16xf32>
    %cst_23 = arith.constant dense<0.000000e+00> : vector<512x16xf32>
    %16 = tpu.matmul %14, %15, %cst_23 {dimension_numbers = #tpu.dot_dimension_numbers<[1], [0], [0], [1], [0, 0, 1, 1], [], []>} : vector<512x3xf32>, vector<3x16xf32>, vector<512x16xf32> -> vector<512x16xf32>
    %17 = arith.addf %12, %16 : vector<512x16xf32>
    %c0_24 = arith.constant 0 : index
    %c0_25 = arith.constant 0 : index
    %c2 = arith.constant 2 : index
    %c0_26 = arith.constant 0 : index
    %18 = vector.load %arg13[%c0_24, %c0_25, %c2, %c0_26] : memref<2x18x18x3xf32, #tpu.memory_space<vmem>>, vector<2x16x16x3xf32>
    %19 = vector.shape_cast %18 : vector<2x16x16x3xf32> to vector<512x3xf32>
    %20 = vector.extract_strided_slice %6 {offsets = [6, 0], sizes = [3, 16], strides = [1, 1]} : vector<27x16xf32> to vector<3x16xf32>
    %cst_27 = arith.constant dense<0.000000e+00> : vector<512x16xf32>
    %21 = tpu.matmul %19, %20, %cst_27 {dimension_numbers = #tpu.dot_dimension_numbers<[1], [0], [0], [1], [0, 0, 1, 1], [], []>} : vector<512x3xf32>, vector<3x16xf32>, vector<512x16xf32> -> vector<512x16xf32>
    %22 = arith.addf %17, %21 : vector<512x16xf32>
    %c0_28 = arith.constant 0 : index
    %c1_29 = arith.constant 1 : index
    %c0_30 = arith.constant 0 : index
    %c0_31 = arith.constant 0 : index
    %23 = vector.load %arg13[%c0_28, %c1_29, %c0_30, %c0_31] : memref<2x18x18x3xf32, #tpu.memory_space<vmem>>, vector<2x16x16x3xf32>
    %24 = vector.shape_cast %23 : vector<2x16x16x3xf32> to vector<512x3xf32>
    %25 = vector.extract_strided_slice %6 {offsets = [9, 0], sizes = [3, 16], strides = [1, 1]} : vector<27x16xf32> to vector<3x16xf32>
    %cst_32 = arith.constant dense<0.000000e+00> : vector<512x16xf32>
    %26 = tpu.matmul %24, %25, %cst_32 {dimension_numbers = #tpu.dot_dimension_numbers<[1], [0], [0], [1], [0, 0, 1, 1], [], []>} : vector<512x3xf32>, vector<3x16xf32>, vector<512x16xf32> -> vector<512x16xf32>
    %27 = arith.addf %22, %26 : vector<512x16xf32>
    %c0_33 = arith.constant 0 : index
    %c1_34 = arith.constant 1 : index
    %c1_35 = arith.constant 1 : index
    %c0_36 = arith.constant 0 : index
    %28 = vector.load %arg13[%c0_33, %c1_34, %c1_35, %c0_36] : memref<2x18x18x3xf32, #tpu.memory_space<vmem>>, vector<2x16x16x3xf32>
    %29 = vector.shape_cast %28 : vector<2x16x16x3xf32> to vector<512x3xf32>
    %30 = vector.extract_strided_slice %6 {offsets = [12, 0], sizes = [3, 16], strides = [1, 1]} : vector<27x16xf32> to vector<3x16xf32>
    %cst_37 = arith.constant dense<0.000000e+00> : vector<512x16xf32>
    %31 = tpu.matmul %29, %30, %cst_37 {dimension_numbers = #tpu.dot_dimension_numbers<[1], [0], [0], [1], [0, 0, 1, 1], [], []>} : vector<512x3xf32>, vector<3x16xf32>, vector<512x16xf32> -> vector<512x16xf32>
    %32 = arith.addf %27, %31 : vector<512x16xf32>
    %c0_38 = arith.constant 0 : index
    %c1_39 = arith.constant 1 : index
    %c2_40 = arith.constant 2 : index
    %c0_41 = arith.constant 0 : index
    %33 = vector.load %arg13[%c0_38, %c1_39, %c2_40, %c0_41] : memref<2x18x18x3xf32, #tpu.memory_space<vmem>>, vector<2x16x16x3xf32>
    %34 = vector.shape_cast %33 : vector<2x16x16x3xf32> to vector<512x3xf32>
    %35 = vector.extract_strided_slice %6 {offsets = [15, 0], sizes = [3, 16], strides = [1, 1]} : vector<27x16xf32> to vector<3x16xf32>
    %cst_42 = arith.constant dense<0.000000e+00> : vector<512x16xf32>
    %36 = tpu.matmul %34, %35, %cst_42 {dimension_numbers = #tpu.dot_dimension_numbers<[1], [0], [0], [1], [0, 0, 1, 1], [], []>} : vector<512x3xf32>, vector<3x16xf32>, vector<512x16xf32> -> vector<512x16xf32>
    %37 = arith.addf %32, %36 : vector<512x16xf32>
    %c0_43 = arith.constant 0 : index
    %c2_44 = arith.constant 2 : index
    %c0_45 = arith.constant 0 : index
    %c0_46 = arith.constant 0 : index
    %38 = vector.load %arg13[%c0_43, %c2_44, %c0_45, %c0_46] : memref<2x18x18x3xf32, #tpu.memory_space<vmem>>, vector<2x16x16x3xf32>
    %39 = vector.shape_cast %38 : vector<2x16x16x3xf32> to vector<512x3xf32>
    %40 = vector.extract_strided_slice %6 {offsets = [18, 0], sizes = [3, 16], strides = [1, 1]} : vector<27x16xf32> to vector<3x16xf32>
    %cst_47 = arith.constant dense<0.000000e+00> : vector<512x16xf32>
    %41 = tpu.matmul %39, %40, %cst_47 {dimension_numbers = #tpu.dot_dimension_numbers<[1], [0], [0], [1], [0, 0, 1, 1], [], []>} : vector<512x3xf32>, vector<3x16xf32>, vector<512x16xf32> -> vector<512x16xf32>
    %42 = arith.addf %37, %41 : vector<512x16xf32>
    %c0_48 = arith.constant 0 : index
    %c2_49 = arith.constant 2 : index
    %c1_50 = arith.constant 1 : index
    %c0_51 = arith.constant 0 : index
    %43 = vector.load %arg13[%c0_48, %c2_49, %c1_50, %c0_51] : memref<2x18x18x3xf32, #tpu.memory_space<vmem>>, vector<2x16x16x3xf32>
    %44 = vector.shape_cast %43 : vector<2x16x16x3xf32> to vector<512x3xf32>
    %45 = vector.extract_strided_slice %6 {offsets = [21, 0], sizes = [3, 16], strides = [1, 1]} : vector<27x16xf32> to vector<3x16xf32>
    %cst_52 = arith.constant dense<0.000000e+00> : vector<512x16xf32>
    %46 = tpu.matmul %44, %45, %cst_52 {dimension_numbers = #tpu.dot_dimension_numbers<[1], [0], [0], [1], [0, 0, 1, 1], [], []>} : vector<512x3xf32>, vector<3x16xf32>, vector<512x16xf32> -> vector<512x16xf32>
    %47 = arith.addf %42, %46 : vector<512x16xf32>
    %c0_53 = arith.constant 0 : index
    %c2_54 = arith.constant 2 : index
    %c2_55 = arith.constant 2 : index
    %c0_56 = arith.constant 0 : index
    %48 = vector.load %arg13[%c0_53, %c2_54, %c2_55, %c0_56] : memref<2x18x18x3xf32, #tpu.memory_space<vmem>>, vector<2x16x16x3xf32>
    %49 = vector.shape_cast %48 : vector<2x16x16x3xf32> to vector<512x3xf32>
    %50 = vector.extract_strided_slice %6 {offsets = [24, 0], sizes = [3, 16], strides = [1, 1]} : vector<27x16xf32> to vector<3x16xf32>
    %cst_57 = arith.constant dense<0.000000e+00> : vector<512x16xf32>
    %51 = tpu.matmul %49, %50, %cst_57 {dimension_numbers = #tpu.dot_dimension_numbers<[1], [0], [0], [1], [0, 0, 1, 1], [], []>} : vector<512x3xf32>, vector<3x16xf32>, vector<512x16xf32> -> vector<512x16xf32>
    %52 = arith.addf %47, %51 : vector<512x16xf32>
    %c0_58 = arith.constant 0 : index
    %c0_59 = arith.constant 0 : index
    %53 = vector.load %arg3[%c0_58, %c0_59] : memref<1x16xf32, #tpu.memory_space<vmem>>, vector<1x16xf32>
    %54 = vector.broadcast %53 : vector<1x16xf32> to vector<512x16xf32>
    %55 = arith.addf %52, %54 : vector<512x16xf32>
    %cst_60 = arith.constant 0.000000e+00 : f32
    %cst_61 = arith.constant 6.000000e+00 : f32
    %56 = vector.broadcast %cst_60 : f32 to vector<512x16xf32>
    %57 = arith.maximumf %56, %55 : vector<512x16xf32>
    %58 = vector.broadcast %cst_61 : f32 to vector<512x16xf32>
    %59 = arith.minimumf %58, %57 : vector<512x16xf32>
    %60 = vector.shape_cast %59 : vector<512x16xf32> to vector<2x8x2x16x16xf32>
    %61 = vector.extract_strided_slice %60 {offsets = [0, 0, 0, 0, 0], sizes = [2, 8, 1, 16, 16], strides = [1, 1, 1, 1, 1]} : vector<2x8x2x16x16xf32> to vector<2x8x1x16x16xf32>
    %62 = vector.shape_cast %61 : vector<2x8x1x16x16xf32> to vector<2x8x16x16xf32>
    %63 = vector.extract_strided_slice %60 {offsets = [0, 0, 1, 0, 0], sizes = [2, 8, 1, 16, 16], strides = [1, 1, 1, 1, 1]} : vector<2x8x2x16x16xf32> to vector<2x8x1x16x16xf32>
    %64 = vector.shape_cast %63 : vector<2x8x1x16x16xf32> to vector<2x8x16x16xf32>
    %65 = arith.maximumf %62, %64 : vector<2x8x16x16xf32>
    %66 = vector.shape_cast %65 : vector<2x8x16x16xf32> to vector<256x16xf32>
    %c0_62 = arith.constant 0 : index
    %c0_63 = arith.constant 0 : index
    %67 = vector.load %arg14[%c0_62, %c0_63] : memref<256x16xf32, #tpu.memory_space<vmem>>, vector<256x16xf32>
    tpu.vector_store %arg14[%c0_62, %c0_63], %66 {strides = array<i32>} : memref<256x16xf32, #tpu.memory_space<vmem>>, vector<256x16xf32>,
    %c0_64 = arith.constant 0 : index
    %c0_65 = arith.constant 0 : index
    %68 = tpu.strided_load %arg14[%c0_64, %c0_65] {strides = array<i32: 2, 1>} : memref<256x16xf32, #tpu.memory_space<vmem>>, vector<128x16xf32>
    %c1_66 = arith.constant 1 : index
    %c0_67 = arith.constant 0 : index
    %69 = tpu.strided_load %arg14[%c1_66, %c0_67] {strides = array<i32: 2, 1>} : memref<256x16xf32, #tpu.memory_space<vmem>>, vector<128x16xf32>
    %70 = arith.maximumf %68, %69 : vector<128x16xf32>
    %cst_68 = arith.constant 0.000000e+00 : f32
    %71 = vector.broadcast %cst_68 : f32 to vector<2x10x10x16xf32>
    %c0_69 = arith.constant 0 : index
    %c0_70 = arith.constant 0 : index
    %c0_71 = arith.constant 0 : index
    %c0_72 = arith.constant 0 : index
    %72 = vector.load %arg15[%c0_69, %c0_70, %c0_71, %c0_72] : memref<2x10x10x16xf32, #tpu.memory_space<vmem>>, vector<2x10x10x16xf32>
    tpu.vector_store %arg15[%c0_69, %c0_70, %c0_71, %c0_72], %71 {strides = array<i32>} : memref<2x10x10x16xf32, #tpu.memory_space<vmem>>, vector<2x10x10x16xf32>,
    %73 = vector.shape_cast %70 : vector<128x16xf32> to vector<2x8x8x16xf32>
    %c0_73 = arith.constant 0 : index
    %c1_74 = arith.constant 1 : index
    %c1_75 = arith.constant 1 : index
    %c0_76 = arith.constant 0 : index
    %74 = vector.load %arg15[%c0_73, %c1_74, %c1_75, %c0_76] : memref<2x10x10x16xf32, #tpu.memory_space<vmem>>, vector<2x8x8x16xf32>
    tpu.vector_store %arg15[%c0_73, %c1_74, %c1_75, %c0_76], %73 {strides = array<i32>} : memref<2x10x10x16xf32, #tpu.memory_space<vmem>>, vector<2x8x8x16xf32>,
    %cst_77 = arith.constant 0.000000e+00 : f32
    %75 = vector.broadcast %cst_77 : f32 to vector<2x8x8x16xf32>
    %c0_78 = arith.constant 0 : index
    %c0_79 = arith.constant 0 : index
    %76 = vector.load %arg4[%c0_78, %c0_79] : memref<9x16xf32, #tpu.memory_space<vmem>>, vector<1x16xf32>
    %77 = vector.shape_cast %76 : vector<1x16xf32> to vector<16xf32>
    %c0_80 = arith.constant 0 : index
    %c0_81 = arith.constant 0 : index
    %c0_82 = arith.constant 0 : index
    %c0_83 = arith.constant 0 : index
    %78 = vector.load %arg15[%c0_80, %c0_81, %c0_82, %c0_83] : memref<2x10x10x16xf32, #tpu.memory_space<vmem>>, vector<2x8x8x16xf32>
    %79 = vector.shape_cast %77 : vector<16xf32> to vector<1x1x1x16xf32>
    %80 = vector.broadcast %79 : vector<1x1x1x16xf32> to vector<2x8x8x16xf32>
    %81 = arith.mulf %78, %80 : vector<2x8x8x16xf32>
    %82 = arith.addf %75, %81 : vector<2x8x8x16xf32>
    %c1_84 = arith.constant 1 : index
    %c0_85 = arith.constant 0 : index
    %83 = vector.load %arg4[%c1_84, %c0_85] : memref<9x16xf32, #tpu.memory_space<vmem>>, vector<1x16xf32>
    %84 = vector.shape_cast %83 : vector<1x16xf32> to vector<16xf32>
    %c0_86 = arith.constant 0 : index
    %c0_87 = arith.constant 0 : index
    %c1_88 = arith.constant 1 : index
    %c0_89 = arith.constant 0 : index
    %85 = vector.load %arg15[%c0_86, %c0_87, %c1_88, %c0_89] : memref<2x10x10x16xf32, #tpu.memory_space<vmem>>, vector<2x8x8x16xf32>
    %86 = vector.shape_cast %84 : vector<16xf32> to vector<1x1x1x16xf32>
    %87 = vector.broadcast %86 : vector<1x1x1x16xf32> to vector<2x8x8x16xf32>
    %88 = arith.mulf %85, %87 : vector<2x8x8x16xf32>
    %89 = arith.addf %82, %88 : vector<2x8x8x16xf32>
    %c2_90 = arith.constant 2 : index
    %c0_91 = arith.constant 0 : index
    %90 = vector.load %arg4[%c2_90, %c0_91] : memref<9x16xf32, #tpu.memory_space<vmem>>, vector<1x16xf32>
    %91 = vector.shape_cast %90 : vector<1x16xf32> to vector<16xf32>
    %c0_92 = arith.constant 0 : index
    %c0_93 = arith.constant 0 : index
    %c2_94 = arith.constant 2 : index
    %c0_95 = arith.constant 0 : index
    %92 = vector.load %arg15[%c0_92, %c0_93, %c2_94, %c0_95] : memref<2x10x10x16xf32, #tpu.memory_space<vmem>>, vector<2x8x8x16xf32>
    %93 = vector.shape_cast %91 : vector<16xf32> to vector<1x1x1x16xf32>
    %94 = vector.broadcast %93 : vector<1x1x1x16xf32> to vector<2x8x8x16xf32>
    %95 = arith.mulf %92, %94 : vector<2x8x8x16xf32>
    %96 = arith.addf %89, %95 : vector<2x8x8x16xf32>
    %c3 = arith.constant 3 : index
    %c0_96 = arith.constant 0 : index
    %97 = vector.load %arg4[%c3, %c0_96] : memref<9x16xf32, #tpu.memory_space<vmem>>, vector<1x16xf32>
    %98 = vector.shape_cast %97 : vector<1x16xf32> to vector<16xf32>
    %c0_97 = arith.constant 0 : index
    %c1_98 = arith.constant 1 : index
    %c0_99 = arith.constant 0 : index
    %c0_100 = arith.constant 0 : index
    %99 = vector.load %arg15[%c0_97, %c1_98, %c0_99, %c0_100] : memref<2x10x10x16xf32, #tpu.memory_space<vmem>>, vector<2x8x8x16xf32>
    %100 = vector.shape_cast %98 : vector<16xf32> to vector<1x1x1x16xf32>
    %101 = vector.broadcast %100 : vector<1x1x1x16xf32> to vector<2x8x8x16xf32>
    %102 = arith.mulf %99, %101 : vector<2x8x8x16xf32>
    %103 = arith.addf %96, %102 : vector<2x8x8x16xf32>
    %c4 = arith.constant 4 : index
    %c0_101 = arith.constant 0 : index
    %104 = vector.load %arg4[%c4, %c0_101] : memref<9x16xf32, #tpu.memory_space<vmem>>, vector<1x16xf32>
    %105 = vector.shape_cast %104 : vector<1x16xf32> to vector<16xf32>
    %c0_102 = arith.constant 0 : index
    %c1_103 = arith.constant 1 : index
    %c1_104 = arith.constant 1 : index
    %c0_105 = arith.constant 0 : index
    %106 = vector.load %arg15[%c0_102, %c1_103, %c1_104, %c0_105] : memref<2x10x10x16xf32, #tpu.memory_space<vmem>>, vector<2x8x8x16xf32>
    %107 = vector.shape_cast %105 : vector<16xf32> to vector<1x1x1x16xf32>
    %108 = vector.broadcast %107 : vector<1x1x1x16xf32> to vector<2x8x8x16xf32>
    %109 = arith.mulf %106, %108 : vector<2x8x8x16xf32>
    %110 = arith.addf %103, %109 : vector<2x8x8x16xf32>
    %c5 = arith.constant 5 : index
    %c0_106 = arith.constant 0 : index
    %111 = vector.load %arg4[%c5, %c0_106] : memref<9x16xf32, #tpu.memory_space<vmem>>, vector<1x16xf32>
    %112 = vector.shape_cast %111 : vector<1x16xf32> to vector<16xf32>
    %c0_107 = arith.constant 0 : index
    %c1_108 = arith.constant 1 : index
    %c2_109 = arith.constant 2 : index
    %c0_110 = arith.constant 0 : index
    %113 = vector.load %arg15[%c0_107, %c1_108, %c2_109, %c0_110] : memref<2x10x10x16xf32, #tpu.memory_space<vmem>>, vector<2x8x8x16xf32>
    %114 = vector.shape_cast %112 : vector<16xf32> to vector<1x1x1x16xf32>
    %115 = vector.broadcast %114 : vector<1x1x1x16xf32> to vector<2x8x8x16xf32>
    %116 = arith.mulf %113, %115 : vector<2x8x8x16xf32>
    %117 = arith.addf %110, %116 : vector<2x8x8x16xf32>
    %c6 = arith.constant 6 : index
    %c0_111 = arith.constant 0 : index
    %118 = vector.load %arg4[%c6, %c0_111] : memref<9x16xf32, #tpu.memory_space<vmem>>, vector<1x16xf32>
    %119 = vector.shape_cast %118 : vector<1x16xf32> to vector<16xf32>
    %c0_112 = arith.constant 0 : index
    %c2_113 = arith.constant 2 : index
    %c0_114 = arith.constant 0 : index
    %c0_115 = arith.constant 0 : index
    %120 = vector.load %arg15[%c0_112, %c2_113, %c0_114, %c0_115] : memref<2x10x10x16xf32, #tpu.memory_space<vmem>>, vector<2x8x8x16xf32>
    %121 = vector.shape_cast %119 : vector<16xf32> to vector<1x1x1x16xf32>
    %122 = vector.broadcast %121 : vector<1x1x1x16xf32> to vector<2x8x8x16xf32>
    %123 = arith.mulf %120, %122 : vector<2x8x8x16xf32>
    %124 = arith.addf %117, %123 : vector<2x8x8x16xf32>
    %c7 = arith.constant 7 : index
    %c0_116 = arith.constant 0 : index
    %125 = vector.load %arg4[%c7, %c0_116] : memref<9x16xf32, #tpu.memory_space<vmem>>, vector<1x16xf32>
    %126 = vector.shape_cast %125 : vector<1x16xf32> to vector<16xf32>
    %c0_117 = arith.constant 0 : index
    %c2_118 = arith.constant 2 : index
    %c1_119 = arith.constant 1 : index
    %c0_120 = arith.constant 0 : index
    %127 = vector.load %arg15[%c0_117, %c2_118, %c1_119, %c0_120] : memref<2x10x10x16xf32, #tpu.memory_space<vmem>>, vector<2x8x8x16xf32>
    %128 = vector.shape_cast %126 : vector<16xf32> to vector<1x1x1x16xf32>
    %129 = vector.broadcast %128 : vector<1x1x1x16xf32> to vector<2x8x8x16xf32>
    %130 = arith.mulf %127, %129 : vector<2x8x8x16xf32>
    %131 = arith.addf %124, %130 : vector<2x8x8x16xf32>
    %c8 = arith.constant 8 : index
    %c0_121 = arith.constant 0 : index
    %132 = vector.load %arg4[%c8, %c0_121] : memref<9x16xf32, #tpu.memory_space<vmem>>, vector<1x16xf32>
    %133 = vector.shape_cast %132 : vector<1x16xf32> to vector<16xf32>
    %c0_122 = arith.constant 0 : index
    %c2_123 = arith.constant 2 : index
    %c2_124 = arith.constant 2 : index
    %c0_125 = arith.constant 0 : index
    %134 = vector.load %arg15[%c0_122, %c2_123, %c2_124, %c0_125] : memref<2x10x10x16xf32, #tpu.memory_space<vmem>>, vector<2x8x8x16xf32>
    %135 = vector.shape_cast %133 : vector<16xf32> to vector<1x1x1x16xf32>
    %136 = vector.broadcast %135 : vector<1x1x1x16xf32> to vector<2x8x8x16xf32>
    %137 = arith.mulf %134, %136 : vector<2x8x8x16xf32>
    %138 = arith.addf %131, %137 : vector<2x8x8x16xf32>
    %139 = vector.shape_cast %138 : vector<2x8x8x16xf32> to vector<128x16xf32>
    %c0_126 = arith.constant 0 : index
    %c0_127 = arith.constant 0 : index
    %140 = vector.load %arg5[%c0_126, %c0_127] : memref<1x16xf32, #tpu.memory_space<vmem>>, vector<1x16xf32>
    %141 = vector.broadcast %140 : vector<1x16xf32> to vector<128x16xf32>
    %142 = arith.addf %139, %141 : vector<128x16xf32>
    %cst_128 = arith.constant 0.000000e+00 : f32
    %cst_129 = arith.constant 6.000000e+00 : f32
    %143 = vector.broadcast %cst_128 : f32 to vector<128x16xf32>
    %144 = arith.maximumf %143, %142 : vector<128x16xf32>
    %145 = vector.broadcast %cst_129 : f32 to vector<128x16xf32>
    %146 = arith.minimumf %145, %144 : vector<128x16xf32>
    %c0_130 = arith.constant 0 : index
    %c0_131 = arith.constant 0 : index
    %147 = vector.load %arg6[%c0_130, %c0_131] : memref<16x32xf32, #tpu.memory_space<vmem>>, vector<16x32xf32>
    %cst_132 = arith.constant dense<0.000000e+00> : vector<128x32xf32>
    %148 = tpu.matmul %146, %147, %cst_132 {dimension_numbers = #tpu.dot_dimension_numbers<[1], [0], [0], [1], [0, 0, 1, 1], [], []>} : vector<128x16xf32>, vector<16x32xf32>, vector<128x32xf32> -> vector<128x32xf32>
    %c0_133 = arith.constant 0 : index
    %c0_134 = arith.constant 0 : index
    %149 = vector.load %arg7[%c0_133, %c0_134] : memref<1x32xf32, #tpu.memory_space<vmem>>, vector<1x32xf32>
    %150 = vector.broadcast %149 : vector<1x32xf32> to vector<128x32xf32>
    %151 = arith.addf %148, %150 : vector<128x32xf32>
    %cst_135 = arith.constant 0.000000e+00 : f32
    %cst_136 = arith.constant 6.000000e+00 : f32
    %152 = vector.broadcast %cst_135 : f32 to vector<128x32xf32>
    %153 = arith.maximumf %152, %151 : vector<128x32xf32>
    %154 = vector.broadcast %cst_136 : f32 to vector<128x32xf32>
    %155 = arith.minimumf %154, %153 : vector<128x32xf32>
    %156 = vector.shape_cast %155 : vector<128x32xf32> to vector<2x4x2x8x32xf32>
    %157 = vector.extract_strided_slice %156 {offsets = [0, 0, 0, 0, 0], sizes = [2, 4, 1, 8, 32], strides = [1, 1, 1, 1, 1]} : vector<2x4x2x8x32xf32> to vector<2x4x1x8x32xf32>
    %158 = vector.shape_cast %157 : vector<2x4x1x8x32xf32> to vector<2x4x8x32xf32>
    %159 = vector.extract_strided_slice %156 {offsets = [0, 0, 1, 0, 0], sizes = [2, 4, 1, 8, 32], strides = [1, 1, 1, 1, 1]} : vector<2x4x2x8x32xf32> to vector<2x4x1x8x32xf32>
    %160 = vector.shape_cast %159 : vector<2x4x1x8x32xf32> to vector<2x4x8x32xf32>
    %161 = arith.maximumf %158, %160 : vector<2x4x8x32xf32>
    %162 = vector.shape_cast %161 : vector<2x4x8x32xf32> to vector<64x32xf32>
    %c0_137 = arith.constant 0 : index
    %c0_138 = arith.constant 0 : index
    %163 = vector.load %arg16[%c0_137, %c0_138] : memref<64x32xf32, #tpu.memory_space<vmem>>, vector<64x32xf32>
    tpu.vector_store %arg16[%c0_137, %c0_138], %162 {strides = array<i32>} : memref<64x32xf32, #tpu.memory_space<vmem>>, vector<64x32xf32>,
    %c0_139 = arith.constant 0 : index
    %c0_140 = arith.constant 0 : index
    %164 = tpu.strided_load %arg16[%c0_139, %c0_140] {strides = array<i32: 2, 1>} : memref<64x32xf32, #tpu.memory_space<vmem>>, vector<32x32xf32>
    %c1_141 = arith.constant 1 : index
    %c0_142 = arith.constant 0 : index
    %165 = tpu.strided_load %arg16[%c1_141, %c0_142] {strides = array<i32: 2, 1>} : memref<64x32xf32, #tpu.memory_space<vmem>>, vector<32x32xf32>
    %166 = arith.maximumf %164, %165 : vector<32x32xf32>
    %c0_143 = arith.constant 0 : index
    %c0_144 = arith.constant 0 : index
    %167 = vector.load %arg8[%c0_143, %c0_144] : memref<32x21xf32, #tpu.memory_space<vmem>>, vector<32x21xf32>
    %cst_145 = arith.constant dense<0.000000e+00> : vector<32x21xf32>
    %168 = tpu.matmul %166, %167, %cst_145 {dimension_numbers = #tpu.dot_dimension_numbers<[1], [0], [0], [1], [0, 0, 1, 1], [], []>} : vector<32x32xf32>, vector<32x21xf32>, vector<32x21xf32> -> vector<32x21xf32>
    %c0_146 = arith.constant 0 : index
    %c0_147 = arith.constant 0 : index
    %169 = vector.load %arg9[%c0_146, %c0_147] : memref<1x21xf32, #tpu.memory_space<vmem>>, vector<1x21xf32>
    %170 = vector.broadcast %169 : vector<1x21xf32> to vector<32x21xf32>
    %171 = arith.addf %168, %170 : vector<32x21xf32>
    %c0_148 = arith.constant 0 : index
    %c0_149 = arith.constant 0 : index
    %172 = vector.load %arg10[%c0_148, %c0_149] : memref<5x21xf32, #tpu.memory_space<vmem>>, vector<5x21xf32>
    %173 = tpu.iota {dimensions = array<i32: 0>} : vector<32x1xi32>
    %c3_i32 = arith.constant 3 : i32
    %174 = vector.broadcast %c3_i32 : i32 to vector<32x1xi32>
    %175 = arith.andi %173, %174 : vector<32x1xi32>
    %176 = arith.sitofp %175 : vector<32x1xi32> to vector<32x1xf32>
    %c2_i32 = arith.constant 2 : i32
    %177 = vector.broadcast %c2_i32 : i32 to vector<32x1xi32>
    %178 = arith.shrsi %173, %177 : vector<32x1xi32>
    %c3_i32_150 = arith.constant 3 : i32
    %179 = vector.broadcast %c3_i32_150 : i32 to vector<32x1xi32>
    %180 = arith.andi %178, %179 : vector<32x1xi32>
    %181 = arith.sitofp %180 : vector<32x1xi32> to vector<32x1xf32>
    %182 = vector.extract_strided_slice %172 {offsets = [2, 0], sizes = [1, 21], strides = [1, 1]} : vector<5x21xf32> to vector<1x21xf32>
    %183 = vector.broadcast %176 : vector<32x1xf32> to vector<32x21xf32>
    %184 = vector.broadcast %182 : vector<1x21xf32> to vector<32x21xf32>
    %185 = arith.mulf %183, %184 : vector<32x21xf32>
    %186 = vector.extract_strided_slice %172 {offsets = [3, 0], sizes = [1, 21], strides = [1, 1]} : vector<5x21xf32> to vector<1x21xf32>
    %187 = vector.broadcast %181 : vector<32x1xf32> to vector<32x21xf32>
    %188 = vector.broadcast %186 : vector<1x21xf32> to vector<32x21xf32>
    %189 = arith.mulf %187, %188 : vector<32x21xf32>
    %190 = arith.addf %185, %189 : vector<32x21xf32>
    %191 = arith.negf %171 : vector<32x21xf32>
    %192 = math.exp %191 : vector<32x21xf32>
    %cst_151 = arith.constant 1.000000e+00 : f32
    %193 = vector.broadcast %cst_151 : f32 to vector<32x21xf32>
    %194 = arith.addf %193, %192 : vector<32x21xf32>
    %195 = arith.divf %193, %194 : vector<32x21xf32>
    %196 = math.exp %171 : vector<32x21xf32>
    %197 = vector.extract_strided_slice %172 {offsets = [0, 0], sizes = [1, 21], strides = [1, 1]} : vector<5x21xf32> to vector<1x21xf32>
    %cst_152 = arith.constant 5.000000e-01 : f32
    %198 = vector.broadcast %cst_152 : f32 to vector<1x21xf32>
    %199 = arith.cmpf ogt, %197, %198 : vector<1x21xf32>
    %200 = arith.addf %195, %190 : vector<32x21xf32>
    %cst_153 = arith.constant 4.000000e+00 : f32
    %201 = vector.broadcast %cst_153 : f32 to vector<32x21xf32>
    %202 = arith.mulf %200, %201 : vector<32x21xf32>
    %203 = vector.extract_strided_slice %172 {offsets = [1, 0], sizes = [1, 21], strides = [1, 1]} : vector<5x21xf32> to vector<1x21xf32>
    %cst_154 = arith.constant 5.000000e-01 : f32
    %204 = vector.broadcast %cst_154 : f32 to vector<1x21xf32>
    %205 = arith.cmpf ogt, %203, %204 : vector<1x21xf32>
    %206 = vector.extract_strided_slice %172 {offsets = [4, 0], sizes = [1, 21], strides = [1, 1]} : vector<5x21xf32> to vector<1x21xf32>
    %207 = vector.broadcast %206 : vector<1x21xf32> to vector<32x21xf32>
    %208 = arith.mulf %196, %207 : vector<32x21xf32>
    %209 = vector.shape_cast %205 : vector<1x21xi1> to vector<1x21xi1>
    %210 = vector.broadcast %209 : vector<1x21xi1> to vector<32x21xi1>
    %211 = arith.select %210, %208, %195 : vector<32x21xi1>, vector<32x21xf32>
    %212 = vector.shape_cast %199 : vector<1x21xi1> to vector<1x21xi1>
    %213 = vector.broadcast %212 : vector<1x21xi1> to vector<32x21xi1>
    %214 = arith.select %213, %202, %211 : vector<32x21xi1>, vector<32x21xf32>
    %c0_155 = arith.constant 0 : index
    %c0_156 = arith.constant 0 : index
    %215 = vector.load %arg11[%c0_155, %c0_156] : memref<32x21xf32, #tpu.memory_space<vmem>>, vector<32x21xf32>
    tpu.vector_store %arg11[%c0_155, %c0_156], %214 {strides = array<i32>} : memref<32x21xf32, #tpu.memory_space<vmem>>, vector<32x21xf32>,
    %c0_157 = arith.constant 0 : index
    %c0_158 = arith.constant 0 : index
    %216 = vector.load %arg12[%c0_157, %c0_158] : memref<32x21xf32, #tpu.memory_space<vmem>>, vector<32x21xf32>
    tpu.vector_store %arg12[%c0_157, %c0_158], %171 {strides = array<i32>} : memref<32x21xf32, #tpu.memory_space<vmem>>, vector<32x21xf32>,
    return
  }
  func.func @transform_0(%arg0: i32) -> (i32, i32, i32, i32) {
    %c0_i32 = arith.constant 0 : i32
    %c0_i32_0 = arith.constant 0 : i32
    %c0_i32_1 = arith.constant 0 : i32
    %c0_i32_2 = arith.constant 0 : i32
    return %arg0, %c0_i32, %c0_i32_0, %c0_i32_1 : i32, i32, i32, i32
  }
  func.func @transform_1(%arg0: i32) -> (i32, i32) {
    %c0_i32 = arith.constant 0 : i32
    %c0_i32_0 = arith.constant 0 : i32
    %c0_i32_1 = arith.constant 0 : i32
    return %c0_i32, %c0_i32_0 : i32, i32
  }
  func.func @transform_2(%arg0: i32) -> (i32, i32) {
    %c0_i32 = arith.constant 0 : i32
    %c0_i32_0 = arith.constant 0 : i32
    %c0_i32_1 = arith.constant 0 : i32
    return %c0_i32, %c0_i32_0 : i32, i32
  }
  func.func @transform_3(%arg0: i32) -> (i32, i32) {
    %c0_i32 = arith.constant 0 : i32
    %c0_i32_0 = arith.constant 0 : i32
    %c0_i32_1 = arith.constant 0 : i32
    return %c0_i32, %c0_i32_0 : i32, i32
  }
  func.func @transform_4(%arg0: i32) -> (i32, i32) {
    %c0_i32 = arith.constant 0 : i32
    %c0_i32_0 = arith.constant 0 : i32
    %c0_i32_1 = arith.constant 0 : i32
    return %c0_i32, %c0_i32_0 : i32, i32
  }
  func.func @transform_5(%arg0: i32) -> (i32, i32) {
    %c0_i32 = arith.constant 0 : i32
    %c0_i32_0 = arith.constant 0 : i32
    %c0_i32_1 = arith.constant 0 : i32
    return %c0_i32, %c0_i32_0 : i32, i32
  }
  func.func @transform_6(%arg0: i32) -> (i32, i32) {
    %c0_i32 = arith.constant 0 : i32
    %c0_i32_0 = arith.constant 0 : i32
    %c0_i32_1 = arith.constant 0 : i32
    return %c0_i32, %c0_i32_0 : i32, i32
  }
  func.func @transform_7(%arg0: i32) -> (i32, i32) {
    %c0_i32 = arith.constant 0 : i32
    %c0_i32_0 = arith.constant 0 : i32
    %c0_i32_1 = arith.constant 0 : i32
    return %c0_i32, %c0_i32_0 : i32, i32
  }
  func.func @transform_8(%arg0: i32) -> (i32, i32) {
    %c0_i32 = arith.constant 0 : i32
    %c0_i32_0 = arith.constant 0 : i32
    %c0_i32_1 = arith.constant 0 : i32
    return %c0_i32, %c0_i32_0 : i32, i32
  }
  func.func @transform_9(%arg0: i32) -> (i32, i32) {
    %c0_i32 = arith.constant 0 : i32
    %c0_i32_0 = arith.constant 0 : i32
    %c0_i32_1 = arith.constant 0 : i32
    return %c0_i32, %c0_i32_0 : i32, i32
  }
  func.func @transform_10(%arg0: i32) -> (i32, i32) {
    %c0_i32 = arith.constant 0 : i32
    %c0_i32_0 = arith.constant 0 : i32
    return %arg0, %c0_i32 : i32, i32
  }
  func.func @transform_11(%arg0: i32) -> (i32, i32) {
    %c0_i32 = arith.constant 0 : i32
    %c0_i32_0 = arith.constant 0 : i32
    return %arg0, %c0_i32 : i32, i32
  }
}

</mosaic_0001>

<bundles_post_ra>
// kernel: darknet_forward.1
= control target key start
LH: loop header
LB: loop body
LE: loop exit
PB: predicated region body
PF: predicated region fallthrough
CT: control target
= control target key end

     0   :  { %vm37_vm0 = vcmask 23552   ;;  %vm666_vm1 = vcmask 1042432   ;;  %v13985_v1 = vmov 0.0   ;;  %vm1698_vm2 = vcmask 1041408   ;;  %s13973_s1 = inlined_call_operand.vmem [shape: f32[27,16], index: 1, kind: input, shape index: {}]   ;;  %s13974_s0 = inlined_call_operand.vmem [shape: f32[2,16,16,3], index: 0, kind: input, shape index: {}]   ;;  %s13975_s5 = inlined_call_operand.vmem [shape: f32[16,32], index: 5, kind: input, shape index: {}]   ;;  %s13976_s2 = inlined_call_operand.vmem [shape: f32[1,16], index: 2, kind: input, shape index: {}]   ;;  %s13977_s3 = inlined_call_operand.vmem [shape: f32[9,16], index: 3, kind: input, shape index: {}]   ;;  %s13978_s4 = inlined_call_operand.vmem [shape: f32[1,16], index: 4, kind: input, shape index: {}]   ;;  %s13979_s7 = inlined_call_operand.vmem [shape: f32[32,21], index: 7, kind: input, shape index: {}]   ;;  %s13980_s6 = inlined_call_operand.vmem [shape: f32[1,32], index: 6, kind: input, shape index: {}]   ;;  %s13981_s8 = inlined_call_operand.vmem [shape: f32[1,21], index: 8, kind: input, shape index: {}]   ;;  %s13982_s11 = inlined_call_operand.vmem [shape: f32[32,21], index: 11, kind: output, shape index: {1}]   ;;  %s13983_s9 = inlined_call_operand.vmem [shape: f32[5,21], index: 9, kind: input, shape index: {}]   ;;  %s13984_s10 = inlined_call_operand.vmem [shape: f32[32,21], index: 10, kind: output, shape index: {0}]  }
   0x1   :  { %v10302_v0 = vld [vmem:[%s13973_s1] sm:$0xff]  ;;  %38 = vst.msk [vmem:[#allocation2] sm:$0xff] %vm37_vm0, %v13985_v1  ;;  %39 = vst.msk [vmem:[#allocation2 + $0x8] sm:$0xff] %vm37_vm0, %v13985_v1  ;;  %v10451_v2 = vld [vmem:[%s13973_s1 + $0x8] sm:$0xff]  ;;  %vm40_vm3 = vcmask 17408   ;;  %vm3826_vm4 = vcmask 1040384  }
   0x2   :  { %42 = vst.msk [vmem:[#allocation2 + $0x18] sm:$0xff] %vm37_vm0, %v13985_v1  ;;  %43 = vst.msk [vmem:[#allocation2 + $0x20] sm:$0xff] %vm37_vm0, %v13985_v1  ;;  %v187_v3 = vld [vmem:[%s13974_s0 + $0x140] sm:$0xff]  ;;  %v473_v4 = vrot.slane %v10302_v0, 3  ;;  %v1699_v5 = vrot.slane %v10302_v0, 6  ;;  %v1700_v6 = vrot.slane %v10451_v2, 6 }
   0x3   :  { %45 = vst.msk [vmem:[#allocation2 + $0x30] sm:$0xff] %vm37_vm0, %v13985_v1  ;;  %46 = vst.msk [vmem:[#allocation2 + $0x38] sm:$0xff] %vm37_vm0, %v13985_v1  ;;  %v251_v7 = vmul.f32 0.003921569, %v187_v3  ;;  %v147_v8 = vld [vmem:[%s13974_s0] sm:$0xff]  ;;  %v188_v10 = vld [vmem:[%s13974_s0 + $0x148] sm:$0xff] }
   0x4   :  { %48 = vst.msk [vmem:[#allocation2 + $0x48] sm:$0xff] %vm37_vm0, %v13985_v1  ;;  %49 = vst.msk [vmem:[#allocation2 + $0x50] sm:$0xff] %vm37_vm0, %v13985_v1  ;;  %v211_v9 = vmul.f32 0.003921569, %v147_v8  ;;  %v148_v11 = vld [vmem:[%s13974_s0 + $0x8] sm:$0xff]  ;;  %v189_v12 = vld [vmem:[%s13974_s0 + $0x150] sm:$0xff]  ;;  %9274 = vmatprep.subr.msk.mxu0 %vm666_vm1, %v473_v4  ;;  %v1701_v13 = vsel %vm1698_vm2, %v1699_v5, %v1700_v6  ;;  %10198 = vmatprep.subr.msk.mxu1 %vm666_vm1, %v473_v4 }
   0x5   :  { %51 = vst.msk [vmem:[#allocation2 + $0x60] sm:$0xff] %vm37_vm0, %v13985_v1  ;;  %52 = vst.msk [vmem:[#allocation2 + $0x68] sm:$0xff] %vm37_vm0, %v13985_v1  ;;  %v252_v14 = vmul.f32 0.003921569, %v188_v10  ;;  %v212_v15 = vmul.f32 0.003921569, %v148_v11  ;;  %9275 = vmatpush3.msk.msra.mxu0 %vm666_vm1, %v473_v4  ;;  %10199 = vmatpush3.msk.msra.mxu1 %vm666_vm1, %v473_v4 }
   0x6   :  { %54 = vst.msk [vmem:[#allocation2 + $0x78] sm:$0xff] %vm37_vm0, %v13985_v1  ;;  %55 = vst.msk [vmem:[#allocation2 + $0x80] sm:$0xff] %vm37_vm0, %v13985_v1  ;;  %v253_v16 = vmul.f32 0.003921569, %v189_v12  ;;  %v149_v17 = vld [vmem:[%s13974_s0 + $0x10] sm:$0xff]  ;;  %v190_v18 = vld [vmem:[%s13974_s0 + $0x158] sm:$0xff]  ;;  %9470 = vmatprep.subr.msk.mxu0 %vm666_vm1, %v1701_v13  ;;  %9372 = vmatprep.subr.msk.mxu1 %vm666_vm1, %v10302_v0 }
   0x7   :  { %57 = vst.msk [vmem:[#allocation2 + $0x90] sm:$0xff] %vm37_vm0, %v13985_v1  ;;  %58 = vst.msk [vmem:[#allocation2 + $0x98] sm:$0xff] %vm37_vm0, %v13985_v1  ;;  %v150_v19 = vld [vmem:[%s13974_s0 + $0x18] sm:$0xff]  ;;  %v213_v20 = vmul.f32 0.003921569, %v149_v17  ;;  %v191_v23 = vld [vmem:[%s13974_s0 + $0x160] sm:$0xff] }
   0x8   :  { %60 = vst.msk [vmem:[#allocation2 + $0xa8] sm:$0xff] %vm37_vm0, %v13985_v1  ;;  %61 = vst.msk [vmem:[#allocation2 + $0xb0] sm:$0xff] %vm37_vm0, %v13985_v1  ;;  %v254_v21 = vmul.f32 0.003921569, %v190_v18  ;;  %v214_v22 = vmul.f32 0.003921569, %v150_v19 }
   0x9   :  { %63 = vst.msk [vmem:[#allocation2 + $0xc0] sm:$0xff] %vm37_vm0, %v13985_v1  ;;  %64 = vst.msk [vmem:[#allocation2 + $0xc8] sm:$0xff] %vm37_vm0, %v13985_v1  ;;  %v151_v24 = vld [vmem:[%s13974_s0 + $0x20] sm:$0xff]  ;;  %v192_v25 = vld [vmem:[%s13974_s0 + $0x168] sm:$0xff]  ;;  %v3117_v26 = vrot.slane %v10451_v2, 4  ;;  %v2409_v39 = vrot.slane %v10451_v2, 1 }
   0xa   :  { %66 = vst.msk [vmem:[#allocation2 + $0xd8] sm:$0xff] %vm37_vm0, %v13985_v1  ;;  %67 = vst.msk [vmem:[#allocation2 + $0xe0] sm:$0xff] %vm37_vm0, %v13985_v1  ;;  %v408_v27 = vld [vmem:[#allocation2 + $0x1] sm:$0xff]  ;;  %v255_v28 = vmul.f32 0.003921569, %v191_v23  ;;  %v193_v34 = vld [vmem:[%s13974_s0 + $0x170] sm:$0xff] }
   0xb   :  { %69 = vst.msk [vmem:[#allocation2 + $0xf0] sm:$0xff] %vm37_vm0, %v13985_v1  ;;  %70 = vst.msk [vmem:[#allocation2 + $0xf8] sm:$0xff] %vm37_vm0, %v13985_v1  ;;  %v215_v29 = vmul.f32 0.003921569, %v151_v24  ;;  %v152_v30 = vld [vmem:[%s13974_s0 + $0x28] sm:$0xff]  ;;  %9276 = vmatprep.mubr.msk.f32.mxu0 %vm37_vm0, %v408_v27  ;;  %v153_v36 = vld [vmem:[%s13974_s0 + $0x30] sm:$0xff] }
   0xc   :  { %72 = vst.msk [vmem:[#allocation2 + $0x108] sm:$0xff] %vm37_vm0, %v13985_v1  ;;  %73 = vst.msk [vmem:[#allocation2 + $0x110] sm:$0xff] %vm37_vm0, %v13985_v1  ;;  %v256_v32 = vmul.f32 0.003921569, %v192_v25  ;;  %v216_v33 = vmul.f32 0.003921569, %v152_v30 }
   0xd   :  { %75 = vst.msk [vmem:[#allocation2 + $0x120] sm:$0xff] %vm37_vm0, %v13985_v1  ;;  %76 = vst.msk [vmem:[#allocation2 + $0x128] sm:$0xff] %vm37_vm0, %v13985_v1  ;;  %v257_v35 = vmul.f32 0.003921569, %v193_v34  ;;  %v194_v37 = vld [vmem:[%s13974_s0 + $0x178] sm:$0xff]  ;;  %v195_v43 = vld [vmem:[%s13974_s0 + $0x180] sm:$0xff] }
   0xe   :  { %78 = vst.msk [vmem:[#allocation2 + $0x138] sm:$0xff] %vm37_vm0, %v13985_v1  ;;  %79 = vst.msk [vmem:[#allocation2 + $0x140] sm:$0xff] %vm37_vm0, %v13985_v1  ;;  %v154_v38 = vld [vmem:[%s13974_s0 + $0x38] sm:$0xff]  ;;  %v217_v41 = vmul.f32 0.003921569, %v153_v36  ;;  %v155_v47 = vld [vmem:[%s13974_s0 + $0x40] sm:$0xff] }
   0xf   :  { %81 = vst.msk [vmem:[#allocation2 + $0x150] sm:$0xff] %vm37_vm0, %v13985_v1  ;;  %82 = vst.msk [vmem:[#allocation2 + $0x158] sm:$0xff] %vm37_vm0, %v13985_v1  ;;  %v258_v42 = vmul.f32 0.003921569, %v194_v37  ;;  %v218_v45 = vmul.f32 0.003921569, %v154_v38 }
  0x10   :  { %84 = vst.msk [vmem:[#allocation2 + $0x168] sm:$0xff] %vm37_vm0, %v13985_v1  ;;  %85 = vst.msk [vmem:[#allocation2 + $0x170] sm:$0xff] %vm37_vm0, %v13985_v1  ;;  %v259_v46 = vmul.f32 0.003921569, %v195_v43  ;;  %v219_v51 = vmul.f32 0.003921569, %v155_v47 }
  0x11   :  { %87 = vst.msk [vmem:[#allocation2 + $0x180] sm:$0xff] %vm37_vm0, %v13985_v1  ;;  %88 = vst.msk [vmem:[#allocation2 + $0x188] sm:$0xff] %vm37_vm0, %v13985_v1  ;;  %v196_v52 = vld [vmem:[%s13974_s0 + $0x188] sm:$0xff]  ;;  %v197_v54 = vld [vmem:[%s13974_s0 + $0x190] sm:$0xff]  ;;  %vm6829_vm5 = vcmask 130048   ;;  %vm6942_vm6 = vcmask 123904  }
  0x12   :  { %90 = vst.msk [vmem:[#allocation2 + $0x198] sm:$0xff] %vm37_vm0, %v13985_v1  ;;  %91 = vst.msk [vmem:[#allocation2 + $0x1a0] sm:$0xff] %vm37_vm0, %v13985_v1  ;;  %v156_v53 = vld [vmem:[%s13974_s0 + $0x48] sm:$0xff]  ;;  %v260_v58 = vmul.f32 0.003921569, %v196_v52  ;;  %v157_v61 = vld [vmem:[%s13974_s0 + $0x50] sm:$0xff] }
  0x13   :  { %93 = vst.msk [vmem:[#allocation2 + $0x1b0] sm:$0xff] %vm37_vm0, %v13985_v1  ;;  %94 = vst.msk [vmem:[#allocation2 + $0x1b8] sm:$0xff] %vm37_vm0, %v13985_v1  ;;  %v220_v59 = vmul.f32 0.003921569, %v156_v53  ;;  %v261_v60 = vmul.f32 0.003921569, %v197_v54 }
  0x14   :  { %96 = vst.msk [vmem:[#allocation2 + $0x1c8] sm:$0xff] %vm37_vm0, %v13985_v1  ;;  %97 = vst.msk [vmem:[#allocation2 + $0x1d0] sm:$0xff] %vm37_vm0, %v13985_v1  ;;  %v198_v62 = vld [vmem:[%s13974_s0 + $0x198] sm:$0xff]  ;;  %v159_v10 = vld [vmem:[%s13974_s0 + $0x60] sm:$0xff]  ;;  %vm7774_vm7 = vcmask 261120   ;;  %vm8024_vm8 = vcmask 171008  }
  0x15   :  { %99 = vst.msk [vmem:[#allocation2 + $0x1e0] sm:$0xff] %vm37_vm0, %v13985_v1  ;;  %100 = vst.msk [vmem:[#allocation2 + $0x1e8] sm:$0xff] %vm37_vm0, %v13985_v1  ;;  %v262_v4 = vmul.f32 0.003921569, %v198_v62  ;;  %v158_v6 = vld [vmem:[%s13974_s0 + $0x58] sm:$0xff]  ;;  %v200_v17 = vld [vmem:[%s13974_s0 + $0x1a8] sm:$0xff] }
  0x16   :  { %102 = vst.msk [vmem:[#allocation2 + $0x1f8] sm:$0xff] %vm37_vm0, %v13985_v1  ;;  %103 = vst.msk [vmem:[#allocation2 + $0x200] sm:$0xff] %vm37_vm0, %v13985_v1  ;;  %v222_v8 = vmul.f32 0.003921569, %v158_v6  ;;  %v264_v19 = vmul.f32 0.003921569, %v200_v17 }
  0x17   :  { %105 = vst.msk [vmem:[#allocation2 + $0x210] sm:$0xff] %vm37_vm0, %v13985_v1  ;;  %106 = vst.msk [vmem:[#allocation2 + $0x218] sm:$0xff] %vm37_vm0, %v13985_v1  ;;  %v161_v24 = vld [vmem:[%s13974_s0 + $0x70] sm:$0xff]  ;;  %v202_v25 = vld [vmem:[%s13974_s0 + $0x1b8] sm:$0xff] }
  0x18   :  { %108 = vst.msk [vmem:[#allocation2 + $0x228] sm:$0xff] %vm37_vm0, %v13985_v1  ;;  %109 = vst.msk [vmem:[#allocation2 + $0x230] sm:$0xff] %vm37_vm0, %v13985_v1  ;;  %v162_v30 = vld [vmem:[%s13974_s0 + $0x78] sm:$0xff]  ;;  %v163_v37 = vld [vmem:[%s13974_s0 + $0x80] sm:$0xff] }
  0x19   :  { %111 = vst.msk [vmem:[#allocation2 + $0x240] sm:$0xff] %vm37_vm0, %v13985_v1  ;;  %112 = vst.msk [vmem:[#allocation2 + $0x248] sm:$0xff] %vm37_vm0, %v13985_v1  ;;  %v227_v38 = vmul.f32 0.003921569, %v163_v37  ;;  %v207_v52 = vld [vmem:[%s13974_s0 + $0x1e0] sm:$0xff] }
  0x1a   :  { %114 = vst.msk [vmem:[#allocation2 + $0x258] sm:$0xff] %vm37_vm0, %v13985_v1  ;;  %115 = vst.msk [vmem:[#allocation2 + $0x260] sm:$0xff] %vm37_vm0, %v13985_v1 }
  0x1b   :  { %117 = vst.msk [vmem:[#allocation2 + $0x270] sm:$0xff] %vm37_vm0, %v13985_v1  ;;  %118 = vst.msk [vmem:[#allocation2 + $0x278] sm:$0xff] %vm37_vm0, %v13985_v1 }
  0x1c   :  { %120 = vst.msk [vmem:[#allocation2 + $0x288] sm:$0xff] %vm37_vm0, %v13985_v1  ;;  %121 = vst.msk [vmem:[#allocation2 + $0x290] sm:$0xff] %vm37_vm0, %v13985_v1 }
  0x1d   :  { %123 = vst.msk [vmem:[#allocation2 + $0x2a0] sm:$0xff] %vm37_vm0, %v13985_v1  ;;  %124 = vst.msk [vmem:[#allocation2 + $0x2a8] sm:$0xff] %vm37_vm0, %v13985_v1 }
  0x1e   :  { %126 = vst.msk [vmem:[#allocation2 + $0x2b8] sm:$0xff] %vm37_vm0, %v13985_v1  ;;  %127 = vst.msk [vmem:[#allocation2 + $0x2c0] sm:$0xff] %vm37_vm0, %v13985_v1 }
  0x1f   :  { %129 = vst.msk [vmem:[#allocation2 + $0x2d0] sm:$0xff] %vm37_vm0, %v13985_v1  ;;  %130 = vst.msk [vmem:[#allocation2 + $0x2d8] sm:$0xff] %vm37_vm0, %v13985_v1 }
  0x20   :  { %132 = vst.msk [vmem:[#allocation2 + $0x2e8] sm:$0xff] %vm37_vm0, %v13985_v1  ;;  %133 = vst.msk [vmem:[#allocation2 + $0x2f0] sm:$0xff] %vm37_vm0, %v13985_v1 }
  0x21   :  { %135 = vst.msk [vmem:[#allocation2 + $0x300] sm:$0xff] %vm37_vm0, %v13985_v1  ;;  %136 = vst.msk [vmem:[#allocation2 + $0x308] sm:$0xff] %vm37_vm0, %v13985_v1 }
  0x22   :  { %138 = vst.msk [vmem:[#allocation2 + $0x318] sm:$0xff] %vm37_vm0, %v13985_v1  ;;  %139 = vst.msk [vmem:[#allocation2 + $0x320] sm:$0xff] %vm37_vm0, %v13985_v1 }
  0x23   :  { %141 = vst.msk [vmem:[#allocation2 + $0x330] sm:$0xff] %vm37_vm0, %v13985_v1  ;;  %142 = vst.msk [vmem:[#allocation2 + $0x338] sm:$0xff] %vm37_vm0, %v13985_v1 }
  0x24   :  { %144 = vst.msk [vmem:[#allocation2 + $0x348] sm:$0xff] %vm37_vm0, %v13985_v1  ;;  %145 = vst.msk [vmem:[#allocation2 + $0x350] sm:$0xff] %vm37_vm0, %v13985_v1 }
  0x25   :  { %41 = vst.msk [vmem:[#allocation2 + $0x10] sm:$0x3] %vm40_vm3, %v13985_v1  ;;  %44 = vst.msk [vmem:[#allocation2 + $0x28] sm:$0x3] %vm40_vm3, %v13985_v1 }
  0x26   :  { %47 = vst.msk [vmem:[#allocation2 + $0x40] sm:$0x3] %vm40_vm3, %v13985_v1  ;;  %50 = vst.msk [vmem:[#allocation2 + $0x58] sm:$0x3] %vm40_vm3, %v13985_v1 }
  0x27   :  { %53 = vst.msk [vmem:[#allocation2 + $0x70] sm:$0x3] %vm40_vm3, %v13985_v1  ;;  %56 = vst.msk [vmem:[#allocation2 + $0x88] sm:$0x3] %vm40_vm3, %v13985_v1 }
  0x28   :  { %59 = vst.msk [vmem:[#allocation2 + $0xa0] sm:$0x3] %vm40_vm3, %v13985_v1  ;;  %62 = vst.msk [vmem:[#allocation2 + $0xb8] sm:$0x3] %vm40_vm3, %v13985_v1 }
  0x29   :  { %65 = vst.msk [vmem:[#allocation2 + $0xd0] sm:$0x3] %vm40_vm3, %v13985_v1  ;;  %68 = vst.msk [vmem:[#allocation2 + $0xe8] sm:$0x3] %vm40_vm3, %v13985_v1 }
  0x2a   :  { %71 = vst.msk [vmem:[#allocation2 + $0x100] sm:$0x3] %vm40_vm3, %v13985_v1  ;;  %74 = vst.msk [vmem:[#allocation2 + $0x118] sm:$0x3] %vm40_vm3, %v13985_v1 }
  0x2b   :  { %77 = vst.msk [vmem:[#allocation2 + $0x130] sm:$0x3] %vm40_vm3, %v13985_v1  ;;  %80 = vst.msk [vmem:[#allocation2 + $0x148] sm:$0x3] %vm40_vm3, %v13985_v1 }
  0x2c   :  { %83 = vst.msk [vmem:[#allocation2 + $0x160] sm:$0x3] %vm40_vm3, %v13985_v1  ;;  %86 = vst.msk [vmem:[#allocation2 + $0x178] sm:$0x3] %vm40_vm3, %v13985_v1  ;;  %v409_v31 = vld [vmem:[#allocation2 + $0x9] sm:$0xff] }
  0x2d   :  { %89 = vst.msk [vmem:[#allocation2 + $0x190] sm:$0x3] %vm40_vm3, %v13985_v1  ;;  %92 = vst.msk [vmem:[#allocation2 + $0x1a8] sm:$0x3] %vm40_vm3, %v13985_v1  ;;  %9277 = vmatmul.mubr.msk.f32.vlgmr.msra.gmra.mxu0 %vm37_vm0, %v409_v31 }
  0x2e   :  { %95 = vst.msk [vmem:[#allocation2 + $0x1c0] sm:$0x3] %vm40_vm3, %v13985_v1  ;;  %98 = vst.msk [vmem:[#allocation2 + $0x1d8] sm:$0x3] %vm40_vm3, %v13985_v1  ;;  %9471 = vmatpush3.msk.msra.mxu0 %vm666_vm1, %v1701_v13 }
  0x2f   :  { %101 = vst.msk [vmem:[#allocation2 + $0x1f0] sm:$0x3] %vm40_vm3, %v13985_v1  ;;  %104 = vst.msk [vmem:[#allocation2 + $0x208] sm:$0x3] %vm40_vm3, %v13985_v1  ;;  %9666 = vmatprep.subr.msk.mxu0 %vm666_vm1, %v3117_v26 }
  0x30   :  { %107 = vst.msk [vmem:[#allocation2 + $0x220] sm:$0x3] %vm40_vm3, %v13985_v1  ;;  %110 = vst.msk [vmem:[#allocation2 + $0x238] sm:$0x3] %vm40_vm3, %v13985_v1 }
  0x31   :  { %113 = vst.msk [vmem:[#allocation2 + $0x250] sm:$0x3] %vm40_vm3, %v13985_v1  ;;  %116 = vst.msk [vmem:[#allocation2 + $0x268] sm:$0x3] %vm40_vm3, %v13985_v1 }
  0x32   :  { %119 = vst.msk [vmem:[#allocation2 + $0x280] sm:$0x3] %vm40_vm3, %v13985_v1  ;;  %122 = vst.msk [vmem:[#allocation2 + $0x298] sm:$0x3] %vm40_vm3, %v13985_v1 }
  0x33   :  { %125 = vst.msk [vmem:[#allocation2 + $0x2b0] sm:$0x3] %vm40_vm3, %v13985_v1  ;;  %128 = vst.msk [vmem:[#allocation2 + $0x2c8] sm:$0x3] %vm40_vm3, %v13985_v1 }
  0x34   :  { %131 = vst.msk [vmem:[#allocation2 + $0x2e0] sm:$0x3] %vm40_vm3, %v13985_v1  ;;  %134 = vst.msk [vmem:[#allocation2 + $0x2f8] sm:$0x3] %vm40_vm3, %v13985_v1 }
  0x35   :  { %137 = vst.msk [vmem:[#allocation2 + $0x310] sm:$0x3] %vm40_vm3, %v13985_v1  ;;  %140 = vst.msk [vmem:[#allocation2 + $0x328] sm:$0x3] %vm40_vm3, %v13985_v1 }
  0x36   :  { %143 = vst.msk [vmem:[#allocation2 + $0x340] sm:$0x3] %vm40_vm3, %v13985_v1  ;;  %146 = vst.msk [vmem:[#allocation2 + $0x358] sm:$0x3] %vm40_vm3, %v13985_v1 }
  0x37   :  { %316 = vst.msk [vmem:[#allocation2 + $0x229] sm:$0xff] %vm37_vm0, %v251_v7  ;;  %276 = vst.msk [vmem:[#allocation2 + $0x19] sm:$0xff] %vm37_vm0, %v211_v9  ;;  %v199_v9 = vld [vmem:[%s13974_s0 + $0x1a0] sm:$0xff] }
  0x38   :  { %317 = vst.msk [vmem:[#allocation2 + $0x231] sm:$0xff] %vm37_vm0, %v252_v14  ;;  %277 = vst.msk [vmem:[#allocation2 + $0x21] sm:$0xff] %vm37_vm0, %v212_v15  ;;  %v263_v13 = vmul.f32 0.003921569, %v199_v9  ;;  %v223_v14 = vmul.f32 0.003921569, %v159_v10 }
  0x39   :  { %318 = vst.msk [vmem:[#allocation2 + $0x241] sm:$0xff] %vm37_vm0, %v253_v16  ;;  %278 = vst.msk [vmem:[#allocation2 + $0x31] sm:$0xff] %vm37_vm0, %v213_v20  ;;  %v160_v20 = vld [vmem:[%s13974_s0 + $0x68] sm:$0xff]  ;;  %v170_v9 = vld [vmem:[%s13974_s0 + $0xb8] sm:$0xff] }
  0x3a   :  { %319 = vst.msk [vmem:[#allocation2 + $0x249] sm:$0xff] %vm37_vm0, %v254_v21  ;;  %279 = vst.msk [vmem:[#allocation2 + $0x39] sm:$0xff] %vm37_vm0, %v214_v22  ;;  %v201_v21 = vld [vmem:[%s13974_s0 + $0x1b0] sm:$0xff]  ;;  %v224_v22 = vmul.f32 0.003921569, %v160_v20 }
  0x3b   :  { %320 = vst.msk [vmem:[#allocation2 + $0x259] sm:$0xff] %vm37_vm0, %v255_v28  ;;  %280 = vst.msk [vmem:[#allocation2 + $0x49] sm:$0xff] %vm37_vm0, %v215_v29  ;;  %v265_v23 = vmul.f32 0.003921569, %v201_v21  ;;  %v225_v28 = vmul.f32 0.003921569, %v161_v24 }
  0x3c   :  { %321 = vst.msk [vmem:[#allocation2 + $0x261] sm:$0xff] %vm37_vm0, %v256_v32  ;;  %281 = vst.msk [vmem:[#allocation2 + $0x51] sm:$0xff] %vm37_vm0, %v216_v33  ;;  %v266_v29 = vmul.f32 0.003921569, %v202_v25  ;;  %v226_v32 = vmul.f32 0.003921569, %v162_v30 }
  0x3d   :  { %322 = vst.msk [vmem:[#allocation2 + $0x271] sm:$0xff] %vm37_vm0, %v257_v35  ;;  %282 = vst.msk [vmem:[#allocation2 + $0x61] sm:$0xff] %vm37_vm0, %v217_v41  ;;  %v203_v33 = vld [vmem:[%s13974_s0 + $0x1c0] sm:$0xff]  ;;  %v164_v41 = vld [vmem:[%s13974_s0 + $0x88] sm:$0xff]  ;;  %v234_v10 = vmul.f32 0.003921569, %v170_v9 }
  0x3e   :  { %v450_v40 = vld [vmem:[#allocation2 + $0x229] sm:$0xff]  ;;  %v410_v44 = vld [vmem:[#allocation2 + $0x19] sm:$0xff]  ;;  %323 = vst.msk [vmem:[#allocation2 + $0x279] sm:$0xff] %vm37_vm0, %v258_v42  ;;  %283 = vst.msk [vmem:[#allocation2 + $0x69] sm:$0xff] %vm37_vm0, %v218_v45  ;;  %v267_v36 = vmul.f32 0.003921569, %v203_v33 }
  0x3f   :  { %9339 = vmatprep.mubr.msk.f32.mxu1 %vm37_vm0, %v450_v40  ;;  %9279 = vmatprep.mubr.msk.f32.mxu0 %vm37_vm0, %v410_v44  ;;  %v451_v48 = vld [vmem:[#allocation2 + $0x231] sm:$0xff]  ;;  %v411_v49 = vld [vmem:[#allocation2 + $0x21] sm:$0xff]  ;;  %324 = vst.msk [vmem:[#allocation2 + $0x289] sm:$0xff] %vm37_vm0, %v259_v46  ;;  %284 = vst.msk [vmem:[#allocation2 + $0x79] sm:$0xff] %vm37_vm0, %v219_v51  ;;  %v228_v45 = vmul.f32 0.003921569, %v164_v41 }
  0x40   :  { %v452_v50 = vld [vmem:[#allocation2 + $0x241] sm:$0xff]  ;;  %9340 = vmatmul.mubr.msk.f32.vlgmr.msra.gmra.mxu1 %vm37_vm0, %v451_v48  ;;  %9280 = vmatmul.mubr.msk.f32.gmra.mxu0 %vm37_vm0, %v411_v49  ;;  %v412_v55 = vld [vmem:[#allocation2 + $0x31] sm:$0xff]  ;;  %325 = vst.msk [vmem:[#allocation2 + $0x291] sm:$0xff] %vm37_vm0, %v260_v58  ;;  %285 = vst.msk [vmem:[#allocation2 + $0x81] sm:$0xff] %vm37_vm0, %v220_v59  ;;  %v271_v59 = vmul.f32 0.003921569, %v207_v52 }
  0x41   :  { %9342 = vmatprep.mubr.msk.f32.mxu1 %vm37_vm0, %v452_v50  ;;  %v453_v56 = vld [vmem:[#allocation2 + $0x249] sm:$0xff]  ;;  %v413_v57 = vld [vmem:[#allocation2 + $0x39] sm:$0xff]  ;;  %9373 = vmatpush3.msk.msra.mxu1 %vm666_vm1, %v10302_v0  ;;  %v221_v0 = vmul.f32 0.003921569, %v157_v61  ;;  %326 = vst.msk [vmem:[#allocation2 + $0x2a1] sm:$0xff] %vm37_vm0, %v261_v60  ;;  %327 = vst.msk [vmem:[#allocation2 + $0x2a9] sm:$0xff] %vm37_vm0, %v262_v4 }
  0x42   :  { %9282 = vmatprep.mubr.msk.f32.mxu0 %vm37_vm0, %v412_v55  ;;  %9568 = vmatprep.subr.msk.mxu1 %vm666_vm1, %v2409_v39  ;;  %v454_v63 = vld [vmem:[#allocation2 + $0x259] sm:$0xff]  ;;  %v414_v3 = vld [vmem:[#allocation2 + $0x49] sm:$0xff]  ;;  %287 = vst.msk [vmem:[#allocation2 + $0x99] sm:$0xff] %vm37_vm0, %v222_v8  ;;  %328 = vst.msk [vmem:[#allocation2 + $0x2b9] sm:$0xff] %vm37_vm0, %v263_v13 }
  0x43   :  { %v455_v5 = vld [vmem:[#allocation2 + $0x261] sm:$0xff]  ;;  %v415_v7 = vld [vmem:[#allocation2 + $0x51] sm:$0xff]  ;;  %286 = vst.msk [vmem:[#allocation2 + $0x91] sm:$0xff] %vm37_vm0, %v221_v0  ;;  %288 = vst.msk [vmem:[#allocation2 + $0xa9] sm:$0xff] %vm37_vm0, %v223_v14 }
  0x44   :  { %9343 = vmatmul.mubr.msk.f32.gmra.mxu1 %vm37_vm0, %v453_v56  ;;  %9283 = vmatmul.mubr.msk.f32.gmra.mxu0 %vm37_vm0, %v413_v57  ;;  %v456_v11 = vld [vmem:[#allocation2 + $0x271] sm:$0xff]  ;;  %v416_v12 = vld [vmem:[#allocation2 + $0x61] sm:$0xff]  ;;  %329 = vst.msk [vmem:[#allocation2 + $0x2c1] sm:$0xff] %vm37_vm0, %v264_v19  ;;  %289 = vst.msk [vmem:[#allocation2 + $0xb1] sm:$0xff] %vm37_vm0, %v224_v22 }
  0x45   :  { %9345 = vmatprep.mubr.msk.f32.mxu1 %vm37_vm0, %v454_v63  ;;  %9285 = vmatprep.mubr.msk.f32.mxu0 %vm37_vm0, %v414_v3  ;;  %v457_v15 = vld [vmem:[#allocation2 + $0x279] sm:$0xff]  ;;  %v417_v16 = vld [vmem:[#allocation2 + $0x69] sm:$0xff]  ;;  %330 = vst.msk [vmem:[#allocation2 + $0x2d1] sm:$0xff] %vm37_vm0, %v265_v23  ;;  %290 = vst.msk [vmem:[#allocation2 + $0xc1] sm:$0xff] %vm37_vm0, %v225_v28 }
  0x46   :  { %v458_v18 = vld [vmem:[#allocation2 + $0x289] sm:$0xff]  ;;  %v418_v27 = vld [vmem:[#allocation2 + $0x79] sm:$0xff]  ;;  %331 = vst.msk [vmem:[#allocation2 + $0x2d9] sm:$0xff] %vm37_vm0, %v266_v29  ;;  %291 = vst.msk [vmem:[#allocation2 + $0xc9] sm:$0xff] %vm37_vm0, %v226_v32 }
  0x47   :  { %v459_v31 = vld [vmem:[#allocation2 + $0x291] sm:$0xff]  ;;  %v419_v34 = vld [vmem:[#allocation2 + $0x81] sm:$0xff]  ;;  %332 = vst.msk [vmem:[#allocation2 + $0x2e9] sm:$0xff] %vm37_vm0, %v267_v36  ;;  %292 = vst.msk [vmem:[#allocation2 + $0xd9] sm:$0xff] %vm37_vm0, %v227_v38 }
  0x48   :  { %9346 = vmatmul.mubr.msk.f32.gmra.mxu1 %vm37_vm0, %v455_v5  ;;  %9286 = vmatmul.mubr.msk.f32.gmra.mxu0 %vm37_vm0, %v415_v7  ;;  %v460_v35 = vld [vmem:[#allocation2 + $0x2a1] sm:$0xff]  ;;  %v205_v42 = vld [vmem:[%s13974_s0 + $0x1d0] sm:$0xff]  ;;  %293 = vst.msk [vmem:[#allocation2 + $0xe1] sm:$0xff] %vm37_vm0, %v228_v45  ;;  %v206_v50 = vld [vmem:[%s13974_s0 + $0x1d8] sm:$0xff] }
  0x49   :  { %9348 = vmatprep.mubr.msk.f32.mxu1 %vm37_vm0, %v456_v11  ;;  %9288 = vmatprep.mubr.msk.f32.mxu0 %vm37_vm0, %v416_v12  ;;  %v204_v40 = vld [vmem:[%s13974_s0 + $0x1c8] sm:$0xff]  ;;  %v165_v46 = vld [vmem:[%s13974_s0 + $0x90] sm:$0xff]  ;;  %v269_v48 = vmul.f32 0.003921569, %v205_v42  ;;  %v166_v51 = vld [vmem:[%s13974_s0 + $0x98] sm:$0xff]  ;;  %336 = vst.msk [vmem:[#allocation2 + $0x319] sm:$0xff] %vm37_vm0, %v271_v59 }
  0x4a   :  { %v420_v43 = vld [vmem:[#allocation2 + $0x91] sm:$0xff]  ;;  %v268_v44 = vmul.f32 0.003921569, %v204_v40  ;;  %v461_v47 = vld [vmem:[#allocation2 + $0x2a9] sm:$0xff]  ;;  %v229_v49 = vmul.f32 0.003921569, %v165_v46 }
  0x4b   :  { %v421_v53 = vld [vmem:[#allocation2 + $0x99] sm:$0xff]  ;;  %334 = vst.msk [vmem:[#allocation2 + $0x301] sm:$0xff] %vm37_vm0, %v269_v48  ;;  %v270_v54 = vmul.f32 0.003921569, %v206_v50  ;;  %v230_v55 = vmul.f32 0.003921569, %v166_v51 }
  0x4c   :  { %9349 = vmatmul.mubr.msk.f32.gmra.mxu1 %vm37_vm0, %v457_v15  ;;  %9289 = vmatmul.mubr.msk.f32.gmra.mxu0 %vm37_vm0, %v417_v16  ;;  %333 = vst.msk [vmem:[#allocation2 + $0x2f1] sm:$0xff] %vm37_vm0, %v268_v44  ;;  %294 = vst.msk [vmem:[#allocation2 + $0xf1] sm:$0xff] %vm37_vm0, %v229_v49  ;;  %v167_v56 = vld [vmem:[%s13974_s0 + $0xa0] sm:$0xff]  ;;  %v422_v58 = vld [vmem:[#allocation2 + $0xa9] sm:$0xff] }
  0x4d   :  { %9351 = vmatprep.mubr.msk.f32.mxu1 %vm37_vm0, %v458_v18  ;;  %9291 = vmatprep.mubr.msk.f32.mxu0 %vm37_vm0, %v418_v27  ;;  %v462_v57 = vld [vmem:[#allocation2 + $0x2b9] sm:$0xff]  ;;  %v231_v60 = vmul.f32 0.003921569, %v167_v56  ;;  %335 = vst.msk [vmem:[#allocation2 + $0x309] sm:$0xff] %vm37_vm0, %v270_v54  ;;  %295 = vst.msk [vmem:[#allocation2 + $0xf9] sm:$0xff] %vm37_vm0, %v230_v55  ;;  %v208_v61 = vld [vmem:[%s13974_s0 + $0x1e8] sm:$0xff] }
  0x4e   :  { %v272_v62 = vmul.f32 0.003921569, %v208_v61  ;;  %v168_v63 = vld [vmem:[%s13974_s0 + $0xa8] sm:$0xff]  ;;  %v423_v0 = vld [vmem:[#allocation2 + $0xb1] sm:$0xff]  ;;  %v171_v11 = vld [vmem:[%s13974_s0 + $0xc0] sm:$0xff]  ;;  %299 = vst.msk [vmem:[#allocation2 + $0x129] sm:$0xff] %vm37_vm0, %v234_v10 }
  0x4f   :  { %296 = vst.msk [vmem:[#allocation2 + $0x109] sm:$0xff] %vm37_vm0, %v231_v60  ;;  %v463_v3 = vld [vmem:[#allocation2 + $0x2c1] sm:$0xff]  ;;  %v232_v4 = vmul.f32 0.003921569, %v168_v63  ;;  %v169_v5 = vld [vmem:[%s13974_s0 + $0xb0] sm:$0xff]  ;;  %v465_v12 = vld [vmem:[#allocation2 + $0x2d9] sm:$0xff] }
  0x50   :  { %9352 = vmatmul.mubr.msk.f32.gmra.mxu1 %vm37_vm0, %v459_v31  ;;  %9292 = vmatmul.mubr.msk.f32.gmra.mxu0 %vm37_vm0, %v419_v34  ;;  %v464_v6 = vld [vmem:[#allocation2 + $0x2d1] sm:$0xff]  ;;  %v424_v7 = vld [vmem:[#allocation2 + $0xc1] sm:$0xff]  ;;  %337 = vst.msk [vmem:[#allocation2 + $0x321] sm:$0xff] %vm37_vm0, %v272_v62  ;;  %v233_v8 = vmul.f32 0.003921569, %v169_v5  ;;  %v425_v14 = vld [vmem:[#allocation2 + $0xc9] sm:$0xff] }
  0x51   :  { %9354 = vmatprep.mubr.msk.f32.mxu1 %vm37_vm0, %v460_v35  ;;  %9294 = vmatprep.mubr.msk.f32.mxu0 %vm37_vm0, %v420_v43  ;;  %297 = vst.msk [vmem:[#allocation2 + $0x111] sm:$0xff] %vm37_vm0, %v232_v4  ;;  %v235_v13 = vmul.f32 0.003921569, %v171_v11  ;;  %v172_v15 = vld [vmem:[%s13974_s0 + $0xc8] sm:$0xff]  ;;  %v173_v16 = vld [vmem:[%s13974_s0 + $0xd0] sm:$0xff]  ;;  %v426_v18 = vld [vmem:[#allocation2 + $0xd9] sm:$0xff] }
  0x52   :  { %298 = vst.msk [vmem:[#allocation2 + $0x121] sm:$0xff] %vm37_vm0, %v233_v8  ;;  %v466_v17 = vld [vmem:[#allocation2 + $0x2e9] sm:$0xff]  ;;  %v236_v19 = vmul.f32 0.003921569, %v172_v15  ;;  %v237_v20 = vmul.f32 0.003921569, %v173_v16 }
  0x53   :  { %300 = vst.msk [vmem:[#allocation2 + $0x139] sm:$0xff] %vm37_vm0, %v235_v13  ;;  %v174_v21 = vld [vmem:[%s13974_s0 + $0xd8] sm:$0xff]  ;;  %v175_v22 = vld [vmem:[%s13974_s0 + $0xe0] sm:$0xff]  ;;  %v176_v30 = vld [vmem:[%s13974_s0 + $0xe8] sm:$0xff] }
  0x54   :  { %9355 = vmatmul.mubr.msk.f32.gmra.mxu1 %vm37_vm0, %v461_v47  ;;  %9295 = vmatmul.mubr.msk.f32.gmra.mxu0 %vm37_vm0, %v421_v53  ;;  %301 = vst.msk [vmem:[#allocation2 + $0x141] sm:$0xff] %vm37_vm0, %v236_v19  ;;  %302 = vst.msk [vmem:[#allocation2 + $0x151] sm:$0xff] %vm37_vm0, %v237_v20  ;;  %v467_v23 = vld [vmem:[#allocation2 + $0x2f1] sm:$0xff]  ;;  %v427_v24 = vld [vmem:[#allocation2 + $0xe1] sm:$0xff]  ;;  %v238_v25 = vmul.f32 0.003921569, %v174_v21 }
  0x55   :  { %9357 = vmatprep.mubr.msk.f32.mxu1 %vm37_vm0, %v462_v57  ;;  %9297 = vmatprep.mubr.msk.f32.mxu0 %vm37_vm0, %v422_v58  ;;  %v239_v27 = vmul.f32 0.003921569, %v175_v22  ;;  %v468_v28 = vld [vmem:[#allocation2 + $0x301] sm:$0xff]  ;;  %v428_v29 = vld [vmem:[#allocation2 + $0xf1] sm:$0xff]  ;;  %v240_v31 = vmul.f32 0.003921569, %v176_v30 }
  0x56   :  { %303 = vst.msk [vmem:[#allocation2 + $0x159] sm:$0xff] %vm37_vm0, %v238_v25  ;;  %v469_v32 = vld [vmem:[#allocation2 + $0x309] sm:$0xff]  ;;  %v429_v33 = vld [vmem:[#allocation2 + $0xf9] sm:$0xff]  ;;  %v440_v9 = vld [vmem:[#allocation2 + $0x1b1] sm:$0xff] }
  0x57   :  { %304 = vst.msk [vmem:[#allocation2 + $0x169] sm:$0xff] %vm37_vm0, %v239_v27  ;;  %v470_v34 = vld [vmem:[#allocation2 + $0x319] sm:$0xff]  ;;  %305 = vst.msk [vmem:[#allocation2 + $0x171] sm:$0xff] %vm37_vm0, %v240_v31  ;;  %v430_v36 = vld [vmem:[#allocation2 + $0x109] sm:$0xff] }
  0x58   :  { %9358 = vmatmul.mubr.msk.f32.gmra.mxu1 %vm37_vm0, %v463_v3  ;;  %9298 = vmatmul.mubr.msk.f32.gmra.mxu0 %vm37_vm0, %v423_v0  ;;  %v179_v35 = vld [vmem:[%s13974_s0 + $0x100] sm:$0xff]  ;;  %v180_v38 = vld [vmem:[%s13974_s0 + $0x108] sm:$0xff]  ;;  %v181_v40 = vld [vmem:[%s13974_s0 + $0x110] sm:$0xff] }
  0x59   :  { %9360 = vmatprep.mubr.msk.f32.mxu1 %vm37_vm0, %v464_v6  ;;  %9300 = vmatprep.mubr.msk.f32.mxu0 %vm37_vm0, %v424_v7  ;;  %v243_v37 = vmul.f32 0.003921569, %v179_v35  ;;  %v244_v41 = vmul.f32 0.003921569, %v180_v38  ;;  %v245_v42 = vmul.f32 0.003921569, %v181_v40 }
  0x5a   :  { %v471_v43 = vld [vmem:[#allocation2 + $0x321] sm:$0xff]  ;;  %v182_v44 = vld [vmem:[%s13974_s0 + $0x118] sm:$0xff]  ;;  %v185_v53 = vld [vmem:[%s13974_s0 + $0x130] sm:$0xff]  ;;  %v3827_v35 = vrot.slane %v10451_v2, 7 }
  0x5b   :  { %308 = vst.msk [vmem:[#allocation2 + $0x1c9] sm:$0xff] %vm37_vm0, %v243_v37  ;;  %v431_v45 = vld [vmem:[#allocation2 + $0x111] sm:$0xff]  ;;  %309 = vst.msk [vmem:[#allocation2 + $0x1d1] sm:$0xff] %vm37_vm0, %v244_v41  ;;  %v246_v46 = vmul.f32 0.003921569, %v182_v44  ;;  %v183_v47 = vld [vmem:[%s13974_s0 + $0x120] sm:$0xff] }
  0x5c   :  { %9361 = vmatmul.mubr.msk.f32.gmra.mxu1 %vm37_vm0, %v465_v12  ;;  %9301 = vmatmul.mubr.msk.f32.gmra.mxu0 %vm37_vm0, %v425_v14  ;;  %310 = vst.msk [vmem:[#allocation2 + $0x1e1] sm:$0xff] %vm37_vm0, %v245_v42  ;;  %v184_v48 = vld [vmem:[%s13974_s0 + $0x128] sm:$0xff]  ;;  %v344_v49 = vld [vmem:[#allocation2] sm:$0xff]  ;;  %v247_v51 = vmul.f32 0.003921569, %v183_v47  ;;  %v186_v55 = vld [vmem:[%s13974_s0 + $0x138] sm:$0xff] }
  0x5d   :  { %9363 = vmatprep.mubr.msk.f32.mxu1 %vm37_vm0, %v466_v17  ;;  %9303 = vmatprep.mubr.msk.f32.mxu0 %vm37_vm0, %v426_v18  ;;  %v432_v50 = vld [vmem:[#allocation2 + $0x121] sm:$0xff]  ;;  %v248_v52 = vmul.f32 0.003921569, %v184_v48  ;;  %311 = vst.msk [vmem:[#allocation2 + $0x1e9] sm:$0xff] %vm37_vm0, %v246_v46  ;;  %v249_v54 = vmul.f32 0.003921569, %v185_v53 }
  0x5e   :  { %312 = vst.msk [vmem:[#allocation2 + $0x1f9] sm:$0xff] %vm37_vm0, %v247_v51  ;;  %v345_v56 = vld [vmem:[#allocation2 + $0x8] sm:$0xff]  ;;  %v250_v58 = vmul.f32 0.003921569, %v186_v55  ;;  %v10833_v59 = vld [vmem:[#allocation2 + $0x18] sm:$0xff]  ;;  %v10842_v61 = vld [vmem:[#allocation2 + $0x20] sm:$0xff] }
  0x5f   :  { %313 = vst.msk [vmem:[#allocation2 + $0x201] sm:$0xff] %vm37_vm0, %v248_v52  ;;  %v433_v57 = vld [vmem:[#allocation2 + $0x129] sm:$0xff]  ;;  %v434_v60 = vld [vmem:[#allocation2 + $0x139] sm:$0xff]  ;;  %314 = vst.msk [vmem:[#allocation2 + $0x211] sm:$0xff] %vm37_vm0, %v249_v54 }
  0x60   :  { %9364 = vmatmul.mubr.msk.f32.gmra.mxu1 %vm37_vm0, %v467_v23  ;;  %9304 = vmatmul.mubr.msk.f32.gmra.mxu0 %vm37_vm0, %v427_v24  ;;  %315 = vst.msk [vmem:[#allocation2 + $0x219] sm:$0xff] %vm37_vm0, %v250_v58  ;;  %v435_v62 = vld [vmem:[#allocation2 + $0x141] sm:$0xff]  ;;  %v10844_v63 = vld [vmem:[#allocation2 + $0x30] sm:$0xff]  ;;  %v10855_v0 = vld [vmem:[#allocation2 + $0x38] sm:$0xff] }
  0x61   :  { %9366 = vmatprep.mubr.msk.f32.mxu1 %vm37_vm0, %v468_v28  ;;  %9306 = vmatprep.mubr.msk.f32.mxu0 %vm37_vm0, %v428_v29  ;;  %v436_v3 = vld [vmem:[#allocation2 + $0x151] sm:$0xff]  ;;  %v437_v4 = vld [vmem:[#allocation2 + $0x159] sm:$0xff]  ;;  %v10857_v5 = vld [vmem:[#allocation2 + $0x48] sm:$0xff] }
  0x62   :  { %v438_v6 = vld [vmem:[#allocation2 + $0x169] sm:$0xff]  ;;  %v439_v7 = vld [vmem:[#allocation2 + $0x171] sm:$0xff]  ;;  %v10867_v8 = vld [vmem:[#allocation2 + $0x60] sm:$0xff] }
  0x63   :  { %v10875_v10 = vld [vmem:[#allocation2 + $0x68] sm:$0xff]  ;;  %v441_v11 = vld [vmem:[#allocation2 + $0x1b9] sm:$0xff]  ;;  %v443_v15 = vld [vmem:[#allocation2 + $0x1d1] sm:$0xff] }
  0x64   :  { %9367 = vmatmul.mubr.msk.f32.gmra.mxu1 %vm37_vm0, %v469_v32  ;;  %9307 = vmatmul.mubr.msk.f32.gmra.mxu0 %vm37_vm0, %v429_v33  ;;  %v10877_v12 = vld [vmem:[#allocation2 + $0x78] sm:$0xff]  ;;  %v442_v13 = vld [vmem:[#allocation2 + $0x1c9] sm:$0xff]  ;;  %v10885_v14 = vld [vmem:[#allocation2 + $0x80] sm:$0xff] }
  0x65   :  { %9369 = vmatprep.mubr.msk.f32.mxu1 %vm37_vm0, %v470_v34  ;;  %9309 = vmatprep.mubr.msk.f32.mxu0 %vm37_vm0, %v430_v36  ;;  %v10887_v16 = vld [vmem:[#allocation2 + $0x90] sm:$0xff]  ;;  %v444_v17 = vld [vmem:[#allocation2 + $0x1e1] sm:$0xff]  ;;  %v10895_v18 = vld [vmem:[#allocation2 + $0x98] sm:$0xff] }
  0x66   :  { %v445_v19 = vld [vmem:[#allocation2 + $0x1e9] sm:$0xff]  ;;  %v446_v21 = vld [vmem:[#allocation2 + $0x1f9] sm:$0xff]  ;;  %v447_v23 = vld [vmem:[#allocation2 + $0x201] sm:$0xff] }
  0x67   :  { %v10897_v20 = vld [vmem:[#allocation2 + $0xa8] sm:$0xff]  ;;  %v10905_v22 = vld [vmem:[#allocation2 + $0xb0] sm:$0xff]  ;;  %v10907_v24 = vld [vmem:[#allocation2 + $0xc0] sm:$0xff] }
  0x68   :  { %9370 = vmatmul.mubr.msk.f32.gmra.mxu1 %vm37_vm0, %v471_v43  ;;  %9310 = vmatmul.mubr.msk.f32.gmra.mxu0 %vm37_vm0, %v431_v45  ;;  %v448_v25 = vld [vmem:[#allocation2 + $0x211] sm:$0xff]  ;;  %v10915_v27 = vld [vmem:[#allocation2 + $0xc8] sm:$0xff]  ;;  %v449_v28 = vld [vmem:[#allocation2 + $0x219] sm:$0xff] }
  0x69   :  { %9374 = vmatprep.mubr.msk.f32.mxu1 %vm37_vm0, %v344_v49  ;;  %9312 = vmatprep.mubr.msk.f32.mxu0 %vm37_vm0, %v432_v50  ;;  %v10917_v29 = vld [vmem:[#allocation2 + $0xd8] sm:$0xff]  ;;  %v1633_v30 = vld [vmem:[#allocation2 + $0x2] sm:$0xff]  ;;  %v1634_v32 = vld [vmem:[#allocation2 + $0xa] sm:$0xff] }
  0x6a   :  { %v10924_v31 = vld [vmem:[#allocation2 + $0xe0] sm:$0xff]  ;;  %v10927_v33 = vld [vmem:[#allocation2 + $0xf0] sm:$0xff]  ;;  %v10943_v37 = vld [vmem:[#allocation2 + $0xf8] sm:$0xff] }
  0x6b   :  { %v1635_v34 = vld [vmem:[#allocation2 + $0x1a] sm:$0xff]  ;;  %v10936_v36 = vld [vmem:[%s13973_s1 + $0x10] sm:$0xff]  ;;  %v1636_v38 = vld [vmem:[#allocation2 + $0x22] sm:$0xff] }
  0x6c   :  { %9375 = vmatmul.mubr.msk.f32.vlgmr.msra.gmra.mxu1 %vm37_vm0, %v345_v56  ;;  %9313 = vmatmul.mubr.msk.f32.gmra.mxu0 %vm37_vm0, %v433_v57  ;;  %v3828_v40 = vrot.slane %v10936_v36, 7  ;;  %v13987_v41 = vrot.slane %v10936_v36, 2  ;;  %v10948_v42 = vld [vmem:[#allocation2 + $0x108] sm:$0xff]  ;;  %v1637_v43 = vld [vmem:[#allocation2 + $0x32] sm:$0xff]  ;;  %v10963_v45 = vld [vmem:[#allocation2 + $0x120] sm:$0xff] }
  0x6d   :  { %9377 = vmatprep.mubr.msk.f32.mxu1 %vm37_vm0, %v10833_v59  ;;  %9315 = vmatprep.mubr.msk.f32.mxu0 %vm37_vm0, %v434_v60  ;;  %v10960_v2 = vld [vmem:[#allocation2 + $0x110] sm:$0xff]  ;;  %v10972_v47 = vld [vmem:[#allocation2 + $0x128] sm:$0xff]  ;;  %v10975_v49 = vld [vmem:[#allocation2 + $0x138] sm:$0xff] }
  0x6e   :  { %9569 = vmatpush3.msk.msra.mxu1 %vm666_vm1, %v2409_v39  ;;  %v10865_v39 = vld [vmem:[#allocation2 + $0x50] sm:$0xff]  ;;  %v10950_v44 = vsel %vm3826_vm4, %v3827_v35, %v3828_v40  ;;  %v1641_v50 = vld [vmem:[#allocation2 + $0x62] sm:$0xff]  ;;  %v178_v55 = vld [vmem:[%s13974_s0 + $0xf8] sm:$0xff] }
  0x6f   :  { %v1639_v46 = vld [vmem:[#allocation2 + $0x4a] sm:$0xff]  ;;  %9764 = vmatprep.subr.msk.mxu1 %vm666_vm1, %v10950_v44  ;;  %v1640_v48 = vld [vmem:[#allocation2 + $0x52] sm:$0xff]  ;;  %v10985_v52 = vld [vmem:[#allocation2 + $0x140] sm:$0xff]  ;;  %v242_v58 = vmul.f32 0.003921569, %v178_v55 }
  0x70   :  { %9378 = vmatmul.mubr.msk.f32.gmra.mxu1 %vm37_vm0, %v10842_v61  ;;  %9316 = vmatmul.mubr.msk.f32.gmra.mxu0 %vm37_vm0, %v435_v62  ;;  %v177_v51 = vld [vmem:[%s13974_s0 + $0xf0] sm:$0xff]  ;;  %v1643_v57 = vld [vmem:[#allocation2 + $0x7a] sm:$0xff]  ;;  %v1644_v62 = vld [vmem:[#allocation2 + $0x82] sm:$0xff] }
  0x71   :  { %9380 = vmatprep.mubr.msk.f32.mxu1 %vm37_vm0, %v10844_v63  ;;  %9318 = vmatprep.mubr.msk.f32.mxu0 %vm37_vm0, %v436_v3  ;;  %v1642_v53 = vld [vmem:[#allocation2 + $0x6a] sm:$0xff]  ;;  %v241_v54 = vmul.f32 0.003921569, %v177_v51  ;;  %307 = vst.msk [vmem:[#allocation2 + $0x189] sm:$0xff] %vm37_vm0, %v242_v58  ;;  %v11000_v60 = vld [vmem:[#allocation2 + $0x158] sm:$0xff]  ;;  %v1657_v51 = vld [vmem:[#allocation2 + $0x122] sm:$0xff] }
  0x72   :  { %v10991_v56 = vld [vmem:[#allocation2 + $0x150] sm:$0xff]  ;;  %v11003_v3 = vld [vmem:[#allocation2 + $0x168] sm:$0xff]  ;;  %v1654_v40 = vld [vmem:[#allocation2 + $0xfa] sm:$0xff] }
  0x73   :  { %306 = vst.msk [vmem:[#allocation2 + $0x181] sm:$0xff] %vm37_vm0, %v241_v54  ;;  %v1653_v35 = vld [vmem:[#allocation2 + $0xf2] sm:$0xff]  ;;  %v1658_v54 = vld [vmem:[#allocation2 + $0x12a] sm:$0xff]  ;;  %v11067_v55 = vld [vmem:[#allocation2 + $0x240] sm:$0xff] }
  0x74   :  { %9381 = vmatmul.mubr.msk.f32.gmra.mxu1 %vm37_vm0, %v10855_v0  ;;  %9319 = vmatmul.mubr.msk.f32.gmra.mxu0 %vm37_vm0, %v437_v4  ;;  %v1645_v4 = vld [vmem:[#allocation2 + $0x92] sm:$0xff]  ;;  %v11074_v58 = vld [vmem:[#allocation2 + $0x248] sm:$0xff] }
  0x75   :  { %9383 = vmatprep.mubr.msk.f32.mxu1 %vm37_vm0, %v10857_v5  ;;  %9321 = vmatprep.mubr.msk.f32.mxu0 %vm37_vm0, %v438_v6  ;;  %v11010_v6 = vld [vmem:[#allocation2 + $0x170] sm:$0xff] }
  0x78   :  { %9384 = vmatmul.mubr.msk.f32.gmra.mxu1 %vm37_vm0, %v10865_v39  ;;  %9322 = vmatmul.mubr.msk.f32.gmra.mxu0 %vm37_vm0, %v439_v7  ;;  %v1646_v7 = vld [vmem:[#allocation2 + $0x9a] sm:$0xff] }
  0x79   :  { %9386 = vmatprep.mubr.msk.f32.mxu1 %vm37_vm0, %v10867_v8  ;;  %9324 = vmatprep.mubr.msk.f32.mxu0 %vm37_vm0, %v440_v9  ;;  %v376_v9 = vld [vmem:[#allocation2 + $0x1b0] sm:$0xff] }
  0x7c   :  { %9387 = vmatmul.mubr.msk.f32.gmra.mxu1 %vm37_vm0, %v10875_v10  ;;  %9325 = vmatmul.mubr.msk.f32.gmra.mxu0 %vm37_vm0, %v441_v11  ;;  %v1647_v11 = vld [vmem:[#allocation2 + $0xaa] sm:$0xff] }
  0x7d   :  { %9389 = vmatprep.mubr.msk.f32.mxu1 %vm37_vm0, %v10877_v12  ;;  %9327 = vmatprep.mubr.msk.f32.mxu0 %vm37_vm0, %v442_v13  ;;  %v377_v13 = vld [vmem:[#allocation2 + $0x1b8] sm:$0xff] }
  0x80   :  { %9390 = vmatmul.mubr.msk.f32.gmra.mxu1 %vm37_vm0, %v10885_v14  ;;  %9328 = vmatmul.mubr.msk.f32.gmra.mxu0 %vm37_vm0, %v443_v15  ;;  %v1648_v15 = vld [vmem:[#allocation2 + $0xb2] sm:$0xff] }
  0x81   :  { %9392 = vmatprep.mubr.msk.f32.mxu1 %vm37_vm0, %v10887_v16  ;;  %9330 = vmatprep.mubr.msk.f32.mxu0 %vm37_vm0, %v444_v17  ;;  %v11018_v17 = vld [vmem:[#allocation2 + $0x1c8] sm:$0xff] }
  0x84   :  { %9393 = vmatmul.mubr.msk.f32.gmra.mxu1 %vm37_vm0, %v10895_v18  ;;  %9331 = vmatmul.mubr.msk.f32.gmra.mxu0 %vm37_vm0, %v445_v19  ;;  %v1649_v19 = vld [vmem:[#allocation2 + $0xc2] sm:$0xff] }
  0x85   :  { %9395 = vmatprep.mubr.msk.f32.mxu1 %vm37_vm0, %v10897_v20  ;;  %9333 = vmatprep.mubr.msk.f32.mxu0 %vm37_vm0, %v446_v21  ;;  %v11024_v21 = vld [vmem:[#allocation2 + $0x1d0] sm:$0xff] }
  0x88   :  { %9396 = vmatmul.mubr.msk.f32.gmra.mxu1 %vm37_vm0, %v10905_v22  ;;  %9334 = vmatmul.mubr.msk.f32.gmra.mxu0 %vm37_vm0, %v447_v23  ;;  %v1650_v23 = vld [vmem:[#allocation2 + $0xca] sm:$0xff] }
  0x89   :  { %9398 = vmatprep.mubr.msk.f32.mxu1 %vm37_vm0, %v10907_v24  ;;  %9336 = vmatprep.mubr.msk.f32.mxu0 %vm37_vm0, %v448_v25  ;;  %v11027_v25 = vld [vmem:[#allocation2 + $0x1e0] sm:$0xff] }
  0x8c   :  { %9399 = vmatmul.mubr.msk.f32.gmra.mxu1 %vm37_vm0, %v10915_v27  ;;  %9337 = vmatmul.mubr.msk.f32.gmra.mxu0 %vm37_vm0, %v449_v28  ;;  %v1651_v28 = vld [vmem:[#allocation2 + $0xda] sm:$0xff] }
  0x8d   :  { %9401 = vmatprep.mubr.msk.f32.mxu1 %vm37_vm0, %v10917_v29  ;;  %9472 = vmatprep.mubr.msk.f32.mxu0 %vm37_vm0, %v1633_v30  ;;  %v11034_v30 = vld [vmem:[#allocation2 + $0x1e8] sm:$0xff] }
  0x90   :  { %9402 = vmatmul.mubr.msk.f32.gmra.mxu1 %vm37_vm0, %v10924_v31  ;;  %9473 = vmatmul.mubr.msk.f32.vlgmr.msra.gmra.mxu0 %vm37_vm0, %v1634_v32  ;;  %v1652_v32 = vld [vmem:[#allocation2 + $0xe2] sm:$0xff] }
  0x91   :  { %9667 = vmatpush3.msk.msra.mxu0 %vm666_vm1, %v3117_v26  ;;  %9404 = vmatprep.mubr.msk.f32.mxu1 %vm37_vm0, %v10927_v33  ;;  %v1638_v26 = vld [vmem:[#allocation2 + $0x3a] sm:$0xff] }
  0x92   :  { %9475 = vmatprep.mubr.msk.f32.mxu0 %vm37_vm0, %v1635_v34  ;;  %9862 = vmatprep.subr.msk.mxu0 %vm666_vm1, %v13987_v41  ;;  %v11037_v34 = vld [vmem:[#allocation2 + $0x1f8] sm:$0xff] }
  0x93   :  { %v210_v41 = vld [vmem:[%s13974_s0 + $0x1f8] sm:$0xff] }
  0x94   :  { %9405 = vmatmul.mubr.msk.f32.gmra.mxu1 %vm37_vm0, %v10943_v37  ;;  %9476 = vmatmul.mubr.msk.f32.gmra.mxu0 %vm37_vm0, %v1636_v38  ;;  %v11044_v38 = vld [vmem:[#allocation2 + $0x200] sm:$0xff] }
  0x95   :  { %9407 = vmatprep.mubr.msk.f32.mxu1 %vm37_vm0, %v10948_v42  ;;  %9478 = vmatprep.mubr.msk.f32.mxu0 %vm37_vm0, %v1637_v43  ;;  %v11047_v43 = vld [vmem:[#allocation2 + $0x210] sm:$0xff] }
  0x98   :  { %9408 = vmatmul.mubr.msk.f32.gmra.mxu1 %vm37_vm0, %v10960_v2  ;;  %9479 = vmatmul.mubr.msk.f32.gmra.mxu0 %vm37_vm0, %v1638_v26  ;;  %v1655_v26 = vld [vmem:[#allocation2 + $0x10a] sm:$0xff] }
  0x99   :  { %9410 = vmatprep.mubr.msk.f32.mxu1 %vm37_vm0, %v10963_v45  ;;  %9481 = vmatprep.mubr.msk.f32.mxu0 %vm37_vm0, %v1639_v46  ;;  %v11054_v46 = vld [vmem:[#allocation2 + $0x218] sm:$0xff] }
  0x9c   :  { %9411 = vmatmul.mubr.msk.f32.gmra.mxu1 %vm37_vm0, %v10972_v47  ;;  %9482 = vmatmul.mubr.msk.f32.gmra.mxu0 %vm37_vm0, %v1640_v48  ;;  %v1656_v48 = vld [vmem:[#allocation2 + $0x112] sm:$0xff] }
  0x9d   :  { %9413 = vmatprep.mubr.msk.f32.mxu1 %vm37_vm0, %v10975_v49  ;;  %9484 = vmatprep.mubr.msk.f32.mxu0 %vm37_vm0, %v1641_v50  ;;  %v11057_v50 = vld [vmem:[#allocation2 + $0x228] sm:$0xff] }
  0xa0   :  { %9414 = vmatmul.mubr.msk.f32.gmra.mxu1 %vm37_vm0, %v10985_v52  ;;  %9485 = vmatmul.mubr.msk.f32.gmra.mxu0 %vm37_vm0, %v1642_v53  ;;  %v11064_v53 = vld [vmem:[#allocation2 + $0x230] sm:$0xff] }
  0xa1   :  { %9416 = vmatprep.mubr.msk.f32.mxu1 %vm37_vm0, %v10991_v56  ;;  %9487 = vmatprep.mubr.msk.f32.mxu0 %vm37_vm0, %v1643_v57  ;;  %v1659_v57 = vld [vmem:[#allocation2 + $0x13a] sm:$0xff] }
  0xa4   :  { %9417 = vmatmul.mubr.msk.f32.gmra.mxu1 %vm37_vm0, %v11000_v60  ;;  %9488 = vmatmul.mubr.msk.f32.gmra.mxu0 %vm37_vm0, %v1644_v62  ;;  %v1660_v62 = vld [vmem:[#allocation2 + $0x142] sm:$0xff] }
  0xa5   :  { %9419 = vmatprep.mubr.msk.f32.mxu1 %vm37_vm0, %v11003_v3  ;;  %9490 = vmatprep.mubr.msk.f32.mxu0 %vm37_vm0, %v1645_v4  ;;  %v11077_v4 = vld [vmem:[#allocation2 + $0x258] sm:$0xff] }
  0xa8   :  { %9420 = vmatmul.mubr.msk.f32.gmra.mxu1 %vm37_vm0, %v11010_v6  ;;  %9491 = vmatmul.mubr.msk.f32.gmra.mxu0 %vm37_vm0, %v1646_v7  ;;  %v1661_v7 = vld [vmem:[#allocation2 + $0x152] sm:$0xff] }
  0xa9   :  { %9422 = vmatprep.mubr.msk.f32.mxu1 %vm37_vm0, %v376_v9  ;;  %9493 = vmatprep.mubr.msk.f32.mxu0 %vm37_vm0, %v1647_v11  ;;  %v11084_v9 = vld [vmem:[#allocation2 + $0x260] sm:$0xff] }
  0xaa   :  { %v1662_v11 = vld [vmem:[#allocation2 + $0x15a] sm:$0xff] }
  0xac   :  { %9423 = vmatmul.mubr.msk.f32.gmra.mxu1 %vm37_vm0, %v377_v13  ;;  %9494 = vmatmul.mubr.msk.f32.gmra.mxu0 %vm37_vm0, %v1648_v15  ;;  %v11087_v13 = vld [vmem:[#allocation2 + $0x270] sm:$0xff] }
  0xad   :  { %9425 = vmatprep.mubr.msk.f32.mxu1 %vm37_vm0, %v11018_v17  ;;  %9496 = vmatprep.mubr.msk.f32.mxu0 %vm37_vm0, %v1649_v19  ;;  %v1663_v15 = vld [vmem:[#allocation2 + $0x16a] sm:$0xff]  ;;  %v11094_v19 = vld [vmem:[#allocation2 + $0x278] sm:$0xff] }
  0xb0   :  { %9426 = vmatmul.mubr.msk.f32.gmra.mxu1 %vm37_vm0, %v11024_v21  ;;  %9497 = vmatmul.mubr.msk.f32.gmra.mxu0 %vm37_vm0, %v1650_v23  ;;  %v1664_v23 = vld [vmem:[#allocation2 + $0x172] sm:$0xff] }
  0xb1   :  { %9428 = vmatprep.mubr.msk.f32.mxu1 %vm37_vm0, %v11027_v25  ;;  %9499 = vmatprep.mubr.msk.f32.mxu0 %vm37_vm0, %v1651_v28  ;;  %v11097_v28 = vld [vmem:[#allocation2 + $0x288] sm:$0xff] }
  0xb4   :  { %9429 = vmatmul.mubr.msk.f32.gmra.mxu1 %vm37_vm0, %v11034_v30  ;;  %9500 = vmatmul.mubr.msk.f32.gmra.mxu0 %vm37_vm0, %v1652_v32  ;;  %v1665_v32 = vld [vmem:[#allocation2 + $0x1b2] sm:$0xff] }
  0xb5   :  { %9431 = vmatprep.mubr.msk.f32.mxu1 %vm37_vm0, %v11037_v34  ;;  %9502 = vmatprep.mubr.msk.f32.mxu0 %vm37_vm0, %v1653_v35  ;;  %v11104_v35 = vld [vmem:[#allocation2 + $0x290] sm:$0xff] }
  0xb8   :  { %9432 = vmatmul.mubr.msk.f32.gmra.mxu1 %vm37_vm0, %v11044_v38  ;;  %9503 = vmatmul.mubr.msk.f32.gmra.mxu0 %vm37_vm0, %v1654_v40  ;;  %v1666_v40 = vld [vmem:[#allocation2 + $0x1ba] sm:$0xff] }
  0xb9   :  { %9434 = vmatprep.mubr.msk.f32.mxu1 %vm37_vm0, %v11047_v43  ;;  %9505 = vmatprep.mubr.msk.f32.mxu0 %vm37_vm0, %v1655_v26  ;;  %v11107_v26 = vld [vmem:[#allocation2 + $0x2a0] sm:$0xff] }
  0xbc   :  { %9435 = vmatmul.mubr.msk.f32.gmra.mxu1 %vm37_vm0, %v11054_v46  ;;  %9506 = vmatmul.mubr.msk.f32.gmra.mxu0 %vm37_vm0, %v1656_v48  ;;  %v1667_v48 = vld [vmem:[#allocation2 + $0x1ca] sm:$0xff] }
  0xbd   :  { %9437 = vmatprep.mubr.msk.f32.mxu1 %vm37_vm0, %v11057_v50  ;;  %9508 = vmatprep.mubr.msk.f32.mxu0 %vm37_vm0, %v1657_v51  ;;  %v11114_v51 = vld [vmem:[#allocation2 + $0x2a8] sm:$0xff] }
  0xc0   :  { %9438 = vmatmul.mubr.msk.f32.gmra.mxu1 %vm37_vm0, %v11064_v53  ;;  %9509 = vmatmul.mubr.msk.f32.gmra.mxu0 %vm37_vm0, %v1658_v54  ;;  %v1668_v54 = vld [vmem:[#allocation2 + $0x1d2] sm:$0xff] }
  0xc1   :  { %9440 = vmatprep.mubr.msk.f32.mxu1 %vm37_vm0, %v11067_v55  ;;  %9511 = vmatprep.mubr.msk.f32.mxu0 %vm37_vm0, %v1659_v57  ;;  %v11117_v57 = vld [vmem:[#allocation2 + $0x2b8] sm:$0xff] }
  0xc4   :  { %9441 = vmatmul.mubr.msk.f32.gmra.mxu1 %vm37_vm0, %v11074_v58  ;;  %9512 = vmatmul.mubr.msk.f32.gmra.mxu0 %vm37_vm0, %v1660_v62  ;;  %v1669_v62 = vld [vmem:[#allocation2 + $0x1e2] sm:$0xff] }
  0xc5   :  { %9443 = vmatprep.mubr.msk.f32.mxu1 %vm37_vm0, %v11077_v4  ;;  %9514 = vmatprep.mubr.msk.f32.mxu0 %vm37_vm0, %v1661_v7  ;;  %v11124_v7 = vld [vmem:[#allocation2 + $0x2c0] sm:$0xff] }
  0xc8   :  { %9444 = vmatmul.mubr.msk.f32.gmra.mxu1 %vm37_vm0, %v11084_v9  ;;  %9515 = vmatmul.mubr.msk.f32.gmra.mxu0 %vm37_vm0, %v1662_v11  ;;  %v1670_v11 = vld [vmem:[#allocation2 + $0x1ea] sm:$0xff] }
  0xc9   :  { %9446 = vmatprep.mubr.msk.f32.mxu1 %vm37_vm0, %v11087_v13  ;;  %9517 = vmatprep.mubr.msk.f32.mxu0 %vm37_vm0, %v1663_v15  ;;  %v11127_v15 = vld [vmem:[#allocation2 + $0x2d0] sm:$0xff] }
  0xca   :  { %13992 = vst [vmem:[#allocation6_spill] sm:$0xff] %v11127_v15 }
  0xcc   :  { %9447 = vmatmul.mubr.msk.f32.gmra.mxu1 %vm37_vm0, %v11094_v19  ;;  %9518 = vmatmul.mubr.msk.f32.gmra.mxu0 %vm37_vm0, %v1664_v23  ;;  %v1671_v23 = vld [vmem:[#allocation2 + $0x1fa] sm:$0xff] }
  0xcd   :  { %9449 = vmatprep.mubr.msk.f32.mxu1 %vm37_vm0, %v11097_v28  ;;  %9520 = vmatprep.mubr.msk.f32.mxu0 %vm37_vm0, %v1665_v32  ;;  %v11134_v32 = vld [vmem:[#allocation2 + $0x2d8] sm:$0xff] }
  0xce   :  { %13993 = vst [vmem:[#allocation7_spill] sm:$0xff] %v11134_v32 }
  0xd0   :  { %9450 = vmatmul.mubr.msk.f32.gmra.mxu1 %vm37_vm0, %v11104_v35  ;;  %9521 = vmatmul.mubr.msk.f32.gmra.mxu0 %vm37_vm0, %v1666_v40  ;;  %v1672_v40 = vld [vmem:[#allocation2 + $0x202] sm:$0xff] }
  0xd1   :  { %9452 = vmatprep.mubr.msk.f32.mxu1 %vm37_vm0, %v11107_v26  ;;  %9523 = vmatprep.mubr.msk.f32.mxu0 %vm37_vm0, %v1667_v48  ;;  %v11137_v48 = vld [vmem:[#allocation2 + $0x2e8] sm:$0xff] }
  0xd2   :  { %13994 = vst [vmem:[#allocation8_spill] sm:$0xff] %v11137_v48 }
  0xd4   :  { %9453 = vmatmul.mubr.msk.f32.gmra.mxu1 %vm37_vm0, %v11114_v51  ;;  %9524 = vmatmul.mubr.msk.f32.gmra.mxu0 %vm37_vm0, %v1668_v54  ;;  %v1673_v54 = vld [vmem:[#allocation2 + $0x212] sm:$0xff] }
  0xd5   :  { %9455 = vmatprep.mubr.msk.f32.mxu1 %vm37_vm0, %v11117_v57  ;;  %9526 = vmatprep.mubr.msk.f32.mxu0 %vm37_vm0, %v1669_v62  ;;  %v209_v62 = vld [vmem:[%s13974_s0 + $0x1f0] sm:$0xff] }
  0xd6   :  { %v273_v1 = vmul.f32 0.003921569, %v209_v62  ;;  %v1676_v62 = vld [vmem:[#allocation2 + $0x232] sm:$0xff] }
  0xd8   :  { %9456 = vmatmul.mubr.msk.f32.gmra.mxu1 %vm37_vm0, %v11124_v7  ;;  %9527 = vmatmul.mubr.msk.f32.gmra.mxu0 %vm37_vm0, %v1670_v11  ;;  %v11147_v11 = vld [vmem:[#allocation2 + $0x2f0] sm:$0xff]  ;;  %338 = vst.msk [vmem:[#allocation2 + $0x331] sm:$0xff] %vm37_vm0, %v273_v1  ;;  %v11172_v1 = vld [vmem:[#allocation2 + $0x320] sm:$0xff] }
  0xd9   :  { %9458 = vmatprep.mubr.msk.f32.mxu1 %vm37_vm0, %v11127_v15  ;;  %9529 = vmatprep.mubr.msk.f32.mxu0 %vm37_vm0, %v1671_v23  ;;  %v1674_v23 = vld [vmem:[#allocation2 + $0x21a] sm:$0xff]  ;;  %v274_v15 = vmul.f32 0.003921569, %v210_v41  ;;  %v1677_v41 = vld [vmem:[#allocation2 + $0x242] sm:$0xff]  ;;  %13995 = vst [vmem:[#allocation9_spill] sm:$0xff] %v11172_v1 }
  0xdb   :  { %339 = vst.msk [vmem:[#allocation2 + $0x339] sm:$0xff] %vm37_vm0, %v274_v15  ;;  %v1678_v15 = vld [vmem:[#allocation2 + $0x24a] sm:$0xff] }
  0xdc   :  { %9459 = vmatmul.mubr.msk.f32.gmra.mxu1 %vm37_vm0, %v11134_v32  ;;  %9530 = vmatmul.mubr.msk.f32.gmra.mxu0 %vm37_vm0, %v1672_v40  ;;  %v11153_v32 = vld [vmem:[#allocation2 + $0x300] sm:$0xff]  ;;  %v1675_v40 = vld [vmem:[#allocation2 + $0x22a] sm:$0xff] }
  0xdd   :  { %9461 = vmatprep.mubr.msk.f32.mxu1 %vm37_vm0, %v11137_v48  ;;  %9532 = vmatprep.mubr.msk.f32.mxu0 %vm37_vm0, %v1673_v54  ;;  %v11162_v54 = vld [vmem:[#allocation2 + $0x308] sm:$0xff]  ;;  %v11165_v48 = vld [vmem:[#allocation2 + $0x318] sm:$0xff] }
  0xe0   :  { %9462 = vmatmul.mubr.msk.f32.gmra.mxu1 %vm37_vm0, %v11147_v11  ;;  %9533 = vmatmul.mubr.msk.f32.gmra.mxu0 %vm37_vm0, %v1674_v23  ;;  %v1679_v23 = vld [vmem:[#allocation2 + $0x25a] sm:$0xff] }
  0xe1   :  { %9464 = vmatprep.mubr.msk.f32.mxu1 %vm37_vm0, %v11153_v32  ;;  %9535 = vmatprep.mubr.msk.f32.mxu0 %vm37_vm0, %v1675_v40  ;;  %v1680_v40 = vld [vmem:[#allocation2 + $0x262] sm:$0xff] }
  0xe4   :  { %9465 = vmatmul.mubr.msk.f32.gmra.mxu1 %vm37_vm0, %v11162_v54  ;;  %9536 = vmatmul.mubr.msk.f32.gmra.mxu0 %vm37_vm0, %v1676_v62  ;;  %v1681_v62 = vld [vmem:[#allocation2 + $0x272] sm:$0xff] }
  0xe5   :  { %9467 = vmatprep.mubr.msk.f32.mxu1 %vm37_vm0, %v11165_v48  ;;  %9538 = vmatprep.mubr.msk.f32.mxu0 %vm37_vm0, %v1677_v41  ;;  %v1682_v41 = vld [vmem:[#allocation2 + $0x27a] sm:$0xff] }
  0xe8   :  { %9468 = vmatmul.mubr.msk.f32.gmra.mxu1 %vm37_vm0, %v11172_v1  ;;  %9539 = vmatmul.mubr.msk.f32.gmra.mxu0 %vm37_vm0, %v1678_v15  ;;  %v1683_v1 = vld [vmem:[#allocation2 + $0x28a] sm:$0xff] }
  0xe9   :  { %9570 = vmatprep.mubr.msk.f32.mxu1 %vm37_vm0, %v10833_v59  ;;  %9541 = vmatprep.mubr.msk.f32.mxu0 %vm37_vm0, %v1679_v23  ;;  %v1684_v59 = vld [vmem:[#allocation2 + $0x292] sm:$0xff] }
  0xec   :  { %9571 = vmatmul.mubr.msk.f32.vlgmr.msra.gmra.mxu1 %vm37_vm0, %v10842_v61  ;;  %9542 = vmatmul.mubr.msk.f32.gmra.mxu0 %vm37_vm0, %v1680_v40  ;;  %v1685_v61 = vld [vmem:[#allocation2 + $0x2a2] sm:$0xff] }
  0xed   :  { %9573 = vmatprep.mubr.msk.f32.mxu1 %vm37_vm0, %v10844_v63  ;;  %9544 = vmatprep.mubr.msk.f32.mxu0 %vm37_vm0, %v1681_v62  ;;  %v1686_v63 = vld [vmem:[#allocation2 + $0x2aa] sm:$0xff]  ;;  %v1693_v40 = vld [vmem:[#allocation2 + $0x302] sm:$0xff] }
  0xee   :  { %9765 = vmatpush3.msk.msra.mxu1 %vm666_vm1, %v10950_v44 }
  0xf0   :  { %9574 = vmatmul.mubr.msk.f32.gmra.mxu1 %vm37_vm0, %v10855_v0  ;;  %9545 = vmatmul.mubr.msk.f32.gmra.mxu0 %vm37_vm0, %v1682_v41  ;;  %v1687_v0 = vld [vmem:[#allocation2 + $0x2ba] sm:$0xff] }
  0xf1   :  { %9576 = vmatprep.mubr.msk.f32.mxu1 %vm37_vm0, %v10857_v5  ;;  %9547 = vmatprep.mubr.msk.f32.mxu0 %vm37_vm0, %v1683_v1  ;;  %v1688_v5 = vld [vmem:[#allocation2 + $0x2c2] sm:$0xff] }
  0xf4   :  { %9577 = vmatmul.mubr.msk.f32.gmra.mxu1 %vm37_vm0, %v10865_v39  ;;  %9548 = vmatmul.mubr.msk.f32.gmra.mxu0 %vm37_vm0, %v1684_v59  ;;  %v1689_v39 = vld [vmem:[#allocation2 + $0x2d2] sm:$0xff] }
  0xf5   :  { %9579 = vmatprep.mubr.msk.f32.mxu1 %vm37_vm0, %v10867_v8  ;;  %9550 = vmatprep.mubr.msk.f32.mxu0 %vm37_vm0, %v1685_v61  ;;  %v11209_v8 = vpop.f32.mrf.mxu0  ;;  %v1695_v61 = vld [vmem:[#allocation2 + $0x31a] sm:$0xff] }
  0xf7   :  { %v11215_v44 = vpop.f32.mrf.mxu0 }
  0xf8   :  { %9580 = vmatmul.mubr.msk.f32.gmra.mxu1 %vm37_vm0, %v10875_v10  ;;  %9551 = vmatmul.mubr.msk.f32.gmra.mxu0 %vm37_vm0, %v1686_v63  ;;  %v1690_v10 = vld [vmem:[#allocation2 + $0x2da] sm:$0xff] }
  0xf9   :  { %9582 = vmatprep.mubr.msk.f32.mxu1 %vm37_vm0, %v10877_v12  ;;  %9553 = vmatprep.mubr.msk.f32.mxu0 %vm37_vm0, %v1687_v0  ;;  %v1691_v12 = vld [vmem:[#allocation2 + $0x2ea] sm:$0xff] }
  0xfc   :  { %9583 = vmatmul.mubr.msk.f32.gmra.mxu1 %vm37_vm0, %v10885_v14  ;;  %9554 = vmatmul.mubr.msk.f32.gmra.mxu0 %vm37_vm0, %v1688_v5  ;;  %v1692_v14 = vld [vmem:[#allocation2 + $0x2f2] sm:$0xff] }
  0xfd   :  { %9585 = vmatprep.mubr.msk.f32.mxu1 %vm37_vm0, %v10887_v16  ;;  %9556 = vmatprep.mubr.msk.f32.mxu0 %vm37_vm0, %v1689_v39  ;;  %v3053_v39 = vld [vmem:[#allocation2 + $0x19] sm:$0xff] }
 0x100   :  { %v11217_v1 = vpop.f32.mrf.mxu1  ;;  %9586 = vmatmul.mubr.msk.f32.gmra.mxu1 %vm37_vm0, %v10895_v18  ;;  %v11221_v15 = vpop.f32.mrf.mxu0  ;;  %9557 = vmatmul.mubr.msk.f32.gmra.mxu0 %vm37_vm0, %v1690_v10 }
 0x101   :  { %9588 = vmatprep.mubr.msk.f32.mxu1 %vm37_vm0, %v10897_v20  ;;  %9559 = vmatprep.mubr.msk.f32.mxu0 %vm37_vm0, %v1691_v12  ;;  %v1694_v20 = vld [vmem:[#allocation2 + $0x30a] sm:$0xff] }
 0x102   :  { %v11227_v16 = vpop.f32.mrf.mxu1  ;;  %v11229_v23 = vpop.f32.mrf.mxu0 }
 0x104   :  { %v11231_v62 = vpop.f32.mrf.mxu1  ;;  %9589 = vmatmul.mubr.msk.f32.gmra.mxu1 %vm37_vm0, %v10905_v22  ;;  %v11235_v18 = vpop.f32.mrf.mxu0  ;;  %9560 = vmatmul.mubr.msk.f32.gmra.mxu0 %vm37_vm0, %v1692_v14 }
 0x105   :  { %9591 = vmatprep.mubr.msk.f32.mxu1 %vm37_vm0, %v10907_v24  ;;  %9562 = vmatprep.mubr.msk.f32.mxu0 %vm37_vm0, %v1693_v40  ;;  %v1696_v24 = vld [vmem:[#allocation2 + $0x322] sm:$0xff]  ;;  %v3055_v40 = vld [vmem:[#allocation2 + $0x31] sm:$0xff] }
 0x106   :  { %v11241_v41 = vpop.f32.mrf.mxu1  ;;  %v11243_v59 = vpop.f32.mrf.mxu0 }
 0x107   :  { %13996 = vst [vmem:[#allocation10_spill] sm:$0xff] %v11241_v41 }
 0x108   :  { %v11245_v63 = vpop.f32.mrf.mxu1  ;;  %9592 = vmatmul.mubr.msk.f32.gmra.mxu1 %vm37_vm0, %v10915_v27  ;;  %v11249_v22 = vpop.f32.mrf.mxu0  ;;  %9563 = vmatmul.mubr.msk.f32.gmra.mxu0 %vm37_vm0, %v1694_v20 }
 0x109   :  { %13997 = vst [vmem:[#allocation11_spill] sm:$0xff] %v11245_v63  ;;  %9594 = vmatprep.mubr.msk.f32.mxu1 %vm37_vm0, %v10917_v29  ;;  %9565 = vmatprep.mubr.msk.f32.mxu0 %vm37_vm0, %v1695_v61  ;;  %v3054_v29 = vld [vmem:[#allocation2 + $0x21] sm:$0xff] }
 0x10a   :  { %v11255_v0 = vpop.f32.mrf.mxu1  ;;  %v11257_v5 = vpop.f32.mrf.mxu0 }
 0x10b   :  { %13998 = vst [vmem:[#allocation12_spill] sm:$0xff] %v11255_v0  ;;  %v3067_v0 = vld [vmem:[#allocation2 + $0xc1] sm:$0xff] }
 0x10c   :  { %v11259_v10 = vpop.f32.mrf.mxu1  ;;  %9595 = vmatmul.mubr.msk.f32.gmra.mxu1 %vm37_vm0, %v10924_v31  ;;  %v11263_v27 = vpop.f32.mrf.mxu0  ;;  %9566 = vmatmul.mubr.msk.f32.gmra.mxu0 %vm37_vm0, %v1696_v24  ;;  %v3056_v24 = vld [vmem:[#allocation2 + $0x39] sm:$0xff] }
 0x10d   :  { %13999 = vst [vmem:[#allocation13_spill] sm:$0xff] %v11259_v10  ;;  %9597 = vmatprep.mubr.msk.f32.mxu1 %vm37_vm0, %v10927_v33  ;;  %9668 = vmatprep.mubr.msk.f32.mxu0 %vm37_vm0, %v3053_v39  ;;  %v14002_v33 = vrot.slane %v10936_v36, 2  ;;  %v11289_v39 = vld [vmem:[%s13973_s1 + $0x18] sm:$0x7] }
 0x10e   :  { %v11269_v12 = vpop.f32.mrf.mxu1  ;;  %v11271_v14 = vpop.f32.mrf.mxu0 }
 0x10f   :  { %14000 = vst [vmem:[#allocation14_spill] sm:$0xff] %v11269_v12  ;;  %v3059_v12 = vld [vmem:[#allocation2 + $0x61] sm:$0xff] }
 0x110   :  { %v11274_v61 = vpop.f32.mrf.mxu1  ;;  %9598 = vmatmul.mubr.msk.f32.gmra.mxu1 %vm37_vm0, %v10943_v37  ;;  %v11278_v31 = vpop.f32.mrf.mxu0  ;;  %9669 = vmatmul.mubr.msk.f32.vlgmr.msra.gmra.mxu0 %vm37_vm0, %v3054_v29  ;;  %v3057_v29 = vld [vmem:[#allocation2 + $0x49] sm:$0xff] }
 0x111   :  { %14001 = vst [vmem:[#allocation15_spill] sm:$0xff] %v11274_v61  ;;  %9863 = vmatpush3.msk.msra.mxu0 %vm666_vm1, %v14002_v33  ;;  %9600 = vmatprep.mubr.msk.f32.mxu1 %vm37_vm0, %v10948_v42  ;;  %v14004_v61 = vrot.slane %v10936_v36, 5 }
 0x112   :  { %v11291_v20 = vpop.f32.mrf.mxu1  ;;  %v11293_v37 = vpop.f32.mrf.mxu0  ;;  %9671 = vmatprep.mubr.msk.f32.mxu0 %vm37_vm0, %v3055_v40  ;;  %10058 = vmatprep.subr.msk.mxu0 %vm666_vm1, %v11289_v39  ;;  %v3058_v40 = vld [vmem:[#allocation2 + $0x51] sm:$0xff] }
 0x113   :  { %14003 = vst [vmem:[#allocation16_spill] sm:$0xff] %v11291_v20  ;;  %9960 = vmatprep.subr.msk.mxu1 %vm666_vm1, %v14004_v61 }
 0x114   :  { %v11301_v42 = vpop.f32.mrf.mxu1  ;;  %9601 = vmatmul.mubr.msk.f32.gmra.mxu1 %vm37_vm0, %v10960_v2  ;;  %v11305_v33 = vpop.f32.mrf.mxu0  ;;  %9672 = vmatmul.mubr.msk.f32.gmra.mxu0 %vm37_vm0, %v3056_v24 }
 0x115   :  { %14005 = vst [vmem:[#allocation17_spill] sm:$0xff] %v11301_v42  ;;  %9603 = vmatprep.mubr.msk.f32.mxu1 %vm37_vm0, %v10963_v45  ;;  %9674 = vmatprep.mubr.msk.f32.mxu0 %vm37_vm0, %v3057_v29  ;;  %v3060_v45 = vld [vmem:[#allocation2 + $0x69] sm:$0xff] }
 0x116   :  { %v11311_v20 = vpop.f32.mrf.mxu1  ;;  %v11313_v61 = vpop.f32.mrf.mxu0 }
 0x117   :  { %14006 = vst [vmem:[#allocation18_spill] sm:$0xff] %v11311_v20  ;;  %v3061_v20 = vld [vmem:[#allocation2 + $0x79] sm:$0xff] }
 0x118   :  { %v11315_v10 = vpop.f32.mrf.mxu1  ;;  %9604 = vmatmul.mubr.msk.f32.gmra.mxu1 %vm37_vm0, %v10972_v47  ;;  %v11319_v2 = vpop.f32.mrf.mxu0  ;;  %9675 = vmatmul.mubr.msk.f32.gmra.mxu0 %vm37_vm0, %v3058_v40 }
 0x119   :  { %14007 = vst [vmem:[#allocation19_spill] sm:$0xff] %v11315_v10  ;;  %9606 = vmatprep.mubr.msk.f32.mxu1 %vm37_vm0, %v10975_v49  ;;  %9677 = vmatprep.mubr.msk.f32.mxu0 %vm37_vm0, %v3059_v12  ;;  %v3062_v49 = vld [vmem:[#allocation2 + $0x81] sm:$0xff] }
 0x11a   :  { %v11325_v24 = vpop.f32.mrf.mxu1  ;;  %v11327_v29 = vpop.f32.mrf.mxu0 }
 0x11b   :  { %14008 = vst [vmem:[#allocation20_spill] sm:$0xff] %v11325_v24  ;;  %v3063_v24 = vld [vmem:[#allocation2 + $0x91] sm:$0xff] }
 0x11c   :  { %v11329_v42 = vpop.f32.mrf.mxu1  ;;  %9607 = vmatmul.mubr.msk.f32.gmra.mxu1 %vm37_vm0, %v10985_v52  ;;  %v11333_v47 = vpop.f32.mrf.mxu0  ;;  %9678 = vmatmul.mubr.msk.f32.gmra.mxu0 %vm37_vm0, %v3060_v45 }
 0x11d   :  { %14009 = vst [vmem:[#allocation21_spill] sm:$0xff] %v11329_v42  ;;  %9609 = vmatprep.mubr.msk.f32.mxu1 %vm37_vm0, %v10991_v56  ;;  %9680 = vmatprep.mubr.msk.f32.mxu0 %vm37_vm0, %v3061_v20  ;;  %v3064_v56 = vld [vmem:[#allocation2 + $0x99] sm:$0xff]  ;;  %v3065_v42 = vld [vmem:[#allocation2 + $0xa9] sm:$0xff] }
 0x11e   :  { %v11339_v12 = vpop.f32.mrf.mxu1  ;;  %v11341_v40 = vpop.f32.mrf.mxu0 }
 0x11f   :  { %14010 = vst [vmem:[#allocation22_spill] sm:$0xff] %v11339_v12  ;;  %v2375_v12 = vld [vmem:[#allocation2 + $0x180] sm:$0xff] }
 0x120   :  { %v11343_v10 = vpop.f32.mrf.mxu1  ;;  %9610 = vmatmul.mubr.msk.f32.gmra.mxu1 %vm37_vm0, %v11000_v60  ;;  %v11347_v52 = vpop.f32.mrf.mxu0  ;;  %9681 = vmatmul.mubr.msk.f32.gmra.mxu0 %vm37_vm0, %v3062_v49 }
 0x121   :  { %14011 = vst [vmem:[#allocation23_spill] sm:$0xff] %v11343_v10  ;;  %9612 = vmatprep.mubr.msk.f32.mxu1 %vm37_vm0, %v11003_v3  ;;  %9683 = vmatprep.mubr.msk.f32.mxu0 %vm37_vm0, %v3063_v24  ;;  %v2376_v3 = vld [vmem:[#allocation2 + $0x188] sm:$0xff]  ;;  %v3066_v24 = vld [vmem:[#allocation2 + $0xb1] sm:$0xff] }
 0x122   :  { %v11353_v20 = vpop.f32.mrf.mxu1  ;;  %v11355_v45 = vpop.f32.mrf.mxu0 }
 0x123   :  { %14012 = vst [vmem:[#allocation24_spill] sm:$0xff] %v11353_v20 }
 0x124   :  { %v11357_v10 = vpop.f32.mrf.mxu1  ;;  %9613 = vmatmul.mubr.msk.f32.gmra.mxu1 %vm37_vm0, %v11010_v6  ;;  %v11361_v60 = vpop.f32.mrf.mxu0  ;;  %9684 = vmatmul.mubr.msk.f32.gmra.mxu0 %vm37_vm0, %v3064_v56 }
 0x125   :  { %14013 = vst [vmem:[#allocation25_spill] sm:$0xff] %v11357_v10  ;;  %9615 = vmatprep.mubr.msk.f32.mxu1 %vm37_vm0, %v2375_v12  ;;  %9686 = vmatprep.mubr.msk.f32.mxu0 %vm37_vm0, %v3065_v42  ;;  %v3068_v42 = vld [vmem:[#allocation2 + $0xc9] sm:$0xff] }
 0x126   :  { %v11366_v49 = vpop.f32.mrf.mxu1  ;;  %v11368_v20 = vpop.f32.mrf.mxu0 }
 0x127   :  { %14014 = vst [vmem:[#allocation26_spill] sm:$0xff] %v11366_v49  ;;  %v3069_v49 = vld [vmem:[#allocation2 + $0xd9] sm:$0xff] }
 0x128   :  { %v11370_v63 = vpop.f32.mrf.mxu1  ;;  %9616 = vmatmul.mubr.msk.f32.gmra.mxu1 %vm37_vm0, %v2376_v3  ;;  %v11373_v6 = vpop.f32.mrf.mxu0  ;;  %9687 = vmatmul.mubr.msk.f32.gmra.mxu0 %vm37_vm0, %v3066_v24 }
 0x129   :  { %14015 = vst [vmem:[#allocation27_spill] sm:$0xff] %v11370_v63  ;;  %9618 = vmatprep.mubr.msk.f32.mxu1 %vm37_vm0, %v11018_v17  ;;  %9689 = vmatprep.mubr.msk.f32.mxu0 %vm37_vm0, %v3067_v0  ;;  %v3070_v17 = vld [vmem:[#allocation2 + $0xe1] sm:$0xff]  ;;  %v3071_v63 = vld [vmem:[#allocation2 + $0xf1] sm:$0xff] }
 0x12a   :  { %v11379_v12 = vpop.f32.mrf.mxu1  ;;  %v11381_v56 = vpop.f32.mrf.mxu0 }
 0x12b   :  { %14016 = vst [vmem:[#allocation28_spill] sm:$0xff] %v11379_v12 }
 0x12c   :  { %v9376_v10 = vpop.f32.mrf.mxu1  ;;  %9619 = vmatmul.mubr.msk.f32.gmra.mxu1 %vm37_vm0, %v11024_v21  ;;  %v11385_v3 = vpop.f32.mrf.mxu0  ;;  %9690 = vmatmul.mubr.msk.f32.gmra.mxu0 %vm37_vm0, %v3068_v42 }
 0x12d   :  { %v11389_v24 = vadd.f32 %v9376_v10, %v11209_v8  ;;  %9621 = vmatprep.mubr.msk.f32.mxu1 %vm37_vm0, %v11027_v25  ;;  %9692 = vmatprep.mubr.msk.f32.mxu0 %vm37_vm0, %v3069_v49  ;;  %v3072_v8 = vld [vmem:[#allocation2 + $0xf9] sm:$0xff]  ;;  %v3073_v49 = vld [vmem:[#allocation2 + $0x109] sm:$0xff] }
 0x12e   :  { %v1314_v0 = vpop.f32.mrf.mxu1  ;;  %v11394_v12 = vpop.f32.mrf.mxu0 }
 0x12f   :  { %v11397_v41 = vadd.f32 %v1314_v0, %v11215_v44 }
 0x130   :  { %v9379_v21 = vpop.f32.mrf.mxu1  ;;  %9622 = vmatmul.mubr.msk.f32.gmra.mxu1 %vm37_vm0, %v11034_v30  ;;  %v11401_v42 = vpop.f32.mrf.mxu0  ;;  %9693 = vmatmul.mubr.msk.f32.gmra.mxu0 %vm37_vm0, %v3070_v17 }
 0x131   :  { %v11405_v25 = vadd.f32 %v9379_v21, %v11221_v15  ;;  %9624 = vmatprep.mubr.msk.f32.mxu1 %vm37_vm0, %v11037_v34  ;;  %9695 = vmatprep.mubr.msk.f32.mxu0 %vm37_vm0, %v3071_v63  ;;  %v3074_v15 = vld [vmem:[#allocation2 + $0x111] sm:$0xff]  ;;  %v3075_v21 = vld [vmem:[#allocation2 + $0x121] sm:$0xff] }
 0x132   :  { %v1324_v10 = vpop.f32.mrf.mxu1  ;;  %v11410_v44 = vpop.f32.mrf.mxu0 }
 0x133   :  { %v11413_v0 = vadd.f32 %v1324_v10, %v11229_v23 }
 0x134   :  { %v9382_v30 = vpop.f32.mrf.mxu1  ;;  %9625 = vmatmul.mubr.msk.f32.gmra.mxu1 %vm37_vm0, %v11044_v38  ;;  %v11417_v17 = vpop.f32.mrf.mxu0  ;;  %9696 = vmatmul.mubr.msk.f32.gmra.mxu0 %vm37_vm0, %v3072_v8 }
 0x135   :  { %v11421_v34 = vadd.f32 %v9382_v30, %v11235_v18  ;;  %9627 = vmatprep.mubr.msk.f32.mxu1 %vm37_vm0, %v11047_v43  ;;  %9698 = vmatprep.mubr.msk.f32.mxu0 %vm37_vm0, %v3073_v49  ;;  %v3076_v18 = vld [vmem:[#allocation2 + $0x129] sm:$0xff]  ;;  %v3077_v30 = vld [vmem:[#allocation2 + $0x139] sm:$0xff] }
 0x136   :  { %v1334_v63 = vpop.f32.mrf.mxu1  ;;  %v11426_v23 = vpop.f32.mrf.mxu0 }
 0x137   :  { %v11429_v10 = vadd.f32 %v1334_v63, %v11243_v59 }
 0x138   :  { %v9385_v38 = vpop.f32.mrf.mxu1  ;;  %9628 = vmatmul.mubr.msk.f32.gmra.mxu1 %vm37_vm0, %v11054_v46  ;;  %v11433_v8 = vpop.f32.mrf.mxu0  ;;  %9699 = vmatmul.mubr.msk.f32.gmra.mxu0 %vm37_vm0, %v3074_v15 }
 0x139   :  { %v11437_v43 = vadd.f32 %v9385_v38, %v11249_v22  ;;  %9630 = vmatprep.mubr.msk.f32.mxu1 %vm37_vm0, %v11057_v50  ;;  %9701 = vmatprep.mubr.msk.f32.mxu0 %vm37_vm0, %v3075_v21  ;;  %v3078_v22 = vld [vmem:[#allocation2 + $0x141] sm:$0xff]  ;;  %v3079_v38 = vld [vmem:[#allocation2 + $0x151] sm:$0xff] }
 0x13a   :  { %v1344_v49 = vpop.f32.mrf.mxu1  ;;  %v11442_v59 = vpop.f32.mrf.mxu0 }
 0x13b   :  { %v11445_v63 = vadd.f32 %v1344_v49, %v11257_v5 }
 0x13c   :  { %v9388_v46 = vpop.f32.mrf.mxu1  ;;  %9631 = vmatmul.mubr.msk.f32.gmra.mxu1 %vm37_vm0, %v11064_v53  ;;  %v11449_v15 = vpop.f32.mrf.mxu0  ;;  %9702 = vmatmul.mubr.msk.f32.gmra.mxu0 %vm37_vm0, %v3076_v18 }
 0x13d   :  { %v11453_v50 = vadd.f32 %v9388_v46, %v11263_v27  ;;  %9633 = vmatprep.mubr.msk.f32.mxu1 %vm37_vm0, %v11067_v55  ;;  %9704 = vmatprep.mubr.msk.f32.mxu0 %vm37_vm0, %v3077_v30  ;;  %v3080_v27 = vld [vmem:[#allocation2 + $0x159] sm:$0xff]  ;;  %v3081_v46 = vld [vmem:[#allocation2 + $0x169] sm:$0xff] }
 0x13e   :  { %v1354_v21 = vpop.f32.mrf.mxu1  ;;  %v11458_v5 = vpop.f32.mrf.mxu0 }
 0x13f   :  { %v11461_v49 = vadd.f32 %v1354_v21, %v11271_v14 }
 0x140   :  { %v9391_v53 = vpop.f32.mrf.mxu1  ;;  %9634 = vmatmul.mubr.msk.f32.gmra.mxu1 %vm37_vm0, %v11074_v58  ;;  %v11465_v18 = vpop.f32.mrf.mxu0  ;;  %9705 = vmatmul.mubr.msk.f32.gmra.mxu0 %vm37_vm0, %v3078_v22 }
 0x141   :  { %v11469_v55 = vadd.f32 %v9391_v53, %v11278_v31  ;;  %9636 = vmatprep.mubr.msk.f32.mxu1 %vm37_vm0, %v11077_v4  ;;  %9707 = vmatprep.mubr.msk.f32.mxu0 %vm37_vm0, %v3079_v38  ;;  %v3082_v31 = vld [vmem:[#allocation2 + $0x171] sm:$0xff]  ;;  %v3083_v53 = vld [vmem:[#allocation2 + $0x181] sm:$0xff] }
 0x142   :  { %v1364_v30 = vpop.f32.mrf.mxu1  ;;  %v11474_v14 = vpop.f32.mrf.mxu0 }
 0x143   :  { %v11477_v21 = vadd.f32 %v1364_v30, %v11293_v37 }
 0x144   :  { %v9394_v58 = vpop.f32.mrf.mxu1  ;;  %9637 = vmatmul.mubr.msk.f32.gmra.mxu1 %vm37_vm0, %v11084_v9  ;;  %v11481_v22 = vpop.f32.mrf.mxu0  ;;  %9708 = vmatmul.mubr.msk.f32.gmra.mxu0 %vm37_vm0, %v3080_v27 }
 0x145   :  { %v11485_v4 = vadd.f32 %v9394_v58, %v11305_v33  ;;  %9639 = vmatprep.mubr.msk.f32.mxu1 %vm37_vm0, %v11087_v13  ;;  %9710 = vmatprep.mubr.msk.f32.mxu0 %vm37_vm0, %v3081_v46  ;;  %v3084_v33 = vld [vmem:[#allocation2 + $0x189] sm:$0xff] }
 0x146   :  { %v1374_v38 = vpop.f32.mrf.mxu1  ;;  %v11490_v37 = vpop.f32.mrf.mxu0  ;;  %v3085_v58 = vld [vmem:[#allocation2 + $0x1c9] sm:$0xff] }
 0x147   :  { %v11493_v30 = vadd.f32 %v1374_v38, %v11313_v61 }
 0x148   :  { %v9397_v9 = vpop.f32.mrf.mxu1  ;;  %9640 = vmatmul.mubr.msk.f32.gmra.mxu1 %vm37_vm0, %v11094_v19  ;;  %v11497_v27 = vpop.f32.mrf.mxu0  ;;  %9711 = vmatmul.mubr.msk.f32.gmra.mxu0 %vm37_vm0, %v3082_v31 }
 0x149   :  { %v11501_v13 = vadd.f32 %v9397_v9, %v11319_v2  ;;  %9642 = vmatprep.mubr.msk.f32.mxu1 %vm37_vm0, %v11097_v28  ;;  %9713 = vmatprep.mubr.msk.f32.mxu0 %vm37_vm0, %v3083_v53  ;;  %v3086_v2 = vld [vmem:[#allocation2 + $0x1d1] sm:$0xff]  ;;  %v3087_v9 = vld [vmem:[#allocation2 + $0x1e1] sm:$0xff] }
 0x14a   :  { %v1384_v46 = vpop.f32.mrf.mxu1  ;;  %v11506_v61 = vpop.f32.mrf.mxu0 }
 0x14b   :  { %v11509_v38 = vadd.f32 %v1384_v46, %v11327_v29 }
 0x14c   :  { %v9400_v19 = vpop.f32.mrf.mxu1  ;;  %9643 = vmatmul.mubr.msk.f32.gmra.mxu1 %vm37_vm0, %v11104_v35  ;;  %v11513_v31 = vpop.f32.mrf.mxu0  ;;  %9714 = vmatmul.mubr.msk.f32.gmra.mxu0 %vm37_vm0, %v3084_v33 }
 0x14d   :  { %v11517_v28 = vadd.f32 %v9400_v19, %v11333_v47  ;;  %9645 = vmatprep.mubr.msk.f32.mxu1 %vm37_vm0, %v11107_v26  ;;  %9716 = vmatprep.mubr.msk.f32.mxu0 %vm37_vm0, %v3085_v58 }
 0x14e   :  { %v1394_v53 = vpop.f32.mrf.mxu1  ;;  %v11522_v29 = vpop.f32.mrf.mxu0 }
 0x14f   :  { %v11525_v46 = vadd.f32 %v1394_v53, %v11341_v40  ;;  %v3088_v40 = vld [vmem:[#allocation2 + $0x1e9] sm:$0xff]  ;;  %v3089_v53 = vld [vmem:[#allocation2 + $0x1f9] sm:$0xff] }
 0x150   :  { %v9403_v35 = vpop.f32.mrf.mxu1  ;;  %9646 = vmatmul.mubr.msk.f32.gmra.mxu1 %vm37_vm0, %v11114_v51  ;;  %v9474_v33 = vpop.f32.mrf.mxu0  ;;  %9717 = vmatmul.mubr.msk.f32.gmra.mxu0 %vm37_vm0, %v3086_v2 }
 0x151   :  { %v11531_v47 = vadd.f32 %v9403_v35, %v11347_v52  ;;  %v11534_v26 = vadd.f32 %v9474_v33, %v11389_v24  ;;  %9648 = vmatprep.mubr.msk.f32.mxu1 %vm37_vm0, %v11117_v57  ;;  %9719 = vmatprep.mubr.msk.f32.mxu0 %vm37_vm0, %v3087_v9  ;;  %v14017_v35 = vld [vmem:[#allocation6_spill] sm:$0xff] }
 0x152   :  { %v1404_v58 = vpop.f32.mrf.mxu1  ;;  %v1962_v19 = vpop.f32.mrf.mxu0 }
 0x153   :  { %v11540_v51 = vadd.f32 %v1404_v58, %v11355_v45  ;;  %v11543_v2 = vadd.f32 %v1962_v19, %v11397_v41  ;;  %v3090_v41 = vld [vmem:[#allocation2 + $0x201] sm:$0xff]  ;;  %v3091_v58 = vld [vmem:[#allocation2 + $0x211] sm:$0xff] }
 0x154   :  { %v9406_v52 = vpop.f32.mrf.mxu1  ;;  %9649 = vmatmul.mubr.msk.f32.gmra.mxu1 %vm37_vm0, %v11124_v7  ;;  %v9477_v24 = vpop.f32.mrf.mxu0  ;;  %9720 = vmatmul.mubr.msk.f32.gmra.mxu0 %vm37_vm0, %v3088_v40  ;;  %v14018_v19 = vld [vmem:[#allocation7_spill] sm:$0xff] }
 0x155   :  { %v11549_v57 = vadd.f32 %v9406_v52, %v11361_v60  ;;  %v11552_v9 = vadd.f32 %v9477_v24, %v11405_v25  ;;  %9651 = vmatprep.mubr.msk.f32.mxu1 %vm37_vm0, %v14017_v35  ;;  %9722 = vmatprep.mubr.msk.f32.mxu0 %vm37_vm0, %v3089_v53  ;;  %v14019_v24 = vld [vmem:[#allocation8_spill] sm:$0xff] }
 0x156   :  { %v1414_v45 = vpop.f32.mrf.mxu1  ;;  %v1972_v33 = vpop.f32.mrf.mxu0 }
 0x157   :  { %v11558_v7 = vadd.f32 %v1414_v45, %v11368_v20  ;;  %v11561_v40 = vadd.f32 %v1972_v33, %v11413_v0  ;;  %v3092_v20 = vld [vmem:[#allocation2 + $0x219] sm:$0xff]  ;;  %v3093_v45 = vld [vmem:[#allocation2 + $0x229] sm:$0xff] }
 0x158   :  { %v9409_v60 = vpop.f32.mrf.mxu1  ;;  %9652 = vmatmul.mubr.msk.f32.gmra.mxu1 %vm37_vm0, %v14018_v19  ;;  %v9480_v25 = vpop.f32.mrf.mxu0  ;;  %9723 = vmatmul.mubr.msk.f32.gmra.mxu0 %vm37_vm0, %v3090_v41 }
 0x159   :  { %v11567_v52 = vadd.f32 %v9409_v60, %v11373_v6  ;;  %v11570_v53 = vadd.f32 %v9480_v25, %v11421_v34  ;;  %9654 = vmatprep.mubr.msk.f32.mxu1 %vm37_vm0, %v14019_v24  ;;  %9725 = vmatprep.mubr.msk.f32.mxu0 %vm37_vm0, %v3091_v58  ;;  %v3095_v25 = vld [vmem:[#allocation2 + $0x241] sm:$0xff] }
 0x15a   :  { %v1424_v0 = vpop.f32.mrf.mxu1  ;;  %v1982_v35 = vpop.f32.mrf.mxu0 }
 0x15b   :  { %v11576_v33 = vadd.f32 %v1424_v0, %v11381_v56  ;;  %v11579_v41 = vadd.f32 %v1982_v35, %v11429_v10  ;;  %v3094_v56 = vld [vmem:[#allocation2 + $0x231] sm:$0xff] }
 0x15c   :  { %v9412_v6 = vpop.f32.mrf.mxu1  ;;  %9655 = vmatmul.mubr.msk.f32.gmra.mxu1 %vm37_vm0, %v11147_v11  ;;  %v9483_v34 = vpop.f32.mrf.mxu0  ;;  %9726 = vmatmul.mubr.msk.f32.gmra.mxu0 %vm37_vm0, %v3092_v20  ;;  %v2407_v35 = vld [vmem:[#allocation2 + $0x330] sm:$0xff] }
 0x15d   :  { %v11585_v60 = vadd.f32 %v9412_v6, %v11385_v3  ;;  %v11588_v58 = vadd.f32 %v9483_v34, %v11437_v43  ;;  %9657 = vmatprep.mubr.msk.f32.mxu1 %vm37_vm0, %v11153_v32  ;;  %9728 = vmatprep.mubr.msk.f32.mxu0 %vm37_vm0, %v3093_v45  ;;  %v3097_v45 = vld [vmem:[#allocation2 + $0x259] sm:$0xff] }
 0x15e   :  { %v1434_v10 = vpop.f32.mrf.mxu1  ;;  %v1992_v19 = vpop.f32.mrf.mxu0  ;;  %v14020_v34 = vld [vmem:[#allocation9_spill] sm:$0xff] }
 0x15f   :  { %v11594_v11 = vadd.f32 %v1434_v10, %v11394_v12  ;;  %v11597_v24 = vadd.f32 %v1992_v19, %v11445_v63  ;;  %v3096_v12 = vld [vmem:[#allocation2 + $0x249] sm:$0xff] }
 0x160   :  { %v9415_v3 = vpop.f32.mrf.mxu1  ;;  %9658 = vmatmul.mubr.msk.f32.gmra.mxu1 %vm37_vm0, %v11162_v54  ;;  %v9486_v43 = vpop.f32.mrf.mxu0  ;;  %9729 = vmatmul.mubr.msk.f32.gmra.mxu0 %vm37_vm0, %v3094_v56 }
 0x161   :  { %v11603_v32 = vadd.f32 %v9415_v3, %v11401_v42  ;;  %v11606_v20 = vadd.f32 %v9486_v43, %v11453_v50  ;;  %9660 = vmatprep.mubr.msk.f32.mxu1 %vm37_vm0, %v11165_v48  ;;  %9731 = vmatprep.mubr.msk.f32.mxu0 %vm37_vm0, %v3095_v25  ;;  %v3761_v25 = vld [vmem:[#allocation2 + $0x1a] sm:$0xff]  ;;  %v3099_v3 = vld [vmem:[#allocation2 + $0x271] sm:$0xff] }
 0x162   :  { %v1444_v63 = vpop.f32.mrf.mxu1  ;;  %v2002_v0 = vpop.f32.mrf.mxu0 }
 0x163   :  { %v11612_v54 = vadd.f32 %v1444_v63, %v11410_v44  ;;  %v11615_v6 = vadd.f32 %v2002_v0, %v11461_v49  ;;  %v2408_v44 = vld [vmem:[#allocation2 + $0x338] sm:$0xff]  ;;  %v3098_v49 = vld [vmem:[#allocation2 + $0x261] sm:$0xff] }
 0x164   :  { %v9418_v42 = vpop.f32.mrf.mxu1  ;;  %9661 = vmatmul.mubr.msk.f32.gmra.mxu1 %vm37_vm0, %v14020_v34  ;;  %v9489_v50 = vpop.f32.mrf.mxu0  ;;  %9732 = vmatmul.mubr.msk.f32.gmra.mxu0 %vm37_vm0, %v3096_v12  ;;  %v3101_v34 = vld [vmem:[#allocation2 + $0x289] sm:$0xff] }
 0x165   :  { %v11621_v48 = vadd.f32 %v9418_v42, %v11417_v17  ;;  %v11624_v56 = vadd.f32 %v9489_v50, %v11469_v55  ;;  %9663 = vmatprep.mubr.msk.f32.mxu1 %vm37_vm0, %v2407_v35  ;;  %9734 = vmatprep.mubr.msk.f32.mxu0 %vm37_vm0, %v3097_v45  ;;  %v3100_v35 = vld [vmem:[#allocation2 + $0x279] sm:$0xff] }
 0x166   :  { %v1454_v10 = vpop.f32.mrf.mxu1  ;;  %v2012_v19 = vpop.f32.mrf.mxu0  ;;  %v3763_v42 = vld [vmem:[#allocation2 + $0x32] sm:$0xff] }
 0x167   :  { %v11629_v43 = vadd.f32 %v1454_v10, %v11426_v23  ;;  %v11632_v12 = vadd.f32 %v2012_v19, %v11477_v21  ;;  %v3762_v23 = vld [vmem:[#allocation2 + $0x22] sm:$0xff]  ;;  %v3102_v19 = vld [vmem:[#allocation2 + $0x291] sm:$0xff] }
 0x168   :  { %v9421_v17 = vpop.f32.mrf.mxu1  ;;  %9664 = vmatmul.mubr.msk.f32.gmra.mxu1 %vm37_vm0, %v2408_v44  ;;  %v9492_v55 = vpop.f32.mrf.mxu0  ;;  %9735 = vmatmul.mubr.msk.f32.gmra.mxu0 %vm37_vm0, %v3098_v49 }
 0x169   :  { %v11637_v63 = vadd.f32 %v9421_v17, %v11433_v8  ;;  %v11640_v0 = vadd.f32 %v9492_v55, %v11485_v4  ;;  %9766 = vmatprep.mubr.msk.f32.mxu1 %vm37_vm0, %v3761_v25  ;;  %9737 = vmatprep.mubr.msk.f32.mxu0 %vm37_vm0, %v3099_v3  ;;  %v3765_v3 = vld [vmem:[#allocation2 + $0x4a] sm:$0xff]  ;;  %v3103_v17 = vld [vmem:[#allocation2 + $0x2a1] sm:$0xff]  ;;  %v14021_v55 = vrot.slane %v10936_v36, 5  ;;  %v3766_v36 = vld [vmem:[#allocation2 + $0x52] sm:$0xff] }
 0x16a   :  { %v1464_v21 = vpop.f32.mrf.mxu1  ;;  %v2022_v45 = vpop.f32.mrf.mxu0 }
 0x16b   :  { %v11645_v50 = vadd.f32 %v1464_v21, %v11442_v59  ;;  %v11648_v44 = vadd.f32 %v2022_v45, %v11493_v30  ;;  %v3764_v59 = vld [vmem:[#allocation2 + $0x3a] sm:$0xff] }
 0x16c   :  { %v9424_v8 = vpop.f32.mrf.mxu1  ;;  %9767 = vmatmul.mubr.msk.f32.vlgmr.msra.gmra.mxu1 %vm37_vm0, %v3762_v23  ;;  %v9495_v4 = vpop.f32.mrf.mxu0  ;;  %9738 = vmatmul.mubr.msk.f32.gmra.mxu0 %vm37_vm0, %v3100_v35 }
 0x16d   :  { %v11653_v49 = vadd.f32 %v9424_v8, %v11449_v15  ;;  %v11656_v10 = vadd.f32 %v9495_v4, %v11501_v13  ;;  %9769 = vmatprep.mubr.msk.f32.mxu1 %vm37_vm0, %v3763_v42  ;;  %9740 = vmatprep.mubr.msk.f32.mxu0 %vm37_vm0, %v3101_v34  ;;  %v3767_v34 = vld [vmem:[#allocation2 + $0x62] sm:$0xff]  ;;  %v3105_v8 = vld [vmem:[#allocation2 + $0x2b9] sm:$0xff] }
 0x16e   :  { %v1474_v30 = vpop.f32.mrf.mxu1  ;;  %v2032_v25 = vpop.f32.mrf.mxu0  ;;  %9961 = vmatpush3.msk.msra.mxu1 %vm666_vm1, %v14021_v55  ;;  %v3107_v55 = vld [vmem:[#allocation2 + $0x2d1] sm:$0xff] }
 0x16f   :  { %v11664_v15 = vadd.f32 %v1474_v30, %v11458_v5  ;;  %v11667_v13 = vadd.f32 %v2032_v25, %v11509_v38  ;;  %v3104_v5 = vld [vmem:[#allocation2 + $0x2a9] sm:$0xff]  ;;  %v3106_v25 = vld [vmem:[#allocation2 + $0x2c1] sm:$0xff] }
 0x170   :  { %v9427_v23 = vpop.f32.mrf.mxu1  ;;  %9770 = vmatmul.mubr.msk.f32.gmra.mxu1 %vm37_vm0, %v3764_v59  ;;  %v9498_v35 = vpop.f32.mrf.mxu0  ;;  %9741 = vmatmul.mubr.msk.f32.gmra.mxu0 %vm37_vm0, %v3102_v19 }
 0x171   :  { %v11672_v21 = vadd.f32 %v9427_v23, %v11465_v18  ;;  %v11675_v45 = vadd.f32 %v9498_v35, %v11517_v28  ;;  %9772 = vmatprep.mubr.msk.f32.mxu1 %vm37_vm0, %v3765_v3  ;;  %9743 = vmatprep.mubr.msk.f32.mxu0 %vm37_vm0, %v3103_v17  ;;  %v3769_v17 = vld [vmem:[#allocation2 + $0x7a] sm:$0xff] }
 0x172   :  { %v1484_v38 = vpop.f32.mrf.mxu1  ;;  %v2042_v42 = vpop.f32.mrf.mxu0 }
 0x173   :  { %v11680_v4 = vadd.f32 %v1484_v38, %v11474_v14  ;;  %v11683_v59 = vadd.f32 %v2042_v42, %v11525_v46  ;;  %v3768_v14 = vld [vmem:[#allocation2 + $0x6a] sm:$0xff]  ;;  %v3108_v38 = vld [vmem:[#allocation2 + $0x2d9] sm:$0xff] }
 0x174   :  { %v9430_v18 = vpop.f32.mrf.mxu1  ;;  %9773 = vmatmul.mubr.msk.f32.gmra.mxu1 %vm37_vm0, %v3766_v36  ;;  %v9501_v28 = vpop.f32.mrf.mxu0  ;;  %9744 = vmatmul.mubr.msk.f32.gmra.mxu0 %vm37_vm0, %v3104_v5 }
 0x175   :  { %v11688_v19 = vadd.f32 %v9430_v18, %v11481_v22  ;;  %v11691_v30 = vadd.f32 %v9501_v28, %v11531_v47  ;;  %9775 = vmatprep.mubr.msk.f32.mxu1 %vm37_vm0, %v3767_v34  ;;  %9746 = vmatprep.mubr.msk.f32.mxu0 %vm37_vm0, %v3105_v8  ;;  %v3771_v34 = vld [vmem:[#allocation2 + $0x92] sm:$0xff]  ;;  %v3109_v8 = vld [vmem:[#allocation2 + $0x2e9] sm:$0xff] }
 0x176   :  { %v1494_v46 = vpop.f32.mrf.mxu1  ;;  %v2052_v3 = vpop.f32.mrf.mxu0 }
 0x177   :  { %v11696_v23 = vadd.f32 %v1494_v46, %v11490_v37  ;;  %v11699_v35 = vadd.f32 %v2052_v3, %v11540_v51  ;;  %v3770_v37 = vld [vmem:[#allocation2 + $0x82] sm:$0xff]  ;;  %v3110_v46 = vld [vmem:[#allocation2 + $0x2f1] sm:$0xff] }
 0x178   :  { %v9433_v22 = vpop.f32.mrf.mxu1  ;;  %9776 = vmatmul.mubr.msk.f32.gmra.mxu1 %vm37_vm0, %v3768_v14  ;;  %v9504_v47 = vpop.f32.mrf.mxu0  ;;  %9747 = vmatmul.mubr.msk.f32.gmra.mxu0 %vm37_vm0, %v3106_v25 }
 0x179   :  { %v11704_v36 = vadd.f32 %v9433_v22, %v11497_v27  ;;  %v11707_v5 = vadd.f32 %v9504_v47, %v11549_v57  ;;  %9778 = vmatprep.mubr.msk.f32.mxu1 %vm37_vm0, %v3769_v17  ;;  %9749 = vmatprep.mubr.msk.f32.mxu0 %vm37_vm0, %v3107_v55  ;;  %v3773_v17 = vld [vmem:[#allocation2 + $0xaa] sm:$0xff]  ;;  %v3111_v55 = vld [vmem:[#allocation2 + $0x301] sm:$0xff] }
 0x17a   :  { %v1504_v51 = vpop.f32.mrf.mxu1  ;;  %v2062_v42 = vpop.f32.mrf.mxu0 }
 0x17b   :  { %v11712_v18 = vadd.f32 %v1504_v51, %v11506_v61  ;;  %v11715_v28 = vadd.f32 %v2062_v42, %v11558_v7  ;;  %v3772_v61 = vld [vmem:[#allocation2 + $0x9a] sm:$0xff]  ;;  %v3775_v42 = vld [vmem:[#allocation2 + $0xc2] sm:$0xff] }
 0x17c   :  { %v9436_v27 = vpop.f32.mrf.mxu1  ;;  %9779 = vmatmul.mubr.msk.f32.gmra.mxu1 %vm37_vm0, %v3770_v37  ;;  %v9507_v57 = vpop.f32.mrf.mxu0  ;;  %9750 = vmatmul.mubr.msk.f32.gmra.mxu0 %vm37_vm0, %v3108_v38  ;;  %v3774_v38 = vld [vmem:[#allocation2 + $0xb2] sm:$0xff] }
 0x17d   :  { %v11720_v14 = vadd.f32 %v9436_v27, %v11513_v31  ;;  %v11723_v25 = vadd.f32 %v9507_v57, %v11567_v52  ;;  %9781 = vmatprep.mubr.msk.f32.mxu1 %vm37_vm0, %v3771_v34  ;;  %9752 = vmatprep.mubr.msk.f32.mxu0 %vm37_vm0, %v3109_v8  ;;  %v3113_v34 = vld [vmem:[#allocation2 + $0x319] sm:$0xff] }
 0x17e   :  { %v1514_v7 = vpop.f32.mrf.mxu1  ;;  %v2072_v3 = vpop.f32.mrf.mxu0 }
 0x17f   :  { %v11728_v22 = vadd.f32 %v1514_v7, %v11522_v29  ;;  %v11731_v47 = vadd.f32 %v2072_v3, %v11576_v33  ;;  %v3112_v29 = vld [vmem:[#allocation2 + $0x309] sm:$0xff]  ;;  %v3777_v3 = vld [vmem:[#allocation2 + $0xda] sm:$0xff] }
 0x180   :  { %v11733_v31 = vpop.f32.mrf.mxu1  ;;  %9782 = vmatmul.mubr.msk.f32.gmra.mxu1 %vm37_vm0, %v3772_v61  ;;  %v9510_v52 = vpop.f32.mrf.mxu0  ;;  %9753 = vmatmul.mubr.msk.f32.gmra.mxu0 %vm37_vm0, %v3110_v46  ;;  %v3776_v61 = vld [vmem:[#allocation2 + $0xca] sm:$0xff]  ;;  %v3114_v46 = vld [vmem:[#allocation2 + $0x321] sm:$0xff] }
 0x181   :  { %v11738_v37 = vadd.f32 %v9510_v52, %v11585_v60  ;;  %9784 = vmatprep.mubr.msk.f32.mxu1 %vm37_vm0, %v3773_v17  ;;  %9755 = vmatprep.mubr.msk.f32.mxu0 %vm37_vm0, %v3111_v55  ;;  %v3115_v17 = vld [vmem:[#allocation2 + $0x331] sm:$0xff] }
 0x182   :  { %v11742_v51 = vpop.f32.mrf.mxu1  ;;  %v2082_v33 = vpop.f32.mrf.mxu0 }
 0x183   :  { %v11745_v8 = vadd.f32 %v2082_v33, %v11594_v11  ;;  %v3116_v33 = vld [vmem:[#allocation2 + $0x339] sm:$0xff] }
 0x184   :  { %v11747_v27 = vpop.f32.mrf.mxu1  ;;  %9785 = vmatmul.mubr.msk.f32.gmra.mxu1 %vm37_vm0, %v3774_v38  ;;  %v9513_v60 = vpop.f32.mrf.mxu0  ;;  %9756 = vmatmul.mubr.msk.f32.gmra.mxu0 %vm37_vm0, %v3112_v29  ;;  %v3778_v29 = vld [vmem:[#allocation2 + $0xe2] sm:$0xff] }
 0x185   :  { %v11752_v57 = vadd.f32 %v9513_v60, %v11603_v32  ;;  %9787 = vmatprep.mubr.msk.f32.mxu1 %vm37_vm0, %v3775_v42  ;;  %9758 = vmatprep.mubr.msk.f32.mxu0 %vm37_vm0, %v3113_v34  ;;  %v3779_v34 = vld [vmem:[#allocation2 + $0xf2] sm:$0xff] }
 0x186   :  { %v11756_v7 = vpop.f32.mrf.mxu1  ;;  %v2092_v11 = vpop.f32.mrf.mxu0  ;;  %v4474_v60 = vld [vmem:[#allocation2 + $0x30] sm:$0xff] }
 0x187   :  { %v11759_v55 = vadd.f32 %v2092_v11, %v11612_v54 }
 0x188   :  { %v11761_v52 = vpop.f32.mrf.mxu1  ;;  %9788 = vmatmul.mubr.msk.f32.gmra.mxu1 %vm37_vm0, %v3776_v61  ;;  %v9516_v32 = vpop.f32.mrf.mxu0  ;;  %9759 = vmatmul.mubr.msk.f32.gmra.mxu0 %vm37_vm0, %v3114_v46 }
 0x189   :  { %v11766_v38 = vadd.f32 %v9516_v32, %v11621_v48  ;;  %9790 = vmatprep.mubr.msk.f32.mxu1 %vm37_vm0, %v3777_v3  ;;  %9761 = vmatprep.mubr.msk.f32.mxu0 %vm37_vm0, %v3115_v17  ;;  %v3780_v3 = vld [vmem:[#allocation2 + $0xfa] sm:$0xff] }
 0x18a   :  { %v11770_v42 = vpop.f32.mrf.mxu1  ;;  %v2102_v54 = vpop.f32.mrf.mxu0  ;;  %v4475_v17 = vld [vmem:[#allocation2 + $0x38] sm:$0xff] }
 0x18b   :  { %14022 = vst [vmem:[#allocation6_spill] sm:$0xff] %v11766_v38  ;;  %v11773_v11 = vadd.f32 %v2102_v54, %v11629_v43  ;;  %v3781_v54 = vld [vmem:[#allocation2 + $0x10a] sm:$0xff] }
 0x18c   :  { %v11775_v61 = vpop.f32.mrf.mxu1  ;;  %9791 = vmatmul.mubr.msk.f32.gmra.mxu1 %vm37_vm0, %v3778_v29  ;;  %v9519_v48 = vpop.f32.mrf.mxu0  ;;  %9762 = vmatmul.mubr.msk.f32.gmra.mxu0 %vm37_vm0, %v3116_v33  ;;  %v4476_v29 = vld [vmem:[#allocation2 + $0x48] sm:$0xff] }
 0x18d   :  { %14023 = vst [vmem:[#allocation7_spill] sm:$0xff] %v11773_v11  ;;  %v11780_v46 = vadd.f32 %v9519_v48, %v11637_v63  ;;  %9793 = vmatprep.mubr.msk.f32.mxu1 %vm37_vm0, %v3779_v34  ;;  %9864 = vmatprep.mubr.msk.f32.mxu0 %vm37_vm0, %v4474_v60  ;;  %v3782_v34 = vld [vmem:[#allocation2 + $0x112] sm:$0xff] }
 0x18e   :  { %v11784_v32 = vpop.f32.mrf.mxu1  ;;  %v2112_v43 = vpop.f32.mrf.mxu0  ;;  %v4477_v60 = vld [vmem:[#allocation2 + $0x50] sm:$0xff] }
 0x18f   :  { %v11787_v11 = vadd.f32 %v2112_v43, %v11645_v50  ;;  %v3783_v43 = vld [vmem:[#allocation2 + $0x122] sm:$0xff] }
 0x190   :  { %v11789_v38 = vpop.f32.mrf.mxu1  ;;  %9794 = vmatmul.mubr.msk.f32.gmra.mxu1 %vm37_vm0, %v3780_v3  ;;  %v9522_v63 = vpop.f32.mrf.mxu0  ;;  %9865 = vmatmul.mubr.msk.f32.vlgmr.msra.gmra.mxu0 %vm37_vm0, %v4475_v17  ;;  %v4478_v3 = vld [vmem:[#allocation2 + $0x60] sm:$0xff] }
 0x191   :  { %14024 = vst [vmem:[#allocation8_spill] sm:$0xff] %v11787_v11  ;;  %v11794_v33 = vadd.f32 %v9522_v63, %v11653_v49  ;;  %10059 = vmatpush3.msk.msra.mxu0 %vm666_vm1, %v11289_v39  ;;  %9796 = vmatprep.mubr.msk.f32.mxu1 %vm37_vm0, %v3781_v54  ;;  %v3784_v54 = vld [vmem:[#allocation2 + $0x12a] sm:$0xff] }
 0x192   :  { %v11799_v50 = vpop.f32.mrf.mxu1  ;;  %v2122_v48 = vpop.f32.mrf.mxu0  ;;  %9867 = vmatprep.mubr.msk.f32.mxu0 %vm37_vm0, %v4476_v29  ;;  %v4479_v29 = vld [vmem:[#allocation2 + $0x68] sm:$0xff] }
 0x193   :  { %14025 = vst [vmem:[#allocation9_spill] sm:$0xff] %v11794_v33  ;;  %v11803_v11 = vadd.f32 %v2122_v48, %v11664_v15  ;;  %v3785_v48 = vld [vmem:[#allocation2 + $0x13a] sm:$0xff] }
 0x194   :  { %v11805_v17 = vpop.f32.mrf.mxu1  ;;  %9797 = vmatmul.mubr.msk.f32.gmra.mxu1 %vm37_vm0, %v3782_v34  ;;  %v9525_v49 = vpop.f32.mrf.mxu0  ;;  %9868 = vmatmul.mubr.msk.f32.gmra.mxu0 %vm37_vm0, %v4477_v60 }
 0x195   :  { %14026 = vst [vmem:[#allocation29_spill] sm:$0xff] %v11803_v11  ;;  %v11810_v39 = vadd.f32 %v9525_v49, %v11672_v21  ;;  %9799 = vmatprep.mubr.msk.f32.mxu1 %vm37_vm0, %v3783_v43  ;;  %9870 = vmatprep.mubr.msk.f32.mxu0 %vm37_vm0, %v4478_v3  ;;  %v4480_v11 = vld [vmem:[#allocation2 + $0x78] sm:$0xff]  ;;  %v3786_v43 = vld [vmem:[#allocation2 + $0x142] sm:$0xff] }
 0x196   :  { %v11814_v63 = vpop.f32.mrf.mxu1  ;;  %v2132_v15 = vpop.f32.mrf.mxu0  ;;  %v4481_v3 = vld [vmem:[#allocation2 + $0x80] sm:$0xff] }
 0x197   :  { %14027 = vst [vmem:[#allocation30_spill] sm:$0xff] %v11810_v39  ;;  %v11817_v33 = vadd.f32 %v2132_v15, %v11680_v4  ;;  %v3787_v15 = vld [vmem:[#allocation2 + $0x152] sm:$0xff] }
 0x198   :  { %v11819_v34 = vpop.f32.mrf.mxu1  ;;  %9800 = vmatmul.mubr.msk.f32.gmra.mxu1 %vm37_vm0, %v3784_v54  ;;  %v9528_v21 = vpop.f32.mrf.mxu0  ;;  %9871 = vmatmul.mubr.msk.f32.gmra.mxu0 %vm37_vm0, %v4479_v29 }
 0x199   :  { %14028 = vst [vmem:[#allocation31_spill] sm:$0xff] %v11817_v33  ;;  %v11824_v60 = vadd.f32 %v9528_v21, %v11688_v19  ;;  %9802 = vmatprep.mubr.msk.f32.mxu1 %vm37_vm0, %v3785_v48  ;;  %9873 = vmatprep.mubr.msk.f32.mxu0 %vm37_vm0, %v4480_v11  ;;  %v4482_v33 = vld [vmem:[#allocation2 + $0x90] sm:$0xff]  ;;  %v3788_v11 = vld [vmem:[#allocation2 + $0x15a] sm:$0xff] }
 0x19a   :  { %v11828_v49 = vpop.f32.mrf.mxu1  ;;  %v2142_v4 = vpop.f32.mrf.mxu0  ;;  %v4483_v48 = vld [vmem:[#allocation2 + $0x98] sm:$0xff] }
 0x19b   :  { %14029 = vst [vmem:[#allocation32_spill] sm:$0xff] %v11824_v60  ;;  %v11831_v39 = vadd.f32 %v2142_v4, %v11696_v23  ;;  %v3789_v4 = vld [vmem:[#allocation2 + $0x16a] sm:$0xff] }
 0x19c   :  { %v11833_v54 = vpop.f32.mrf.mxu1  ;;  %9803 = vmatmul.mubr.msk.f32.gmra.mxu1 %vm37_vm0, %v3786_v43  ;;  %v9531_v19 = vpop.f32.mrf.mxu0  ;;  %9874 = vmatmul.mubr.msk.f32.gmra.mxu0 %vm37_vm0, %v4481_v3 }
 0x19d   :  { %14030 = vst [vmem:[#allocation33_spill] sm:$0xff] %v11831_v39  ;;  %v11838_v29 = vadd.f32 %v9531_v19, %v11704_v36  ;;  %9805 = vmatprep.mubr.msk.f32.mxu1 %vm37_vm0, %v3787_v15  ;;  %9876 = vmatprep.mubr.msk.f32.mxu0 %vm37_vm0, %v4482_v33  ;;  %v4484_v39 = vld [vmem:[#allocation2 + $0xa8] sm:$0xff]  ;;  %v3790_v33 = vld [vmem:[#allocation2 + $0x172] sm:$0xff] }
 0x19e   :  { %v11842_v21 = vpop.f32.mrf.mxu1  ;;  %v2152_v23 = vpop.f32.mrf.mxu0  ;;  %v4485_v15 = vld [vmem:[#allocation2 + $0xb0] sm:$0xff] }
 0x19f   :  { %14031 = vst [vmem:[#allocation34_spill] sm:$0xff] %v11838_v29  ;;  %v11845_v60 = vadd.f32 %v2152_v23, %v11712_v18  ;;  %v3791_v23 = vld [vmem:[#allocation2 + $0x182] sm:$0xff] }
 0x1a0   :  { %v11847_v43 = vpop.f32.mrf.mxu1  ;;  %9806 = vmatmul.mubr.msk.f32.gmra.mxu1 %vm37_vm0, %v3788_v11  ;;  %v9534_v36 = vpop.f32.mrf.mxu0  ;;  %9877 = vmatmul.mubr.msk.f32.gmra.mxu0 %vm37_vm0, %v4483_v48  ;;  %v1530_v11 = vadd.f32 %v11733_v31, %v11217_v1  ;;  %v4487_v1 = vld [vmem:[#allocation2 + $0xc8] sm:$0xff] }
 0x1a1   :  { %14032 = vst [vmem:[#allocation35_spill] sm:$0xff] %v11845_v60  ;;  %v11852_v3 = vadd.f32 %v9534_v36, %v11720_v14  ;;  %9808 = vmatprep.mubr.msk.f32.mxu1 %vm37_vm0, %v3789_v4  ;;  %9879 = vmatprep.mubr.msk.f32.mxu0 %vm37_vm0, %v4484_v39  ;;  %v4486_v60 = vld [vmem:[#allocation2 + $0xc0] sm:$0xff]  ;;  %v1525_v39 = vadd.f32 %v11742_v51, %v11227_v16  ;;  %v3792_v36 = vld [vmem:[#allocation2 + $0x18a] sm:$0xff] }
 0x1a2   :  { %v11856_v19 = vpop.f32.mrf.mxu1  ;;  %v2162_v18 = vpop.f32.mrf.mxu0  ;;  %v14037_v51 = vld [vmem:[#allocation10_spill] sm:$0xff] }
 0x1a3   :  { %14033 = vst [vmem:[#allocation36_spill] sm:$0xff] %v11852_v3  ;;  %v11861_v29 = vadd.f32 %v2162_v18, %v11728_v22  ;;  %v3793_v18 = vld [vmem:[#allocation2 + $0x1ca] sm:$0xff] }
 0x1a4   :  { %v11863_v48 = vpop.f32.mrf.mxu1  ;;  %9809 = vmatmul.mubr.msk.f32.gmra.mxu1 %vm37_vm0, %v3790_v33  ;;  %v9537_v14 = vpop.f32.mrf.mxu0  ;;  %9880 = vmatmul.mubr.msk.f32.gmra.mxu0 %vm37_vm0, %v4485_v15  ;;  %v1540_v33 = vadd.f32 %v11747_v27, %v11231_v62  ;;  %v4489_v62 = vld [vmem:[#allocation2 + $0xe0] sm:$0xff] }
 0x1a5   :  { %14034 = vst [vmem:[#allocation37_spill] sm:$0xff] %v11861_v29  ;;  %v11869_v4 = vadd.f32 %v9537_v14, %v1530_v11  ;;  %9811 = vmatprep.mubr.msk.f32.mxu1 %vm37_vm0, %v3791_v23  ;;  %9882 = vmatprep.mubr.msk.f32.mxu0 %vm37_vm0, %v4486_v60  ;;  %v4488_v29 = vld [vmem:[#allocation2 + $0xd8] sm:$0xff]  ;;  %v1535_v60 = vadd.f32 %v11756_v7, %v14037_v51  ;;  %v3796_v51 = vld [vmem:[#allocation2 + $0x1ea] sm:$0xff] }
 0x1a6   :  { %v11873_v22 = vpop.f32.mrf.mxu1  ;;  %v2172_v31 = vpop.f32.mrf.mxu0  ;;  %v3794_v11 = vld [vmem:[#allocation2 + $0x1d2] sm:$0xff] }
 0x1a7   :  { %14035 = vst [vmem:[#allocation38_spill] sm:$0xff] %v11869_v4  ;;  %v11877_v15 = vadd.f32 %v2172_v31, %v1525_v39  ;;  %v3795_v39 = vld [vmem:[#allocation2 + $0x1e2] sm:$0xff]  ;;  %v4490_v31 = vld [vmem:[#allocation2 + $0xf0] sm:$0xff] }
 0x1a8   :  { %v11879_v3 = vpop.f32.mrf.mxu1  ;;  %9812 = vmatmul.mubr.msk.f32.gmra.mxu1 %vm37_vm0, %v3792_v36  ;;  %v9540_v16 = vpop.f32.mrf.mxu0  ;;  %9883 = vmatmul.mubr.msk.f32.gmra.mxu0 %vm37_vm0, %v4487_v1  ;;  %v14038_v36 = vld [vmem:[#allocation11_spill] sm:$0xff] }
 0x1a9   :  { %14036 = vst [vmem:[#allocation39_spill] sm:$0xff] %v11877_v15  ;;  %v11885_v23 = vadd.f32 %v9540_v16, %v1540_v33  ;;  %9814 = vmatprep.mubr.msk.f32.mxu1 %vm37_vm0, %v3793_v18  ;;  %9885 = vmatprep.mubr.msk.f32.mxu0 %vm37_vm0, %v4488_v29  ;;  %v1550_v15 = vadd.f32 %v11761_v52, %v14038_v36  ;;  %v14040_v18 = vld [vmem:[#allocation12_spill] sm:$0xff]  ;;  %v4491_v52 = vld [vmem:[#allocation2 + $0xf8] sm:$0xff]  ;;  %v4492_v36 = vld [vmem:[#allocation2 + $0x108] sm:$0xff] }
 0x1aa   :  { %v11889_v27 = vpop.f32.mrf.mxu1  ;;  %v2182_v14 = vpop.f32.mrf.mxu0  ;;  %v1545_v29 = vadd.f32 %v11770_v42, %v14040_v18 }
 0x1ab   :  { %v11893_v1 = vadd.f32 %v2182_v14, %v1535_v60 }
 0x1ac   :  { %v9572_v4 = vpop.f32.mrf.mxu1  ;;  %9815 = vmatmul.mubr.msk.f32.gmra.mxu1 %vm37_vm0, %v3794_v11  ;;  %v9543_v7 = vpop.f32.mrf.mxu0  ;;  %9886 = vmatmul.mubr.msk.f32.gmra.mxu0 %vm37_vm0, %v4489_v62  ;;  %v3797_v11 = vld [vmem:[#allocation2 + $0x1fa] sm:$0xff] }
 0x1ad   :  { %14039 = vst [vmem:[#allocation10_spill] sm:$0xff] %v11893_v1  ;;  %v11900_v33 = vadd.f32 %v9572_v4, %v11534_v26  ;;  %v11902_v16 = vadd.f32 %v9543_v7, %v1550_v15  ;;  %9817 = vmatprep.mubr.msk.f32.mxu1 %vm37_vm0, %v3795_v39  ;;  %9888 = vmatprep.mubr.msk.f32.mxu0 %vm37_vm0, %v4490_v31  ;;  %v14041_v1 = vld [vmem:[#allocation13_spill] sm:$0xff]  ;;  %v14042_v39 = vld [vmem:[#allocation14_spill] sm:$0xff] }
 0x1ae   :  { %v2670_v60 = vpop.f32.mrf.mxu1  ;;  %v2192_v14 = vpop.f32.mrf.mxu0  ;;  %v1560_v62 = vadd.f32 %v11775_v61, %v14041_v1  ;;  %v1555_v31 = vadd.f32 %v11784_v32, %v14042_v39  ;;  %v4493_v61 = vld [vmem:[#allocation2 + $0x110] sm:$0xff] }
 0x1af   :  { %v11909_v42 = vadd.f32 %v2670_v60, %v11543_v2  ;;  %v11911_v26 = vadd.f32 %v2192_v14, %v1545_v29  ;;  %v3798_v2 = vld [vmem:[#allocation2 + $0x202] sm:$0xff] }
 0x1b0   :  { %v9575_v4 = vpop.f32.mrf.mxu1  ;;  %9818 = vmatmul.mubr.msk.f32.gmra.mxu1 %vm37_vm0, %v3796_v51  ;;  %v9546_v15 = vpop.f32.mrf.mxu0  ;;  %9889 = vmatmul.mubr.msk.f32.gmra.mxu0 %vm37_vm0, %v4491_v52  ;;  %v3799_v51 = vld [vmem:[#allocation2 + $0x212] sm:$0xff]  ;;  %v4494_v60 = vld [vmem:[#allocation2 + $0x120] sm:$0xff]  ;;  %v14043_v14 = vld [vmem:[#allocation15_spill] sm:$0xff] }
 0x1b1   :  { %v11918_v7 = vadd.f32 %v9575_v4, %v11552_v9  ;;  %v11920_v18 = vadd.f32 %v9546_v15, %v1560_v62  ;;  %9820 = vmatprep.mubr.msk.f32.mxu1 %vm37_vm0, %v3797_v11  ;;  %9891 = vmatprep.mubr.msk.f32.mxu0 %vm37_vm0, %v4492_v36  ;;  %v1570_v52 = vadd.f32 %v11789_v38, %v14043_v14  ;;  %v14044_v36 = vld [vmem:[#allocation16_spill] sm:$0xff]  ;;  %v4495_v38 = vld [vmem:[#allocation2 + $0x128] sm:$0xff]  ;;  %v14045_v14 = vld [vmem:[#allocation17_spill] sm:$0xff] }
 0x1b2   :  { %v2680_v1 = vpop.f32.mrf.mxu1  ;;  %v2202_v29 = vpop.f32.mrf.mxu0  ;;  %v1565_v4 = vadd.f32 %v11799_v50, %v14044_v36 }
 0x1b3   :  { %v11927_v32 = vadd.f32 %v2680_v1, %v11561_v40  ;;  %v11929_v9 = vadd.f32 %v2202_v29, %v1555_v31  ;;  %v3800_v40 = vld [vmem:[#allocation2 + $0x21a] sm:$0xff] }
 0x1b4   :  { %v9578_v62 = vpop.f32.mrf.mxu1  ;;  %9821 = vmatmul.mubr.msk.f32.gmra.mxu1 %vm37_vm0, %v3798_v2  ;;  %v9549_v11 = vpop.f32.mrf.mxu0  ;;  %9892 = vmatmul.mubr.msk.f32.gmra.mxu0 %vm37_vm0, %v4493_v61  ;;  %v3801_v2 = vld [vmem:[#allocation2 + $0x22a] sm:$0xff]  ;;  %v4496_v29 = vld [vmem:[#allocation2 + $0x138] sm:$0xff]  ;;  %v1580_v61 = vadd.f32 %v11805_v17, %v14045_v14  ;;  %v4497_v17 = vld [vmem:[#allocation2 + $0x140] sm:$0xff] }
 0x1b5   :  { %v11936_v15 = vadd.f32 %v9578_v62, %v11570_v53  ;;  %v11938_v39 = vadd.f32 %v9549_v11, %v1570_v52  ;;  %9823 = vmatprep.mubr.msk.f32.mxu1 %vm37_vm0, %v3799_v51  ;;  %9894 = vmatprep.mubr.msk.f32.mxu0 %vm37_vm0, %v4494_v60  ;;  %v14046_v60 = vld [vmem:[#allocation18_spill] sm:$0xff]  ;;  %v14047_v14 = vld [vmem:[#allocation19_spill] sm:$0xff] }
 0x1b6   :  { %v2690_v31 = vpop.f32.mrf.mxu1  ;;  %v2212_v1 = vpop.f32.mrf.mxu0  ;;  %v1575_v62 = vadd.f32 %v11814_v63, %v14046_v60 }
 0x1b7   :  { %v11945_v50 = vadd.f32 %v2690_v31, %v11579_v41  ;;  %v11947_v53 = vadd.f32 %v2212_v1, %v1565_v4  ;;  %v3802_v41 = vld [vmem:[#allocation2 + $0x232] sm:$0xff] }
 0x1b8   :  { %v9581_v52 = vpop.f32.mrf.mxu1  ;;  %9824 = vmatmul.mubr.msk.f32.gmra.mxu1 %vm37_vm0, %v3800_v40  ;;  %v9552_v51 = vpop.f32.mrf.mxu0  ;;  %9895 = vmatmul.mubr.msk.f32.gmra.mxu0 %vm37_vm0, %v4495_v38  ;;  %v3803_v40 = vld [vmem:[#allocation2 + $0x242] sm:$0xff]  ;;  %v4498_v1 = vld [vmem:[#allocation2 + $0x150] sm:$0xff]  ;;  %v1590_v38 = vadd.f32 %v11819_v34, %v14047_v14  ;;  %v4499_v34 = vld [vmem:[#allocation2 + $0x158] sm:$0xff] }
 0x1b9   :  { %v11954_v11 = vadd.f32 %v9581_v52, %v11588_v58  ;;  %v11956_v36 = vadd.f32 %v9552_v51, %v1580_v61  ;;  %9826 = vmatprep.mubr.msk.f32.mxu1 %vm37_vm0, %v3801_v2  ;;  %9897 = vmatprep.mubr.msk.f32.mxu0 %vm37_vm0, %v4496_v29  ;;  %v14048_v29 = vld [vmem:[#allocation20_spill] sm:$0xff]  ;;  %v14049_v14 = vld [vmem:[#allocation21_spill] sm:$0xff] }
 0x1ba   :  { %v2700_v4 = vpop.f32.mrf.mxu1  ;;  %v2222_v31 = vpop.f32.mrf.mxu0  ;;  %v1585_v52 = vadd.f32 %v11828_v49, %v14048_v29 }
 0x1bb   :  { %v11963_v63 = vadd.f32 %v2700_v4, %v11597_v24  ;;  %v11965_v58 = vadd.f32 %v2222_v31, %v1575_v62  ;;  %v3804_v24 = vld [vmem:[#allocation2 + $0x24a] sm:$0xff] }
 0x1bc   :  { %v9584_v61 = vpop.f32.mrf.mxu1  ;;  %9827 = vmatmul.mubr.msk.f32.gmra.mxu1 %vm37_vm0, %v3802_v41  ;;  %v9555_v2 = vpop.f32.mrf.mxu0  ;;  %9898 = vmatmul.mubr.msk.f32.gmra.mxu0 %vm37_vm0, %v4497_v17  ;;  %v3805_v41 = vld [vmem:[#allocation2 + $0x25a] sm:$0xff]  ;;  %v4500_v31 = vld [vmem:[#allocation2 + $0x168] sm:$0xff]  ;;  %v1600_v17 = vadd.f32 %v11833_v54, %v14049_v14  ;;  %v4501_v54 = vld [vmem:[#allocation2 + $0x170] sm:$0xff] }
 0x1bd   :  { %v11972_v51 = vadd.f32 %v9584_v61, %v11606_v20  ;;  %v11974_v60 = vadd.f32 %v9555_v2, %v1590_v38  ;;  %9829 = vmatprep.mubr.msk.f32.mxu1 %vm37_vm0, %v3803_v40  ;;  %9900 = vmatprep.mubr.msk.f32.mxu0 %vm37_vm0, %v4498_v1  ;;  %v14050_v1 = vld [vmem:[#allocation22_spill] sm:$0xff]  ;;  %v14051_v14 = vld [vmem:[#allocation23_spill] sm:$0xff] }
 0x1be   :  { %v2710_v62 = vpop.f32.mrf.mxu1  ;;  %v2232_v4 = vpop.f32.mrf.mxu0  ;;  %v1595_v61 = vadd.f32 %v11842_v21, %v14050_v1 }
 0x1bf   :  { %v11981_v49 = vadd.f32 %v2710_v62, %v11615_v6  ;;  %v11983_v20 = vadd.f32 %v2232_v4, %v1585_v52  ;;  %v3806_v6 = vld [vmem:[#allocation2 + $0x262] sm:$0xff] }
 0x1c0   :  { %v9587_v38 = vpop.f32.mrf.mxu1  ;;  %9830 = vmatmul.mubr.msk.f32.gmra.mxu1 %vm37_vm0, %v3804_v24  ;;  %v9558_v40 = vpop.f32.mrf.mxu0  ;;  %9901 = vmatmul.mubr.msk.f32.gmra.mxu0 %vm37_vm0, %v4499_v34  ;;  %v3807_v24 = vld [vmem:[#allocation2 + $0x272] sm:$0xff]  ;;  %v4502_v4 = vld [vmem:[#allocation2 + $0x180] sm:$0xff]  ;;  %v1610_v34 = vadd.f32 %v11847_v43, %v14051_v14  ;;  %v4503_v43 = vld [vmem:[#allocation2 + $0x188] sm:$0xff] }
 0x1c1   :  { %v11990_v2 = vadd.f32 %v9587_v38, %v11624_v56  ;;  %v11992_v29 = vadd.f32 %v9558_v40, %v1600_v17  ;;  %9832 = vmatprep.mubr.msk.f32.mxu1 %vm37_vm0, %v3805_v41  ;;  %9903 = vmatprep.mubr.msk.f32.mxu0 %vm37_vm0, %v4500_v31  ;;  %v14052_v31 = vld [vmem:[#allocation24_spill] sm:$0xff]  ;;  %v14053_v14 = vld [vmem:[#allocation25_spill] sm:$0xff] }
 0x1c2   :  { %v2720_v52 = vpop.f32.mrf.mxu1  ;;  %v2242_v62 = vpop.f32.mrf.mxu0  ;;  %v1605_v38 = vadd.f32 %v11856_v19, %v14052_v31 }
 0x1c3   :  { %v11999_v21 = vadd.f32 %v2720_v52, %v11632_v12  ;;  %v12001_v56 = vadd.f32 %v2242_v62, %v1595_v61  ;;  %v3808_v12 = vld [vmem:[#allocation2 + $0x27a] sm:$0xff] }
 0x1c4   :  { %v9590_v17 = vpop.f32.mrf.mxu1  ;;  %9833 = vmatmul.mubr.msk.f32.gmra.mxu1 %vm37_vm0, %v3806_v6  ;;  %v9561_v41 = vpop.f32.mrf.mxu0  ;;  %9904 = vmatmul.mubr.msk.f32.gmra.mxu0 %vm37_vm0, %v4501_v54  ;;  %v3809_v6 = vld [vmem:[#allocation2 + $0x28a] sm:$0xff]  ;;  %v4504_v62 = vld [vmem:[#allocation2 + $0x198] sm:$0xff]  ;;  %v1620_v54 = vadd.f32 %v11863_v48, %v14053_v14  ;;  %v4505_v48 = vld [vmem:[#allocation2 + $0x1a0] sm:$0xff] }
 0x1c5   :  { %v12008_v40 = vadd.f32 %v9590_v17, %v11640_v0  ;;  %v12010_v1 = vadd.f32 %v9561_v41, %v1610_v34  ;;  %9835 = vmatprep.mubr.msk.f32.mxu1 %vm37_vm0, %v3807_v24  ;;  %9906 = vmatprep.mubr.msk.f32.mxu0 %vm37_vm0, %v4502_v4  ;;  %v14054_v4 = vld [vmem:[#allocation26_spill] sm:$0xff]  ;;  %v14055_v14 = vld [vmem:[#allocation27_spill] sm:$0xff] }
 0x1c6   :  { %v2730_v61 = vpop.f32.mrf.mxu1  ;;  %v2252_v52 = vpop.f32.mrf.mxu0  ;;  %v1615_v17 = vadd.f32 %v11873_v22, %v14054_v4 }
 0x1c7   :  { %v12017_v19 = vadd.f32 %v2730_v61, %v11648_v44  ;;  %v12019_v0 = vadd.f32 %v2252_v52, %v1605_v38  ;;  %v3810_v44 = vld [vmem:[#allocation2 + $0x292] sm:$0xff]  ;;  %v4506_v52 = vld [vmem:[#allocation2 + $0x1e0] sm:$0xff] }
 0x1c8   :  { %v9593_v34 = vpop.f32.mrf.mxu1  ;;  %9836 = vmatmul.mubr.msk.f32.gmra.mxu1 %vm37_vm0, %v3808_v12  ;;  %v9564_v24 = vpop.f32.mrf.mxu0  ;;  %9907 = vmatmul.mubr.msk.f32.gmra.mxu0 %vm37_vm0, %v4503_v43  ;;  %v3811_v12 = vld [vmem:[#allocation2 + $0x2a2] sm:$0xff]  ;;  %v1630_v43 = vadd.f32 %v11879_v3, %v14055_v14 }
 0x1c9   :  { %v12026_v41 = vadd.f32 %v9593_v34, %v11656_v10  ;;  %v12028_v31 = vadd.f32 %v9564_v24, %v1620_v54  ;;  %9838 = vmatprep.mubr.msk.f32.mxu1 %vm37_vm0, %v3809_v6  ;;  %9909 = vmatprep.mubr.msk.f32.mxu0 %vm37_vm0, %v4504_v62  ;;  %v14056_v62 = vld [vmem:[#allocation28_spill] sm:$0xff]  ;;  %v4507_v3 = vld [vmem:[#allocation2 + $0x1e8] sm:$0xff] }
 0x1ca   :  { %v2740_v38 = vpop.f32.mrf.mxu1  ;;  %v2262_v61 = vpop.f32.mrf.mxu0  ;;  %v1625_v34 = vadd.f32 %v11889_v27, %v14056_v62  ;;  %v3815_v62 = vld [vmem:[#allocation2 + $0x2d2] sm:$0xff] }
 0x1cb   :  { %v12035_v22 = vadd.f32 %v2740_v38, %v11667_v13  ;;  %v12037_v10 = vadd.f32 %v2262_v61, %v1615_v17  ;;  %v3812_v13 = vld [vmem:[#allocation2 + $0x2aa] sm:$0xff]  ;;  %v4508_v61 = vld [vmem:[#allocation2 + $0x1f8] sm:$0xff] }
 0x1cc   :  { %v9596_v54 = vpop.f32.mrf.mxu1  ;;  %9839 = vmatmul.mubr.msk.f32.gmra.mxu1 %vm37_vm0, %v3810_v44  ;;  %v9567_v6 = vpop.f32.mrf.mxu0  ;;  %9910 = vmatmul.mubr.msk.f32.gmra.mxu0 %vm37_vm0, %v4505_v48  ;;  %v3813_v44 = vld [vmem:[#allocation2 + $0x2ba] sm:$0xff] }
 0x1cd   :  { %v12044_v24 = vadd.f32 %v9596_v54, %v11675_v45  ;;  %v12046_v4 = vadd.f32 %v9567_v6, %v1630_v43  ;;  %9841 = vmatprep.mubr.msk.f32.mxu1 %vm37_vm0, %v3811_v12  ;;  %9912 = vmatprep.mubr.msk.f32.mxu0 %vm37_vm0, %v4506_v52  ;;  %v3814_v43 = vld [vmem:[#allocation2 + $0x2c2] sm:$0xff] }
 0x1ce   :  { %v2750_v17 = vpop.f32.mrf.mxu1  ;;  %v2272_v38 = vpop.f32.mrf.mxu0 }
 0x1cf   :  { %v12051_v48 = vadd.f32 %v2750_v17, %v11683_v59  ;;  %v12053_v14 = vadd.f32 %v2272_v38, %v1625_v34  ;;  %v4509_v59 = vld [vmem:[#allocation2 + $0x200] sm:$0xff]  ;;  %v4510_v34 = vld [vmem:[#allocation2 + $0x210] sm:$0xff] }
 0x1d0   :  { %v9599_v27 = vpop.f32.mrf.mxu1  ;;  %9842 = vmatmul.mubr.msk.f32.gmra.mxu1 %vm37_vm0, %v3812_v13  ;;  %v9670_v45 = vpop.f32.mrf.mxu0  ;;  %9913 = vmatmul.mubr.msk.f32.gmra.mxu0 %vm37_vm0, %v4507_v3 }
 0x1d1   :  { %v12058_v12 = vadd.f32 %v9599_v27, %v11691_v30  ;;  %v12061_v52 = vadd.f32 %v9670_v45, %v11900_v33  ;;  %9844 = vmatprep.mubr.msk.f32.mxu1 %vm37_vm0, %v3813_v44  ;;  %9915 = vmatprep.mubr.msk.f32.mxu0 %vm37_vm0, %v4508_v61  ;;  %v3816_v44 = vld [vmem:[#allocation2 + $0x2da] sm:$0xff]  ;;  %v3817_v27 = vld [vmem:[#allocation2 + $0x2ea] sm:$0xff] }
 0x1d2   :  { %v2760_v54 = vpop.f32.mrf.mxu1  ;;  %v3378_v6 = vpop.f32.mrf.mxu0  ;;  %v4512_v45 = vld [vmem:[#allocation2 + $0x228] sm:$0xff] }
 0x1d3   :  { %v12066_v13 = vadd.f32 %v2760_v54, %v11699_v35  ;;  %v12069_v3 = vadd.f32 %v3378_v6, %v11909_v42  ;;  %v4511_v35 = vld [vmem:[#allocation2 + $0x218] sm:$0xff] }
 0x1d4   :  { %v9602_v30 = vpop.f32.mrf.mxu1  ;;  %9845 = vmatmul.mubr.msk.f32.gmra.mxu1 %vm37_vm0, %v3814_v43  ;;  %v9673_v33 = vpop.f32.mrf.mxu0  ;;  %9916 = vmatmul.mubr.msk.f32.gmra.mxu0 %vm37_vm0, %v4509_v59 }
 0x1d5   :  { %v12074_v17 = vadd.f32 %v9602_v30, %v11707_v5  ;;  %v12077_v38 = vadd.f32 %v9673_v33, %v11918_v7  ;;  %9847 = vmatprep.mubr.msk.f32.mxu1 %vm37_vm0, %v3815_v62  ;;  %9918 = vmatprep.mubr.msk.f32.mxu0 %vm37_vm0, %v4510_v34  ;;  %v3818_v62 = vld [vmem:[#allocation2 + $0x2f2] sm:$0xff]  ;;  %v3819_v30 = vld [vmem:[#allocation2 + $0x302] sm:$0xff] }
 0x1d6   :  { %v2770_v42 = vpop.f32.mrf.mxu1  ;;  %v3388_v61 = vpop.f32.mrf.mxu0  ;;  %v4514_v33 = vld [vmem:[#allocation2 + $0x240] sm:$0xff] }
 0x1d7   :  { %v12082_v43 = vadd.f32 %v2770_v42, %v11715_v28  ;;  %v12085_v59 = vadd.f32 %v3388_v61, %v11927_v32  ;;  %v4513_v28 = vld [vmem:[#allocation2 + $0x230] sm:$0xff] }
 0x1d8   :  { %v9605_v5 = vpop.f32.mrf.mxu1  ;;  %9848 = vmatmul.mubr.msk.f32.gmra.mxu1 %vm37_vm0, %v3816_v44  ;;  %v9676_v7 = vpop.f32.mrf.mxu0  ;;  %9919 = vmatmul.mubr.msk.f32.gmra.mxu0 %vm37_vm0, %v4511_v35 }
 0x1d9   :  { %v12090_v54 = vadd.f32 %v9605_v5, %v11723_v25  ;;  %v12093_v6 = vadd.f32 %v9676_v7, %v11936_v15  ;;  %9850 = vmatprep.mubr.msk.f32.mxu1 %vm37_vm0, %v3817_v27  ;;  %9921 = vmatprep.mubr.msk.f32.mxu0 %vm37_vm0, %v4512_v45  ;;  %v3820_v27 = vld [vmem:[#allocation2 + $0x30a] sm:$0xff]  ;;  %v3821_v5 = vld [vmem:[#allocation2 + $0x31a] sm:$0xff] }
 0x1da   :  { %v2780_v32 = vpop.f32.mrf.mxu1  ;;  %v3398_v34 = vpop.f32.mrf.mxu0  ;;  %v4516_v7 = vld [vmem:[#allocation2 + $0x258] sm:$0xff] }
 0x1db   :  { %v12098_v44 = vadd.f32 %v2780_v32, %v11731_v47  ;;  %v12101_v35 = vadd.f32 %v3398_v34, %v11945_v50  ;;  %v4515_v47 = vld [vmem:[#allocation2 + $0x248] sm:$0xff] }
 0x1dc   :  { %v9608_v25 = vpop.f32.mrf.mxu1  ;;  %9851 = vmatmul.mubr.msk.f32.gmra.mxu1 %vm37_vm0, %v3818_v62  ;;  %v9679_v15 = vpop.f32.mrf.mxu0  ;;  %9922 = vmatmul.mubr.msk.f32.gmra.mxu0 %vm37_vm0, %v4513_v28 }
 0x1dd   :  { %v12106_v42 = vadd.f32 %v9608_v25, %v11738_v37  ;;  %v12109_v61 = vadd.f32 %v9679_v15, %v11954_v11  ;;  %9853 = vmatprep.mubr.msk.f32.mxu1 %vm37_vm0, %v3819_v30  ;;  %9924 = vmatprep.mubr.msk.f32.mxu0 %vm37_vm0, %v4514_v33  ;;  %v3822_v30 = vld [vmem:[#allocation2 + $0x322] sm:$0xff]  ;;  %v3823_v25 = vld [vmem:[#allocation2 + $0x332] sm:$0xff] }
 0x1de   :  { %v2790_v50 = vpop.f32.mrf.mxu1  ;;  %v3408_v45 = vpop.f32.mrf.mxu0  ;;  %v4518_v15 = vld [vmem:[#allocation2 + $0x270] sm:$0xff] }
 0x1df   :  { %v12114_v62 = vadd.f32 %v2790_v50, %v11745_v8  ;;  %v12117_v28 = vadd.f32 %v3408_v45, %v11963_v63  ;;  %v4517_v8 = vld [vmem:[#allocation2 + $0x260] sm:$0xff] }
 0x1e0   :  { %v9611_v37 = vpop.f32.mrf.mxu1  ;;  %9854 = vmatmul.mubr.msk.f32.gmra.mxu1 %vm37_vm0, %v3820_v27  ;;  %v9682_v11 = vpop.f32.mrf.mxu0  ;;  %9925 = vmatmul.mubr.msk.f32.gmra.mxu0 %vm37_vm0, %v4515_v47  ;;  %v14057_v50 = vld [vmem:[#allocation6_spill] sm:$0xff] }
 0x1e1   :  { %v12122_v32 = vadd.f32 %v9611_v37, %v11752_v57  ;;  %v12125_v34 = vadd.f32 %v9682_v11, %v11972_v51  ;;  %9856 = vmatprep.mubr.msk.f32.mxu1 %vm37_vm0, %v3821_v5  ;;  %9927 = vmatprep.mubr.msk.f32.mxu0 %vm37_vm0, %v4516_v7  ;;  %v3824_v7 = vld [vmem:[#allocation2 + $0x33a] sm:$0xff]  ;;  %v5182_v11 = vld [vmem:[#allocation2 + $0x31] sm:$0xff] }
 0x1e2   :  { %v2800_v63 = vpop.f32.mrf.mxu1  ;;  %v3418_v33 = vpop.f32.mrf.mxu0 }
 0x1e3   :  { %v12130_v27 = vadd.f32 %v2800_v63, %v11759_v55  ;;  %v12133_v47 = vadd.f32 %v3418_v33, %v11981_v49  ;;  %v4519_v55 = vld [vmem:[#allocation2 + $0x278] sm:$0xff]  ;;  %v4520_v63 = vld [vmem:[#allocation2 + $0x288] sm:$0xff] }
 0x1e4   :  { %v9614_v57 = vpop.f32.mrf.mxu1  ;;  %9857 = vmatmul.mubr.msk.f32.gmra.mxu1 %vm37_vm0, %v3822_v30  ;;  %v9685_v51 = vpop.f32.mrf.mxu0  ;;  %9928 = vmatmul.mubr.msk.f32.gmra.mxu0 %vm37_vm0, %v4517_v8  ;;  %v14058_v30 = vld [vmem:[#allocation7_spill] sm:$0xff] }
 0x1e5   :  { %v12138_v45 = vadd.f32 %v9614_v57, %v14057_v50  ;;  %v12141_v5 = vadd.f32 %v9685_v51, %v11990_v2  ;;  %9859 = vmatprep.mubr.msk.f32.mxu1 %vm37_vm0, %v3823_v25  ;;  %9930 = vmatprep.mubr.msk.f32.mxu0 %vm37_vm0, %v4518_v15  ;;  %v5183_v51 = vld [vmem:[#allocation2 + $0x39] sm:$0xff]  ;;  %v4521_v50 = vld [vmem:[#allocation2 + $0x290] sm:$0xff] }
 0x1e6   :  { %v2810_v49 = vpop.f32.mrf.mxu1  ;;  %v3428_v37 = vpop.f32.mrf.mxu0 }
 0x1e7   :  { %v12146_v33 = vadd.f32 %v2810_v49, %v14058_v30  ;;  %v12149_v8 = vadd.f32 %v3428_v37, %v11999_v21  ;;  %v5184_v37 = vld [vmem:[#allocation2 + $0x49] sm:$0xff]  ;;  %v4522_v30 = vld [vmem:[#allocation2 + $0x2a0] sm:$0xff] }
 0x1e8   :  { %v9617_v57 = vpop.f32.mrf.mxu1  ;;  %9860 = vmatmul.mubr.msk.f32.gmra.mxu1 %vm37_vm0, %v3824_v7  ;;  %v9688_v2 = vpop.f32.mrf.mxu0  ;;  %9931 = vmatmul.mubr.msk.f32.gmra.mxu0 %vm37_vm0, %v4519_v55  ;;  %v14061_v7 = vld [vmem:[#allocation8_spill] sm:$0xff] }
 0x1e9   :  { %14059 = vst [vmem:[#allocation11_spill] sm:$0xff] %v12149_v8  ;;  %v12154_v25 = vadd.f32 %v9617_v57, %v11780_v46  ;;  %v12157_v15 = vadd.f32 %v9688_v2, %v12008_v40  ;;  %9962 = vmatprep.mubr.msk.f32.mxu1 %vm37_vm0, %v5182_v11  ;;  %9933 = vmatprep.mubr.msk.f32.mxu0 %vm37_vm0, %v4520_v63  ;;  %v14063_v11 = vld [vmem:[#allocation9_spill] sm:$0xff] }
 0x1ea   :  { %v2820_v21 = vpop.f32.mrf.mxu1  ;;  %v3438_v49 = vpop.f32.mrf.mxu0  ;;  %v5185_v2 = vld [vmem:[#allocation2 + $0x51] sm:$0xff] }
 0x1eb   :  { %14060 = vst [vmem:[#allocation12_spill] sm:$0xff] %v12157_v15  ;;  %v12162_v8 = vadd.f32 %v2820_v21, %v14061_v7  ;;  %v12165_v55 = vadd.f32 %v3438_v49, %v12017_v19  ;;  %v4523_v21 = vld [vmem:[#allocation2 + $0x2a8] sm:$0xff] }
 0x1ec   :  { %v9620_v46 = vpop.f32.mrf.mxu1  ;;  %9963 = vmatmul.mubr.msk.f32.vlgmr.msra.gmra.mxu1 %vm37_vm0, %v5183_v51  ;;  %v9691_v40 = vpop.f32.mrf.mxu0  ;;  %9934 = vmatmul.mubr.msk.f32.gmra.mxu0 %vm37_vm0, %v4521_v50  ;;  %v5186_v7 = vld [vmem:[#allocation2 + $0x61] sm:$0xff]  ;;  %v14065_v51 = vld [vmem:[#allocation29_spill] sm:$0xff] }
 0x1ed   :  { %14062 = vst [vmem:[#allocation13_spill] sm:$0xff] %v12165_v55  ;;  %v12170_v63 = vadd.f32 %v9620_v46, %v14063_v11  ;;  %v12173_v57 = vadd.f32 %v9691_v40, %v12026_v41  ;;  %9965 = vmatprep.mubr.msk.f32.mxu1 %vm37_vm0, %v5184_v37  ;;  %9936 = vmatprep.mubr.msk.f32.mxu0 %vm37_vm0, %v4522_v30  ;;  %v4524_v55 = vld [vmem:[#allocation2 + $0x2b8] sm:$0xff]  ;;  %v14067_v37 = vld [vmem:[#allocation30_spill] sm:$0xff]  ;;  %v5187_v11 = vld [vmem:[#allocation2 + $0x69] sm:$0xff] }
 0x1ee   :  { %v2830_v19 = vpop.f32.mrf.mxu1  ;;  %v3448_v49 = vpop.f32.mrf.mxu0 }
 0x1ef   :  { %14064 = vst [vmem:[#allocation14_spill] sm:$0xff] %v12173_v57  ;;  %v12178_v15 = vadd.f32 %v2830_v19, %v14065_v51  ;;  %v12181_v50 = vadd.f32 %v3448_v49, %v12035_v22  ;;  %v4525_v19 = vld [vmem:[#allocation2 + $0x2c0] sm:$0xff] }
 0x1f0   :  { %v9623_v46 = vpop.f32.mrf.mxu1  ;;  %9966 = vmatmul.mubr.msk.f32.gmra.mxu1 %vm37_vm0, %v5185_v2  ;;  %v9694_v41 = vpop.f32.mrf.mxu0  ;;  %9937 = vmatmul.mubr.msk.f32.gmra.mxu0 %vm37_vm0, %v4523_v21  ;;  %v5188_v51 = vld [vmem:[#allocation2 + $0x79] sm:$0xff]  ;;  %v14069_v2 = vld [vmem:[#allocation31_spill] sm:$0xff] }
 0x1f1   :  { %14066 = vst [vmem:[#allocation15_spill] sm:$0xff] %v12181_v50  ;;  %v12186_v30 = vadd.f32 %v9623_v46, %v14067_v37  ;;  %v12189_v40 = vadd.f32 %v9694_v41, %v12044_v24  ;;  %9968 = vmatprep.mubr.msk.f32.mxu1 %vm37_vm0, %v5186_v7  ;;  %9939 = vmatprep.mubr.msk.f32.mxu0 %vm37_vm0, %v4524_v55  ;;  %v4526_v50 = vld [vmem:[#allocation2 + $0x2d0] sm:$0xff]  ;;  %v5189_v37 = vld [vmem:[#allocation2 + $0x81] sm:$0xff] }
 0x1f2   :  { %v2840_v22 = vpop.f32.mrf.mxu1  ;;  %v3458_v49 = vpop.f32.mrf.mxu0  ;;  %v14071_v7 = vld [vmem:[#allocation32_spill] sm:$0xff] }
 0x1f3   :  { %14068 = vst [vmem:[#allocation16_spill] sm:$0xff] %v12189_v40  ;;  %v12194_v57 = vadd.f32 %v2840_v22, %v14069_v2  ;;  %v12197_v21 = vadd.f32 %v3458_v49, %v12051_v48  ;;  %v4527_v22 = vld [vmem:[#allocation2 + $0x2d8] sm:$0xff] }
 0x1f4   :  { %v9626_v46 = vpop.f32.mrf.mxu1  ;;  %9969 = vmatmul.mubr.msk.f32.gmra.mxu1 %vm37_vm0, %v5187_v11  ;;  %v9697_v24 = vpop.f32.mrf.mxu0  ;;  %9940 = vmatmul.mubr.msk.f32.gmra.mxu0 %vm37_vm0, %v4525_v19  ;;  %v5190_v2 = vld [vmem:[#allocation2 + $0x91] sm:$0xff] }
 0x1f5   :  { %14070 = vst [vmem:[#allocation17_spill] sm:$0xff] %v12197_v21  ;;  %v12202_v55 = vadd.f32 %v9626_v46, %v14071_v7  ;;  %v12205_v41 = vadd.f32 %v9697_v24, %v12058_v12  ;;  %9971 = vmatprep.mubr.msk.f32.mxu1 %vm37_vm0, %v5188_v51  ;;  %9942 = vmatprep.mubr.msk.f32.mxu0 %vm37_vm0, %v4526_v50  ;;  %v4528_v21 = vld [vmem:[#allocation2 + $0x2e8] sm:$0xff]  ;;  %v14073_v11 = vld [vmem:[#allocation33_spill] sm:$0xff]  ;;  %v14075_v51 = vld [vmem:[#allocation34_spill] sm:$0xff] }
 0x1f6   :  { %v2850_v48 = vpop.f32.mrf.mxu1  ;;  %v3468_v49 = vpop.f32.mrf.mxu0  ;;  %v5191_v7 = vld [vmem:[#allocation2 + $0x99] sm:$0xff] }
 0x1f7   :  { %14072 = vst [vmem:[#allocation18_spill] sm:$0xff] %v12205_v41  ;;  %v12210_v40 = vadd.f32 %v2850_v48, %v14073_v11  ;;  %v12213_v19 = vadd.f32 %v3468_v49, %v12066_v13  ;;  %v4529_v48 = vld [vmem:[#allocation2 + $0x2f0] sm:$0xff] }
 0x1f8   :  { %v9629_v46 = vpop.f32.mrf.mxu1  ;;  %9972 = vmatmul.mubr.msk.f32.gmra.mxu1 %vm37_vm0, %v5189_v37  ;;  %v9700_v12 = vpop.f32.mrf.mxu0  ;;  %9943 = vmatmul.mubr.msk.f32.gmra.mxu0 %vm37_vm0, %v4527_v22  ;;  %v5192_v11 = vld [vmem:[#allocation2 + $0xa9] sm:$0xff] }
 0x1f9   :  { %14074 = vst [vmem:[#allocation19_spill] sm:$0xff] %v12213_v19  ;;  %v12218_v50 = vadd.f32 %v9629_v46, %v14075_v51  ;;  %v12221_v24 = vadd.f32 %v9700_v12, %v12074_v17  ;;  %9974 = vmatprep.mubr.msk.f32.mxu1 %vm37_vm0, %v5190_v2  ;;  %9945 = vmatprep.mubr.msk.f32.mxu0 %vm37_vm0, %v4528_v21  ;;  %v4530_v19 = vld [vmem:[#allocation2 + $0x300] sm:$0xff]  ;;  %v14077_v37 = vld [vmem:[#allocation35_spill] sm:$0xff]  ;;  %v14079_v2 = vld [vmem:[#allocation36_spill] sm:$0xff] }
 0x1fa   :  { %v2860_v13 = vpop.f32.mrf.mxu1  ;;  %v3478_v49 = vpop.f32.mrf.mxu0  ;;  %v5193_v51 = vld [vmem:[#allocation2 + $0xb1] sm:$0xff] }
 0x1fb   :  { %14076 = vst [vmem:[#allocation20_spill] sm:$0xff] %v12221_v24  ;;  %v12226_v41 = vadd.f32 %v2860_v13, %v14077_v37  ;;  %v12229_v22 = vadd.f32 %v3478_v49, %v12082_v43  ;;  %v4531_v13 = vld [vmem:[#allocation2 + $0x308] sm:$0xff] }
 0x1fc   :  { %v9632_v46 = vpop.f32.mrf.mxu1  ;;  %9975 = vmatmul.mubr.msk.f32.gmra.mxu1 %vm37_vm0, %v5191_v7  ;;  %v9703_v17 = vpop.f32.mrf.mxu0  ;;  %9946 = vmatmul.mubr.msk.f32.gmra.mxu0 %vm37_vm0, %v4529_v48  ;;  %v5194_v37 = vld [vmem:[#allocation2 + $0xc1] sm:$0xff]  ;;  %v14081_v7 = vld [vmem:[#allocation37_spill] sm:$0xff] }
 0x1fd   :  { %14078 = vst [vmem:[#allocation21_spill] sm:$0xff] %v12229_v22  ;;  %v12234_v21 = vadd.f32 %v9632_v46, %v14079_v2  ;;  %v12237_v12 = vadd.f32 %v9703_v17, %v12090_v54  ;;  %9977 = vmatprep.mubr.msk.f32.mxu1 %vm37_vm0, %v5192_v11  ;;  %9948 = vmatprep.mubr.msk.f32.mxu0 %vm37_vm0, %v4530_v19  ;;  %v4532_v22 = vld [vmem:[#allocation2 + $0x318] sm:$0xff]  ;;  %v14083_v11 = vld [vmem:[#allocation38_spill] sm:$0xff]  ;;  %v5195_v2 = vld [vmem:[#allocation2 + $0xc9] sm:$0xff] }
 0x1fe   :  { %v2870_v43 = vpop.f32.mrf.mxu1  ;;  %v3488_v49 = vpop.f32.mrf.mxu0 }
 0x1ff   :  { %14080 = vst [vmem:[#allocation22_spill] sm:$0xff] %v12237_v12  ;;  %v12242_v24 = vadd.f32 %v2870_v43, %v14081_v7  ;;  %v12245_v48 = vadd.f32 %v3488_v49, %v12098_v44  ;;  %v4533_v43 = vld [vmem:[#allocation2 + $0x320] sm:$0xff] }
 0x200   :  { %v9635_v46 = vpop.f32.mrf.mxu1  ;;  %9978 = vmatmul.mubr.msk.f32.gmra.mxu1 %vm37_vm0, %v5193_v51  ;;  %v9706_v54 = vpop.f32.mrf.mxu0  ;;  %9949 = vmatmul.mubr.msk.f32.gmra.mxu0 %vm37_vm0, %v4531_v13  ;;  %v5196_v7 = vld [vmem:[#allocation2 + $0xd9] sm:$0xff]  ;;  %v14084_v51 = vld [vmem:[#allocation39_spill] sm:$0xff] }
 0x201   :  { %14082 = vst [vmem:[#allocation23_spill] sm:$0xff] %v12245_v48  ;;  %v12250_v19 = vadd.f32 %v9635_v46, %v14083_v11  ;;  %v12253_v17 = vadd.f32 %v9706_v54, %v12106_v42  ;;  %9980 = vmatprep.mubr.msk.f32.mxu1 %vm37_vm0, %v5194_v37  ;;  %9951 = vmatprep.mubr.msk.f32.mxu0 %vm37_vm0, %v4532_v22  ;;  %v4534_v48 = vld [vmem:[#allocation2 + $0x330] sm:$0xff]  ;;  %v5197_v54 = vld [vmem:[#allocation2 + $0xe1] sm:$0xff]  ;;  %v4535_v11 = vld [vmem:[#allocation2 + $0x338] sm:$0xff] }
 0x202   :  { %v2880_v44 = vpop.f32.mrf.mxu1  ;;  %v3498_v49 = vpop.f32.mrf.mxu0 }
 0x203   :  { %v12258_v12 = vadd.f32 %v2880_v44, %v14084_v51  ;;  %v12261_v13 = vadd.f32 %v3498_v49, %v12114_v62  ;;  %v5198_v49 = vld [vmem:[#allocation2 + $0xf1] sm:$0xff]  ;;  %v4536_v51 = vld [vmem:[#allocation2 + $0x348] sm:$0xff] }
 0x204   :  { %v9638_v46 = vpop.f32.mrf.mxu1  ;;  %9981 = vmatmul.mubr.msk.f32.gmra.mxu1 %vm37_vm0, %v5195_v2  ;;  %v9709_v42 = vpop.f32.mrf.mxu0  ;;  %9952 = vmatmul.mubr.msk.f32.gmra.mxu0 %vm37_vm0, %v4533_v43  ;;  %v14086_v2 = vld [vmem:[#allocation10_spill] sm:$0xff] }
 0x205   :  { %14085 = vst [vmem:[#allocation24_spill] sm:$0xff] %v12261_v13  ;;  %v12266_v22 = vadd.f32 %v9638_v46, %v11885_v23  ;;  %v12269_v37 = vadd.f32 %v9709_v42, %v12122_v32  ;;  %9983 = vmatprep.mubr.msk.f32.mxu1 %vm37_vm0, %v5196_v7  ;;  %9954 = vmatprep.mubr.msk.f32.mxu0 %vm37_vm0, %v4534_v48  ;;  %v5199_v46 = vld [vmem:[#allocation2 + $0xf9] sm:$0xff]  ;;  %v4537_v42 = vld [vmem:[#allocation2 + $0x350] sm:$0xff] }
 0x206   :  { %v2890_v62 = vpop.f32.mrf.mxu1  ;;  %v3508_v44 = vpop.f32.mrf.mxu0 }
 0x207   :  { %v12274_v13 = vadd.f32 %v2890_v62, %v14086_v2  ;;  %v12277_v43 = vadd.f32 %v3508_v44, %v12130_v27  ;;  %v5200_v44 = vld [vmem:[#allocation2 + $0x109] sm:$0xff]  ;;  %v5890_v2 = vld [vmem:[#allocation2 + $0x32] sm:$0xff] }
 0x208   :  { %v9641_v23 = vpop.f32.mrf.mxu1  ;;  %9984 = vmatmul.mubr.msk.f32.gmra.mxu1 %vm37_vm0, %v5197_v54  ;;  %v9712_v32 = vpop.f32.mrf.mxu0  ;;  %9955 = vmatmul.mubr.msk.f32.gmra.mxu0 %vm37_vm0, %v4535_v11 }
 0x209   :  { %v12282_v48 = vadd.f32 %v9641_v23, %v11902_v16  ;;  %v12285_v7 = vadd.f32 %v9712_v32, %v12138_v45  ;;  %9986 = vmatprep.mubr.msk.f32.mxu1 %vm37_vm0, %v5198_v49  ;;  %9957 = vmatprep.mubr.msk.f32.mxu0 %vm37_vm0, %v4536_v51  ;;  %v5201_v23 = vld [vmem:[#allocation2 + $0x111] sm:$0xff] }
 0x20a   :  { %v2900_v27 = vpop.f32.mrf.mxu1  ;;  %v3518_v62 = vpop.f32.mrf.mxu0 }
 0x20b   :  { %v12290_v54 = vadd.f32 %v2900_v27, %v11911_v26  ;;  %v12293_v11 = vadd.f32 %v3518_v62, %v12146_v33  ;;  %v5891_v26 = vld [vmem:[#allocation2 + $0x3a] sm:$0xff]  ;;  %v5892_v62 = vld [vmem:[#allocation2 + $0x4a] sm:$0xff] }
 0x20c   :  { %v9644_v16 = vpop.f32.mrf.mxu1  ;;  %9987 = vmatmul.mubr.msk.f32.gmra.mxu1 %vm37_vm0, %v5199_v46  ;;  %v9715_v45 = vpop.f32.mrf.mxu0  ;;  %9958 = vmatmul.mubr.msk.f32.gmra.mxu0 %vm37_vm0, %v4537_v42  ;;  %v5202_v27 = vld [vmem:[#allocation2 + $0x121] sm:$0xff] }
 0x20d   :  { %v12298_v49 = vadd.f32 %v9644_v16, %v11920_v18  ;;  %v12301_v51 = vadd.f32 %v9715_v45, %v12154_v25  ;;  %9989 = vmatprep.mubr.msk.f32.mxu1 %vm37_vm0, %v5200_v44  ;;  %10060 = vmatprep.mubr.msk.f32.mxu0 %vm37_vm0, %v5890_v2  ;;  %v5203_v16 = vld [vmem:[#allocation2 + $0x129] sm:$0xff] }
 0x20e   :  { %v2910_v33 = vpop.f32.mrf.mxu1  ;;  %v3528_v32 = vpop.f32.mrf.mxu0 }
 0x20f   :  { %v12306_v46 = vadd.f32 %v2910_v33, %v11929_v9  ;;  %v12309_v42 = vadd.f32 %v3528_v32, %v12162_v8  ;;  %v5893_v9 = vld [vmem:[#allocation2 + $0x52] sm:$0xff]  ;;  %v5894_v32 = vld [vmem:[#allocation2 + $0x62] sm:$0xff] }
 0x210   :  { %v9647_v18 = vpop.f32.mrf.mxu1  ;;  %9990 = vmatmul.mubr.msk.f32.gmra.mxu1 %vm37_vm0, %v5201_v23  ;;  %v9718_v25 = vpop.f32.mrf.mxu0  ;;  %10061 = vmatmul.mubr.msk.f32.vlgmr.msra.gmra.mxu0 %vm37_vm0, %v5891_v26  ;;  %v5204_v33 = vld [vmem:[#allocation2 + $0x139] sm:$0xff] }
 0x211   :  { %v12314_v44 = vadd.f32 %v9647_v18, %v11938_v39  ;;  %v12317_v2 = vadd.f32 %v9718_v25, %v12170_v63  ;;  %9992 = vmatprep.mubr.msk.f32.mxu1 %vm37_vm0, %v5202_v27  ;;  %10063 = vmatprep.mubr.msk.f32.mxu0 %vm37_vm0, %v5892_v62  ;;  %v5205_v18 = vld [vmem:[#allocation2 + $0x141] sm:$0xff] }
 0x212   :  { %v2920_v8 = vpop.f32.mrf.mxu1  ;;  %v3538_v45 = vpop.f32.mrf.mxu0 }
 0x213   :  { %v12322_v23 = vadd.f32 %v2920_v8, %v11947_v53  ;;  %v12325_v26 = vadd.f32 %v3538_v45, %v12178_v15  ;;  %v5895_v53 = vld [vmem:[#allocation2 + $0x6a] sm:$0xff]  ;;  %v5896_v45 = vld [vmem:[#allocation2 + $0x7a] sm:$0xff] }
 0x214   :  { %v9650_v39 = vpop.f32.mrf.mxu1  ;;  %9993 = vmatmul.mubr.msk.f32.gmra.mxu1 %vm37_vm0, %v5203_v16  ;;  %v9721_v63 = vpop.f32.mrf.mxu0  ;;  %10064 = vmatmul.mubr.msk.f32.gmra.mxu0 %vm37_vm0, %v5893_v9  ;;  %v5206_v8 = vld [vmem:[#allocation2 + $0x151] sm:$0xff] }
 0x215   :  { %v12330_v27 = vadd.f32 %v9650_v39, %v11956_v36  ;;  %v12333_v62 = vadd.f32 %v9721_v63, %v12186_v30  ;;  %9995 = vmatprep.mubr.msk.f32.mxu1 %vm37_vm0, %v5204_v33  ;;  %10066 = vmatprep.mubr.msk.f32.mxu0 %vm37_vm0, %v5894_v32  ;;  %v5207_v39 = vld [vmem:[#allocation2 + $0x159] sm:$0xff] }
 0x216   :  { %v2930_v15 = vpop.f32.mrf.mxu1  ;;  %v3548_v25 = vpop.f32.mrf.mxu0 }
 0x217   :  { %v12338_v16 = vadd.f32 %v2930_v15, %v11965_v58  ;;  %v12341_v9 = vadd.f32 %v3548_v25, %v12194_v57  ;;  %v5897_v58 = vld [vmem:[#allocation2 + $0x82] sm:$0xff]  ;;  %v5898_v25 = vld [vmem:[#allocation2 + $0x92] sm:$0xff] }
 0x218   :  { %v9653_v36 = vpop.f32.mrf.mxu1  ;;  %9996 = vmatmul.mubr.msk.f32.gmra.mxu1 %vm37_vm0, %v5205_v18  ;;  %v9724_v30 = vpop.f32.mrf.mxu0  ;;  %10067 = vmatmul.mubr.msk.f32.gmra.mxu0 %vm37_vm0, %v5895_v53  ;;  %v5208_v15 = vld [vmem:[#allocation2 + $0x169] sm:$0xff] }
 0x219   :  { %v12346_v33 = vadd.f32 %v9653_v36, %v11974_v60  ;;  %v12349_v32 = vadd.f32 %v9724_v30, %v12202_v55  ;;  %9998 = vmatprep.mubr.msk.f32.mxu1 %vm37_vm0, %v5206_v8  ;;  %10069 = vmatprep.mubr.msk.f32.mxu0 %vm37_vm0, %v5896_v45  ;;  %v5209_v36 = vld [vmem:[#allocation2 + $0x171] sm:$0xff] }
 0x21a   :  { %v2940_v57 = vpop.f32.mrf.mxu1  ;;  %v3558_v63 = vpop.f32.mrf.mxu0 }
 0x21b   :  { %v12354_v18 = vadd.f32 %v2940_v57, %v11983_v20  ;;  %v12357_v53 = vadd.f32 %v3558_v63, %v12210_v40  ;;  %v5899_v20 = vld [vmem:[#allocation2 + $0x9a] sm:$0xff]  ;;  %v5900_v63 = vld [vmem:[#allocation2 + $0xaa] sm:$0xff] }
 0x21c   :  { %v9656_v60 = vpop.f32.mrf.mxu1  ;;  %9999 = vmatmul.mubr.msk.f32.gmra.mxu1 %vm37_vm0, %v5207_v39  ;;  %v9727_v55 = vpop.f32.mrf.mxu0  ;;  %10070 = vmatmul.mubr.msk.f32.gmra.mxu0 %vm37_vm0, %v5897_v58  ;;  %v5210_v57 = vld [vmem:[#allocation2 + $0x181] sm:$0xff] }
 0x21d   :  { %v12362_v8 = vadd.f32 %v9656_v60, %v11992_v29  ;;  %v12365_v45 = vadd.f32 %v9727_v55, %v12218_v50  ;;  %10001 = vmatprep.mubr.msk.f32.mxu1 %vm37_vm0, %v5208_v15  ;;  %10072 = vmatprep.mubr.msk.f32.mxu0 %vm37_vm0, %v5898_v25  ;;  %v5211_v60 = vld [vmem:[#allocation2 + $0x189] sm:$0xff] }
 0x21e   :  { %v2950_v40 = vpop.f32.mrf.mxu1  ;;  %v3568_v30 = vpop.f32.mrf.mxu0 }
 0x21f   :  { %v12370_v39 = vadd.f32 %v2950_v40, %v12001_v56  ;;  %v12373_v58 = vadd.f32 %v3568_v30, %v12226_v41  ;;  %v5901_v56 = vld [vmem:[#allocation2 + $0xb2] sm:$0xff]  ;;  %v5902_v30 = vld [vmem:[#allocation2 + $0xc2] sm:$0xff] }
 0x220   :  { %v9659_v29 = vpop.f32.mrf.mxu1  ;;  %10002 = vmatmul.mubr.msk.f32.gmra.mxu1 %vm37_vm0, %v5209_v36  ;;  %v9730_v50 = vpop.f32.mrf.mxu0  ;;  %10073 = vmatmul.mubr.msk.f32.gmra.mxu0 %vm37_vm0, %v5899_v20  ;;  %v5212_v40 = vld [vmem:[#allocation2 + $0x199] sm:$0xff] }
 0x221   :  { %v12378_v15 = vadd.f32 %v9659_v29, %v12010_v1  ;;  %v12381_v25 = vadd.f32 %v9730_v50, %v12234_v21  ;;  %10004 = vmatprep.mubr.msk.f32.mxu1 %vm37_vm0, %v5210_v57  ;;  %10075 = vmatprep.mubr.msk.f32.mxu0 %vm37_vm0, %v5900_v63  ;;  %v5213_v29 = vld [vmem:[#allocation2 + $0x1a1] sm:$0xff] }
 0x222   :  { %v2960_v41 = vpop.f32.mrf.mxu1  ;;  %v3578_v55 = vpop.f32.mrf.mxu0 }
 0x223   :  { %v12386_v36 = vadd.f32 %v2960_v41, %v12019_v0  ;;  %v12389_v20 = vadd.f32 %v3578_v55, %v12242_v24  ;;  %v5903_v0 = vld [vmem:[#allocation2 + $0xca] sm:$0xff]  ;;  %v5214_v41 = vld [vmem:[#allocation2 + $0x1e1] sm:$0xff] }
 0x224   :  { %v9662_v1 = vpop.f32.mrf.mxu1  ;;  %10005 = vmatmul.mubr.msk.f32.gmra.mxu1 %vm37_vm0, %v5211_v60  ;;  %v9733_v21 = vpop.f32.mrf.mxu0  ;;  %10076 = vmatmul.mubr.msk.f32.gmra.mxu0 %vm37_vm0, %v5901_v56  ;;  %v5904_v55 = vld [vmem:[#allocation2 + $0xda] sm:$0xff] }
 0x225   :  { %v12394_v57 = vadd.f32 %v9662_v1, %v12028_v31  ;;  %v12397_v63 = vadd.f32 %v9733_v21, %v12250_v19  ;;  %10007 = vmatprep.mubr.msk.f32.mxu1 %vm37_vm0, %v5212_v40  ;;  %10078 = vmatprep.mubr.msk.f32.mxu0 %vm37_vm0, %v5902_v30  ;;  %v5215_v1 = vld [vmem:[#allocation2 + $0x1e9] sm:$0xff] }
 0x226   :  { %v2970_v24 = vpop.f32.mrf.mxu1  ;;  %v3588_v50 = vpop.f32.mrf.mxu0 }
 0x227   :  { %v12402_v60 = vadd.f32 %v2970_v24, %v12037_v10  ;;  %v12405_v56 = vadd.f32 %v3588_v50, %v12258_v12  ;;  %v5905_v10 = vld [vmem:[#allocation2 + $0xe2] sm:$0xff]  ;;  %v5216_v24 = vld [vmem:[#allocation2 + $0x1f9] sm:$0xff] }
 0x228   :  { %v9665_v31 = vpop.f32.mrf.mxu1  ;;  %10008 = vmatmul.mubr.msk.f32.gmra.mxu1 %vm37_vm0, %v5213_v29  ;;  %v9736_v19 = vpop.f32.mrf.mxu0  ;;  %10079 = vmatmul.mubr.msk.f32.gmra.mxu0 %vm37_vm0, %v5903_v0  ;;  %v5906_v50 = vld [vmem:[#allocation2 + $0xf2] sm:$0xff] }
 0x229   :  { %v12410_v40 = vadd.f32 %v9665_v31, %v12046_v4  ;;  %v12413_v30 = vadd.f32 %v9736_v19, %v12266_v22  ;;  %10010 = vmatprep.mubr.msk.f32.mxu1 %vm37_vm0, %v5214_v41  ;;  %10081 = vmatprep.mubr.msk.f32.mxu0 %vm37_vm0, %v5904_v55  ;;  %v5217_v31 = vld [vmem:[#allocation2 + $0x201] sm:$0xff] }
 0x22a   :  { %v2980_v12 = vpop.f32.mrf.mxu1  ;;  %v3598_v21 = vpop.f32.mrf.mxu0 }
 0x22b   :  { %v12418_v29 = vadd.f32 %v2980_v12, %v12053_v14  ;;  %v12421_v0 = vadd.f32 %v3598_v21, %v12274_v13  ;;  %v5907_v14 = vld [vmem:[#allocation2 + $0xfa] sm:$0xff]  ;;  %v5218_v12 = vld [vmem:[#allocation2 + $0x211] sm:$0xff] }
 0x22c   :  { %v9768_v4 = vpop.f32.mrf.mxu1  ;;  %10011 = vmatmul.mubr.msk.f32.gmra.mxu1 %vm37_vm0, %v5215_v1  ;;  %v9739_v22 = vpop.f32.mrf.mxu0  ;;  %10082 = vmatmul.mubr.msk.f32.gmra.mxu0 %vm37_vm0, %v5905_v10  ;;  %v5908_v21 = vld [vmem:[#allocation2 + $0x10a] sm:$0xff] }
 0x22d   :  { %v12426_v41 = vadd.f32 %v9768_v4, %v12061_v52  ;;  %v12429_v55 = vadd.f32 %v9739_v22, %v12282_v48  ;;  %10013 = vmatprep.mubr.msk.f32.mxu1 %vm37_vm0, %v5216_v24  ;;  %10084 = vmatprep.mubr.msk.f32.mxu0 %vm37_vm0, %v5906_v50  ;;  %v5219_v4 = vld [vmem:[#allocation2 + $0x219] sm:$0xff] }
 0x22e   :  { %v4090_v13 = vpop.f32.mrf.mxu1  ;;  %v3608_v19 = vpop.f32.mrf.mxu0 }
 0x22f   :  { %v12434_v1 = vadd.f32 %v4090_v13, %v12069_v3  ;;  %v12437_v10 = vadd.f32 %v3608_v19, %v12290_v54  ;;  %v5909_v3 = vld [vmem:[#allocation2 + $0x112] sm:$0xff]  ;;  %v5220_v13 = vld [vmem:[#allocation2 + $0x229] sm:$0xff] }
 0x230   :  { %v9771_v52 = vpop.f32.mrf.mxu1  ;;  %10014 = vmatmul.mubr.msk.f32.gmra.mxu1 %vm37_vm0, %v5217_v31  ;;  %v9742_v48 = vpop.f32.mrf.mxu0  ;;  %10085 = vmatmul.mubr.msk.f32.gmra.mxu0 %vm37_vm0, %v5907_v14  ;;  %v5910_v19 = vld [vmem:[#allocation2 + $0x122] sm:$0xff] }
 0x231   :  { %v12442_v24 = vadd.f32 %v9771_v52, %v12077_v38  ;;  %v12445_v50 = vadd.f32 %v9742_v48, %v12298_v49  ;;  %10016 = vmatprep.mubr.msk.f32.mxu1 %vm37_vm0, %v5218_v12  ;;  %10087 = vmatprep.mubr.msk.f32.mxu0 %vm37_vm0, %v5908_v21  ;;  %v5221_v52 = vld [vmem:[#allocation2 + $0x231] sm:$0xff] }
 0x232   :  { %v4100_v54 = vpop.f32.mrf.mxu1  ;;  %v3618_v22 = vpop.f32.mrf.mxu0 }
 0x233   :  { %v12450_v31 = vadd.f32 %v4100_v54, %v12085_v59  ;;  %v12453_v14 = vadd.f32 %v3618_v22, %v12306_v46  ;;  %v5911_v59 = vld [vmem:[#allocation2 + $0x12a] sm:$0xff]  ;;  %v5222_v54 = vld [vmem:[#allocation2 + $0x241] sm:$0xff] }
 0x234   :  { %v9774_v38 = vpop.f32.mrf.mxu1  ;;  %10017 = vmatmul.mubr.msk.f32.gmra.mxu1 %vm37_vm0, %v5219_v4  ;;  %v9745_v49 = vpop.f32.mrf.mxu0  ;;  %10088 = vmatmul.mubr.msk.f32.gmra.mxu0 %vm37_vm0, %v5909_v3  ;;  %v5912_v22 = vld [vmem:[#allocation2 + $0x13a] sm:$0xff] }
 0x235   :  { %v12458_v12 = vadd.f32 %v9774_v38, %v12093_v6  ;;  %v12461_v21 = vadd.f32 %v9745_v49, %v12314_v44  ;;  %10019 = vmatprep.mubr.msk.f32.mxu1 %vm37_vm0, %v5220_v13  ;;  %10090 = vmatprep.mubr.msk.f32.mxu0 %vm37_vm0, %v5910_v19  ;;  %v5223_v38 = vld [vmem:[#allocation2 + $0x249] sm:$0xff] }
 0x236   :  { %v4110_v46 = vpop.f32.mrf.mxu1  ;;  %v3628_v48 = vpop.f32.mrf.mxu0 }
 0x237   :  { %v12466_v4 = vadd.f32 %v4110_v46, %v12101_v35  ;;  %v12469_v3 = vadd.f32 %v3628_v48, %v12322_v23  ;;  %v5913_v35 = vld [vmem:[#allocation2 + $0x142] sm:$0xff]  ;;  %v5224_v46 = vld [vmem:[#allocation2 + $0x259] sm:$0xff] }
 0x238   :  { %v9777_v6 = vpop.f32.mrf.mxu1  ;;  %10020 = vmatmul.mubr.msk.f32.gmra.mxu1 %vm37_vm0, %v5221_v52  ;;  %v9748_v44 = vpop.f32.mrf.mxu0  ;;  %10091 = vmatmul.mubr.msk.f32.gmra.mxu0 %vm37_vm0, %v5911_v59  ;;  %v5914_v48 = vld [vmem:[#allocation2 + $0x152] sm:$0xff] }
 0x239   :  { %v12474_v13 = vadd.f32 %v9777_v6, %v12109_v61  ;;  %v12477_v19 = vadd.f32 %v9748_v44, %v12330_v27  ;;  %10022 = vmatprep.mubr.msk.f32.mxu1 %vm37_vm0, %v5222_v54  ;;  %10093 = vmatprep.mubr.msk.f32.mxu0 %vm37_vm0, %v5912_v22  ;;  %v5225_v6 = vld [vmem:[#allocation2 + $0x261] sm:$0xff] }
 0x23a   :  { %v4120_v23 = vpop.f32.mrf.mxu1  ;;  %v3638_v49 = vpop.f32.mrf.mxu0 }
 0x23b   :  { %v12482_v52 = vadd.f32 %v4120_v23, %v12117_v28  ;;  %v12485_v59 = vadd.f32 %v3638_v49, %v12338_v16  ;;  %v5915_v28 = vld [vmem:[#allocation2 + $0x15a] sm:$0xff]  ;;  %v5226_v23 = vld [vmem:[#allocation2 + $0x271] sm:$0xff] }
 0x23c   :  { %v9780_v61 = vpop.f32.mrf.mxu1  ;;  %10023 = vmatmul.mubr.msk.f32.gmra.mxu1 %vm37_vm0, %v5223_v38  ;;  %v9751_v27 = vpop.f32.mrf.mxu0  ;;  %10094 = vmatmul.mubr.msk.f32.gmra.mxu0 %vm37_vm0, %v5913_v35  ;;  %v5916_v49 = vld [vmem:[#allocation2 + $0x16a] sm:$0xff] }
 0x23d   :  { %v12490_v54 = vadd.f32 %v9780_v61, %v12125_v34  ;;  %v12493_v22 = vadd.f32 %v9751_v27, %v12346_v33  ;;  %10025 = vmatprep.mubr.msk.f32.mxu1 %vm37_vm0, %v5224_v46  ;;  %10096 = vmatprep.mubr.msk.f32.mxu0 %vm37_vm0, %v5914_v48  ;;  %v5227_v61 = vld [vmem:[#allocation2 + $0x279] sm:$0xff] }
 0x23e   :  { %v4130_v16 = vpop.f32.mrf.mxu1  ;;  %v3648_v44 = vpop.f32.mrf.mxu0 }
 0x23f   :  { %v12498_v38 = vadd.f32 %v4130_v16, %v12133_v47  ;;  %v12501_v35 = vadd.f32 %v3648_v44, %v12354_v18  ;;  %v5917_v47 = vld [vmem:[#allocation2 + $0x172] sm:$0xff]  ;;  %v5228_v16 = vld [vmem:[#allocation2 + $0x289] sm:$0xff] }
 0x240   :  { %v9783_v34 = vpop.f32.mrf.mxu1  ;;  %10026 = vmatmul.mubr.msk.f32.gmra.mxu1 %vm37_vm0, %v5225_v6  ;;  %v9754_v33 = vpop.f32.mrf.mxu0  ;;  %10097 = vmatmul.mubr.msk.f32.gmra.mxu0 %vm37_vm0, %v5915_v28  ;;  %v5918_v44 = vld [vmem:[#allocation2 + $0x182] sm:$0xff] }
 0x241   :  { %14087 = vst [vmem:[#allocation25_spill] sm:$0xff] %v12501_v35  ;;  %v12506_v46 = vadd.f32 %v9783_v34, %v12141_v5  ;;  %v12509_v48 = vadd.f32 %v9754_v33, %v12362_v8  ;;  %10028 = vmatprep.mubr.msk.f32.mxu1 %vm37_vm0, %v5226_v23  ;;  %10099 = vmatprep.mubr.msk.f32.mxu0 %vm37_vm0, %v5916_v49  ;;  %v14089_v6 = vld [vmem:[#allocation11_spill] sm:$0xff]  ;;  %v14091_v23 = vld [vmem:[#allocation12_spill] sm:$0xff] }
 0x242   :  { %v4140_v18 = vpop.f32.mrf.mxu1  ;;  %v3658_v27 = vpop.f32.mrf.mxu0  ;;  %v5229_v33 = vld [vmem:[#allocation2 + $0x291] sm:$0xff] }
 0x243   :  { %14088 = vst [vmem:[#allocation26_spill] sm:$0xff] %v12509_v48  ;;  %v12514_v35 = vadd.f32 %v4140_v18, %v14089_v6  ;;  %v12517_v28 = vadd.f32 %v3658_v27, %v12370_v39  ;;  %v5919_v18 = vld [vmem:[#allocation2 + $0x18a] sm:$0xff]  ;;  %v5230_v6 = vld [vmem:[#allocation2 + $0x2a1] sm:$0xff] }
 0x244   :  { %v9786_v5 = vpop.f32.mrf.mxu1  ;;  %10029 = vmatmul.mubr.msk.f32.gmra.mxu1 %vm37_vm0, %v5227_v61  ;;  %v9757_v8 = vpop.f32.mrf.mxu0  ;;  %10100 = vmatmul.mubr.msk.f32.gmra.mxu0 %vm37_vm0, %v5917_v47  ;;  %v14093_v61 = vld [vmem:[#allocation13_spill] sm:$0xff] }
 0x245   :  { %14090 = vst [vmem:[#allocation27_spill] sm:$0xff] %v12517_v28  ;;  %v12522_v34 = vadd.f32 %v9786_v5, %v14091_v23  ;;  %v12525_v49 = vadd.f32 %v9757_v8, %v12378_v15  ;;  %10031 = vmatprep.mubr.msk.f32.mxu1 %vm37_vm0, %v5228_v16  ;;  %10102 = vmatprep.mubr.msk.f32.mxu0 %vm37_vm0, %v5918_v44  ;;  %v5920_v28 = vld [vmem:[#allocation2 + $0x19a] sm:$0xff]  ;;  %v5231_v23 = vld [vmem:[#allocation2 + $0x2a9] sm:$0xff] }
 0x246   :  { %v4150_v39 = vpop.f32.mrf.mxu1  ;;  %v3668_v27 = vpop.f32.mrf.mxu0  ;;  %v14095_v16 = vld [vmem:[#allocation14_spill] sm:$0xff] }
 0x247   :  { %14092 = vst [vmem:[#allocation28_spill] sm:$0xff] %v12525_v49  ;;  %v12530_v48 = vadd.f32 %v4150_v39, %v14093_v61  ;;  %v12533_v47 = vadd.f32 %v3668_v27, %v12386_v36  ;;  %v5921_v39 = vld [vmem:[#allocation2 + $0x1a2] sm:$0xff]  ;;  %v5232_v61 = vld [vmem:[#allocation2 + $0x2b9] sm:$0xff] }
 0x248   :  { %v9789_v5 = vpop.f32.mrf.mxu1  ;;  %10032 = vmatmul.mubr.msk.f32.gmra.mxu1 %vm37_vm0, %v5229_v33  ;;  %v9760_v15 = vpop.f32.mrf.mxu0  ;;  %10103 = vmatmul.mubr.msk.f32.gmra.mxu0 %vm37_vm0, %v5919_v18  ;;  %v14096_v33 = vld [vmem:[#allocation15_spill] sm:$0xff] }
 0x249   :  { %14094 = vst [vmem:[#allocation6_spill] sm:$0xff] %v12533_v47  ;;  %v12538_v8 = vadd.f32 %v9789_v5, %v14095_v16  ;;  %v12541_v44 = vadd.f32 %v9760_v15, %v12394_v57  ;;  %10034 = vmatprep.mubr.msk.f32.mxu1 %vm37_vm0, %v5230_v6  ;;  %10105 = vmatprep.mubr.msk.f32.mxu0 %vm37_vm0, %v5920_v28  ;;  %v5922_v47 = vld [vmem:[#allocation2 + $0x1e2] sm:$0xff]  ;;  %v14098_v6 = vld [vmem:[#allocation16_spill] sm:$0xff] }
 0x24a   :  { %v4160_v36 = vpop.f32.mrf.mxu1  ;;  %v3678_v27 = vpop.f32.mrf.mxu0  ;;  %v5233_v16 = vld [vmem:[#allocation2 + $0x2c1] sm:$0xff] }
 0x24b   :  { %v12546_v49 = vadd.f32 %v4160_v36, %v14096_v33  ;;  %v12549_v18 = vadd.f32 %v3678_v27, %v12402_v60  ;;  %v5923_v36 = vld [vmem:[#allocation2 + $0x1ea] sm:$0xff] }
 0x24c   :  { %v9792_v5 = vpop.f32.mrf.mxu1  ;;  %10035 = vmatmul.mubr.msk.f32.gmra.mxu1 %vm37_vm0, %v5231_v23  ;;  %v9763_v57 = vpop.f32.mrf.mxu0  ;;  %10106 = vmatmul.mubr.msk.f32.gmra.mxu0 %vm37_vm0, %v5921_v39  ;;  %v5234_v33 = vld [vmem:[#allocation2 + $0x2d1] sm:$0xff]  ;;  %v5924_v23 = vld [vmem:[#allocation2 + $0x1fa] sm:$0xff] }
 0x24d   :  { %14097 = vst [vmem:[#allocation7_spill] sm:$0xff] %v12549_v18  ;;  %v12554_v15 = vadd.f32 %v9792_v5, %v14098_v6  ;;  %v12557_v28 = vadd.f32 %v9763_v57, %v12410_v40  ;;  %10037 = vmatprep.mubr.msk.f32.mxu1 %vm37_vm0, %v5232_v61  ;;  %10108 = vmatprep.mubr.msk.f32.mxu0 %vm37_vm0, %v5922_v47  ;;  %v14101_v40 = vld [vmem:[#allocation18_spill] sm:$0xff] }
 0x24e   :  { %v12561_v60 = vpop.f32.mrf.mxu1  ;;  %v3688_v27 = vpop.f32.mrf.mxu0  ;;  %v5235_v57 = vld [vmem:[#allocation2 + $0x2d9] sm:$0xff]  ;;  %v5925_v6 = vld [vmem:[#allocation2 + $0x202] sm:$0xff] }
 0x24f   :  { %14099 = vst [vmem:[#allocation8_spill] sm:$0xff] %v12557_v28  ;;  %v12564_v18 = vadd.f32 %v3688_v27, %v12418_v29 }
 0x250   :  { %v9795_v39 = vpop.f32.mrf.mxu1  ;;  %10038 = vmatmul.mubr.msk.f32.gmra.mxu1 %vm37_vm0, %v5233_v16  ;;  %v9866_v5 = vpop.f32.mrf.mxu0  ;;  %10109 = vmatmul.mubr.msk.f32.gmra.mxu0 %vm37_vm0, %v5923_v36  ;;  %v5926_v16 = vld [vmem:[#allocation2 + $0x212] sm:$0xff] }
 0x251   :  { %14100 = vst [vmem:[#allocation9_spill] sm:$0xff] %v12564_v18  ;;  %v12569_v61 = vadd.f32 %v9795_v39, %v14101_v40  ;;  %v12572_v47 = vadd.f32 %v9866_v5, %v12426_v41  ;;  %10040 = vmatprep.mubr.msk.f32.mxu1 %vm37_vm0, %v5234_v33  ;;  %10111 = vmatprep.mubr.msk.f32.mxu0 %vm37_vm0, %v5924_v23  ;;  %v5236_v18 = vld [vmem:[#allocation2 + $0x2e9] sm:$0xff]  ;;  %v5237_v5 = vld [vmem:[#allocation2 + $0x2f1] sm:$0xff]  ;;  %v5927_v40 = vld [vmem:[#allocation2 + $0x21a] sm:$0xff] }
 0x252   :  { %v12576_v29 = vpop.f32.mrf.mxu1  ;;  %v4799_v27 = vpop.f32.mrf.mxu0  ;;  %v14104_v41 = vld [vmem:[#allocation20_spill] sm:$0xff] }
 0x253   :  { %14102 = vst [vmem:[#allocation29_spill] sm:$0xff] %v12572_v47  ;;  %v12579_v28 = vadd.f32 %v4799_v27, %v12434_v1 }
 0x254   :  { %v9798_v36 = vpop.f32.mrf.mxu1  ;;  %10041 = vmatmul.mubr.msk.f32.gmra.mxu1 %vm37_vm0, %v5235_v57  ;;  %v9869_v39 = vpop.f32.mrf.mxu0  ;;  %10112 = vmatmul.mubr.msk.f32.gmra.mxu0 %vm37_vm0, %v5925_v6  ;;  %v5928_v57 = vld [vmem:[#allocation2 + $0x22a] sm:$0xff] }
 0x255   :  { %14103 = vst [vmem:[#allocation30_spill] sm:$0xff] %v12579_v28  ;;  %v12584_v33 = vadd.f32 %v9798_v36, %v14104_v41  ;;  %v12587_v23 = vadd.f32 %v9869_v39, %v12442_v24  ;;  %10043 = vmatprep.mubr.msk.f32.mxu1 %vm37_vm0, %v5236_v18  ;;  %10114 = vmatprep.mubr.msk.f32.mxu0 %vm37_vm0, %v5926_v16  ;;  %v5238_v28 = vld [vmem:[#allocation2 + $0x301] sm:$0xff]  ;;  %v5239_v39 = vld [vmem:[#allocation2 + $0x309] sm:$0xff]  ;;  %v5929_v41 = vld [vmem:[#allocation2 + $0x232] sm:$0xff] }
 0x256   :  { %v12591_v1 = vpop.f32.mrf.mxu1  ;;  %v4809_v27 = vpop.f32.mrf.mxu0  ;;  %v14107_v24 = vld [vmem:[#allocation22_spill] sm:$0xff] }
 0x257   :  { %14105 = vst [vmem:[#allocation31_spill] sm:$0xff] %v12587_v23  ;;  %v12594_v47 = vadd.f32 %v4809_v27, %v12450_v31 }
 0x258   :  { %v9801_v6 = vpop.f32.mrf.mxu1  ;;  %10044 = vmatmul.mubr.msk.f32.gmra.mxu1 %vm37_vm0, %v5237_v5  ;;  %v9872_v36 = vpop.f32.mrf.mxu0  ;;  %10115 = vmatmul.mubr.msk.f32.gmra.mxu0 %vm37_vm0, %v5927_v40  ;;  %v5930_v5 = vld [vmem:[#allocation2 + $0x242] sm:$0xff] }
 0x259   :  { %14106 = vst [vmem:[#allocation32_spill] sm:$0xff] %v12594_v47  ;;  %v12599_v18 = vadd.f32 %v9801_v6, %v14107_v24  ;;  %v12602_v16 = vadd.f32 %v9872_v36, %v12458_v12  ;;  %10046 = vmatprep.mubr.msk.f32.mxu1 %vm37_vm0, %v5238_v28  ;;  %10117 = vmatprep.mubr.msk.f32.mxu0 %vm37_vm0, %v5928_v57  ;;  %v5240_v47 = vld [vmem:[#allocation2 + $0x319] sm:$0xff]  ;;  %v5241_v57 = vld [vmem:[#allocation2 + $0x321] sm:$0xff]  ;;  %v5931_v36 = vld [vmem:[#allocation2 + $0x24a] sm:$0xff] }
 0x25a   :  { %v12606_v31 = vpop.f32.mrf.mxu1  ;;  %v4819_v27 = vpop.f32.mrf.mxu0 }
 0x25b   :  { %v12609_v23 = vadd.f32 %v4819_v27, %v12466_v4  ;;  %v5932_v27 = vld [vmem:[#allocation2 + $0x25a] sm:$0xff] }
 0x25c   :  { %v9804_v40 = vpop.f32.mrf.mxu1  ;;  %10047 = vmatmul.mubr.msk.f32.gmra.mxu1 %vm37_vm0, %v5239_v39  ;;  %v9875_v6 = vpop.f32.mrf.mxu0  ;;  %10118 = vmatmul.mubr.msk.f32.gmra.mxu0 %vm37_vm0, %v5929_v41  ;;  %v5242_v39 = vld [vmem:[#allocation2 + $0x331] sm:$0xff] }
 0x25d   :  { %14108 = vst [vmem:[#allocation33_spill] sm:$0xff] %v12609_v23  ;;  %v12614_v12 = vadd.f32 %v9804_v40, %v12253_v17  ;;  %v12617_v28 = vadd.f32 %v9875_v6, %v12474_v13  ;;  %10049 = vmatprep.mubr.msk.f32.mxu1 %vm37_vm0, %v5240_v47  ;;  %10120 = vmatprep.mubr.msk.f32.mxu0 %vm37_vm0, %v5930_v5  ;;  %v14110_v23 = vmov 0.0   ;;  %v5243_v40 = vld [vmem:[#allocation2 + $0x339] sm:$0xff]  ;;  %v5933_v6 = vld [vmem:[#allocation2 + $0x262] sm:$0xff] }
 0x25e   :  { %v12621_v4 = vpop.f32.mrf.mxu1  ;;  %v4829_v24 = vpop.f32.mrf.mxu0  ;;  %6941 = vst.msk [vmem:[#allocation4] sm:$0xff] %vm6829_vm5, %v14110_v23  ;;  %6944 = vst.msk [vmem:[#allocation4 + $0x10] sm:$0xff] %vm6829_vm5, %v14110_v23 }
 0x25f   :  { %14109 = vst [vmem:[#allocation34_spill] sm:$0xff] %v12617_v28  ;;  %6946 = vst.msk [vmem:[#allocation4 + $0x20] sm:$0xff] %vm6829_vm5, %v14110_v23  ;;  %v12664_v17 = vadd.f32 %v4829_v24, %v12482_v52 }
 0x260   :  { %6948 = vst.msk [vmem:[#allocation4 + $0x30] sm:$0xff] %vm6829_vm5, %v14110_v23  ;;  %6950 = vst.msk [vmem:[#allocation4 + $0x40] sm:$0xff] %vm6829_vm5, %v14110_v23  ;;  %v9807_v13 = vpop.f32.mrf.mxu1  ;;  %10050 = vmatmul.mubr.msk.f32.gmra.mxu1 %vm37_vm0, %v5241_v57  ;;  %v9878_v47 = vpop.f32.mrf.mxu0  ;;  %10121 = vmatmul.mubr.msk.f32.gmra.mxu0 %vm37_vm0, %v5931_v36  ;;  %v5934_v57 = vld [vmem:[#allocation2 + $0x272] sm:$0xff] }
 0x261   :  { %6952 = vst.msk [vmem:[#allocation4 + $0x50] sm:$0xff] %vm6829_vm5, %v14110_v23  ;;  %6954 = vst.msk [vmem:[#allocation4 + $0x60] sm:$0xff] %vm6829_vm5, %v14110_v23  ;;  %v12669_v41 = vadd.f32 %v9807_v13, %v12269_v37  ;;  %v12672_v5 = vadd.f32 %v9878_v47, %v12490_v54  ;;  %10052 = vmatprep.mubr.msk.f32.mxu1 %vm37_vm0, %v5242_v39  ;;  %10123 = vmatprep.mubr.msk.f32.mxu0 %vm37_vm0, %v5932_v27  ;;  %v5245_v27 = vld [vmem:[#allocation2 + $0x351] sm:$0xff]  ;;  %v5935_v13 = vld [vmem:[#allocation2 + $0x27a] sm:$0xff] }
 0x262   :  { %6956 = vst.msk [vmem:[#allocation4 + $0x70] sm:$0xff] %vm6829_vm5, %v14110_v23  ;;  %6958 = vst.msk [vmem:[#allocation4 + $0x80] sm:$0xff] %vm6829_vm5, %v14110_v23  ;;  %v12676_v52 = vpop.f32.mrf.mxu1  ;;  %v4839_v24 = vpop.f32.mrf.mxu0 }
 0x263   :  { %6960 = vst.msk [vmem:[#allocation4 + $0x90] sm:$0xff] %vm6829_vm5, %v14110_v23  ;;  %6962 = vst.msk [vmem:[#allocation4 + $0xa0] sm:$0xff] %vm6829_vm5, %v14110_v23  ;;  %v12679_v28 = vadd.f32 %v4839_v24, %v12498_v38  ;;  %v5936_v24 = vld [vmem:[#allocation2 + $0x28a] sm:$0xff] }
 0x264   :  { %6964 = vst.msk [vmem:[#allocation4 + $0xb0] sm:$0xff] %vm6829_vm5, %v14110_v23  ;;  %6966 = vst.msk [vmem:[#allocation4 + $0xc0] sm:$0xff] %vm6829_vm5, %v14110_v23  ;;  %v9810_v36 = vpop.f32.mrf.mxu1  ;;  %10053 = vmatmul.mubr.msk.f32.gmra.mxu1 %vm37_vm0, %v5243_v40  ;;  %v9881_v37 = vpop.f32.mrf.mxu0  ;;  %10124 = vmatmul.mubr.msk.f32.gmra.mxu0 %vm37_vm0, %v5933_v6 }
 0x265   :  { %6968 = vst.msk [vmem:[#allocation4 + $0xd0] sm:$0xff] %vm6829_vm5, %v14110_v23  ;;  %6970 = vst.msk [vmem:[#allocation4 + $0xe0] sm:$0xff] %vm6829_vm5, %v14110_v23  ;;  %v12684_v54 = vadd.f32 %v9810_v36, %v12285_v7  ;;  %v12687_v39 = vadd.f32 %v9881_v37, %v12506_v46  ;;  %10126 = vmatprep.mubr.msk.f32.mxu0 %vm37_vm0, %v5934_v57  ;;  %v5938_v37 = vld [vmem:[#allocation2 + $0x2a2] sm:$0xff] }
 0x266   :  { %6972 = vst.msk [vmem:[#allocation4 + $0xf0] sm:$0xff] %vm6829_vm5, %v14110_v23  ;;  %6974 = vst.msk [vmem:[#allocation4 + $0x100] sm:$0xff] %vm6829_vm5, %v14110_v23  ;;  %v12691_v38 = vpop.f32.mrf.mxu1  ;;  %v4849_v47 = vpop.f32.mrf.mxu0 }
 0x267   :  { %6976 = vst.msk [vmem:[#allocation4 + $0x110] sm:$0xff] %vm6829_vm5, %v14110_v23  ;;  %6978 = vst.msk [vmem:[#allocation4 + $0x120] sm:$0xff] %vm6829_vm5, %v14110_v23  ;;  %v12694_v40 = vadd.f32 %v4849_v47, %v12514_v35 }
 0x268   :  { %6980 = vst.msk [vmem:[#allocation4 + $0x130] sm:$0xff] %vm6829_vm5, %v14110_v23  ;;  %14111 = vst [vmem:[#allocation35_spill] sm:$0xff] %v12664_v17  ;;  %v5244_v17 = vld [vmem:[#allocation2 + $0x349] sm:$0xff]  ;;  %v9813_v6 = vpop.f32.mrf.mxu1  ;;  %v9884_v7 = vpop.f32.mrf.mxu0  ;;  %10127 = vmatmul.mubr.msk.f32.gmra.mxu0 %vm37_vm0, %v5935_v13 }
 0x269   :  { %10055 = vmatprep.mubr.msk.f32.mxu1 %vm37_vm0, %v5244_v17  ;;  %6945 = vst.msk [vmem:[#allocation4 + $0x18] sm:$0x3] %vm6942_vm6, %v14110_v23  ;;  %6943 = vst.msk [vmem:[#allocation4 + $0x8] sm:$0x3] %vm6942_vm6, %v14110_v23  ;;  %v12739_v35 = vadd.f32 %v9813_v6, %v12301_v51  ;;  %v12742_v46 = vadd.f32 %v9884_v7, %v12522_v34  ;;  %10129 = vmatprep.mubr.msk.f32.mxu0 %vm37_vm0, %v5936_v24  ;;  %v5937_v17 = vld [vmem:[#allocation2 + $0x292] sm:$0xff]  ;;  %v5940_v7 = vld [vmem:[#allocation2 + $0x2ba] sm:$0xff] }
 0x26a   :  { %10056 = vmatmul.mubr.msk.f32.gmra.mxu1 %vm37_vm0, %v5245_v27  ;;  %6947 = vst.msk [vmem:[#allocation4 + $0x28] sm:$0x3] %vm6942_vm6, %v14110_v23  ;;  %6949 = vst.msk [vmem:[#allocation4 + $0x38] sm:$0x3] %vm6942_vm6, %v14110_v23  ;;  %v12745_v57 = vpop.f32.mrf.mxu1  ;;  %v4859_v36 = vpop.f32.mrf.mxu0 }
 0x26b   :  { %6951 = vst.msk [vmem:[#allocation4 + $0x48] sm:$0x3] %vm6942_vm6, %v14110_v23  ;;  %6953 = vst.msk [vmem:[#allocation4 + $0x58] sm:$0x3] %vm6942_vm6, %v14110_v23  ;;  %v12748_v27 = vadd.f32 %v4859_v36, %v12530_v48 }
 0x26c   :  { %6955 = vst.msk [vmem:[#allocation4 + $0x68] sm:$0x3] %vm6942_vm6, %v14110_v23  ;;  %6957 = vst.msk [vmem:[#allocation4 + $0x78] sm:$0x3] %vm6942_vm6, %v14110_v23  ;;  %v9816_v13 = vpop.f32.mrf.mxu1  ;;  %v9887_v47 = vpop.f32.mrf.mxu0  ;;  %10130 = vmatmul.mubr.msk.f32.gmra.mxu0 %vm37_vm0, %v5937_v17  ;;  %v14115_v17 = vld [vmem:[#allocation17_spill] sm:$0xff] }
 0x26d   :  { %6959 = vst.msk [vmem:[#allocation4 + $0x88] sm:$0x3] %vm6942_vm6, %v14110_v23  ;;  %6961 = vst.msk [vmem:[#allocation4 + $0x98] sm:$0x3] %vm6942_vm6, %v14110_v23  ;;  %v12752_v51 = vadd.f32 %v9816_v13, %v12317_v2  ;;  %v12755_v34 = vadd.f32 %v9887_v47, %v12538_v8  ;;  %10132 = vmatprep.mubr.msk.f32.mxu0 %vm37_vm0, %v5938_v37  ;;  %v4425_v2 = vadd.f32 %v12561_v60, %v14115_v17  ;;  %v5941_v13 = vld [vmem:[#allocation2 + $0x2c2] sm:$0xff] }
 0x26e   :  { %6963 = vst.msk [vmem:[#allocation4 + $0xa8] sm:$0x3] %vm6942_vm6, %v14110_v23  ;;  %6965 = vst.msk [vmem:[#allocation4 + $0xb8] sm:$0x3] %vm6942_vm6, %v14110_v23  ;;  %v12758_v24 = vpop.f32.mrf.mxu1  ;;  %v4869_v6 = vpop.f32.mrf.mxu0  ;;  %v14117_v60 = vld [vmem:[#allocation19_spill] sm:$0xff] }
 0x26f   :  { %6967 = vst.msk [vmem:[#allocation4 + $0xc8] sm:$0x3] %vm6942_vm6, %v14110_v23  ;;  %6969 = vst.msk [vmem:[#allocation4 + $0xd8] sm:$0x3] %vm6942_vm6, %v14110_v23  ;;  %v12761_v48 = vadd.f32 %v4869_v6, %v12546_v49  ;;  %v5942_v6 = vld [vmem:[#allocation2 + $0x2d2] sm:$0xff] }
 0x270   :  { %6971 = vst.msk [vmem:[#allocation4 + $0xe8] sm:$0x3] %vm6942_vm6, %v14110_v23  ;;  %6973 = vst.msk [vmem:[#allocation4 + $0xf8] sm:$0x3] %vm6942_vm6, %v14110_v23  ;;  %v9819_v36 = vpop.f32.mrf.mxu1 }
 0x271   :  { %6975 = vst.msk [vmem:[#allocation4 + $0x108] sm:$0x3] %vm6942_vm6, %v14110_v23  ;;  %6977 = vst.msk [vmem:[#allocation4 + $0x118] sm:$0x3] %vm6942_vm6, %v14110_v23  ;;  %v12767_v8 = vadd.f32 %v9819_v36, %v12333_v62  ;;  %v7533_v62 = vld [vmem:[%s13975_s5 + $0x8] sm:$0xff]  ;;  %v5943_v36 = vld [vmem:[#allocation2 + $0x2da] sm:$0xff] }
 0x272   :  { %6979 = vst.msk [vmem:[#allocation4 + $0x128] sm:$0x3] %vm6942_vm6, %v14110_v23  ;;  %6981 = vst.msk [vmem:[#allocation4 + $0x138] sm:$0x3] %vm6942_vm6, %v14110_v23  ;;  %v5939_v23 = vld [vmem:[#allocation2 + $0x2aa] sm:$0xff]  ;;  %v12773_v47 = vpop.f32.mrf.mxu1  ;;  %10156 = vmatprep.subr.mxu1 %v7533_v62 }
 0x273   :  { %14112 = vst [vmem:[#allocation36_spill] sm:$0xff] %v12748_v27  ;;  %14113 = vst [vmem:[#allocation37_spill] sm:$0xff] %v12755_v34  ;;  %v9890_v27 = vpop.f32.mrf.mxu0  ;;  %10133 = vmatmul.mubr.msk.f32.gmra.mxu0 %vm37_vm0, %v5939_v23  ;;  %10157 = vmatpush3.msra.mxu1 %v7533_v62 }
 0x274   :  { %14114 = vst [vmem:[#allocation38_spill] sm:$0xff] %v12761_v48  ;;  %v12770_v37 = vadd.f32 %v9890_v27, %v12554_v15  ;;  %10135 = vmatprep.mubr.msk.f32.mxu0 %vm37_vm0, %v5940_v7  ;;  %v9822_v34 = vpop.f32.mrf.mxu1  ;;  %v4427_v15 = vadd.f32 %v12576_v29, %v14117_v60 }
 0x275   :  { %v4879_v49 = vpop.f32.mrf.mxu0  ;;  %v12784_v27 = vadd.f32 %v9822_v34, %v12349_v32  ;;  %v14119_v32 = vld [vmem:[#allocation21_spill] sm:$0xff] }
 0x276   :  { %v12775_v48 = vadd.f32 %v4879_v49, %v4425_v2  ;;  %v4270_v17 = vpop.f32.mrf.mxu1 }
 0x277   :  { %v9893_v23 = vpop.f32.mrf.mxu0  ;;  %10136 = vmatmul.mubr.msk.f32.gmra.mxu0 %vm37_vm0, %v5941_v13  ;;  %v5944_v13 = vld [vmem:[#allocation2 + $0x2ea] sm:$0xff]  ;;  %v12791_v49 = vadd.f32 %v4270_v17, %v12357_v53 }
 0x278   :  { %14116 = vst [vmem:[#allocation39_spill] sm:$0xff] %v12775_v48  ;;  %v12787_v7 = vadd.f32 %v9893_v23, %v12569_v61  ;;  %10138 = vmatprep.mubr.msk.f32.mxu0 %vm37_vm0, %v5942_v6  ;;  %v9825_v29 = vpop.f32.mrf.mxu1  ;;  %v4429_v61 = vadd.f32 %v12591_v1, %v14119_v32  ;;  %v5945_v23 = vld [vmem:[#allocation2 + $0x2f2] sm:$0xff]  ;;  %v5948_v32 = vld [vmem:[#allocation2 + $0x31a] sm:$0xff] }
 0x279   :  { %v4889_v2 = vpop.f32.mrf.mxu0  ;;  %v12799_v34 = vadd.f32 %v9825_v29, %v12365_v45  ;;  %v14120_v45 = vld [vmem:[#allocation23_spill] sm:$0xff] }
 0x27a   :  { %v12793_v48 = vadd.f32 %v4889_v2, %v4427_v15  ;;  %v4280_v53 = vpop.f32.mrf.mxu1  ;;  %v5946_v15 = vld [vmem:[#allocation2 + $0x302] sm:$0xff]  ;;  %v4431_v1 = vadd.f32 %v12606_v31, %v14120_v45  ;;  %v5947_v29 = vld [vmem:[#allocation2 + $0x30a] sm:$0xff]  ;;  %v5950_v45 = vld [vmem:[#allocation2 + $0x332] sm:$0xff] }
 0x27b   :  { %v9896_v60 = vpop.f32.mrf.mxu0  ;;  %10139 = vmatmul.mubr.msk.f32.gmra.mxu0 %vm37_vm0, %v5943_v36  ;;  %v12806_v17 = vadd.f32 %v4280_v53, %v12373_v58 }
 0x27c   :  { %14118 = vst [vmem:[#allocation10_spill] sm:$0xff] %v12793_v48  ;;  %v12802_v6 = vadd.f32 %v9896_v60, %v12584_v33  ;;  %10141 = vmatprep.mubr.msk.f32.mxu0 %vm37_vm0, %v5944_v13  ;;  %v9828_v36 = vpop.f32.mrf.mxu1 }
 0x27d   :  { %v4899_v62 = vpop.f32.mrf.mxu0  ;;  %v12814_v33 = vadd.f32 %v9828_v36, %v12381_v25  ;;  %v14121_v25 = vld [vmem:[#allocation24_spill] sm:$0xff] }
 0x27e   :  { %v12808_v2 = vadd.f32 %v4899_v62, %v4429_v61  ;;  %v4290_v58 = vpop.f32.mrf.mxu1  ;;  %v4433_v31 = vadd.f32 %v12621_v4, %v14121_v25 }
 0x27f   :  { %v9899_v48 = vpop.f32.mrf.mxu0  ;;  %10142 = vmatmul.mubr.msk.f32.gmra.mxu0 %vm37_vm0, %v5945_v23  ;;  %v12821_v61 = vadd.f32 %v4290_v58, %v12389_v20 }
 0x280   :  { %v12817_v13 = vadd.f32 %v9899_v48, %v12599_v18  ;;  %10144 = vmatprep.mubr.msk.f32.mxu0 %vm37_vm0, %v5946_v15  ;;  %v9831_v23 = vpop.f32.mrf.mxu1  ;;  %v5949_v15 = vld [vmem:[#allocation2 + $0x322] sm:$0xff] }
 0x281   :  { %v4909_v60 = vpop.f32.mrf.mxu0  ;;  %v12829_v18 = vadd.f32 %v9831_v23, %v12397_v63  ;;  %v4435_v63 = vadd.f32 %v12676_v52, %v12277_v43  ;;  %v4437_v43 = vadd.f32 %v12691_v38, %v12293_v11  ;;  %v5953_v52 = vld [vmem:[#allocation2 + $0x352] sm:$0xff]  ;;  %v4439_v11 = vadd.f32 %v12745_v57, %v12309_v42 }
 0x282   :  { %v12823_v53 = vadd.f32 %v4909_v60, %v4431_v1  ;;  %v4300_v20 = vpop.f32.mrf.mxu1 }
 0x283   :  { %v9902_v62 = vpop.f32.mrf.mxu0  ;;  %10145 = vmatmul.mubr.msk.f32.gmra.mxu0 %vm37_vm0, %v5947_v29  ;;  %v12836_v1 = vadd.f32 %v4300_v20, %v12405_v56 }
 0x284   :  { %v12832_v48 = vadd.f32 %v9902_v62, %v12614_v12  ;;  %10147 = vmatprep.mubr.msk.f32.mxu0 %vm37_vm0, %v5948_v32  ;;  %v9834_v29 = vpop.f32.mrf.mxu1  ;;  %v5951_v32 = vld [vmem:[#allocation2 + $0x33a] sm:$0xff]  ;;  %v5952_v62 = vld [vmem:[#allocation2 + $0x34a] sm:$0xff] }
 0x285   :  { %v4919_v36 = vpop.f32.mrf.mxu0  ;;  %v12844_v12 = vadd.f32 %v9834_v29, %v12413_v30 }
 0x286   :  { %v12838_v58 = vadd.f32 %v4919_v36, %v4433_v31  ;;  %v4310_v56 = vpop.f32.mrf.mxu1 }
 0x287   :  { %v9905_v60 = vpop.f32.mrf.mxu0  ;;  %10148 = vmatmul.mubr.msk.f32.gmra.mxu0 %vm37_vm0, %v5949_v15  ;;  %v12851_v25 = vadd.f32 %v4310_v56, %v12421_v0 }
 0x288   :  { %v12847_v4 = vadd.f32 %v9905_v60, %v12669_v41  ;;  %10150 = vmatprep.mubr.msk.f32.mxu0 %vm37_vm0, %v5950_v45  ;;  %v9837_v15 = vpop.f32.mrf.mxu1 }
 0x289   :  { %v4929_v23 = vpop.f32.mrf.mxu0  ;;  %v12859_v30 = vadd.f32 %v9837_v15, %v12429_v55  ;;  %v4441_v15 = vadd.f32 %v12758_v24, %v12325_v26 }
 0x28a   :  { %v12853_v31 = vadd.f32 %v4929_v23, %v4435_v63  ;;  %v4320_v0 = vpop.f32.mrf.mxu1 }
 0x28b   :  { %v9908_v20 = vpop.f32.mrf.mxu0  ;;  %10151 = vmatmul.mubr.msk.f32.gmra.mxu0 %vm37_vm0, %v5951_v32  ;;  %v12866_v45 = vadd.f32 %v4320_v0, %v12437_v10 }
 0x28c   :  { %v12862_v41 = vadd.f32 %v9908_v20, %v12684_v54  ;;  %10153 = vmatprep.mubr.msk.f32.mxu0 %vm37_vm0, %v5952_v62  ;;  %v9840_v60 = vpop.f32.mrf.mxu1 }
 0x28d   :  { %v4939_v36 = vpop.f32.mrf.mxu0  ;;  %v12874_v55 = vadd.f32 %v9840_v60, %v12445_v50 }
 0x28e   :  { %v12868_v29 = vadd.f32 %v4939_v36, %v4437_v43  ;;  %v4330_v38 = vpop.f32.mrf.mxu1 }
 0x28f   :  { %v9911_v63 = vpop.f32.mrf.mxu0  ;;  %10154 = vmatmul.mubr.msk.f32.gmra.mxu0 %vm37_vm0, %v5953_v52  ;;  %v12880_v10 = vadd.f32 %v4330_v38, %v12453_v14 }
 0x290   :  { %14122 = vst [vmem:[#allocation11_spill] sm:$0xff] %v12868_v29  ;;  %v12877_v54 = vadd.f32 %v9911_v63, %v12739_v35  ;;  %v9843_v23 = vpop.f32.mrf.mxu1  ;;  %v7532_v35 = vld [vmem:[%s13975_s5] sm:$0xff] }
 0x291   :  { %v4949_v32 = vpop.f32.mrf.mxu0  ;;  %v12887_v42 = vadd.f32 %v9843_v23, %v12461_v21  ;;  %10158 = vmatprep.subr.mxu1 %v7532_v35  ;;  %v4443_v21 = vadd.f32 %v12773_v47, %v12341_v9 }
 0x292   :  { %14123 = vst [vmem:[#allocation12_spill] sm:$0xff] %v12877_v54  ;;  %v12882_v56 = vadd.f32 %v4949_v32, %v4439_v11  ;;  %v4340_v57 = vpop.f32.mrf.mxu1  ;;  %10159 = vmatpush3.msra.mxu1 %v7532_v35  ;;  %v14130_v32 = vld [vmem:[#allocation25_spill] sm:$0xff] }
 0x293   :  { %v9914_v62 = vpop.f32.mrf.mxu0  ;;  %v12896_v20 = vadd.f32 %v4340_v57, %v12469_v3 }
 0x294   :  { %14124 = vst [vmem:[#allocation13_spill] sm:$0xff] %v12882_v56  ;;  %v12890_v50 = vadd.f32 %v9914_v62, %v12752_v51  ;;  %v9846_v26 = vpop.f32.mrf.mxu1 }
 0x295   :  { %v4959_v14 = vpop.f32.mrf.mxu0  ;;  %v12903_v51 = vadd.f32 %v9846_v26, %v12477_v19  ;;  %v14134_v26 = vld [vmem:[#allocation27_spill] sm:$0xff] }
 0x296   :  { %14125 = vst [vmem:[#allocation14_spill] sm:$0xff] %v12890_v50  ;;  %v12898_v43 = vadd.f32 %v4959_v14, %v4441_v15  ;;  %v4350_v0 = vpop.f32.mrf.mxu1  ;;  %v14132_v15 = vld [vmem:[#allocation26_spill] sm:$0xff] }
 0x297   :  { %v9917_v24 = vpop.f32.mrf.mxu0  ;;  %v12909_v60 = vadd.f32 %v4350_v0, %v12485_v59 }
 0x298   :  { %14126 = vst [vmem:[#allocation15_spill] sm:$0xff] %v12898_v43  ;;  %v12906_v52 = vadd.f32 %v9917_v24, %v12767_v8  ;;  %v9849_v63 = vpop.f32.mrf.mxu1 }
 0x299   :  { %v4969_v36 = vpop.f32.mrf.mxu0  ;;  %v12914_v38 = vadd.f32 %v9849_v63, %v12493_v22 }
 0x29a   :  { %14127 = vst [vmem:[#allocation16_spill] sm:$0xff] %v12906_v52  ;;  %v12911_v3 = vadd.f32 %v4969_v36, %v4443_v21  ;;  %v4360_v19 = vpop.f32.mrf.mxu1  ;;  %v14136_v36 = vld [vmem:[#allocation28_spill] sm:$0xff] }
 0x29b   :  { %v9920_v11 = vpop.f32.mrf.mxu0  ;;  %v12920_v8 = vadd.f32 %v4360_v19, %v14130_v32 }
 0x29c   :  { %14128 = vst [vmem:[#allocation18_spill] sm:$0xff] %v12911_v3  ;;  %v12917_v9 = vadd.f32 %v9920_v11, %v12784_v27  ;;  %v9852_v59 = vpop.f32.mrf.mxu1  ;;  %v14169_v3 = vld [vmem:[#allocation33_spill] sm:$0xff] }
 0x29d   :  { %v4979_v47 = vpop.f32.mrf.mxu0  ;;  %v4466_v35 = vadd.f32 %v9852_v59, %v14132_v15 }
 0x29e   :  { %14129 = vst [vmem:[#allocation20_spill] sm:$0xff] %v12917_v9  ;;  %v12923_v23 = vadd.f32 %v4979_v47, %v12791_v49  ;;  %v4370_v22 = vpop.f32.mrf.mxu1  ;;  %v14138_v47 = vld [vmem:[#allocation6_spill] sm:$0xff] }
 0x29f   :  { %v9923_v62 = vpop.f32.mrf.mxu0  ;;  %v4465_v27 = vadd.f32 %v4370_v22, %v14134_v26  ;;  %v14141_v26 = vld [vmem:[#allocation7_spill] sm:$0xff] }
 0x2a0   :  { %14131 = vst [vmem:[#allocation22_spill] sm:$0xff] %v12923_v23  ;;  %v12927_v57 = vadd.f32 %v9923_v62, %v12799_v34  ;;  %v9855_v21 = vpop.f32.mrf.mxu1 }
 0x2a1   :  { %v4989_v14 = vpop.f32.mrf.mxu0  ;;  %v4468_v63 = vadd.f32 %v9855_v21, %v14136_v36 }
 0x2a2   :  { %14133 = vst [vmem:[#allocation17_spill] sm:$0xff] %v12927_v57  ;;  %v12931_v24 = vadd.f32 %v4989_v14, %v12806_v17  ;;  %v4380_v11 = vpop.f32.mrf.mxu1  ;;  %v14168_v57 = vld [vmem:[#allocation32_spill] sm:$0xff] }
 0x2a3   :  { %v9926_v0 = vpop.f32.mrf.mxu0  ;;  %v4467_v32 = vadd.f32 %v4380_v11, %v14138_v47  ;;  %v14143_v11 = vld [vmem:[#allocation8_spill] sm:$0xff] }
 0x2a4   :  { %14135 = vst [vmem:[#allocation19_spill] sm:$0xff] %v12931_v24  ;;  %v12935_v49 = vadd.f32 %v9926_v0, %v12814_v33  ;;  %v9858_v59 = vpop.f32.mrf.mxu1  ;;  %v7106_v24 = vld [vmem:[#allocation4 + $0x2] sm:$0xff] }
 0x2a5   :  { %v4999_v19 = vpop.f32.mrf.mxu0  ;;  %v4470_v15 = vadd.f32 %v9858_v59, %v12541_v44  ;;  %v14145_v44 = vld [vmem:[#allocation9_spill] sm:$0xff] }
 0x2a6   :  { %14137 = vst [vmem:[#allocation21_spill] sm:$0xff] %v12935_v49  ;;  %v12939_v34 = vadd.f32 %v4999_v19, %v12821_v61  ;;  %v4390_v22 = vpop.f32.mrf.mxu1  ;;  %v13063_v49 = vld [vmem:[%s13977_s3 + $0x2] ss:$0 sm:$0xff] }
 0x2a7   :  { %v9929_v62 = vpop.f32.mrf.mxu0  ;;  %v4469_v21 = vadd.f32 %v4390_v22, %v14141_v26  ;;  %v7126_v9 = vmul.f32 %v13063_v49, %v7106_v24 }
 0x2a8   :  { %14139 = vst [vmem:[#allocation23_spill] sm:$0xff] %v12939_v34  ;;  %v12943_v17 = vadd.f32 %v9929_v62, %v12829_v18  ;;  %v9861_v0 = vpop.f32.mrf.mxu1 }
 0x2a9   :  { %v5009_v14 = vpop.f32.mrf.mxu0  ;;  %v4472_v47 = vadd.f32 %v9861_v0, %v14143_v11 }
 0x2aa   :  { %14140 = vst [vmem:[#allocation24_spill] sm:$0xff] %v12943_v17  ;;  %v12947_v33 = vadd.f32 %v5009_v14, %v12836_v1  ;;  %v4400_v19 = vpop.f32.mrf.mxu1 }
 0x2ab   :  { %v9932_v36 = vpop.f32.mrf.mxu0  ;;  %v4471_v59 = vadd.f32 %v4400_v19, %v14145_v44 }
 0x2ac   :  { %14142 = vst [vmem:[#allocation25_spill] sm:$0xff] %v12947_v33  ;;  %v12951_v61 = vadd.f32 %v9932_v36, %v12844_v12  ;;  %v9964_v62 = vpop.f32.mrf.mxu1 }
 0x2ad   :  { %v5019_v34 = vpop.f32.mrf.mxu0 }
 0x2ae   :  { %14144 = vst [vmem:[#allocation26_spill] sm:$0xff] %v12951_v61  ;;  %v12955_v18 = vadd.f32 %v5019_v34, %v12851_v25  ;;  %v5507_v1 = vpop.f32.mrf.mxu1 }
 0x2af   :  { %v9935_v17 = vpop.f32.mrf.mxu0 }
 0x2b0   :  { %14146 = vst [vmem:[#allocation27_spill] sm:$0xff] %v12955_v18  ;;  %v12958_v22 = vadd.f32 %v9935_v17, %v12859_v30  ;;  %v9967_v0 = vpop.f32.mrf.mxu1 }
 0x2b1   :  { %v5029_v14 = vpop.f32.mrf.mxu0 }
 0x2b2   :  { %14147 = vst [vmem:[#allocation28_spill] sm:$0xff] %v12958_v22  ;;  %v12961_v26 = vadd.f32 %v5029_v14, %v12866_v45  ;;  %v12966_v11 = vpop.f32.mrf.mxu1 }
 0x2b3   :  { %v9938_v12 = vpop.f32.mrf.mxu0 }
 0x2b4   :  { %14148 = vst [vmem:[#allocation6_spill] sm:$0xff] %v12961_v26  ;;  %v12964_v36 = vadd.f32 %v9938_v12, %v12874_v55  ;;  %v12971_v34 = vpop.f32.mrf.mxu1 }
 0x2b5   :  { %v5039_v19 = vpop.f32.mrf.mxu0 }
 0x2b6   :  { %14149 = vst [vmem:[#allocation7_spill] sm:$0xff] %v12964_v36  ;;  %v12969_v25 = vadd.f32 %v5039_v19, %v12880_v10  ;;  %v12976_v44 = vpop.f32.mrf.mxu1 }
 0x2b7   :  { %v9941_v30 = vpop.f32.mrf.mxu0 }
 0x2b8   :  { %14150 = vst [vmem:[#allocation8_spill] sm:$0xff] %v12969_v25  ;;  %v12974_v17 = vadd.f32 %v9941_v30, %v12887_v42  ;;  %v12981_v55 = vpop.f32.mrf.mxu1 }
 0x2b9   :  { %v5049_v45 = vpop.f32.mrf.mxu0 }
 0x2ba   :  { %14151 = vst [vmem:[#allocation9_spill] sm:$0xff] %v12974_v17  ;;  %v12979_v14 = vadd.f32 %v5049_v45, %v12896_v20  ;;  %v12986_v10 = vpop.f32.mrf.mxu1 }
 0x2bb   :  { %v9944_v12 = vpop.f32.mrf.mxu0 }
 0x2bc   :  { %14152 = vst [vmem:[#allocation40_spill] sm:$0xff] %v12979_v14  ;;  %v12984_v36 = vadd.f32 %v9944_v12, %v12903_v51  ;;  %v12991_v42 = vpop.f32.mrf.mxu1 }
 0x2bd   :  { %v5059_v19 = vpop.f32.mrf.mxu0 }
 0x2be   :  { %14153 = vst [vmem:[#allocation41_spill] sm:$0xff] %v12984_v36  ;;  %v12989_v25 = vadd.f32 %v5059_v19, %v12909_v60  ;;  %v12996_v20 = vpop.f32.mrf.mxu1 }
 0x2bf   :  { %v9947_v30 = vpop.f32.mrf.mxu0 }
 0x2c0   :  { %14154 = vst [vmem:[#allocation42_spill] sm:$0xff] %v12989_v25  ;;  %v12994_v17 = vadd.f32 %v9947_v30, %v12914_v38  ;;  %v13001_v51 = vpop.f32.mrf.mxu1 }
 0x2c1   :  { %v5069_v45 = vpop.f32.mrf.mxu0 }
 0x2c2   :  { %14155 = vst [vmem:[#allocation43_spill] sm:$0xff] %v12994_v17  ;;  %v12999_v14 = vadd.f32 %v5069_v45, %v12920_v8  ;;  %v13005_v26 = vpop.f32.mrf.mxu1 }
 0x2c3   :  { %v9950_v12 = vpop.f32.mrf.mxu0 }
 0x2c4   :  { %14156 = vst [vmem:[#allocation44_spill] sm:$0xff] %v12999_v14  ;;  %v13003_v36 = vadd.f32 %v9950_v12, %v4466_v35  ;;  %v13009_v25 = vpop.f32.mrf.mxu1 }
 0x2c5   :  { %v5079_v60 = vpop.f32.mrf.mxu0 }
 0x2c6   :  { %14157 = vst [vmem:[#allocation45_spill] sm:$0xff] %v13003_v36  ;;  %v13007_v19 = vadd.f32 %v5079_v60, %v4465_v27  ;;  %v13013_v17 = vpop.f32.mrf.mxu1 }
 0x2c7   :  { %v9953_v38 = vpop.f32.mrf.mxu0 }
 0x2c8   :  { %14158 = vst [vmem:[#allocation46_spill] sm:$0xff] %v13007_v19  ;;  %v13011_v30 = vadd.f32 %v9953_v38, %v4468_v63  ;;  %v13017_v45 = vpop.f32.mrf.mxu1 }
 0x2c9   :  { %v5089_v22 = vpop.f32.mrf.mxu0 }
 0x2ca   :  { %14159 = vst [vmem:[#allocation47_spill] sm:$0xff] %v13011_v30  ;;  %v13015_v8 = vadd.f32 %v5089_v22, %v4467_v32  ;;  %v13021_v12 = vpop.f32.mrf.mxu1  ;;  %v14164_v32 = vld [vmem:[#allocation29_spill] sm:$0xff] }
 0x2cb   :  { %v9956_v14 = vpop.f32.mrf.mxu0  ;;  %v5827_v22 = vadd.f32 %v9964_v62, %v14164_v32  ;;  %v7000_v62 = vld [vmem:[#allocation4] sm:$0xff] }
 0x2cc   :  { %14160 = vst [vmem:[#allocation48_spill] sm:$0xff] %v13015_v8  ;;  %v13019_v35 = vadd.f32 %v9956_v14, %v4470_v15  ;;  %v13025_v60 = vpop.f32.mrf.mxu1  ;;  %v7053_v32 = vld [vmem:[#allocation4 + $0x1] sm:$0xff] }
 0x2cd   :  { %v5099_v36 = vpop.f32.mrf.mxu0 }
 0x2ce   :  { %14161 = vst [vmem:[#allocation49_spill] sm:$0xff] %v13019_v35  ;;  %v13023_v27 = vadd.f32 %v5099_v36, %v4469_v21  ;;  %v13029_v38 = vpop.f32.mrf.mxu1  ;;  %v13039_v21 = vld [vmem:[%s13976_s2] ss:$0 sm:$0xff] }
 0x2cf   :  { %v9959_v19 = vpop.f32.mrf.mxu0  ;;  %v14166_v36 = vld [vmem:[#allocation30_spill] sm:$0xff] }
 0x2d0   :  { %14162 = vst [vmem:[#allocation50_spill] sm:$0xff] %v13023_v27  ;;  %v13027_v63 = vadd.f32 %v9959_v19, %v4472_v47  ;;  %v13034_v18 = vpop.f32.mrf.mxu1  ;;  %v5826_v14 = vadd.f32 %v5507_v1, %v14166_v36  ;;  %v13045_v47 = vld [vmem:[%s13977_s3] ss:$0 sm:$0xff] }
 0x2d1   :  { %v5109_v30 = vpop.f32.mrf.mxu0  ;;  %v7020_v61 = vmul.f32 %v13045_v47, %v7000_v62 }
 0x2d2   :  { %14163 = vst [vmem:[#allocation51_spill] sm:$0xff] %v13027_v63  ;;  %v13032_v8 = vadd.f32 %v5109_v30, %v4471_v59  ;;  %v13047_v19 = vpop.f32.mrf.mxu1  ;;  %v13052_v30 = vld [vmem:[%s13977_s3 + $0x1] ss:$0 sm:$0xff] }
 0x2d3   :  { %v10062_v15 = vpop.f32.mrf.mxu0  ;;  %v7073_v33 = vmul.f32 %v13052_v30, %v7053_v32 }
 0x2d4   :  { %14165 = vst [vmem:[#allocation29_spill] sm:$0xff] %v13032_v8  ;;  %v6535_v27 = vadd.f32 %v10062_v15, %v5827_v22  ;;  %v14167_v8 = vld [vmem:[#allocation31_spill] sm:$0xff]  ;;  %v13056_v15 = vpop.f32.mrf.mxu1 }
 0x2d5   :  { %v6215_v59 = vpop.f32.mrf.mxu0  ;;  %v5829_v63 = vadd.f32 %v9967_v0, %v14167_v8  ;;  %v5828_v0 = vadd.f32 %v12966_v11, %v14168_v57  ;;  %v5830_v57 = vadd.f32 %v12976_v44, %v14169_v3  ;;  %v7089_v52 = vadd.f32 %v7073_v33, %v7020_v61 }
 0x2d6   :  { %v6606_v1 = vadd.f32 %v13039_v21, %v6535_v27  ;;  %v6534_v22 = vadd.f32 %v6215_v59, %v5826_v14  ;;  %v13068_v27 = vpop.f32.mrf.mxu1 }
 0x2d7   :  { %v10065_v36 = vpop.f32.mrf.mxu0 }
 0x2d8   :  { %v6537_v35 = vadd.f32 %v10065_v36, %v5829_v63  ;;  %v6605_v8 = vadd.f32 %v13039_v21, %v6534_v22  ;;  %v5831_v63 = vadd.f32 %v12971_v34, %v12602_v16  ;;  %v6670_v59 = vmax.f32 %v6606_v1, 0.0  ;;  %v13073_v36 = vpop.f32.mrf.mxu1 }
 0x2d9   :  { %v6225_v14 = vpop.f32.mrf.mxu0 }
 0x2da   :  { %v6608_v62 = vadd.f32 %v13039_v21, %v6537_v35  ;;  %v6536_v32 = vadd.f32 %v6225_v14, %v5828_v0  ;;  %v6669_v43 = vmax.f32 %v6605_v8, 0.0  ;;  %v13079_v56 = vpop.f32.mrf.mxu1  ;;  %v6734_v34 = vmin.f32 %v6670_v59, 6.0  ;;  %v14170_v0 = vld [vmem:[#allocation34_spill] sm:$0xff] }
 0x2db   :  { %v10068_v23 = vpop.f32.mrf.mxu0  ;;  %v5833_v14 = vadd.f32 %v12981_v55, %v14170_v0  ;;  %v13089_v8 = vadd.f32 %v7126_v9, %v7089_v52  ;;  %v5835_v59 = vadd.f32 %v12991_v42, %v12672_v5  ;;  %v5836_v52 = vadd.f32 %v13005_v26, %v12694_v40  ;;  %v14172_v26 = vld [vmem:[#allocation36_spill] sm:$0xff] }
 0x2dc   :  { %v6672_v11 = vmax.f32 %v6608_v62, 0.0  ;;  %v6539_v22 = vadd.f32 %v10068_v23, %v5831_v63  ;;  %v6607_v50 = vadd.f32 %v13039_v21, %v6536_v32  ;;  %v13084_v29 = vpop.f32.mrf.mxu1  ;;  %v14171_v23 = vld [vmem:[#allocation35_spill] sm:$0xff]  ;;  %v7008_v63 = vld [vmem:[#allocation4 + $0xa0] sm:$0xff]  ;;  %v6733_v62 = vmin.f32 %v6669_v43, 6.0 }
 0x2dd   :  { %v6235_v16 = vpop.f32.mrf.mxu0  ;;  %v5832_v33 = vadd.f32 %v12986_v10, %v14171_v23  ;;  %v5837_v10 = vadd.f32 %v13001_v51, %v12687_v39  ;;  %v5839_v40 = vadd.f32 %v13009_v25, %v12742_v46  ;;  %v5838_v51 = vadd.f32 %v13013_v17, %v14172_v26  ;;  %v7114_v23 = vld [vmem:[#allocation4 + $0xa2] sm:$0xff] }
 0x2de   :  { %v6736_v35 = vmin.f32 %v6672_v11, 6.0  ;;  %v6538_v1 = vadd.f32 %v6235_v16, %v5830_v57  ;;  %v6671_v54 = vmax.f32 %v6607_v50, 0.0  ;;  %v6610_v24 = vadd.f32 %v13039_v21, %v6539_v22  ;;  %v13093_v32 = vpop.f32.mrf.mxu1  ;;  %v7061_v11 = vld [vmem:[#allocation4 + $0xa1] sm:$0xff] }
 0x2df   :  { %v10071_v3 = vpop.f32.mrf.mxu0  ;;  %v5834_v22 = vadd.f32 %v12996_v20, %v12679_v28  ;;  %v7081_v39 = vmul.f32 %v13052_v30, %v7061_v11  ;;  %v13125_v46 = vadd.f32 %v13025_v60, %v12770_v37  ;;  %v7134_v37 = vmul.f32 %v13063_v49, %v7114_v23 }
 0x2e0   :  { %v6798_v61 = vmax.f32 %v6734_v34, %v6736_v35  ;;  %v6609_v44 = vadd.f32 %v13039_v21, %v6538_v1  ;;  %v6735_v55 = vmin.f32 %v6671_v54, 6.0  ;;  %v6541_v50 = vadd.f32 %v10071_v3, %v5833_v14  ;;  %v13103_v42 = vpop.f32.mrf.mxu1  ;;  %v14173_v1 = vld [vmem:[#allocation37_spill] sm:$0xff] }
 0x2e1   :  { %v6245_v57 = vpop.f32.mrf.mxu0  ;;  %v6674_v43 = vmax.f32 %v6610_v24, 0.0  ;;  %v7028_v34 = vmul.f32 %v13045_v47, %v7008_v63  ;;  %v13114_v0 = vadd.f32 %v13017_v45, %v14173_v1  ;;  %v13137_v60 = vadd.f32 %v13034_v18, %v12787_v7 }
 0x2e2   :  { %6831 = vst.msk [vmem:[#allocation3 + $0x8] sm:$0xff] %vm6829_vm5, %v6798_v61  ;;  %v6540_v9 = vadd.f32 %v6245_v57, %v5832_v33  ;;  %v6797_v5 = vmax.f32 %v6733_v62, %v6735_v55  ;;  %v6612_v54 = vadd.f32 %v13039_v21, %v6541_v50  ;;  %v6673_v35 = vmax.f32 %v6609_v44, 0.0  ;;  %v13117_v24 = vpop.f32.mrf.mxu1  ;;  %v14174_v33 = vld [vmem:[#allocation38_spill] sm:$0xff]  ;;  %v14175_v44 = vld [vmem:[#allocation39_spill] sm:$0xff]  ;;  %v7326_v57 = vld [vmem:[#allocation4 + $0x90] sm:$0xff] }
 0x2e3   :  { %v10074_v16 = vpop.f32.mrf.mxu0  ;;  %v13121_v61 = vadd.f32 %v13021_v12, %v14174_v33  ;;  %v13129_v45 = vadd.f32 %v13029_v38, %v14175_v44  ;;  %v6738_v63 = vmin.f32 %v6674_v43, 6.0  ;;  %v13151_v7 = vadd.f32 %v13056_v15, %v12802_v6  ;;  %v13165_v6 = vld [vmem:[%s13977_s3 + $0x7] ss:$0 sm:$0xff]  ;;  %v7432_v15 = vld [vmem:[#allocation4 + $0x92] sm:$0xff] }
 0x2e4   :  { %v6611_v28 = vadd.f32 %v13039_v21, %v6540_v9  ;;  %v6543_v20 = vadd.f32 %v10074_v16, %v5835_v59  ;;  %6830 = vst.msk [vmem:[#allocation3] sm:$0xff] %vm6829_vm5, %v6797_v5  ;;  %v6676_v14 = vmax.f32 %v6612_v54, 0.0  ;;  %v13132_v55 = vpop.f32.mrf.mxu1  ;;  %v6737_v12 = vmin.f32 %v6673_v35, 6.0  ;;  %v13143_v16 = vld [vmem:[%s13977_s3 + $0x6] ss:$0 sm:$0xff]  ;;  %v7379_v35 = vld [vmem:[#allocation4 + $0x91] sm:$0xff] }
 0x2e5   :  { %v6255_v3 = vpop.f32.mrf.mxu0  ;;  %v7097_v9 = vadd.f32 %v7081_v39, %v7028_v34  ;;  %v13173_v33 = vmul.f32 %v13165_v6, %v7379_v35 }
 0x2e6   :  { %v6675_v25 = vmax.f32 %v6611_v28, 0.0  ;;  %v6542_v17 = vadd.f32 %v6255_v3, %v5834_v22  ;;  %v6740_v59 = vmin.f32 %v6676_v14, 6.0  ;;  %v6614_v62 = vadd.f32 %v13039_v21, %v6543_v20  ;;  %v5647_v43 = vpop.f32.mrf.mxu1  ;;  %v14176_v28 = vld [vmem:[#allocation10_spill] sm:$0xff] }
 0x2e7   :  { %v10077_v50 = vpop.f32.mrf.mxu0  ;;  %v13147_v34 = vadd.f32 %v13047_v19, %v14176_v28  ;;  %v13154_v20 = vmul.f32 %v13143_v16, %v7326_v57  ;;  %14178 = vst [vmem:[#allocation31_spill] sm:$0xff] %v13173_v33 }
 0x2e8   :  { %v6739_v11 = vmin.f32 %v6675_v25, 6.0  ;;  %v6800_v22 = vmax.f32 %v6738_v63, %v6740_v59  ;;  %v6613_v38 = vadd.f32 %v13039_v21, %v6542_v17  ;;  %v6545_v5 = vadd.f32 %v10077_v50, %v5837_v10  ;;  %v10009_v19 = vpop.f32.mrf.mxu1 }
 0x2e9   :  { %v6265_v54 = vpop.f32.mrf.mxu0  ;;  %14177 = vst [vmem:[#allocation30_spill] sm:$0xff] %v13154_v20  ;;  %v13158_v10 = vadd.f32 %v13068_v27, %v12808_v2  ;;  %v6678_v39 = vmax.f32 %v6614_v62, 0.0  ;;  %v13169_v2 = vadd.f32 %v13073_v36, %v12817_v13  ;;  %v13181_v13 = vld [vmem:[%s13977_s3 + $0x8] ss:$0 sm:$0xff]  ;;  %v13185_v36 = vadd.f32 %v13079_v56, %v12823_v53 }
 0x2ea   :  { %v6799_v18 = vmax.f32 %v6737_v12, %v6739_v11  ;;  %6833 = vst.msk [vmem:[#allocation3 + $0x18] sm:$0xff] %vm6829_vm5, %v6800_v22  ;;  %v6616_v26 = vadd.f32 %v13039_v21, %v6545_v5  ;;  %v6544_v1 = vadd.f32 %v6265_v54, %v5836_v52  ;;  %v13175_v52 = vadd.f32 %v7134_v37, %v7097_v9  ;;  %v5657_v59 = vpop.f32.mrf.mxu1 }
 0x2eb   :  { %v10080_v14 = vpop.f32.mrf.mxu0  ;;  %v6862_v3 = vld [vmem:[#allocation3] ss:$2 sm:$0xff]  ;;  %v6894_v23 = vld [vmem:[#allocation3 + $0x1] ss:$2 sm:$0xff]  ;;  %v6677_v17 = vmax.f32 %v6613_v38, 0.0  ;;  %v13189_v57 = vmul.f32 %v13181_v13, %v7432_v15  ;;  %v13194_v12 = vadd.f32 %v13084_v29, %v12832_v48  ;;  %v6742_v11 = vmin.f32 %v6678_v39, 6.0 }
 0x2ec   :  { %6832 = vst.msk [vmem:[#allocation3 + $0x10] sm:$0xff] %vm6829_vm5, %v6799_v18  ;;  %v6547_v27 = vadd.f32 %v10080_v14, %v5839_v40  ;;  %v6925_v25 = vmax.f32 %v6862_v3, %v6894_v23  ;;  %v6680_v44 = vmax.f32 %v6616_v26, 0.0  ;;  %v6615_v63 = vadd.f32 %v13039_v21, %v6544_v1  ;;  %v10012_v22 = vpop.f32.mrf.mxu1  ;;  %v14181_v15 = vld [vmem:[#allocation12_spill] sm:$0xff] }
 0x2ed   :  { %v6275_v62 = vpop.f32.mrf.mxu0  ;;  %14179 = vst [vmem:[#allocation32_spill] sm:$0xff] %v13189_v57  ;;  %v13198_v53 = vadd.f32 %v13093_v32, %v12838_v58  ;;  %v13202_v56 = vadd.f32 %v13103_v42, %v12847_v4  ;;  %v6741_v54 = vmin.f32 %v6677_v17, 6.0  ;;  %v13208_v39 = vadd.f32 %v13117_v24, %v12853_v31 }
 0x2ee   :  { %v6618_v40 = vadd.f32 %v13039_v21, %v6547_v27  ;;  %v6546_v50 = vadd.f32 %v6275_v62, %v5838_v51  ;;  %6983 = vst.msk [vmem:[#allocation4 + $0x11] sm:$0xff] %vm6829_vm5, %v6925_v25  ;;  %v6744_v9 = vmin.f32 %v6680_v44, 6.0  ;;  %v6679_v37 = vmax.f32 %v6615_v63, 0.0  ;;  %v5667_v28 = vpop.f32.mrf.mxu1  ;;  %v14183_v25 = vld [vmem:[#allocation14_spill] sm:$0xff]  ;;  %v14184_v63 = vld [vmem:[#allocation15_spill] sm:$0xff] }
 0x2ef   :  { %v10083_v38 = vpop.f32.mrf.mxu0  ;;  %v13212_v58 = vadd.f32 %v13132_v55, %v12862_v41  ;;  %v13220_v3 = vadd.f32 %v10009_v19, %v14181_v15  ;;  %v14182_v55 = vld [vmem:[#allocation13_spill] sm:$0xff]  ;;  %v13227_v17 = vadd.f32 %v10012_v22, %v14183_v25  ;;  %v14185_v22 = vld [vmem:[#allocation16_spill] sm:$0xff] }
 0x2f0   :  { %v6617_v51 = vadd.f32 %v13039_v21, %v6546_v50  ;;  %v6549_v5 = vadd.f32 %v10083_v38, %v13114_v0  ;;  %v6802_v48 = vmax.f32 %v6742_v11, %v6744_v9  ;;  %v6743_v29 = vmin.f32 %v6679_v37, 6.0  ;;  %v14180_v0 = vld [vmem:[#allocation11_spill] sm:$0xff]  ;;  %v10015_v24 = vpop.f32.mrf.mxu1  ;;  %v13243_v11 = vld [vmem:[%s13977_s3 + $0x4] ss:$0 sm:$0xff] }
 0x2f1   :  { %v6682_v35 = vmax.f32 %v6618_v40, 0.0  ;;  %v6285_v18 = vpop.f32.mrf.mxu0  ;;  %v13217_v1 = vadd.f32 %v5647_v43, %v14180_v0  ;;  %v13224_v27 = vadd.f32 %v5657_v59, %v14182_v55  ;;  %v13232_v43 = vld [vmem:[%s13977_s3 + $0x3] ss:$0 sm:$0xff]  ;;  %v13247_v38 = vadd.f32 %v10015_v24, %v14185_v22  ;;  %v14187_v24 = vld [vmem:[#allocation20_spill] sm:$0xff] }
 0x2f2   :  { %v6681_v4 = vmax.f32 %v6617_v51, 0.0  ;;  %v6620_v32 = vadd.f32 %v13039_v21, %v6549_v5  ;;  %6835 = vst.msk [vmem:[#allocation3 + $0x28] sm:$0xff] %vm6829_vm5, %v6802_v48  ;;  %v6801_v14 = vmax.f32 %v6741_v54, %v6743_v29  ;;  %v6548_v31 = vadd.f32 %v6285_v18, %v13121_v61  ;;  %v5677_v40 = vpop.f32.mrf.mxu1  ;;  %v14186_v29 = vld [vmem:[#allocation18_spill] sm:$0xff] }
 0x2f3   :  { %v6864_v42 = vld [vmem:[#allocation3 + $0x10] ss:$2 sm:$0xff]  ;;  %v6896_v26 = vld [vmem:[#allocation3 + $0x11] ss:$2 sm:$0xff]  ;;  %v10086_v23 = vpop.f32.mrf.mxu0  ;;  %v6746_v19 = vmin.f32 %v6682_v35, 6.0  ;;  %v13236_v61 = vadd.f32 %v5667_v28, %v14184_v63  ;;  %v13252_v35 = vadd.f32 %v5677_v40, %v14186_v29  ;;  %v14188_v40 = vld [vmem:[#allocation22_spill] sm:$0xff] }
 0x2f4   :  { %v6926_v41 = vmax.f32 %v6864_v42, %v6896_v26  ;;  %v6684_v44 = vmax.f32 %v6620_v32, 0.0  ;;  %6834 = vst.msk [vmem:[#allocation3 + $0x20] sm:$0xff] %vm6829_vm5, %v6801_v14  ;;  %v6619_v62 = vadd.f32 %v13039_v21, %v6548_v31  ;;  %v6551_v59 = vadd.f32 %v10086_v23, %v13125_v46  ;;  %v10018_v28 = vpop.f32.mrf.mxu1 }
 0x2f5   :  { %v6295_v50 = vpop.f32.mrf.mxu0  ;;  %v6745_v9 = vmin.f32 %v6681_v4, 6.0  ;;  %v7159_v5 = vld [vmem:[#allocation4 + $0x10] sm:$0xff]  ;;  %v13258_v4 = vld [vmem:[%s13977_s3 + $0x5] ss:$0 sm:$0xff]  ;;  %v13266_v23 = vadd.f32 %v10018_v28, %v14187_v24 }
 0x2f6   :  { %6984 = vst.msk [vmem:[#allocation4 + $0x21] sm:$0xff] %vm6829_vm5, %v6926_v41  ;;  %v6748_v37 = vmin.f32 %v6684_v44, 6.0  ;;  %v6550_v51 = vadd.f32 %v6295_v50, %v13129_v45  ;;  %v7212_v54 = vld [vmem:[#allocation4 + $0x11] sm:$0xff]  ;;  %v6683_v48 = vmax.f32 %v6619_v62, 0.0  ;;  %v6622_v46 = vadd.f32 %v13039_v21, %v6551_v59  ;;  %v5687_v41 = vpop.f32.mrf.mxu1 }
 0x2f7   :  { %v10089_v18 = vpop.f32.mrf.mxu0  ;;  %v7179_v32 = vmul.f32 %v13232_v43, %v7159_v5  ;;  %v13260_v42 = vld [vmem:[#allocation4 + $0x12] sm:$0xff]  ;;  %v7232_v14 = vmul.f32 %v13243_v11, %v7212_v54  ;;  %v13275_v50 = vadd.f32 %v5687_v41, %v14188_v40 }
 0x2f8   :  { %v6804_v45 = vmax.f32 %v6746_v19, %v6748_v37  ;;  %v6621_v26 = vadd.f32 %v13039_v21, %v6550_v51  ;;  %v6553_v0 = vadd.f32 %v10089_v18, %v13137_v60  ;;  %v6747_v15 = vmin.f32 %v6683_v48, 6.0  ;;  %v10021_v37 = vpop.f32.mrf.mxu1 }
 0x2f9   :  { %v6686_v31 = vmax.f32 %v6622_v46, 0.0  ;;  %v6305_v55 = vpop.f32.mrf.mxu0  ;;  %v7195_v25 = vadd.f32 %v7179_v32, %v13089_v8  ;;  %v7285_v60 = vmul.f32 %v13258_v4, %v13260_v42  ;;  %v7021_v18 = vmul.f32 %v13045_v47, %v7159_v5  ;;  %v14189_v32 = vld [vmem:[#allocation17_spill] sm:$0xff] }
 0x2fa   :  { %6837 = vst.msk [vmem:[#allocation3 + $0x38] sm:$0xff] %vm6829_vm5, %v6804_v45  ;;  %v6685_v44 = vmax.f32 %v6621_v26, 0.0  ;;  %v6624_v19 = vadd.f32 %v13039_v21, %v6553_v0  ;;  %v6552_v63 = vadd.f32 %v6305_v55, %v13147_v34  ;;  %v6803_v62 = vmax.f32 %v6745_v9, %v6747_v15  ;;  %v5697_v26 = vpop.f32.mrf.mxu1 }
 0x2fb   :  { %v6750_v59 = vmin.f32 %v6686_v31, 6.0  ;;  %v10092_v22 = vpop.f32.mrf.mxu0  ;;  %v7248_v51 = vadd.f32 %v7232_v14, %v7195_v25  ;;  %v6866_v48 = vld [vmem:[#allocation3 + $0x20] ss:$2 sm:$0xff]  ;;  %v6898_v8 = vld [vmem:[#allocation3 + $0x21] ss:$2 sm:$0xff]  ;;  %v13281_v9 = vadd.f32 %v10021_v37, %v14189_v32  ;;  %v7074_v25 = vmul.f32 %v13052_v30, %v7212_v54 }
 0x2fc   :  { %v6749_v46 = vmin.f32 %v6685_v44, 6.0  ;;  %v6688_v29 = vmax.f32 %v6624_v19, 0.0  ;;  %v6623_v28 = vadd.f32 %v13039_v21, %v6552_v63  ;;  %v6927_v34 = vmax.f32 %v6866_v48, %v6898_v8  ;;  %6836 = vst.msk [vmem:[#allocation3 + $0x30] sm:$0xff] %vm6829_vm5, %v6803_v62  ;;  %v10024_v63 = vpop.f32.mrf.mxu1  ;;  %v14191_v48 = vld [vmem:[#allocation21_spill] sm:$0xff] }
 0x2fd   :  { %v6555_v45 = vadd.f32 %v10092_v22, %v13151_v7  ;;  %v6315_v0 = vpop.f32.mrf.mxu0  ;;  %v7301_v15 = vadd.f32 %v7285_v60, %v7248_v51  ;;  %v13284_v14 = vld [vmem:[#allocation4 + $0x20] sm:$0xff]  ;;  %v14190_v7 = vld [vmem:[#allocation19_spill] sm:$0xff]  ;;  %v13305_v8 = vadd.f32 %v10024_v63, %v14191_v48 }
 0x2fe   :  { %v13286_v31 = vld [vmem:[#allocation4 + $0x21] sm:$0xff]  ;;  %v6752_v41 = vmin.f32 %v6688_v29, 6.0  ;;  %v6687_v55 = vmax.f32 %v6623_v28, 0.0  ;;  %v6554_v5 = vadd.f32 %v6315_v0, %v13158_v10  ;;  %6985 = vst.msk [vmem:[#allocation4 + $0x31] sm:$0xff] %vm6829_vm5, %v6927_v34  ;;  %v13295_v19 = vadd.f32 %v5697_v26, %v14190_v7  ;;  %v5707_v28 = vpop.f32.mrf.mxu1 }
 0x2ff   :  { %v13288_v24 = vld [vmem:[#allocation4 + $0x22] sm:$0xff]  ;;  %v6626_v44 = vadd.f32 %v13039_v21, %v6555_v45  ;;  %v10095_v60 = vpop.f32.mrf.mxu0  ;;  %v7339_v62 = vmul.f32 %v13143_v16, %v13284_v14  ;;  %v7392_v40 = vmul.f32 %v13165_v6, %v13286_v31  ;;  %v7090_v0 = vadd.f32 %v7074_v25, %v7021_v18 }
 0x300   :  { %v6806_v37 = vmax.f32 %v6750_v59, %v6752_v41  ;;  %v6751_v22 = vmin.f32 %v6687_v55, 6.0  ;;  %v6625_v10 = vadd.f32 %v13039_v21, %v6554_v5  ;;  %v7445_v54 = vmul.f32 %v13181_v13, %v13288_v24  ;;  %v14192_v5 = vld [vmem:[#allocation23_spill] sm:$0xff]  ;;  %v10027_v7 = vpop.f32.mrf.mxu1 }
 0x301   :  { %v6690_v51 = vmax.f32 %v6626_v44, 0.0  ;;  %v6557_v29 = vadd.f32 %v10095_v60, %v13169_v2  ;;  %v6325_v34 = vpop.f32.mrf.mxu0  ;;  %v7355_v32 = vadd.f32 %v7339_v62, %v7301_v15  ;;  %v13312_v44 = vadd.f32 %v5707_v28, %v14192_v5  ;;  %v13317_v2 = vld [vmem:[%s13978_s4] ss:$0 sm:$0xff] }
 0x302   :  { %6839 = vst.msk [vmem:[#allocation3 + $0x48] sm:$0xff] %vm6829_vm5, %v6806_v37  ;;  %v6805_v45 = vmax.f32 %v6749_v46, %v6751_v22  ;;  %v6689_v26 = vmax.f32 %v6625_v10, 0.0  ;;  %v6556_v59 = vadd.f32 %v6325_v34, %v13185_v36  ;;  %v7127_v60 = vmul.f32 %v13063_v49, %v13260_v42  ;;  %v5717_v10 = vpop.f32.mrf.mxu1 }
 0x303   :  { %v6754_v41 = vmin.f32 %v6690_v51, 6.0  ;;  %v6628_v55 = vadd.f32 %v13039_v21, %v6557_v29  ;;  %v10098_v63 = vpop.f32.mrf.mxu0  ;;  %v7408_v48 = vadd.f32 %v7392_v40, %v7355_v32  ;;  %v6868_v15 = vld [vmem:[#allocation3 + $0x30] ss:$2 sm:$0xff]  ;;  %v6900_v46 = vld [vmem:[#allocation3 + $0x31] ss:$2 sm:$0xff] }
 0x304   :  { %6838 = vst.msk [vmem:[#allocation3 + $0x40] sm:$0xff] %vm6829_vm5, %v6805_v45  ;;  %v6753_v36 = vmin.f32 %v6689_v26, 6.0  ;;  %v6627_v18 = vadd.f32 %v13039_v21, %v6556_v59  ;;  %v6559_v25 = vadd.f32 %v10098_v63, %v13194_v12  ;;  %v6928_v62 = vmax.f32 %v6868_v15, %v6900_v46  ;;  %v14193_v40 = vld [vmem:[#allocation24_spill] sm:$0xff]  ;;  %v14194_v26 = vld [vmem:[#allocation25_spill] sm:$0xff]  ;;  %v10030_v42 = vpop.f32.mrf.mxu1 }
 0x305   :  { %v6692_v37 = vmax.f32 %v6628_v55, 0.0  ;;  %v13325_v22 = vadd.f32 %v10027_v7, %v14193_v40  ;;  %v6335_v51 = vpop.f32.mrf.mxu0  ;;  %v7461_v29 = vadd.f32 %v7445_v54, %v7408_v48  ;;  %v7143_v45 = vadd.f32 %v7127_v60, %v7090_v0 }
 0x306   :  { %v6691_v28 = vmax.f32 %v6627_v18, 0.0  ;;  %v6630_v34 = vadd.f32 %v13039_v21, %v6559_v25  ;;  %v6558_v32 = vadd.f32 %v6335_v51, %v13198_v53  ;;  %6986 = vst.msk [vmem:[#allocation4 + $0x41] sm:$0xff] %vm6829_vm5, %v6928_v62  ;;  %v13331_v59 = vadd.f32 %v5717_v10, %v14194_v26  ;;  %v5727_v46 = vpop.f32.mrf.mxu1  ;;  %v14195_v10 = vld [vmem:[#allocation26_spill] sm:$0xff] }
 0x307   :  { %v6756_v12 = vmin.f32 %v6692_v37, 6.0  ;;  %v10101_v55 = vpop.f32.mrf.mxu0  ;;  %v7484_v5 = vadd.f32 %v13317_v2, %v7461_v29  ;;  %v7180_v7 = vmul.f32 %v13232_v43, %v13284_v14  ;;  %v7233_v53 = vmul.f32 %v13243_v11, %v13286_v31  ;;  %v13343_v29 = vld [vmem:[#allocation4 + $0x30] sm:$0xff] }
 0x308   :  { %v6755_v54 = vmin.f32 %v6691_v28, 6.0  ;;  %v6694_v63 = vmax.f32 %v6630_v34, 0.0  ;;  %v6629_v48 = vadd.f32 %v13039_v21, %v6558_v32  ;;  %v6561_v15 = vadd.f32 %v10101_v55, %v13202_v56  ;;  %v10033_v32 = vpop.f32.mrf.mxu1 }
 0x309   :  { %v6808_v0 = vmax.f32 %v6754_v41, %v6756_v12  ;;  %v6345_v18 = vpop.f32.mrf.mxu0  ;;  %v7500_v25 = vmax.f32 %v7484_v5, 0.0  ;;  %v7196_v60 = vadd.f32 %v7180_v7, %v7143_v45  ;;  %v13341_v51 = vadd.f32 %v10030_v42, %v14195_v10  ;;  %v14196_v42 = vld [vmem:[#allocation27_spill] sm:$0xff] }
 0x30a   :  { %v6807_v62 = vmax.f32 %v6753_v36, %v6755_v54  ;;  %v6758_v37 = vmin.f32 %v6694_v63, 6.0  ;;  %v6693_v40 = vmax.f32 %v6629_v48, 0.0  ;;  %v6632_v41 = vadd.f32 %v13039_v21, %v6561_v15  ;;  %v13353_v54 = vld [vmem:[#allocation4 + $0x31] sm:$0xff] }
 0x30b   :  { %v6870_v28 = vld [vmem:[#allocation3 + $0x40] ss:$2 sm:$0xff]  ;;  %v6902_v34 = vld [vmem:[#allocation3 + $0x41] ss:$2 sm:$0xff]  ;;  %6841 = vst.msk [vmem:[#allocation3 + $0x58] sm:$0xff] %vm6829_vm5, %v6808_v0  ;;  %v6560_v56 = vadd.f32 %v6345_v18, %v13208_v39  ;;  %v10104_v12 = vpop.f32.mrf.mxu0  ;;  %v7516_v26 = vmin.f32 %v7500_v25, 6.0  ;;  %v7249_v45 = vadd.f32 %v7233_v53, %v7196_v60  ;;  %v13350_v5 = vadd.f32 %v5727_v46, %v14196_v42  ;;  %v5737_v0 = vpop.f32.mrf.mxu1 }
 0x30c   :  { %v6929_v36 = vmax.f32 %v6870_v28, %v6902_v34  ;;  %6840 = vst.msk [vmem:[#allocation3 + $0x50] sm:$0xff] %vm6829_vm5, %v6807_v62  ;;  %v6757_v55 = vmin.f32 %v6693_v40, 6.0  ;;  %v6563_v7 = vadd.f32 %v10104_v12, %v13212_v58  ;;  %v6696_v63 = vmax.f32 %v6632_v41, 0.0  ;;  %v13361_v18 = vld [vmem:[#allocation4 + $0x32] sm:$0xff]  ;;  %v14198_v60 = vld [vmem:[#allocation6_spill] sm:$0xff] }
 0x30d   :  { %v6631_v48 = vadd.f32 %v13039_v21, %v6560_v56  ;;  %10160 = vmatprep.mubr.msk.f32.mxu1 %vm6829_vm5, %v7516_v26  ;;  %v6355_v39 = vpop.f32.mrf.mxu0  ;;  %v7286_v53 = vmul.f32 %v13258_v4, %v13288_v24  ;;  %v7340_v15 = vmul.f32 %v13143_v16, %v13343_v29  ;;  %v14197_v58 = vld [vmem:[#allocation28_spill] sm:$0xff]  ;;  %v13369_v62 = vadd.f32 %v5737_v0, %v14198_v60  ;;  %v10036_v34 = vpop.f32.mrf.mxu1 }
 0x30e   :  { %6987 = vst.msk [vmem:[#allocation4 + $0x51] sm:$0xff] %vm6829_vm5, %v6929_v36  ;;  %v13365_v46 = vadd.f32 %v10033_v32, %v14197_v58  ;;  %v6634_v25 = vadd.f32 %v13039_v21, %v6563_v7  ;;  %v6562_v40 = vadd.f32 %v6355_v39, %v13217_v1  ;;  %v6760_v10 = vmin.f32 %v6696_v63, 6.0 }
 0x30f   :  { %v6695_v28 = vmax.f32 %v6631_v48, 0.0  ;;  %v10107_v41 = vpop.f32.mrf.mxu0  ;;  %v7302_v56 = vadd.f32 %v7286_v53, %v7249_v45  ;;  %v7393_v12 = vmul.f32 %v13165_v6, %v13353_v54  ;;  %v7446_v42 = vmul.f32 %v13181_v13, %v13361_v18  ;;  %v5747_v58 = vpop.f32.mrf.mxu1  ;;  %v14199_v53 = vld [vmem:[#allocation7_spill] sm:$0xff] }
 0x310   :  { %v6698_v26 = vmax.f32 %v6634_v25, 0.0  ;;  %v6633_v36 = vadd.f32 %v13039_v21, %v6562_v40  ;;  %v6565_v32 = vadd.f32 %v10107_v41, %v13220_v3  ;;  %v6810_v7 = vmax.f32 %v6758_v37, %v6760_v10 }
 0x311   :  { %v6759_v0 = vmin.f32 %v6695_v28, 6.0  ;;  %v6365_v1 = vpop.f32.mrf.mxu0  ;;  %v7356_v63 = vadd.f32 %v7340_v15, %v7302_v56  ;;  %v7022_v48 = vmul.f32 %v13045_v47, %v13284_v14  ;;  %v13381_v60 = vadd.f32 %v10036_v34, %v14199_v53  ;;  %v10039_v10 = vpop.f32.mrf.mxu1  ;;  %v14200_v34 = vld [vmem:[#allocation8_spill] sm:$0xff] }
 0x312   :  { %v6762_v45 = vmin.f32 %v6698_v26, 6.0  ;;  %v6697_v39 = vmax.f32 %v6633_v36, 0.0  ;;  %v6636_v25 = vadd.f32 %v13039_v21, %v6565_v32  ;;  %6843 = vst.msk [vmem:[#allocation3 + $0x68] sm:$0xff] %vm6829_vm5, %v6810_v7  ;;  %v6564_v37 = vadd.f32 %v6365_v1, %v13224_v27 }
 0x313   :  { %v6872_v40 = vld [vmem:[#allocation3 + $0x50] ss:$2 sm:$0xff]  ;;  %v6904_v3 = vld [vmem:[#allocation3 + $0x51] ss:$2 sm:$0xff]  ;;  %v6809_v41 = vmax.f32 %v6757_v55, %v6759_v0  ;;  %v10110_v28 = vpop.f32.mrf.mxu0  ;;  %v7409_v15 = vadd.f32 %v7393_v12, %v7356_v63  ;;  %v7075_v14 = vmul.f32 %v13052_v30, %v13286_v31  ;;  %v13389_v53 = vadd.f32 %v5747_v58, %v14200_v34  ;;  %v5757_v7 = vpop.f32.mrf.mxu1 }
 0x314   :  { %v6930_v56 = vmax.f32 %v6872_v40, %v6904_v3  ;;  %v6761_v26 = vmin.f32 %v6697_v39, 6.0  ;;  %v6700_v36 = vmax.f32 %v6636_v25, 0.0  ;;  %v6635_v32 = vadd.f32 %v13039_v21, %v6564_v37  ;;  %v14201_v31 = vld [vmem:[#allocation9_spill] sm:$0xff]  ;;  %v14202_v37 = vld [vmem:[#allocation40_spill] sm:$0xff] }
 0x315   :  { %6842 = vst.msk [vmem:[#allocation3 + $0x60] sm:$0xff] %vm6829_vm5, %v6809_v41  ;;  %v6567_v55 = vadd.f32 %v10110_v28, %v13227_v17  ;;  %v7462_v27 = vadd.f32 %v7446_v42, %v7409_v15  ;;  %v6375_v0 = vpop.f32.mrf.mxu0  ;;  %v7091_v1 = vadd.f32 %v7075_v14, %v7022_v48  ;;  %v13396_v63 = vadd.f32 %v10039_v10, %v14201_v31  ;;  %v10042_v3 = vpop.f32.mrf.mxu1 }
 0x316   :  { %6988 = vst.msk [vmem:[#allocation4 + $0x61] sm:$0xff] %vm6829_vm5, %v6930_v56  ;;  %v6764_v12 = vmin.f32 %v6700_v36, 6.0  ;;  %v6566_v39 = vadd.f32 %v6375_v0, %v13236_v61  ;;  %v7128_v58 = vmul.f32 %v13063_v49, %v13288_v24  ;;  %v6699_v25 = vmax.f32 %v6635_v32, 0.0 }
 0x317   :  { %v6638_v40 = vadd.f32 %v13039_v21, %v6567_v55  ;;  %v7485_v17 = vadd.f32 %v13317_v2, %v7462_v27  ;;  %v10113_v42 = vpop.f32.mrf.mxu0  ;;  %v7181_v48 = vmul.f32 %v13232_v43, %v13343_v29  ;;  %v13406_v28 = vadd.f32 %v5757_v7, %v14202_v37  ;;  %v5767_v56 = vpop.f32.mrf.mxu1  ;;  %v14203_v55 = vld [vmem:[#allocation41_spill] sm:$0xff] }
 0x318   :  { %v6812_v41 = vmax.f32 %v6762_v45, %v6764_v12  ;;  %v6637_v10 = vadd.f32 %v13039_v21, %v6566_v39  ;;  %v6569_v61 = vadd.f32 %v10113_v42, %v13247_v38  ;;  %v6763_v15 = vmin.f32 %v6699_v25, 6.0 }
 0x319   :  { %v6702_v24 = vmax.f32 %v6638_v40, 0.0  ;;  %v7501_v14 = vmax.f32 %v7485_v17, 0.0  ;;  %v6385_v36 = vpop.f32.mrf.mxu0  ;;  %v7144_v34 = vadd.f32 %v7128_v58, %v7091_v1  ;;  %v13412_v27 = vadd.f32 %v10042_v3, %v14203_v55  ;;  %v10045_v38 = vpop.f32.mrf.mxu1  ;;  %v13416_v40 = vld [vmem:[#allocation4 + $0x40] sm:$0xff] }
 0x31a   :  { %6845 = vst.msk [vmem:[#allocation3 + $0x78] sm:$0xff] %vm6829_vm5, %v6812_v41  ;;  %v6701_v32 = vmax.f32 %v6637_v10, 0.0  ;;  %v6640_v45 = vadd.f32 %v13039_v21, %v6569_v61  ;;  %v6568_v7 = vadd.f32 %v6385_v36, %v13252_v35  ;;  %v6811_v0 = vmax.f32 %v6761_v26, %v6763_v15  ;;  %v13418_v17 = vld [vmem:[#allocation4 + $0x41] sm:$0xff] }
 0x31b   :  { %v6766_v12 = vmin.f32 %v6702_v24, 6.0  ;;  %v7517_v31 = vmin.f32 %v7501_v14, 6.0  ;;  %v10116_v39 = vpop.f32.mrf.mxu0  ;;  %v7197_v25 = vadd.f32 %v7181_v48, %v7144_v34  ;;  %v14204_v3 = vld [vmem:[#allocation42_spill] sm:$0xff]  ;;  %v14205_v26 = vld [vmem:[#allocation43_spill] sm:$0xff]  ;;  %v5777_v15 = vpop.f32.mrf.mxu1  ;;  %v7234_v24 = vmul.f32 %v13243_v11, %v13353_v54 }
 0x31c   :  { %v6874_v1 = vld [vmem:[#allocation3 + $0x60] ss:$2 sm:$0xff]  ;;  %v6906_v58 = vld [vmem:[#allocation3 + $0x61] ss:$2 sm:$0xff]  ;;  %v6765_v42 = vmin.f32 %v6701_v32, 6.0  ;;  %v6704_v41 = vmax.f32 %v6640_v45, 0.0  ;;  %v13421_v37 = vadd.f32 %v5767_v56, %v14204_v3  ;;  %v6639_v10 = vadd.f32 %v13039_v21, %v6568_v7 }
 0x31d   :  { %v6931_v35 = vmax.f32 %v6874_v1, %v6906_v58  ;;  %6844 = vst.msk [vmem:[#allocation3 + $0x70] sm:$0xff] %vm6829_vm5, %v6811_v0  ;;  %10161 = vmatmul.mubr.msk.f32.vlgmr.msra.gmra.mxu1 %vm6829_vm5, %v7517_v31  ;;  %v13427_v48 = vadd.f32 %v10045_v38, %v14205_v26  ;;  %v6571_v61 = vadd.f32 %v10116_v39, %v13266_v23  ;;  %v13432_v14 = vld [vmem:[#allocation4 + $0x42] sm:$0xff]  ;;  %v6395_v56 = vpop.f32.mrf.mxu0  ;;  %v14206_v32 = vld [vmem:[#allocation44_spill] sm:$0xff]  ;;  %v10048_v38 = vpop.f32.mrf.mxu1 }
 0x31e   :  { %v6768_v36 = vmin.f32 %v6704_v41, 6.0  ;;  %v6703_v34 = vmax.f32 %v6639_v10, 0.0  ;;  %v13435_v55 = vadd.f32 %v5777_v15, %v14206_v32  ;;  %v7287_v45 = vmul.f32 %v13258_v4, %v13361_v18 }
 0x31f   :  { %6989 = vst.msk [vmem:[#allocation4 + $0x71] sm:$0xff] %vm6829_vm5, %v6931_v35  ;;  %v6642_v7 = vadd.f32 %v13039_v21, %v6571_v61  ;;  %v7250_v23 = vadd.f32 %v7234_v24, %v7197_v25  ;;  %v7341_v0 = vmul.f32 %v13143_v16, %v13416_v40  ;;  %v7394_v31 = vmul.f32 %v13165_v6, %v13418_v17  ;;  %v10119_v39 = vpop.f32.mrf.mxu0  ;;  %v5787_v25 = vpop.f32.mrf.mxu1 }
 0x320   :  { %v6814_v1 = vmax.f32 %v6766_v12, %v6768_v36  ;;  %v6767_v58 = vmin.f32 %v6703_v34, 6.0  ;;  %v7447_v41 = vmul.f32 %v13181_v13, %v13432_v14  ;;  %v6570_v3 = vadd.f32 %v6395_v56, %v13275_v50  ;;  %v14207_v36 = vld [vmem:[#allocation45_spill] sm:$0xff] }
 0x321   :  { %v6706_v10 = vmax.f32 %v6642_v7, 0.0  ;;  %v7303_v35 = vadd.f32 %v7287_v45, %v7250_v23  ;;  %v6573_v26 = vadd.f32 %v10119_v39, %v13281_v9  ;;  %v6405_v61 = vpop.f32.mrf.mxu0  ;;  %v7023_v15 = vmul.f32 %v13045_v47, %v13343_v29  ;;  %v14208_v45 = vld [vmem:[#allocation46_spill] sm:$0xff]  ;;  %v10051_v7 = vpop.f32.mrf.mxu1 }
 0x322   :  { %6847 = vst.msk [vmem:[#allocation3 + $0x88] sm:$0xff] %vm6829_vm5, %v6814_v1  ;;  %v6813_v24 = vmax.f32 %v6765_v42, %v6767_v58  ;;  %v6641_v12 = vadd.f32 %v13039_v21, %v6570_v3  ;;  %v13454_v34 = vadd.f32 %v10048_v38, %v14207_v36  ;;  %v6572_v32 = vadd.f32 %v6405_v61, %v13295_v19 }
 0x323   :  { %v7357_v50 = vadd.f32 %v7341_v0, %v7303_v35  ;;  %v6644_v56 = vadd.f32 %v13039_v21, %v6573_v26  ;;  %v13459_v9 = vadd.f32 %v5787_v25, %v14208_v45  ;;  %v10122_v23 = vpop.f32.mrf.mxu0  ;;  %v7076_v47 = vmul.f32 %v13052_v30, %v13353_v54  ;;  %v5797_v35 = vpop.f32.mrf.mxu1  ;;  %v14209_v45 = vld [vmem:[#allocation47_spill] sm:$0xff] }
 0x324   :  { %v6876_v29 = vld [vmem:[#allocation3 + $0x70] ss:$2 sm:$0xff]  ;;  %v6908_v42 = vld [vmem:[#allocation3 + $0x71] ss:$2 sm:$0xff]  ;;  %6846 = vst.msk [vmem:[#allocation3 + $0x80] sm:$0xff] %vm6829_vm5, %v6813_v24  ;;  %v6770_v39 = vmin.f32 %v6706_v10, 6.0  ;;  %v6643_v1 = vadd.f32 %v13039_v21, %v6572_v32  ;;  %v6575_v19 = vadd.f32 %v10122_v23, %v13305_v8  ;;  %v13467_v30 = vadd.f32 %v10051_v7, %v14209_v45 }
 0x325   :  { %v6705_v38 = vmax.f32 %v6641_v12, 0.0  ;;  %v6932_v0 = vmax.f32 %v6876_v29, %v6908_v42  ;;  %v7410_v58 = vadd.f32 %v7394_v31, %v7357_v50  ;;  %v6708_v3 = vmax.f32 %v6644_v56, 0.0  ;;  %v6415_v25 = vpop.f32.mrf.mxu0  ;;  %v13475_v12 = vld [vmem:[#allocation4 + $0x50] sm:$0xff]  ;;  %v10054_v32 = vpop.f32.mrf.mxu1 }
 0x326   :  { %v7092_v26 = vadd.f32 %v7076_v47, %v7023_v15  ;;  %v6707_v36 = vmax.f32 %v6643_v1, 0.0  ;;  %v6646_v54 = vadd.f32 %v13039_v21, %v6575_v19  ;;  %v7129_v8 = vmul.f32 %v13063_v49, %v13361_v18  ;;  %v13477_v15 = vld [vmem:[#allocation4 + $0x51] sm:$0xff] }
 0x327   :  { %v6769_v61 = vmin.f32 %v6705_v38, 6.0  ;;  %6990 = vst.msk [vmem:[#allocation4 + $0x81] sm:$0xff] %vm6829_vm5, %v6932_v0  ;;  %v7463_v10 = vadd.f32 %v7447_v41, %v7410_v58  ;;  %v6772_v24 = vmin.f32 %v6708_v3, 6.0  ;;  %v7182_v31 = vmul.f32 %v13232_v43, %v13416_v40  ;;  %v10125_v50 = vpop.f32.mrf.mxu0  ;;  %v14210_v23 = vld [vmem:[#allocation48_spill] sm:$0xff]  ;;  %v5807_v19 = vpop.f32.mrf.mxu1 }
 0x328   :  { %v6771_v56 = vmin.f32 %v6707_v36, 6.0  ;;  %v6710_v7 = vmax.f32 %v6646_v54, 0.0  ;;  %v13480_v47 = vadd.f32 %v5797_v35, %v14210_v23  ;;  %v7235_v41 = vmul.f32 %v13243_v11, %v13418_v17  ;;  %v13484_v29 = vld [vmem:[#allocation4 + $0x52] sm:$0xff] }
 0x329   :  { %v7486_v18 = vadd.f32 %v13317_v2, %v7463_v10  ;;  %v6816_v42 = vmax.f32 %v6770_v39, %v6772_v24  ;;  %v7145_v38 = vadd.f32 %v7129_v8, %v7092_v26  ;;  %v7288_v1 = vmul.f32 %v13258_v4, %v13432_v14  ;;  %v6425_v0 = vpop.f32.mrf.mxu0 }
 0x32a   :  { %v6815_v58 = vmax.f32 %v6769_v61, %v6771_v56  ;;  %v13489_v3 = vmin.f32 %v6710_v7, 6.0  ;;  %v7342_v35 = vmul.f32 %v13143_v16, %v13475_v12  ;;  %v7395_v36 = vmul.f32 %v13165_v6, %v13477_v15  ;;  %v10057_v61 = vpop.f32.mrf.mxu1  ;;  %v14211_v56 = vld [vmem:[#allocation49_spill] sm:$0xff] }
 0x32b   :  { %v6878_v45 = vld [vmem:[#allocation3 + $0x80] ss:$2 sm:$0xff]  ;;  %v6910_v54 = vld [vmem:[#allocation3 + $0x81] ss:$2 sm:$0xff]  ;;  %v7502_v23 = vmax.f32 %v7486_v18, 0.0  ;;  %6849 = vst.msk [vmem:[#allocation3 + $0x98] sm:$0xff] %vm6829_vm5, %v6816_v42  ;;  %v7198_v39 = vadd.f32 %v7182_v31, %v7145_v38  ;;  %v7448_v26 = vmul.f32 %v13181_v13, %v13484_v29  ;;  %v6574_v10 = vadd.f32 %v6415_v25, %v13312_v44  ;;  %v10128_v24 = vpop.f32.mrf.mxu0 }
 0x32c   :  { %v6933_v8 = vmax.f32 %v6878_v45, %v6910_v54  ;;  %6848 = vst.msk [vmem:[#allocation3 + $0x90] sm:$0xff] %vm6829_vm5, %v6815_v58  ;;  %v13501_v7 = vadd.f32 %v10054_v32, %v14211_v56  ;;  %v6577_v57 = vadd.f32 %v10125_v50, %v13325_v22  ;;  %v6576_v18 = vadd.f32 %v6425_v0, %v13331_v59  ;;  %v14212_v38 = vld [vmem:[#allocation50_spill] sm:$0xff]  ;;  %v14213_v59 = vld [vmem:[#allocation51_spill] sm:$0xff] }
 0x32d   :  { %v7518_v33 = vmin.f32 %v7502_v23, 6.0  ;;  %v7251_v42 = vadd.f32 %v7235_v41, %v7198_v39  ;;  %v6645_v31 = vadd.f32 %v13039_v21, %v6574_v10  ;;  %v13507_v20 = vadd.f32 %v5807_v19, %v14212_v38  ;;  %v6435_v44 = vpop.f32.mrf.mxu0  ;;  %v13513_v25 = vld [vmem:[%s13976_s2] ss:$0 sm:$0xff]  ;;  %v13547_v38 = vld [vmem:[#allocation4 + $0x62] sm:$0xff] }
 0x32e   :  { %6991 = vst.msk [vmem:[#allocation4 + $0xb1] sm:$0xff] %vm6829_vm5, %v6933_v8  ;;  %v6648_v32 = vadd.f32 %v13513_v25, %v6577_v57  ;;  %v6647_v22 = vadd.f32 %v13513_v25, %v6576_v18  ;;  %v13518_v50 = vadd.f32 %v10057_v61, %v14213_v59  ;;  %v6579_v21 = vadd.f32 %v10128_v24, %v13341_v51  ;;  %v13525_v0 = vld [vmem:[%s13977_s3] ss:$0 sm:$0xff]  ;;  %v13532_v57 = vld [vmem:[%s13977_s3 + $0x1] ss:$0 sm:$0xff] }
 0x32f   :  { %10163 = vmatprep.mubr.msk.f32.mxu1 %vm6829_vm5, %v7518_v33  ;;  %v7304_v41 = vadd.f32 %v7288_v1, %v7251_v42  ;;  %v6709_v19 = vmax.f32 %v6645_v31, 0.0  ;;  %v7024_v58 = vmul.f32 %v13525_v0, %v13416_v40  ;;  %v7077_v51 = vmul.f32 %v13532_v57, %v13418_v17  ;;  %v10131_v45 = vpop.f32.mrf.mxu0  ;;  %v13539_v39 = vld [vmem:[#allocation4 + $0x60] sm:$0xff] }
 0x330   :  { %v6712_v33 = vmax.f32 %v6648_v32, 0.0  ;;  %v6711_v1 = vmax.f32 %v6647_v22, 0.0  ;;  %v6650_v54 = vadd.f32 %v13513_v25, %v6579_v21  ;;  %v7130_v23 = vmul.f32 %v13063_v49, %v13432_v14  ;;  %v13545_v31 = vld [vmem:[#allocation4 + $0x61] sm:$0xff] }
 0x331   :  { %v7358_v10 = vadd.f32 %v7342_v35, %v7304_v41  ;;  %v6773_v40 = vmin.f32 %v6709_v19, 6.0  ;;  %v7093_v61 = vadd.f32 %v7077_v51, %v7024_v58  ;;  %v7183_v24 = vmul.f32 %v13232_v43, %v13475_v12  ;;  %v6445_v8 = vpop.f32.mrf.mxu0 }
 0x332   :  { %v6776_v56 = vmin.f32 %v6712_v33, 6.0  ;;  %v6775_v18 = vmin.f32 %v6711_v1, 6.0  ;;  %v6714_v17 = vmax.f32 %v6650_v54, 0.0  ;;  %v7236_v42 = vmul.f32 %v13243_v11, %v13477_v15 }
 0x333   :  { %v6880_v49 = vld [vmem:[#allocation3 + $0x90] ss:$2 sm:$0xff]  ;;  %v6912_v14 = vld [vmem:[#allocation3 + $0x91] ss:$2 sm:$0xff]  ;;  %v7411_v32 = vadd.f32 %v7395_v36, %v7358_v10  ;;  %v7146_v35 = vadd.f32 %v7130_v23, %v7093_v61  ;;  %v7289_v22 = vmul.f32 %v13258_v4, %v13484_v29  ;;  %v7343_v59 = vmul.f32 %v13143_v16, %v13539_v39  ;;  %v10134_v21 = vpop.f32.mrf.mxu0 }
 0x334   :  { %v6934_v41 = vmax.f32 %v6880_v49, %v6912_v14  ;;  %v6818_v19 = vmax.f32 %v13489_v3, %v6776_v56  ;;  %v6817_v58 = vmax.f32 %v6773_v40, %v6775_v18  ;;  %v13554_v51 = vmin.f32 %v6714_v17, 6.0 }
 0x335   :  { %v7464_v33 = vadd.f32 %v7448_v26, %v7411_v32  ;;  %v7199_v1 = vadd.f32 %v7183_v24, %v7146_v35  ;;  %v7396_v54 = vmul.f32 %v13165_v6, %v13545_v31  ;;  %v7449_v36 = vmul.f32 %v13181_v13, %v13547_v38  ;;  %v6455_v23 = vpop.f32.mrf.mxu0 }
 0x336   :  { %6992 = vst.msk [vmem:[#allocation4 + $0xc1] sm:$0xff] %vm6829_vm5, %v6934_v41  ;;  %6851 = vst.msk [vmem:[#allocation3 + $0xa8] sm:$0xff] %vm6829_vm5, %v6818_v19  ;;  %v6578_v3 = vadd.f32 %v6435_v44, %v13350_v5  ;;  %v6581_v10 = vadd.f32 %v10131_v45, %v13365_v46  ;;  %v6580_v26 = vadd.f32 %v6445_v8, %v13369_v62  ;;  %v13579_v8 = vld [vmem:[%s13977_s3 + $0x2] ss:$0 sm:$0xff] }
 0x337   :  { %6850 = vst.msk [vmem:[#allocation3 + $0xa0] sm:$0xff] %vm6829_vm5, %v6817_v58  ;;  %v6583_v40 = vadd.f32 %v10134_v21, %v13381_v60  ;;  %v7487_v61 = vadd.f32 %v13317_v2, %v7464_v33  ;;  %v7252_v24 = vadd.f32 %v7236_v42, %v7199_v1  ;;  %v7025_v56 = vmul.f32 %v13525_v0, %v13475_v12  ;;  %v10137_v17 = vpop.f32.mrf.mxu0  ;;  %v13585_v58 = vld [vmem:[#allocation4 + $0x70] sm:$0xff] }
 0x338   :  { %v7078_v18 = vmul.f32 %v13532_v57, %v13477_v15  ;;  %v6649_v49 = vadd.f32 %v13513_v25, %v6578_v3  ;;  %v6652_v5 = vadd.f32 %v13513_v25, %v6581_v10  ;;  %v6651_v46 = vadd.f32 %v13513_v25, %v6580_v26 }
 0x339   :  { %v6654_v62 = vadd.f32 %v13513_v25, %v6583_v40  ;;  %v7503_v44 = vmax.f32 %v7487_v61, 0.0  ;;  %v7305_v60 = vadd.f32 %v7289_v22, %v7252_v24  ;;  %v7131_v12 = vmul.f32 %v13579_v8, %v13484_v29  ;;  %v6465_v15 = vpop.f32.mrf.mxu0  ;;  %v13589_v29 = vld [vmem:[#allocation4 + $0x71] sm:$0xff] }
 0x33a   :  { %v7094_v45 = vadd.f32 %v7078_v18, %v7025_v56  ;;  %v6713_v42 = vmax.f32 %v6649_v49, 0.0  ;;  %v6716_v14 = vmax.f32 %v6652_v5, 0.0  ;;  %v6715_v32 = vmax.f32 %v6651_v46, 0.0  ;;  %v13591_v40 = vld [vmem:[#allocation4 + $0x72] sm:$0xff] }
 0x33b   :  { %v6718_v35 = vmax.f32 %v6654_v62, 0.0  ;;  %v7519_v21 = vmin.f32 %v7503_v44, 6.0  ;;  %v7359_v41 = vadd.f32 %v7343_v59, %v7305_v60  ;;  %v7184_v22 = vmul.f32 %v13232_v43, %v13539_v39  ;;  %v10140_v33 = vpop.f32.mrf.mxu0 }
 0x33c   :  { %v7147_v19 = vadd.f32 %v7131_v12, %v7094_v45  ;;  %v6777_v1 = vmin.f32 %v6713_v42, 6.0  ;;  %v6780_v3 = vmin.f32 %v6716_v14, 6.0  ;;  %v6779_v10 = vmin.f32 %v6715_v32, 6.0 }
 0x33d   :  { %v13587_v26 = vmin.f32 %v6718_v35, 6.0  ;;  %10164 = vmatmul.mubr.msk.f32.gmra.mxu1 %vm6829_vm5, %v7519_v21  ;;  %v7412_v24 = vadd.f32 %v7396_v54, %v7359_v41  ;;  %v7237_v18 = vmul.f32 %v13243_v11, %v13545_v31  ;;  %v7290_v49 = vmul.f32 %v13258_v4, %v13547_v38  ;;  %v13598_v5 = vpop.f32.mrf.mxu0 }
 0x33e   :  { %v6882_v61 = vld [vmem:[#allocation3 + $0xa0] ss:$2 sm:$0xff]  ;;  %v6914_v59 = vld [vmem:[#allocation3 + $0xa1] ss:$2 sm:$0xff]  ;;  %v7200_v56 = vadd.f32 %v7184_v22, %v7147_v19  ;;  %v6820_v62 = vmax.f32 %v13554_v51, %v6780_v3  ;;  %v6819_v44 = vmax.f32 %v6777_v1, %v6779_v10  ;;  %v7344_v60 = vmul.f32 %v13143_v16, %v13585_v58 }
 0x33f   :  { %v6935_v46 = vmax.f32 %v6882_v61, %v6914_v59  ;;  %v7465_v45 = vadd.f32 %v7449_v36, %v7412_v24  ;;  %v7397_v54 = vmul.f32 %v13165_v6, %v13589_v29  ;;  %v7450_v42 = vmul.f32 %v13181_v13, %v13591_v40  ;;  %v10143_v14 = vpop.f32.mrf.mxu0  ;;  %v7325_v24 = vld [vmem:[#allocation4 + $0x80] sm:$0xff] }
 0x340   :  { %v7253_v12 = vadd.f32 %v7237_v18, %v7200_v56  ;;  %6853 = vst.msk [vmem:[#allocation3 + $0xb8] sm:$0xff] %vm6829_vm5, %v6820_v62  ;;  %6852 = vst.msk [vmem:[#allocation3 + $0xb0] sm:$0xff] %vm6829_vm5, %v6819_v44  ;;  %v6582_v51 = vadd.f32 %v6455_v23, %v13389_v53  ;;  %v6585_v32 = vadd.f32 %v10137_v17, %v13396_v63  ;;  %v7431_v44 = vld [vmem:[#allocation4 + $0x82] sm:$0xff] }
 0x341   :  { %6993 = vst.msk [vmem:[#allocation4 + $0xd1] sm:$0xff] %vm6829_vm5, %v6935_v46  ;;  %v6584_v16 = vadd.f32 %v6465_v15, %v13406_v28  ;;  %v6587_v36 = vadd.f32 %v10140_v33, %v13412_v27  ;;  %v7488_v6 = vadd.f32 %v13317_v2, %v7465_v45  ;;  %v7026_v13 = vmul.f32 %v13525_v0, %v13539_v39  ;;  %v6485_v41 = vpop.f32.mrf.mxu0 }
 0x342   :  { %v7306_v35 = vadd.f32 %v7290_v49, %v7253_v12  ;;  %v7079_v21 = vmul.f32 %v13532_v57, %v13545_v31  ;;  %v6653_v19 = vadd.f32 %v13513_v25, %v6582_v51  ;;  %v6656_v53 = vadd.f32 %v13513_v25, %v6585_v32 }
 0x343   :  { %v6655_v63 = vadd.f32 %v13513_v25, %v6584_v16  ;;  %v6658_v28 = vadd.f32 %v13513_v25, %v6587_v36  ;;  %v7504_v23 = vmax.f32 %v7488_v6, 0.0  ;;  %v7132_v15 = vmul.f32 %v13579_v8, %v13547_v38  ;;  %v13625_v22 = vpop.f32.mrf.mxu0  ;;  %v7378_v38 = vld [vmem:[#allocation4 + $0x81] sm:$0xff] }
 0x344   :  { %v7360_v27 = vadd.f32 %v7344_v60, %v7306_v35  ;;  %v7095_v17 = vadd.f32 %v7079_v21, %v7026_v13  ;;  %v6717_v39 = vmax.f32 %v6653_v19, 0.0  ;;  %v6720_v33 = vmax.f32 %v6656_v53, 0.0  ;;  %v13640_v13 = vld [vmem:[%s13977_s3 + $0x6] ss:$0 sm:$0xff]  ;;  %v13647_v53 = vld [vmem:[%s13977_s3 + $0x7] ss:$0 sm:$0xff] }
 0x345   :  { %v6719_v31 = vmax.f32 %v6655_v63, 0.0  ;;  %v6722_v1 = vmax.f32 %v6658_v28, 0.0  ;;  %v7520_v3 = vmin.f32 %v7504_v23, 6.0  ;;  %v7185_v59 = vmul.f32 %v13232_v43, %v13585_v58  ;;  %v6495_v56 = vpop.f32.mrf.mxu0 }
 0x346   :  { %v7413_v10 = vadd.f32 %v7397_v54, %v7360_v27  ;;  %v7148_v61 = vadd.f32 %v7132_v15, %v7095_v17  ;;  %v6781_v18 = vmin.f32 %v6717_v39, 6.0  ;;  %v6784_v49 = vmin.f32 %v6720_v33, 6.0 }
 0x347   :  { %v6783_v46 = vmin.f32 %v6719_v31, 6.0  ;;  %v13629_v62 = vmin.f32 %v6722_v1, 6.0  ;;  %10166 = vmatprep.mubr.msk.f32.mxu1 %vm6829_vm5, %v7520_v3  ;;  %v6884_v60 = vld [vmem:[#allocation3 + $0xb0] ss:$2 sm:$0xff]  ;;  %v6916_v45 = vld [vmem:[#allocation3 + $0xb1] ss:$2 sm:$0xff]  ;;  %v7238_v54 = vmul.f32 %v13243_v11, %v13589_v29  ;;  %v7291_v32 = vmul.f32 %v13258_v4, %v13591_v40  ;;  %v10149_v16 = vpop.f32.mrf.mxu0 }
 0x348   :  { %v7466_v12 = vadd.f32 %v7450_v42, %v7413_v10  ;;  %v7201_v51 = vadd.f32 %v7185_v59, %v7148_v61  ;;  %v6936_v36 = vmax.f32 %v6884_v60, %v6916_v45  ;;  %v6822_v6 = vmax.f32 %v13587_v26, %v6784_v49  ;;  %v13653_v26 = vld [vmem:[%s13977_s3 + $0x8] ss:$0 sm:$0xff] }
 0x349   :  { %v6821_v35 = vmax.f32 %v6781_v18, %v6783_v46  ;;  %v7345_v21 = vmul.f32 %v13640_v13, %v7325_v24  ;;  %v7398_v63 = vmul.f32 %v13647_v53, %v7378_v38  ;;  %v7451_v28 = vmul.f32 %v13653_v26, %v7431_v44  ;;  %v6505_v23 = vpop.f32.mrf.mxu0 }
 0x34a   :  { %v7489_v42 = vadd.f32 %v13317_v2, %v7466_v12  ;;  %v7254_v19 = vadd.f32 %v7238_v54, %v7201_v51  ;;  %6994 = vst.msk [vmem:[#allocation4 + $0xe1] sm:$0xff] %vm6829_vm5, %v6936_v36  ;;  %6855 = vst.msk [vmem:[#allocation3 + $0xc8] sm:$0xff] %vm6829_vm5, %v6822_v6  ;;  %v6586_v27 = vadd.f32 %v13598_v5, %v13421_v37  ;;  %v7167_v6 = vld [vmem:[#allocation4 + $0xb0] sm:$0xff] }
 0x34b   :  { %6854 = vst.msk [vmem:[#allocation3 + $0xc0] sm:$0xff] %vm6829_vm5, %v6821_v35  ;;  %v6589_v17 = vadd.f32 %v10143_v14, %v13427_v48  ;;  %v6588_v15 = vadd.f32 %v6485_v41, %v13435_v55  ;;  %v7027_v39 = vmul.f32 %v13525_v0, %v13585_v58  ;;  %v7080_v1 = vmul.f32 %v13532_v57, %v13589_v29  ;;  %v10152_v55 = vpop.f32.mrf.mxu0  ;;  %v5817_v35 = vpop.f32.mrf.mxu1 }
 0x34c   :  { %v7505_v33 = vmax.f32 %v7489_v42, 0.0  ;;  %v7307_v31 = vadd.f32 %v7291_v32, %v7254_v19  ;;  %v7133_v3 = vmul.f32 %v13579_v8, %v13591_v40  ;;  %v6657_v10 = vadd.f32 %v13513_v25, %v6586_v27 }
 0x34d   :  { %v6660_v61 = vadd.f32 %v13513_v25, %v6589_v17  ;;  %v6659_v37 = vadd.f32 %v13513_v25, %v6588_v15  ;;  %v7186_v48 = vmul.f32 %v13232_v43, %v7325_v24  ;;  %v7096_v58 = vadd.f32 %v7080_v1, %v7027_v39  ;;  %v7220_v17 = vld [vmem:[#allocation4 + $0xb1] sm:$0xff] }
 0x34e   :  { %v7521_v5 = vmin.f32 %v7505_v33, 6.0  ;;  %v7361_v14 = vadd.f32 %v7345_v21, %v7307_v31  ;;  %v7239_v41 = vmul.f32 %v13243_v11, %v7378_v38  ;;  %v6721_v59 = vmax.f32 %v6657_v10, 0.0  ;;  %v6515_v11 = vpop.f32.mrf.mxu0  ;;  %v14214_v39 = vld [vmem:[#allocation29_spill] sm:$0xff] }
 0x34f   :  { %v6724_v18 = vmax.f32 %v6660_v61, 0.0  ;;  %v6723_v29 = vmax.f32 %v6659_v37, 0.0  ;;  %v7292_v49 = vmul.f32 %v13258_v4, %v7431_v44  ;;  %v7149_v46 = vadd.f32 %v7133_v3, %v7096_v58  ;;  %v7273_v10 = vld [vmem:[#allocation4 + $0xb2] sm:$0xff]  ;;  %v13700_v37 = vld [vmem:[#allocation4 + $0xc0] sm:$0xff] }
 0x350   :  { %10167 = vmatmul.mubr.msk.f32.gmra.mxu1 %vm6829_vm5, %v7521_v5  ;;  %v7414_v40 = vadd.f32 %v7398_v63, %v7361_v14  ;;  %v6591_v60 = vadd.f32 %v13625_v22, %v13454_v34  ;;  %v6590_v43 = vadd.f32 %v6495_v56, %v13459_v9  ;;  %v6785_v24 = vmin.f32 %v6721_v59, 6.0  ;;  %v10155_v15 = vpop.f32.mrf.mxu0  ;;  %v14215_v5 = vld [vmem:[#allocation30_spill] sm:$0xff] }
 0x351   :  { %v6788_v45 = vmin.f32 %v6724_v18, 6.0  ;;  %v6787_v12 = vmin.f32 %v6723_v29, 6.0  ;;  %v6593_v51 = vadd.f32 %v10149_v16, %v13467_v30  ;;  %v7202_v36 = vadd.f32 %v7186_v48, %v7149_v46  ;;  %v13702_v48 = vld [vmem:[#allocation4 + $0xc1] sm:$0xff] }
 0x352   :  { %v6886_v38 = vld [vmem:[#allocation3 + $0xc0] ss:$2 sm:$0xff]  ;;  %v6918_v54 = vld [vmem:[#allocation3 + $0xc1] ss:$2 sm:$0xff]  ;;  %v7467_v32 = vadd.f32 %v7451_v28, %v7414_v40  ;;  %v6662_v4 = vadd.f32 %v13513_v25, %v6591_v60  ;;  %v6661_v44 = vadd.f32 %v13513_v25, %v6590_v43  ;;  %v6592_v63 = vadd.f32 %v6505_v23, %v13480_v47  ;;  %v6525_v60 = vpop.f32.mrf.mxu0 }
 0x353   :  { %v6937_v21 = vmax.f32 %v6886_v38, %v6918_v54  ;;  %v6824_v34 = vmax.f32 %v13629_v62, %v6788_v45  ;;  %v6823_v9 = vmax.f32 %v6785_v24, %v6787_v12  ;;  %v6664_v22 = vadd.f32 %v13513_v25, %v6593_v51  ;;  %v13693_v62 = vld [vmem:[%s13977_s3 + $0x3] ss:$0 sm:$0xff]  ;;  %v13716_v40 = vld [vmem:[%s13977_s3 + $0x5] ss:$0 sm:$0xff]  ;;  %v14216_v43 = vld [vmem:[#allocation31_spill] sm:$0xff] }
 0x354   :  { %v7490_v56 = vadd.f32 %v13317_v2, %v7467_v32  ;;  %v7255_v30 = vadd.f32 %v7239_v41, %v7202_v36  ;;  %v6726_v16 = vmax.f32 %v6662_v4, 0.0  ;;  %v6725_v42 = vmax.f32 %v6661_v44, 0.0  ;;  %v13708_v41 = vld [vmem:[%s13977_s3 + $0x4] ss:$0 sm:$0xff] }
 0x355   :  { %6995 = vst.msk [vmem:[#allocation4 + $0xf1] sm:$0xff] %vm6829_vm5, %v6937_v21  ;;  %6857 = vst.msk [vmem:[#allocation3 + $0xd8] sm:$0xff] %vm6829_vm5, %v6824_v34  ;;  %v6728_v19 = vmax.f32 %v6664_v22, 0.0  ;;  %v6595_v28 = vadd.f32 %v10152_v55, %v13501_v7  ;;  %v7187_v27 = vmul.f32 %v13693_v62, %v7167_v6  ;;  %v5888_v33 = vadd.f32 %v5817_v35, %v14214_v39  ;;  %v13711_v18 = vld [vmem:[#allocation4 + $0xc2] sm:$0xff]  ;;  %v14217_v35 = vld [vmem:[#allocation32_spill] sm:$0xff] }
 0x356   :  { %6856 = vst.msk [vmem:[#allocation3 + $0xd0] sm:$0xff] %vm6829_vm5, %v6823_v9  ;;  %v7506_v31 = vmax.f32 %v7490_v56, 0.0  ;;  %v7308_v1 = vadd.f32 %v7292_v49, %v7255_v30  ;;  %v6790_v3 = vmin.f32 %v6726_v16, 6.0  ;;  %v6663_v47 = vadd.f32 %v13513_v25, %v6592_v63 }
 0x357   :  { %v6792_v61 = vmin.f32 %v6728_v19, 6.0  ;;  %v6666_v7 = vadd.f32 %v13513_v25, %v6595_v28  ;;  %v7203_v23 = vadd.f32 %v7187_v27, %v13175_v52  ;;  %v6789_v58 = vmin.f32 %v6725_v42, 6.0 }
 0x358   :  { %v7522_v55 = vmin.f32 %v7506_v31, 6.0  ;;  %v7362_v14 = vadd.f32 %v14215_v5, %v7308_v1  ;;  %v7240_v59 = vmul.f32 %v13708_v41, %v7220_v17  ;;  %v6727_v49 = vmax.f32 %v6663_v47, 0.0  ;;  %v7434_v5 = vld [vmem:[#allocation4 + $0xd2] sm:$0xff] }
 0x359   :  { %v6826_v29 = vmax.f32 %v6790_v3, %v6792_v61  ;;  %v6730_v52 = vmax.f32 %v6666_v7, 0.0  ;;  %v7293_v46 = vmul.f32 %v13716_v40, %v7273_v10  ;;  %v7347_v12 = vmul.f32 %v13640_v13, %v13700_v37  ;;  %v7328_v7 = vld [vmem:[#allocation4 + $0xd0] sm:$0xff] }
 0x35a   :  { %10169 = vmatprep.mubr.msk.f32.mxu1 %vm6829_vm5, %v7522_v55  ;;  %v7415_v24 = vadd.f32 %v14216_v43, %v7362_v14  ;;  %v7256_v45 = vadd.f32 %v7240_v59, %v7203_v23  ;;  %v7400_v51 = vmul.f32 %v13647_v53, %v13702_v48  ;;  %v6791_v38 = vmin.f32 %v6727_v49, 6.0  ;;  %v13748_v14 = vld [vmem:[%s13978_s4] ss:$0 sm:$0xff] }
 0x35b   :  { %6859 = vst.msk [vmem:[#allocation3 + $0xe8] sm:$0xff] %vm6829_vm5, %v6826_v29  ;;  %v7453_v54 = vmul.f32 %v13653_v26, %v13711_v18  ;;  %v6594_v32 = vadd.f32 %v6515_v11, %v13507_v20  ;;  %v6597_v36 = vadd.f32 %v10155_v15, %v13518_v50  ;;  %v6596_v9 = vadd.f32 %v6525_v60, %v5888_v33 }
 0x35c   :  { %v7468_v21 = vadd.f32 %v14217_v35, %v7415_v24  ;;  %v7309_v34 = vadd.f32 %v7293_v46, %v7256_v45  ;;  %v7029_v22 = vmul.f32 %v13525_v0, %v7167_v6  ;;  %v6825_v30 = vmax.f32 %v6789_v58, %v6791_v38  ;;  %v7329_v38 = vld [vmem:[#allocation4 + $0xe0] sm:$0xff] }
 0x35d   :  { %v6888_v4 = vld [vmem:[#allocation3 + $0xd0] ss:$2 sm:$0xff]  ;;  %v6920_v44 = vld [vmem:[#allocation3 + $0xd1] ss:$2 sm:$0xff]  ;;  %v6665_v16 = vadd.f32 %v13513_v25, %v6594_v32  ;;  %v6668_v42 = vadd.f32 %v13513_v25, %v6597_v36  ;;  %v6667_v20 = vadd.f32 %v13513_v25, %v6596_v9  ;;  %v7082_v50 = vmul.f32 %v13532_v57, %v7220_v17  ;;  %v7382_v35 = vld [vmem:[#allocation4 + $0xe1] sm:$0xff] }
 0x35e   :  { %v6938_v56 = vmax.f32 %v6888_v4, %v6920_v44  ;;  %v7491_v19 = vadd.f32 %v13317_v2, %v7468_v21  ;;  %v7363_v63 = vadd.f32 %v7347_v12, %v7309_v34  ;;  %6858 = vst.msk [vmem:[#allocation3 + $0xe0] sm:$0xff] %vm6829_vm5, %v6825_v30  ;;  %v7135_v6 = vmul.f32 %v13579_v8, %v7273_v10  ;;  %v7381_v10 = vld [vmem:[#allocation4 + $0xd1] sm:$0xff]  ;;  %v7435_v21 = vld [vmem:[#allocation4 + $0xe2] sm:$0xff] }
 0x35f   :  { %v6729_v11 = vmax.f32 %v6665_v16, 0.0  ;;  %v6732_v28 = vmax.f32 %v6668_v42, 0.0  ;;  %v7188_v27 = vmul.f32 %v13693_v62, %v13700_v37  ;;  %v6731_v33 = vmax.f32 %v6667_v20, 0.0  ;;  %v7330_v20 = vld [vmem:[#allocation4 + $0xf0] sm:$0xff] }
 0x360   :  { %6996 = vst.msk [vmem:[#allocation4 + $0x101] sm:$0xff] %vm6829_vm5, %v6938_v56  ;;  %v7507_v15 = vmax.f32 %v7491_v19, 0.0  ;;  %v7416_v39 = vadd.f32 %v7400_v51, %v7363_v63  ;;  %v7098_v2 = vadd.f32 %v7082_v50, %v7029_v22  ;;  %v6794_v31 = vmin.f32 %v6730_v52, 6.0 }
 0x361   :  { %v6793_v1 = vmin.f32 %v6729_v11, 6.0  ;;  %v6796_v25 = vmin.f32 %v6732_v28, 6.0  ;;  %v6795_v61 = vmin.f32 %v6731_v33, 6.0  ;;  %v7241_v55 = vmul.f32 %v13708_v41, %v13702_v48  ;;  %v7383_v33 = vld [vmem:[#allocation4 + $0xf1] sm:$0xff] }
 0x362   :  { %v7523_v3 = vmin.f32 %v7507_v15, 6.0  ;;  %v7469_v17 = vadd.f32 %v7453_v54, %v7416_v39  ;;  %v7151_v47 = vadd.f32 %v7135_v6, %v7098_v2  ;;  %v7030_v49 = vmul.f32 %v13525_v0, %v13700_v37  ;;  %v7436_v2 = vld [vmem:[#allocation4 + $0xf2] sm:$0xff] }
 0x363   :  { %v6828_v23 = vmax.f32 %v6794_v31, %v6796_v25  ;;  %v6827_v59 = vmax.f32 %v6793_v1, %v6795_v61  ;;  %v7294_v52 = vmul.f32 %v13716_v40, %v13711_v18  ;;  %v7348_v46 = vmul.f32 %v13640_v13, %v7328_v7 }
 0x364   :  { %10170 = vmatmul.mubr.msk.f32.gmra.mxu1 %vm6829_vm5, %v7523_v3  ;;  %v7492_v58 = vadd.f32 %v13748_v14, %v7469_v17  ;;  %v7204_v29 = vadd.f32 %v7188_v27, %v7151_v47  ;;  %v7083_v60 = vmul.f32 %v13532_v57, %v13702_v48  ;;  %v7401_v51 = vmul.f32 %v13647_v53, %v7381_v10 }
 0x365   :  { %6861 = vst.msk [vmem:[#allocation3 + $0xf8] sm:$0xff] %vm6829_vm5, %v6828_v23  ;;  %v6890_v43 = vld [vmem:[#allocation3 + $0xe0] ss:$2 sm:$0xff]  ;;  %v6922_v24 = vld [vmem:[#allocation3 + $0xe1] ss:$2 sm:$0xff]  ;;  %6860 = vst.msk [vmem:[#allocation3 + $0xf0] sm:$0xff] %vm6829_vm5, %v6827_v59  ;;  %v7454_v37 = vmul.f32 %v13653_v26, %v7434_v5  ;;  %v7136_v36 = vmul.f32 %v13579_v8, %v13711_v18  ;;  %v7189_v4 = vmul.f32 %v13693_v62, %v7328_v7 }
 0x366   :  { %v7508_v45 = vmax.f32 %v7492_v58, 0.0  ;;  %v7257_v12 = vadd.f32 %v7241_v55, %v7204_v29  ;;  %v6939_v54 = vmax.f32 %v6890_v43, %v6922_v24  ;;  %v7099_v32 = vadd.f32 %v7083_v60, %v7030_v49 }
 0x367   :  { %v7031_v34 = vmul.f32 %v13525_v0, %v7328_v7  ;;  %v7084_v9 = vmul.f32 %v13532_v57, %v7381_v10  ;;  %v7242_v56 = vmul.f32 %v13708_v41, %v7381_v10  ;;  %v7295_v30 = vmul.f32 %v13716_v40, %v7434_v5  ;;  %v7331_v49 = vld [vmem:[#allocation4 + $0x100] sm:$0xff] }
 0x368   :  { %v7524_v44 = vmin.f32 %v7508_v45, 6.0  ;;  %v7310_v48 = vadd.f32 %v7294_v52, %v7257_v12  ;;  %6997 = vst.msk [vmem:[#allocation4 + $0x111] sm:$0xff] %vm6829_vm5, %v6939_v54  ;;  %v7152_v22 = vadd.f32 %v7136_v36, %v7099_v32  ;;  %v7349_v16 = vmul.f32 %v13640_v13, %v7329_v38 }
 0x369   :  { %v7100_v42 = vadd.f32 %v7084_v9, %v7031_v34  ;;  %v7137_v19 = vmul.f32 %v13579_v8, %v7434_v5  ;;  %v7190_v63 = vmul.f32 %v13693_v62, %v7329_v38  ;;  %v7402_v11 = vmul.f32 %v13647_v53, %v7382_v35 }
 0x36a   :  { %10172 = vmatprep.mubr.msk.f32.mxu1 %vm6829_vm5, %v7524_v44  ;;  %v7364_v18 = vadd.f32 %v7348_v46, %v7310_v48  ;;  %v7205_v50 = vadd.f32 %v7189_v4, %v7152_v22  ;;  %v7455_v28 = vmul.f32 %v13653_v26, %v7435_v21  ;;  %v7032_v6 = vmul.f32 %v13525_v0, %v7329_v38  ;;  %v7437_v4 = vld [vmem:[#allocation4 + $0x102] sm:$0xff] }
 0x36b   :  { %v7153_v15 = vadd.f32 %v7137_v19, %v7100_v42  ;;  %v7243_v39 = vmul.f32 %v13708_v41, %v7382_v35  ;;  %v7085_v31 = vmul.f32 %v13532_v57, %v7382_v35  ;;  %v7296_v17 = vmul.f32 %v13716_v40, %v7435_v21 }
 0x36c   :  { %v7417_v27 = vadd.f32 %v7401_v51, %v7364_v18  ;;  %v6892_v1 = vld [vmem:[#allocation3 + $0xf0] ss:$2 sm:$0xff]  ;;  %v6924_v25 = vld [vmem:[#allocation3 + $0xf1] ss:$2 sm:$0xff]  ;;  %v7258_v3 = vadd.f32 %v7242_v56, %v7205_v50  ;;  %v7138_v61 = vmul.f32 %v13579_v8, %v7435_v21  ;;  %v7191_v47 = vmul.f32 %v13693_v62, %v7330_v20  ;;  %v7384_v51 = vld [vmem:[#allocation4 + $0x101] sm:$0xff] }
 0x36d   :  { %v6940_v7 = vmax.f32 %v6892_v1, %v6924_v25  ;;  %v7206_v55 = vadd.f32 %v7190_v63, %v7153_v15  ;;  %v7101_v10 = vadd.f32 %v7085_v31, %v7032_v6  ;;  %v7350_v58 = vmul.f32 %v13640_v13, %v7330_v20 }
 0x36e   :  { %v7470_v23 = vadd.f32 %v7454_v37, %v7417_v27  ;;  %v7311_v5 = vadd.f32 %v7295_v30, %v7258_v3  ;;  %v7403_v59 = vmul.f32 %v13647_v53, %v7383_v33  ;;  %v7456_v29 = vmul.f32 %v13653_v26, %v7436_v2 }
 0x36f   :  { %6998 = vst.msk [vmem:[#allocation4 + $0x121] sm:$0xff] %vm6829_vm5, %v6940_v7  ;;  %v7259_v46 = vadd.f32 %v7243_v39, %v7206_v55  ;;  %v7154_v60 = vadd.f32 %v7138_v61, %v7101_v10  ;;  %v7033_v43 = vmul.f32 %v13525_v0, %v7330_v20  ;;  %v7244_v45 = vmul.f32 %v13708_v41, %v7383_v33  ;;  %v7332_v42 = vld [vmem:[#allocation4 + $0x110] sm:$0xff] }
 0x370   :  { %v7493_v52 = vadd.f32 %v13748_v14, %v7470_v23  ;;  %v7365_v24 = vadd.f32 %v7349_v16, %v7311_v5  ;;  %v7297_v12 = vmul.f32 %v13716_v40, %v7436_v2  ;;  %v7086_v37 = vmul.f32 %v13532_v57, %v7383_v33 }
 0x371   :  { %v7312_v54 = vadd.f32 %v7296_v17, %v7259_v46  ;;  %v7207_v32 = vadd.f32 %v7191_v47, %v7154_v60  ;;  %v7351_v36 = vmul.f32 %v13640_v13, %v7331_v49  ;;  %v7139_v35 = vmul.f32 %v13579_v8, %v7436_v2  ;;  %v7438_v47 = vld [vmem:[#allocation4 + $0x112] sm:$0xff] }
 0x372   :  { %v7509_v38 = vmax.f32 %v7493_v52, 0.0  ;;  %v7418_v44 = vadd.f32 %v7402_v11, %v7365_v24  ;;  %v7102_v48 = vadd.f32 %v7086_v37, %v7033_v43  ;;  %v7192_v21 = vmul.f32 %v13693_v62, %v7331_v49  ;;  %v7385_v11 = vld [vmem:[#allocation4 + $0x111] sm:$0xff] }
 0x373   :  { %v7366_v9 = vadd.f32 %v7350_v58, %v7312_v54  ;;  %v7260_v22 = vadd.f32 %v7244_v45, %v7207_v32  ;;  %v7404_v56 = vmul.f32 %v13647_v53, %v7384_v51  ;;  %v7457_v16 = vmul.f32 %v13653_v26, %v7437_v4 }
 0x374   :  { %v7525_v34 = vmin.f32 %v7509_v38, 6.0  ;;  %v7471_v30 = vadd.f32 %v7455_v28, %v7418_v44  ;;  %v7155_v18 = vadd.f32 %v7139_v35, %v7102_v48  ;;  %v7034_v19 = vmul.f32 %v13525_v0, %v7331_v49 }
 0x375   :  { %v7419_v63 = vadd.f32 %v7403_v59, %v7366_v9  ;;  %v7313_v20 = vadd.f32 %v7297_v12, %v7260_v22  ;;  %v7245_v50 = vmul.f32 %v13708_v41, %v7384_v51  ;;  %v7087_v6 = vmul.f32 %v13532_v57, %v7384_v51 }
 0x376   :  { %10173 = vmatmul.mubr.msk.f32.gmra.mxu1 %vm6829_vm5, %v7525_v34  ;;  %v7494_v27 = vadd.f32 %v13748_v14, %v7471_v30  ;;  %v7208_v15 = vadd.f32 %v7192_v21, %v7155_v18  ;;  %v7298_v28 = vmul.f32 %v13716_v40, %v7437_v4  ;;  %v7140_v39 = vmul.f32 %v13579_v8, %v7437_v4  ;;  %v7333_v5 = vld [vmem:[#allocation4 + $0x120] sm:$0xff]  ;;  %v7334_v21 = vld [vmem:[#allocation4 + $0x130] sm:$0xff] }
 0x377   :  { %v7472_v33 = vadd.f32 %v7456_v29, %v7419_v63  ;;  %v7367_v2 = vadd.f32 %v7351_v36, %v7313_v20  ;;  %v7103_v31 = vadd.f32 %v7087_v6, %v7034_v19  ;;  %v7193_v1 = vmul.f32 %v13693_v62, %v7332_v42  ;;  %v7439_v35 = vld [vmem:[#allocation4 + $0x122] sm:$0xff]  ;;  %v7387_v30 = vld [vmem:[#allocation4 + $0x131] sm:$0xff] }
 0x378   :  { %v7510_v25 = vmax.f32 %v7494_v27, 0.0  ;;  %v7261_v3 = vadd.f32 %v7245_v50, %v7208_v15  ;;  %v7352_v17 = vmul.f32 %v13640_v13, %v7332_v42  ;;  %v7405_v61 = vmul.f32 %v13647_v53, %v7385_v11  ;;  %v7440_v50 = vld [vmem:[#allocation4 + $0x132] sm:$0xff] }
 0x379   :  { %v7495_v7 = vadd.f32 %v13748_v14, %v7472_v33  ;;  %v7420_v23 = vadd.f32 %v7404_v56, %v7367_v2  ;;  %v7156_v55 = vadd.f32 %v7140_v39, %v7103_v31  ;;  %v7246_v10 = vmul.f32 %v13708_v41, %v7385_v11 }
 0x37a   :  { %v7526_v58 = vmin.f32 %v7510_v25, 6.0  ;;  %v7314_v59 = vadd.f32 %v7298_v28, %v7261_v3  ;;  %v7035_v29 = vmul.f32 %v13525_v0, %v7332_v42  ;;  %v7088_v49 = vmul.f32 %v13532_v57, %v7385_v11  ;;  %v7386_v57 = vld [vmem:[#allocation4 + $0x121] sm:$0xff] }
 0x37b   :  { %v7511_v52 = vmax.f32 %v7495_v7, 0.0  ;;  %v7473_v46 = vadd.f32 %v7457_v16, %v7420_v23  ;;  %v7209_v60 = vadd.f32 %v7193_v1, %v7156_v55  ;;  %v7299_v43 = vmul.f32 %v13716_v40, %v7438_v47 }
 0x37c   :  { %10175 = vmatprep.mubr.msk.f32.mxu1 %vm6829_vm5, %v7526_v58  ;;  %v7368_v24 = vadd.f32 %v7352_v17, %v7314_v59  ;;  %v7104_v45 = vadd.f32 %v7088_v49, %v7035_v29  ;;  %v7141_v12 = vmul.f32 %v13579_v8, %v7438_v47  ;;  %v7194_v51 = vmul.f32 %v13693_v62, %v7333_v5  ;;  %v7802_v17 = vld [vmem:[%s13979_s7] sm:$0xff] }
 0x37d   :  { %v7527_v37 = vmin.f32 %v7511_v52, 6.0  ;;  %v7496_v38 = vadd.f32 %v13748_v14, %v7473_v46  ;;  %v7262_v54 = vadd.f32 %v7246_v10, %v7209_v60  ;;  %v7353_v0 = vmul.f32 %v13640_v13, %v7333_v5 }
 0x37e   :  { %v7421_v32 = vadd.f32 %v7405_v61, %v7368_v24  ;;  %v7458_v36 = vmul.f32 %v13653_v26, %v7438_v47  ;;  %v7157_v4 = vadd.f32 %v7141_v12, %v7104_v45  ;;  %v7247_v62 = vmul.f32 %v13708_v41, %v7386_v57  ;;  %v13847_v61 = vld [vmem:[%s13980_s6] ss:$0 sm:$0xff] }
 0x37f   :  { %10176 = vmatmul.mubr.msk.f32.gmra.mxu1 %vm6829_vm5, %v7527_v37  ;;  %v7512_v44 = vmax.f32 %v7496_v38, 0.0  ;;  %v7315_v48 = vadd.f32 %v7299_v43, %v7262_v54  ;;  %v7406_v56 = vmul.f32 %v13647_v53, %v7386_v57  ;;  %v7300_v42 = vmul.f32 %v13716_v40, %v7439_v35 }
 0x380   :  { %v7474_v8 = vadd.f32 %v7458_v36, %v7421_v32  ;;  %v7210_v34 = vadd.f32 %v7194_v51, %v7157_v4  ;;  %v7354_v19 = vmul.f32 %v13640_v13, %v7334_v21  ;;  %v7459_v20 = vmul.f32 %v13653_v26, %v7439_v35 }
 0x381   :  { %v7528_v9 = vmin.f32 %v7512_v44, 6.0  ;;  %v7369_v22 = vadd.f32 %v7353_v0, %v7315_v48  ;;  %v7407_v6 = vmul.f32 %v13647_v53, %v7387_v30  ;;  %v7460_v39 = vmul.f32 %v13653_v26, %v7440_v50  ;;  %v7805_v53 = vld [vmem:[%s13979_s7 + $0x18] sm:$0xff]  ;;  %v7804_v26 = vld [vmem:[%s13979_s7 + $0x10] sm:$0xff] }
 0x382   :  { %v7497_v16 = vadd.f32 %v13748_v14, %v7474_v8  ;;  %v7263_v18 = vadd.f32 %v7247_v62, %v7210_v34  ;;  %10184 = vmatprep.subr.mxu1 %v7805_v53 }
 0x383   :  { %10178 = vmatprep.mubr.msk.f32.mxu1 %vm6829_vm5, %v7528_v9  ;;  %v7422_v63 = vadd.f32 %v7406_v56, %v7369_v22  ;;  %10185 = vmatpush3.msra.mxu1 %v7805_v53 }
 0x384   :  { %v7513_v11 = vmax.f32 %v7497_v16, 0.0  ;;  %v7316_v41 = vadd.f32 %v7300_v42, %v7263_v18  ;;  %10186 = vmatprep.subr.mxu1 %v7804_v26 }
 0x385   :  { %v7475_v27 = vadd.f32 %v7459_v20, %v7422_v63  ;;  %10187 = vmatpush3.msra.mxu1 %v7804_v26 }
 0x386   :  { %v7529_v15 = vmin.f32 %v7513_v11, 6.0  ;;  %v7370_v28 = vadd.f32 %v7354_v19, %v7316_v41 }
 0x387   :  { %v7498_v33 = vadd.f32 %v13748_v14, %v7475_v27 }
 0x388   :  { %10179 = vmatmul.mubr.msk.f32.gmra.mxu1 %vm6829_vm5, %v7529_v15  ;;  %v7423_v13 = vadd.f32 %v7407_v6, %v7370_v28 }
 0x389   :  { %v7514_v40 = vmax.f32 %v7498_v33, 0.0 }
 0x38a   :  { %v7476_v2 = vadd.f32 %v7460_v39, %v7423_v13 }
 0x38b   :  { %v7530_v31 = vmin.f32 %v7514_v40, 6.0 }
 0x38c   :  { %v7499_v1 = vadd.f32 %v13748_v14, %v7476_v2  ;;  %v7803_v14 = vld [vmem:[%s13979_s7 + $0x8] sm:$0xff] }
 0x38d   :  { %10181 = vmatprep.mubr.msk.f32.mxu1 %vm6829_vm5, %v7530_v31  ;;  %10188 = vmatprep.subr.mxu1 %v7803_v14 }
 0x38e   :  { %v7515_v25 = vmax.f32 %v7499_v1, 0.0  ;;  %10189 = vmatpush3.msra.mxu1 %v7803_v14 }
 0x38f   :  { %10190 = vmatprep.subr.mxu1 %v7802_v17 }
 0x390   :  { %v7531_v3 = vmin.f32 %v7515_v25, 6.0  ;;  %10191 = vmatpush3.msra.mxu1 %v7802_v17 }
 0x392   :  { %10182 = vmatmul.mubr.msk.f32.gmra.mxu1 %vm6829_vm5, %v7531_v3 }
 0x3dd   :  { %v10162_v47 = vpop.f32.mrf.mxu1 }
 0x3de   :  { %v7661_v7 = vadd.f32 %v10162_v47, %v13847_v61 }
 0x3df   :  { %v7655_v23 = vpop.f32.mrf.mxu1 }
 0x3e0   :  { %v7735_v55 = vmax.f32 %v7661_v7, 0.0  ;;  %v7656_v10 = vadd.f32 %v13847_v61, %v7655_v23 }
 0x3e2   :  { %v7734_v5 = vmax.f32 %v7656_v10, 0.0  ;;  %v7751_v58 = vmin.f32 %v7735_v55, 6.0 }
 0x3e4   :  { %v7750_v59 = vmin.f32 %v7734_v5, 6.0 }
 0x3e6   :  { %v7766_v29 = vmax.f32 %v7750_v59, %v7751_v58 }
 0x3e8   :  { %7775 = vst.msk [vmem:[#allocation5] sm:$0xff] %vm7774_vm7, %v7766_v29 }
 0x3fd   :  { %v10165_v49 = vpop.f32.mrf.mxu1 }
 0x3fe   :  { %v7671_v52 = vadd.f32 %v10165_v49, %v13847_v61 }
 0x3ff   :  { %v7665_v46 = vpop.f32.mrf.mxu1 }
 0x400   :  { %v7737_v60 = vmax.f32 %v7671_v52, 0.0  ;;  %v7666_v43 = vadd.f32 %v13847_v61, %v7665_v46 }
 0x402   :  { %v7736_v24 = vmax.f32 %v7666_v43, 0.0  ;;  %v7753_v45 = vmin.f32 %v7737_v60, 6.0 }
 0x404   :  { %v7752_v12 = vmin.f32 %v7736_v24, 6.0 }
 0x406   :  { %v7767_v51 = vmax.f32 %v7752_v12, %v7753_v45 }
 0x408   :  { %7776 = vst.msk [vmem:[#allocation5 + $0x8] sm:$0xff] %vm7774_vm7, %v7767_v51 }
 0x40f   :  { %v7783_v38 = vld [vmem:[#allocation5] ss:$2 sm:$0xff]  ;;  %v7791_v54 = vld [vmem:[#allocation5 + $0x1] ss:$2 sm:$0xff] }
 0x410   :  { %v10168_v37 = vpop.f32.mrf.mxu1  ;;  %v7798_v57 = vmax.f32 %v7783_v38, %v7791_v54 }
 0x411   :  { %v7681_v0 = vadd.f32 %v10168_v37, %v13847_v61 }
 0x412   :  { %v7675_v32 = vpop.f32.mrf.mxu1  ;;  %10192 = vmatprep.mubr.msk.f32.mxu1 %vm7774_vm7, %v7798_v57 }
 0x413   :  { %v7739_v36 = vmax.f32 %v7681_v0, 0.0  ;;  %v7676_v4 = vadd.f32 %v13847_v61, %v7675_v32  ;;  %v13880_v0 = vld [vmem:[%s13981_s8] ss:$0 sm:$0xff] }
 0x415   :  { %v7738_v44 = vmax.f32 %v7676_v4, 0.0  ;;  %v7755_v48 = vmin.f32 %v7739_v36, 6.0 }
 0x417   :  { %v7754_v35 = vmin.f32 %v7738_v44, 6.0  ;;  %v7911_v44 = vlaneseq }
 0x419   :  { %v7768_v21 = vmax.f32 %v7754_v35, %v7755_v48  ;;  %v13892_v35 = vshrl.u32 %v7911_v44, 7 }
 0x41b   :  { %7777 = vst.msk [vmem:[#allocation5 + $0x10] sm:$0xff] %vm7774_vm7, %v7768_v21  ;;  %v7913_v21 = vadd.s32 8, %v13892_v35 }
 0x424   :  { %v10171_v8 = vpop.f32.mrf.mxu1 }
 0x425   :  { %v7691_v34 = vadd.f32 %v10171_v8, %v13847_v61  ;;  %v7925_v8 = vshra.s32 %v7913_v21, 2 }
 0x426   :  { %v7685_v62 = vpop.f32.mrf.mxu1 }
 0x427   :  { %v7741_v9 = vmax.f32 %v7691_v34, 0.0  ;;  %v7686_v22 = vadd.f32 %v13847_v61, %v7685_v62  ;;  %v7924_v62 = vshra.s32 %v13892_v35, 2 }
 0x429   :  { %v7740_v56 = vmax.f32 %v7686_v22, 0.0  ;;  %v7757_v30 = vmin.f32 %v7741_v9, 6.0  ;;  %v7938_v22 = vsub.s32 2, %v13892_v35 }
 0x42b   :  { %v7756_v16 = vmin.f32 %v7740_v56, 6.0 }
 0x42d   :  { %v7769_v18 = vmax.f32 %v7756_v16, %v7757_v30  ;;  %v7917_v30 = vand.u32 3, %v7913_v21  ;;  %v7929_v16 = vand.u32 3, %v7925_v8 }
 0x42f   :  { %7778 = vst.msk [vmem:[#allocation5 + $0x18] sm:$0xff] %vm7774_vm7, %v7769_v18  ;;  %v7946_v18 = vsub.s32 3, %v13892_v35 }
 0x436   :  { %v10174_v42 = vpop.f32.mrf.mxu1  ;;  %v7785_v19 = vld [vmem:[#allocation5 + $0x10] ss:$2 sm:$0xff]  ;;  %v7793_v63 = vld [vmem:[#allocation5 + $0x11] ss:$2 sm:$0xff] }
 0x437   :  { %v7701_v20 = vadd.f32 %v10174_v42, %v13847_v61  ;;  %v7799_v50 = vmax.f32 %v7785_v19, %v7793_v63  ;;  %v7910_v63 = vld [vmem:[%s13983_s9] sm:$0x1f] }
 0x438   :  { %v7695_v11 = vpop.f32.mrf.mxu1  ;;  %vm7988_vm9 = vcmp.gt.f32.partialorder %v7910_v63, 0.5 }
 0x439   :  { %v7743_v41 = vmax.f32 %v7701_v20, 0.0  ;;  %v7696_v6 = vadd.f32 %v13847_v61, %v7695_v11  ;;  %10193 = vmatmul.mubr.msk.f32.vlgmr.msra.gmra.mxu1 %vm7774_vm7, %v7799_v50  ;;  %v7916_v20 = vand.u32 3, %v13892_v35  ;;  %v7928_v50 = vand.u32 3, %v7924_v62 }
 0x43b   :  { %v7742_v27 = vmax.f32 %v7696_v6, 0.0  ;;  %v7759_v15 = vmin.f32 %v7743_v41, 6.0  ;;  %v13902_v41 = vrot.slane %v7910_v63, %v7938_v22  ;;  %v7921_v6 = vcvt.s32.f32 %v7917_v30 }
 0x43d   :  { %v7758_v28 = vmin.f32 %v7742_v27, 6.0  ;;  %v7933_v27 = vcvt.s32.f32 %v7929_v16 }
 0x43f   :  { %v7770_v39 = vmax.f32 %v7758_v28, %v7759_v15  ;;  %v10177_v33 = vpop.f32.mrf.mxu1  ;;  %v13904_v15 = vrot.slane %v7910_v63, %v7946_v18  ;;  %v7920_v28 = vcvt.s32.f32 %v7916_v20 }
 0x440   :  { %v7711_v13 = vadd.f32 %v10177_v33, %v13847_v61  ;;  %v7941_v33 = vmul.f32 %v13902_v41, %v7921_v6 }
 0x441   :  { %7779 = vst.msk [vmem:[#allocation5 + $0x20] sm:$0xff] %vm7774_vm7, %v7770_v39  ;;  %v7705_v40 = vpop.f32.mrf.mxu1  ;;  %v7932_v39 = vcvt.s32.f32 %v7928_v50 }
 0x442   :  { %v7745_v2 = vmax.f32 %v7711_v13, 0.0  ;;  %v7706_v31 = vadd.f32 %v13847_v61, %v7705_v40  ;;  %v7949_v13 = vmul.f32 %v13904_v15, %v7933_v27  ;;  %v8008_v40 = vsub.s32 1, %v13892_v35 }
 0x444   :  { %v7744_v1 = vmax.f32 %v7706_v31, 0.0  ;;  %v7761_v25 = vmin.f32 %v7745_v2, 6.0  ;;  %v7999_v2 = vsub.s32 4, %v13892_v35  ;;  %v10238_v31 = vmov 0  }
 0x446   :  { %v7760_v3 = vmin.f32 %v7744_v1, 6.0  ;;  %v8005_v1 = vsel %vm7988_vm9, 1, %v10238_v31 }
 0x448   :  { %v7771_v53 = vmax.f32 %v7760_v3, %v7761_v25  ;;  %v10180_v26 = vpop.f32.mrf.mxu1  ;;  %v8017_v25 = vsub.s32 0, %v13892_v35  ;;  %v7940_v3 = vmul.f32 %v13902_v41, %v7920_v28 }
 0x449   :  { %v7721_v14 = vadd.f32 %v10180_v26, %v13847_v61  ;;  %v7953_v26 = vadd.f32 %v7949_v13, %v7941_v33 }
 0x44a   :  { %7780 = vst.msk [vmem:[#allocation5 + $0x28] sm:$0xff] %vm7774_vm7, %v7771_v53  ;;  %v7715_v17 = vpop.f32.mrf.mxu1  ;;  %v7948_v53 = vmul.f32 %v13904_v15, %v7932_v39 }
 0x44b   :  { %v7747_v47 = vmax.f32 %v7721_v14, 0.0  ;;  %v7716_v7 = vadd.f32 %v13847_v61, %v7715_v17  ;;  %v13913_v14 = vrot.slane %v8005_v1, %v8008_v40  ;;  %v13915_v17 = vrot.slane %v7910_v63, %v7999_v2 }
 0x44d   :  { %v7746_v23 = vmax.f32 %v7716_v7, 0.0  ;;  %v7763_v55 = vmin.f32 %v7747_v47, 6.0  ;;  %v13917_v47 = vrot.slane %v8005_v1, %v8017_v25  ;;  %vm8010_vm10 = vcmp.eq.s32.totalorder %v13913_v14, 1 }
 0x44f   :  { %v7762_v10 = vmin.f32 %v7746_v23, 6.0  ;;  %v7952_v23 = vadd.f32 %v7948_v53, %v7940_v3  ;;  %vm8019_vm11 = vcmp.eq.s32.totalorder %v13917_v47, 1 }
 0x451   :  { %v7772_v5 = vmax.f32 %v7762_v10, %v7763_v55  ;;  %v7787_v58 = vld [vmem:[#allocation5 + $0x20] ss:$2 sm:$0xff]  ;;  %v7795_v59 = vld [vmem:[#allocation5 + $0x21] ss:$2 sm:$0xff] }
 0x452   :  { %v7800_v29 = vmax.f32 %v7787_v58, %v7795_v59  ;;  %v10183_v49 = vpop.f32.mrf.mxu1 }
 0x453   :  { %7781 = vst.msk [vmem:[#allocation5 + $0x30] sm:$0xff] %vm7774_vm7, %v7772_v5  ;;  %v7731_v52 = vadd.f32 %v10183_v49, %v13847_v61 }
 0x454   :  { %10195 = vmatprep.mubr.msk.f32.mxu1 %vm7774_vm7, %v7800_v29  ;;  %v7725_v46 = vpop.f32.mrf.mxu1 }
 0x455   :  { %v7749_v60 = vmax.f32 %v7731_v52, 0.0  ;;  %v7726_v43 = vadd.f32 %v13847_v61, %v7725_v46 }
 0x457   :  { %v7748_v24 = vmax.f32 %v7726_v43, 0.0  ;;  %v7765_v45 = vmin.f32 %v7749_v60, 6.0 }
 0x459   :  { %v7764_v12 = vmin.f32 %v7748_v24, 6.0 }
 0x45b   :  { %v7773_v51 = vmax.f32 %v7764_v12, %v7765_v45 }
 0x45d   :  { %7782 = vst.msk [vmem:[#allocation5 + $0x38] sm:$0xff] %vm7774_vm7, %v7773_v51 }
 0x464   :  { %v7789_v37 = vld [vmem:[#allocation5 + $0x30] ss:$2 sm:$0xff]  ;;  %v7797_v38 = vld [vmem:[#allocation5 + $0x31] ss:$2 sm:$0xff] }
 0x465   :  { %v7801_v54 = vmax.f32 %v7789_v37, %v7797_v38 }
 0x467   :  { %10196 = vmatmul.mubr.msk.f32.gmra.mxu1 %vm7774_vm7, %v7801_v54 }
 0x4f9   :  { %v10194_v57 = vpop.f32.mrf.mxu1 }
 0x4fa   :  { %v7897_v61 = vadd.f32 %v10194_v57, %v13880_v0 }
 0x4fb   :  { %v7891_v32 = vpop.f32.mrf.mxu1 }
 0x4fc   :  { %v8660_v36 = vmul.f32 -1.442695, %v7897_v61  ;;  %8030 = vst.msk [vmem:[%s13982_s11 + $0x8] sm:$0xff] %vm8024_vm8, %v7897_v61  ;;  %v7892_v4 = vadd.f32 %v13880_v0, %v7891_v32  ;;  %v7982_v34 = vmul.f32 1.442695, %v7897_v61  ;;  %v7915_v61 = vadd.s32 24, %v13892_v35 }
 0x4fd   :  { %v7914_v32 = vadd.s32 16, %v13892_v35 }
 0x4fe   :  { %10202 = vpow2.f32 %v8660_v36  ;;  %v8659_v48 = vmul.f32 -1.442695, %v7892_v4  ;;  %8029 = vst.msk [vmem:[%s13982_s11] sm:$0xff] %vm8024_vm8, %v7892_v4  ;;  %v7980_v56 = vmul.f32 1.442695, %v7892_v4  ;;  %v7927_v36 = vshra.s32 %v7915_v61, 2 }
 0x4ff   :  { %v7926_v44 = vshra.s32 %v7914_v32, 2  ;;  %v7919_v8 = vand.u32 3, %v7915_v61 }
 0x500   :  { %10204 = vpow2.f32 %v8659_v48 }
 0x501   :  { %10206 = vpow2.f32 %v7982_v34  ;;  %v7931_v34 = vand.u32 3, %v7927_v36  ;;  %v7930_v22 = vand.u32 3, %v7926_v44  ;;  %v7923_v30 = vcvt.s32.f32 %v7919_v8 }
 0x503   :  { %v7935_v16 = vcvt.s32.f32 %v7931_v34  ;;  %v7934_v35 = vcvt.s32.f32 %v7930_v22 }
 0x505   :  { %v7950_v20 = vmul.f32 %v13904_v15, %v7934_v35 }
 0x50b   :  { %v10203_v9 = vpop.eup %10202 }
 0x50c   :  { %v7969_v42 = vadd.f32 1.0, %v10203_v9  ;;  %v7918_v9 = vand.u32 3, %v7914_v32 }
 0x50d   :  { %v10205_v19 = vpop.eup %10204 }
 0x50e   :  { %10208 = vrcp.f32 %v7969_v42  ;;  %v7968_v11 = vadd.f32 1.0, %v10205_v19  ;;  %v10207_v7 = vpop.eup %10206  ;;  %v7922_v18 = vcvt.s32.f32 %v7918_v9  ;;  %v7943_v42 = vmul.f32 %v13902_v41, %v7923_v30 }
 0x50f   :  { %10210 = vpow2.f32 %v7980_v56  ;;  %v8002_v59 = vmul.f32 %v10207_v7, %v13915_v17  ;;  %v7951_v19 = vmul.f32 %v13904_v15, %v7935_v16 }
 0x510   :  { %10212 = vrcp.f32 %v7968_v11  ;;  %v7942_v63 = vmul.f32 %v13902_v41, %v7922_v18 }
 0x511   :  { %v7955_v50 = vadd.f32 %v7951_v19, %v7943_v42 }
 0x512   :  { %v7954_v6 = vadd.f32 %v7950_v20, %v7942_v63 }
 0x51b   :  { %v10209_v55 = vpop.eup %10208 }
 0x51c   :  { %v10211_v10 = vpop.eup %10210  ;;  %v7990_v5 = vadd.f32 %v10209_v55, %v7953_v26  ;;  %v8012_v52 = vsel %vm8010_vm10, %v8002_v59, %v10209_v55 }
 0x51d   :  { %v10213_v58 = vpop.eup %10212  ;;  %v8001_v46 = vmul.f32 %v10211_v10, %v13915_v17 }
 0x51e   :  { %v7994_v29 = vmul.f32 4.0, %v7990_v5  ;;  %v7989_v49 = vadd.f32 %v10213_v58, %v7952_v23 }
 0x51f   :  { %v8011_v24 = vsel %vm8010_vm10, %v8001_v46, %v10213_v58 }
 0x520   :  { %v8021_v60 = vsel %vm8019_vm11, %v7994_v29, %v8012_v52  ;;  %v7993_v43 = vmul.f32 4.0, %v7989_v49 }
 0x521   :  { %8026 = vst.msk [vmem:[%s13984_s10 + $0x8] sm:$0xff] %vm8024_vm8, %v8021_v60 }
 0x522   :  { %v8020_v45 = vsel %vm8019_vm11, %v7993_v43, %v8011_v24 }
 0x523   :  { %8025 = vst.msk [vmem:[%s13984_s10] sm:$0xff] %vm8024_vm8, %v8020_v45 }
 0x527   :  { %v10197_v12 = vpop.f32.mrf.mxu1 }
 0x528   :  { %v7907_v51 = vadd.f32 %v10197_v12, %v13880_v0 }
 0x529   :  { %v7901_v37 = vpop.f32.mrf.mxu1 }
 0x52a   :  { %v8662_v38 = vmul.f32 -1.442695, %v7907_v51  ;;  %8032 = vst.msk [vmem:[%s13982_s11 + $0x18] sm:$0xff] %vm8024_vm8, %v7907_v51  ;;  %v7902_v54 = vadd.f32 %v13880_v0, %v7901_v37  ;;  %v7986_v4 = vmul.f32 1.442695, %v7907_v51 }
 0x52c   :  { %10214 = vpow2.f32 %v8662_v38  ;;  %v8661_v57 = vmul.f32 -1.442695, %v7902_v54  ;;  %8031 = vst.msk [vmem:[%s13982_s11 + $0x10] sm:$0xff] %vm8024_vm8, %v7902_v54  ;;  %v7984_v21 = vmul.f32 1.442695, %v7902_v54 }
 0x52e   :  { %10216 = vpow2.f32 %v8661_v57 }
 0x52f   :  { %10218 = vpow2.f32 %v7986_v4 }
 0x539   :  { %v10215_v48 = vpop.eup %10214 }
 0x53a   :  { %v7971_v0 = vadd.f32 1.0, %v10215_v48 }
 0x53b   :  { %v10217_v62 = vpop.eup %10216 }
 0x53c   :  { %10220 = vrcp.f32 %v7971_v0  ;;  %v7970_v56 = vadd.f32 1.0, %v10217_v62  ;;  %v10219_v11 = vpop.eup %10218 }
 0x53d   :  { %10222 = vpow2.f32 %v7984_v21  ;;  %v8004_v13 = vmul.f32 %v10219_v11, %v13915_v17 }
 0x53e   :  { %10224 = vrcp.f32 %v7970_v56 }
 0x549   :  { %v10221_v27 = vpop.eup %10220 }
 0x54a   :  { %v10223_v28 = vpop.eup %10222  ;;  %v7992_v39 = vadd.f32 %v10221_v27, %v7955_v50  ;;  %v8014_v31 = vsel %vm8010_vm10, %v8004_v13, %v10221_v27 }
 0x54b   :  { %v10225_v33 = vpop.eup %10224  ;;  %v8003_v1 = vmul.f32 %v10223_v28, %v13915_v17 }
 0x54c   :  { %v7996_v40 = vmul.f32 4.0, %v7992_v39  ;;  %v7991_v2 = vadd.f32 %v10225_v33, %v7954_v6 }
 0x54d   :  { %v8013_v25 = vsel %vm8010_vm10, %v8003_v1, %v10225_v33 }
 0x54e   :  { %v8023_v41 = vsel %vm8019_vm11, %v7996_v40, %v8014_v31  ;;  %v7995_v15 = vmul.f32 4.0, %v7991_v2 }
 0x54f   :  { %8028 = vst.msk [vmem:[%s13984_s10 + $0x18] sm:$0xff] %vm8024_vm8, %v8023_v41 }
 0x550   :  { %v8022_v3 = vsel %vm8019_vm11, %v7995_v15, %v8013_v25 }
 0x551   :  { %8027 = vst.msk [vmem:[%s13984_s10 + $0x10] sm:$0xff] %vm8024_vm8, %v8022_v3 }

</bundles_post_ra>
